<compile_context>
chip_gen: v7x
topology: tpu7x:2x2x1
jax: 0.10.0
libtpu: 0.0.40
codegen_flags: <defaults>
</compile_context>

<pallas_src>
import jax
import jax.numpy as jnp
from jax.experimental import pallas as pl
from jax.experimental.pallas import tpu as pltpu

_EPS = 1e-5


def _pick_tile_m(m):
    """Largest row tile (multiple of 8) dividing M that still gives a grid >= 2."""
    for t in (1024, 512, 256, 128, 64, 32, 16, 8):
        if t < m and m % t == 0:
            return t
    return m


# ---------------------------------------------------------------------------
# Kernel 1: per-channel partial sum / sum-of-squares over one row tile.
# ---------------------------------------------------------------------------
def _stats_kernel(x_ref, s_ref):
    x = x_ref[...]                                              # (TILE_M, C) f32
    s_ref[:, 0:1, :] = jnp.sum(x, axis=0, keepdims=True)[None]
    s_ref[:, 1:2, :] = jnp.sum(x * x, axis=0, keepdims=True)[None]


def _channel_stats(x2d, tile_m):
    """Global per-channel mean / biased variance via tiled partial sums."""
    m, c = x2d.shape
    nt = m // tile_m
    partial = pl.pallas_call(
        _stats_kernel,
        out_shape=jax.ShapeDtypeStruct((nt, 2, c), jnp.float32),
        grid=(nt,),
        in_specs=[pl.BlockSpec((tile_m, c), lambda i: (i, 0))],
        out_specs=pl.BlockSpec((1, 2, c), lambda i: (i, 0, 0)),
        compiler_params=pltpu.CompilerParams(dimension_semantics=("parallel",)),
    )(x2d)
    tot = jnp.sum(partial, axis=0)                              # (2, C) tiny reduce
    mean = tot[0] / m
    var = tot[1] / m - mean * mean                              # biased (train mode)
    return mean, var


def _bn_affine(mean, var, gamma, beta):
    """Fold BN(batch stats) + affine into a per-channel scale/shift pair."""
    scale = gamma * jax.lax.rsqrt(var + _EPS)                   # (1, C)
    shift = beta - mean * scale                                 # (1, C)
    return scale, shift


# ---------------------------------------------------------------------------
# Kernel 2: BN1-normalize + ReLU + 1x1 conv (+bias), fused partial BN2 stats.
# ---------------------------------------------------------------------------
def _bn_relu_conv1x1_kernel(x_ref, scale1_ref, shift1_ref, w1_ref, cb1_ref,
                            y_ref, ystats_ref):
    x = x_ref[...]                                              # (TILE_M, Cin) f32
    h = jnp.maximum(x * scale1_ref[...] + shift1_ref[...], 0.0)
    # 1x1 conv == per-pixel channel matmul on the MXU (bf16 in, f32 accumulate).
    y = jnp.dot(h.astype(jnp.bfloat16), w1_ref[...],
                preferred_element_type=jnp.float32) + cb1_ref[...]
    y_ref[...] = y
    # Partial BN2 statistics of this tile (reduced across tiles in the wrapper).
    ystats_ref[:, 0:1, :] = jnp.sum(y, axis=0, keepdims=True)[None]
    ystats_ref[:, 1:2, :] = jnp.sum(y * y, axis=0, keepdims=True)[None]


# ---------------------------------------------------------------------------
# Kernel 3: BN2-normalize + ReLU + 3x3 conv (pad=1) for one image.
# Padding is written into a VMEM scratch; 9 taps accumulate into f32 scratch.
# ---------------------------------------------------------------------------
def _bn_relu_conv3x3_kernel(y_ref, scale2_ref, shift2_ref, w3_ref, cb3_ref,
                            o_ref, xpad_ref, acc_ref):
    _, hh, ww, c4 = y_ref.shape
    y2 = y_ref[...].reshape(hh * ww, c4)                        # (H*W, C4) f32
    act = jnp.maximum(y2 * scale2_ref[...] + shift2_ref[...], 0.0)

    # In-kernel zero padding (replaces jnp.pad + extra HBM round trip).
    xpad_ref[...] = jnp.zeros_like(xpad_ref)
    xpad_ref[1:hh + 1, 1:ww + 1, :] = act.reshape(hh, ww, c4).astype(jnp.bfloat16)
    xp = xpad_ref[...]                                          # (H+2, W+2, C4) bf16

    acc_ref[...] = jnp.zeros_like(acc_ref)
    for ky in range(3):                                         # statically unrolled
        for kx in range(3):
            patch = xp[ky:ky + hh, kx:kx + ww, :].reshape(hh * ww, c4)
            acc_ref[...] += jnp.dot(patch, w3_ref[ky, kx],
                                    preferred_element_type=jnp.float32)
    # TODO(synk): present a lane-dense (H, W*G) output slab and fuse the
    # channel-concat write via input_output_aliases to remove masked stores
    # and the per-layer concat copy.
    o_ref[...] = (acc_ref[...] + cb3_ref[...])[None]            # (1, H*W, G)


# ---------------------------------------------------------------------------
# One dense_layer: concat(x, conv3x3(relu(bn2(conv1x1(relu(bn1(x)))))))
# ---------------------------------------------------------------------------
def dense_layer_forward(x_nhwc, p):
    n, h, w, cin = x_nhwc.shape
    c4 = p["w1"].shape[1]
    g = p["w3"].shape[-1]
    m = n * h * w
    tile_m = _pick_tile_m(m)
    nt = m // tile_m

    x2d = x_nhwc.reshape(m, cin)

    # ---- BN1 global batch statistics (tiled single-sweep sum / sumsq) ----
    mean1, var1 = _channel_stats(x2d, tile_m)
    scale1, shift1 = _bn_affine(mean1, var1, p["g1"], p["b1"])

    # ---- BN1-normalize + ReLU + 1x1 conv, with fused partial BN2 stats ----
    w1_bf16 = p["w1"].astype(jnp.bfloat16)
    y2d, ystats = pl.pallas_call(
        _bn_relu_conv1x1_kernel,
        out_shape=(jax.ShapeDtypeStruct((m, c4), jnp.float32),
                   jax.ShapeDtypeStruct((nt, 2, c4), jnp.float32)),
        grid=(nt,),
        in_specs=[
            pl.BlockSpec((tile_m, cin), lambda i: (i, 0)),
            pl.BlockSpec((1, cin), lambda i: (0, 0)),
            pl.BlockSpec((1, cin), lambda i: (0, 0)),
            pl.BlockSpec((cin, c4), lambda i: (0, 0)),
            pl.BlockSpec((1, c4), lambda i: (0, 0)),
        ],
        out_specs=(pl.BlockSpec((tile_m, c4), lambda i: (i, 0)),
                   pl.BlockSpec((1, 2, c4), lambda i: (i, 0, 0))),
        compiler_params=pltpu.CompilerParams(dimension_semantics=("parallel",)),
    )(x2d, scale1, shift1, w1_bf16, p["cb1"])

    ytot = jnp.sum(ystats, axis=0)                              # (2, C4)
    mean2 = ytot[0] / m
    var2 = ytot[1] / m - mean2 * mean2
    scale2, shift2 = _bn_affine(mean2, var2, p["g2"], p["b2"])

    # ---- BN2-normalize + ReLU + 3x3 conv (pad handled in-kernel) ----
    w3_bf16 = p["w3"].astype(jnp.bfloat16)
    y_nhwc = y2d.reshape(n, h, w, c4)
    new_flat = pl.pallas_call(
        _bn_relu_conv3x3_kernel,
        out_shape=jax.ShapeDtypeStruct((n, h * w, g), jnp.float32),
        grid=(n,),
        in_specs=[
            pl.BlockSpec((1, h, w, c4), lambda b: (b, 0, 0, 0)),
            pl.BlockSpec((1, c4), lambda b: (0, 0)),
            pl.BlockSpec((1, c4), lambda b: (0, 0)),
            pl.BlockSpec((3, 3, c4, g), lambda b: (0, 0, 0, 0)),
            pl.BlockSpec((1, g), lambda b: (0, 0)),
        ],
        out_specs=pl.BlockSpec((1, h * w, g), lambda b: (b, 0, 0)),
        scratch_shapes=[pltpu.VMEM((h + 2, w + 2, c4), jnp.bfloat16),
                        pltpu.VMEM((h * w, g), jnp.float32)],
        compiler_params=pltpu.CompilerParams(dimension_semantics=("parallel",)),
    )(y_nhwc, scale2, shift2, w3_bf16, p["cb3"])
    new_feats = new_flat.reshape(n, h, w, g)

    # torch.cat([feature_maps, x], dim=1): feature_maps IS the original input,
    # so original channels come first, new feature maps appended (last dim in NHWC).
    # TODO(synk): eliminate this O(num_layers^2) copy by writing the new channels
    # straight into a preallocated (N,H,W,C_total) buffer via input_output_aliases.
    return jnp.concatenate([x_nhwc, new_feats], axis=-1)


def dense_block_forward(x_nchw, params):
    x = jnp.transpose(x_nchw, (0, 2, 3, 1))   # NCHW -> NHWC
    for p in params:
        x = dense_layer_forward(x, p)
    return jnp.transpose(x, (0, 3, 1, 2))     # NHWC -> NCHW


def init_dense_block_params(key, num_layers, in_channels, growth_rate):
    """Deterministic synthetic parameters (shapes match the PyTorch module)."""
    params = []
    for i in range(num_layers):
        cin = in_channels + i * growth_rate
        c4 = 4 * growth_rate
        key, *ks = jax.random.split(key, 9)
        scale1 = 1.0 / jnp.sqrt(jnp.float32(cin))
        scale3 = 1.0 / jnp.sqrt(jnp.float32(9 * c4))
        params.append({
            # BatchNorm affine params (perturbed so the affine path is exercised).
            "g1": 1.0 + 0.1 * jax.random.normal(ks[0], (1, cin), jnp.float32),
            "b1": 0.1 * jax.random.normal(ks[1], (1, cin), jnp.float32),
            # conv_1x1: PyTorch weight (c4, cin, 1, 1) -> stored as (cin, c4).
            "w1": scale1 * jax.random.normal(ks[2], (cin, c4), jnp.float32),
            "cb1": 0.1 * jax.random.normal(ks[3], (1, c4), jnp.float32),
            "g2": 1.0 + 0.1 * jax.random.normal(ks[4], (1, c4), jnp.float32),
            "b2": 0.1 * jax.random.normal(ks[5], (1, c4), jnp.float32),
            # conv_3x3: PyTorch weight (g, c4, 3, 3) -> stored HWIO (3,3,c4,g).
            "w3": scale3 * jax.random.normal(
                ks[6], (3, 3, c4, growth_rate), jnp.float32),
            "cb3": 0.1 * jax.random.normal(ks[7], (1, growth_rate), jnp.float32),
        })
    return params


if __name__ == "__main__":
    num_layers, in_channels, growth_rate = 3, 4, 4
    n, hh, ww = 2, 16, 16

    key = jax.random.PRNGKey(0)
    kx, kp = jax.random.split(key)
    x = jax.random.normal(kx, (n, in_channels, hh, ww), jnp.float32)
    params = init_dense_block_params(kp, num_layers, in_channels, growth_rate)

    out = jax.jit(dense_block_forward)(x, params)
    out = jax.block_until_ready(out)

    expected_c = in_channels + num_layers * growth_rate
    assert out.shape == (n, expected_c, hh, ww), out.shape
    assert out.dtype == jnp.float32
    assert bool(jnp.all(jnp.isfinite(out)))
    print("KERNEL_OK")
</pallas_src>

<mosaic_0001>
module attributes {stable_mosaic.version = 11 : i64} {
  func.func @_stats_kernel(%arg0: i32, %arg1: memref<256x4xf32, #tpu.memory_space<vmem>>, %arg2: memref<1x2x4xf32, #tpu.memory_space<vmem>>) attributes {dimension_semantics = [#tpu.dimension_semantics<parallel>], iteration_bounds = array<i64: 2>, scalar_prefetch = 0 : i64, scratch_operands = 0 : i64, tpu.core_type = #tpu.core_type<tc>, window_params = [{transform_indices = @transform_0, window_bounds = array<i64: 256, 4>}, {transform_indices = @transform_1, window_bounds = array<i64: 1, 2, 4>}]} {
    %c0 = arith.constant 0 : index
    %c0_0 = arith.constant 0 : index
    %0 = vector.load %arg1[%c0, %c0_0] : memref<256x4xf32, #tpu.memory_space<vmem>>, vector<256x4xf32>
    %cst = arith.constant dense<0.000000e+00> : vector<4xf32>
    %1 = vector.multi_reduction <add>, %0, %cst [0] : vector<256x4xf32> to vector<4xf32>
    %2 = vector.shape_cast %1 : vector<4xf32> to vector<1x4xf32>
    %3 = vector.shape_cast %2 : vector<1x4xf32> to vector<1x1x4xf32>
    %c0_1 = arith.constant 0 : index
    %c0_2 = arith.constant 0 : index
    %c0_3 = arith.constant 0 : index
    %4 = vector.load %arg2[%c0_1, %c0_2, %c0_3] : memref<1x2x4xf32, #tpu.memory_space<vmem>>, vector<1x1x4xf32>
    tpu.vector_store %arg2[%c0_1, %c0_2, %c0_3], %3 {strides = array<i32>} : memref<1x2x4xf32, #tpu.memory_space<vmem>>, vector<1x1x4xf32>,
    %5 = arith.mulf %0, %0 : vector<256x4xf32>
    %cst_4 = arith.constant dense<0.000000e+00> : vector<4xf32>
    %6 = vector.multi_reduction <add>, %5, %cst_4 [0] : vector<256x4xf32> to vector<4xf32>
    %7 = vector.shape_cast %6 : vector<4xf32> to vector<1x4xf32>
    %8 = vector.shape_cast %7 : vector<1x4xf32> to vector<1x1x4xf32>
    %c0_5 = arith.constant 0 : index
    %c1 = arith.constant 1 : index
    %c0_6 = arith.constant 0 : index
    %9 = vector.load %arg2[%c0_5, %c1, %c0_6] : memref<1x2x4xf32, #tpu.memory_space<vmem>>, vector<1x1x4xf32>
    tpu.vector_store %arg2[%c0_5, %c1, %c0_6], %8 {strides = array<i32>} : memref<1x2x4xf32, #tpu.memory_space<vmem>>, vector<1x1x4xf32>,
    return
  }
  func.func @transform_0(%arg0: i32) -> (i32, i32) {
    %c0_i32 = arith.constant 0 : i32
    %c0_i32_0 = arith.constant 0 : i32
    return %arg0, %c0_i32 : i32, i32
  }
  func.func @transform_1(%arg0: i32) -> (i32, i32, i32) {
    %c0_i32 = arith.constant 0 : i32
    %c0_i32_0 = arith.constant 0 : i32
    %c0_i32_1 = arith.constant 0 : i32
    return %arg0, %c0_i32, %c0_i32_0 : i32, i32, i32
  }
}

module attributes {stable_mosaic.version = 11 : i64} {
  func.func @_bn_relu_conv3x3_kernel(%arg0: i32, %arg1: memref<1x16x16x16xf32, #tpu.memory_space<vmem>>, %arg2: memref<1x16xf32, #tpu.memory_space<vmem>>, %arg3: memref<1x16xf32, #tpu.memory_space<vmem>>, %arg4: memref<3x3x16x4xbf16, #tpu.memory_space<vmem>>, %arg5: memref<1x4xf32, #tpu.memory_space<vmem>>, %arg6: memref<1x256x4xf32, #tpu.memory_space<vmem>>, %arg7: memref<18x18x16xbf16, #tpu.memory_space<vmem>>, %arg8: memref<256x4xf32, #tpu.memory_space<vmem>>) attributes {dimension_semantics = [#tpu.dimension_semantics<parallel>], iteration_bounds = array<i64: 2>, scalar_prefetch = 0 : i64, scratch_operands = 2 : i64, tpu.core_type = #tpu.core_type<tc>, window_params = [{transform_indices = @transform_0, window_bounds = array<i64: 1, 16, 16, 16>}, {pipeline_mode = #tpu.pipeline_mode<synchronous>, transform_indices = @transform_1, window_bounds = array<i64: 1, 16>}, {pipeline_mode = #tpu.pipeline_mode<synchronous>, transform_indices = @transform_2, window_bounds = array<i64: 1, 16>}, {pipeline_mode = #tpu.pipeline_mode<synchronous>, transform_indices = @transform_3, window_bounds = array<i64: 3, 3, 16, 4>}, {pipeline_mode = #tpu.pipeline_mode<synchronous>, transform_indices = @transform_4, window_bounds = array<i64: 1, 4>}, {transform_indices = @transform_5, window_bounds = array<i64: 1, 256, 4>}]} {
    %c0 = arith.constant 0 : index
    %c0_0 = arith.constant 0 : index
    %c0_1 = arith.constant 0 : index
    %c0_2 = arith.constant 0 : index
    %0 = vector.load %arg1[%c0, %c0_0, %c0_1, %c0_2] : memref<1x16x16x16xf32, #tpu.memory_space<vmem>>, vector<1x16x16x16xf32>
    %1 = vector.shape_cast %0 : vector<1x16x16x16xf32> to vector<256x16xf32>
    %c0_3 = arith.constant 0 : index
    %c0_4 = arith.constant 0 : index
    %2 = vector.load %arg2[%c0_3, %c0_4] : memref<1x16xf32, #tpu.memory_space<vmem>>, vector<1x16xf32>
    %3 = vector.broadcast %2 : vector<1x16xf32> to vector<256x16xf32>
    %4 = arith.mulf %1, %3 : vector<256x16xf32>
    %c0_5 = arith.constant 0 : index
    %c0_6 = arith.constant 0 : index
    %5 = vector.load %arg3[%c0_5, %c0_6] : memref<1x16xf32, #tpu.memory_space<vmem>>, vector<1x16xf32>
    %6 = vector.broadcast %5 : vector<1x16xf32> to vector<256x16xf32>
    %7 = arith.addf %4, %6 : vector<256x16xf32>
    %cst = arith.constant 0.000000e+00 : f32
    %8 = vector.broadcast %cst : f32 to vector<256x16xf32>
    %9 = arith.maximumf %7, %8 : vector<256x16xf32>
    %cst_7 = arith.constant 0.000000e+00 : bf16
    %10 = vector.broadcast %cst_7 : bf16 to vector<18x18x16xbf16>
    %c0_8 = arith.constant 0 : index
    %c0_9 = arith.constant 0 : index
    %c0_10 = arith.constant 0 : index
    %11 = vector.load %arg7[%c0_8, %c0_9, %c0_10] : memref<18x18x16xbf16, #tpu.memory_space<vmem>>, vector<18x18x16xbf16>
    tpu.vector_store %arg7[%c0_8, %c0_9, %c0_10], %10 {strides = array<i32>} : memref<18x18x16xbf16, #tpu.memory_space<vmem>>, vector<18x18x16xbf16>,
    %12 = vector.shape_cast %9 : vector<256x16xf32> to vector<16x16x16xf32>
    %13 = arith.truncf %12 : vector<16x16x16xf32> to vector<16x16x16xbf16>
    %c1 = arith.constant 1 : index
    %c1_11 = arith.constant 1 : index
    %c0_12 = arith.constant 0 : index
    %14 = vector.load %arg7[%c1, %c1_11, %c0_12] : memref<18x18x16xbf16, #tpu.memory_space<vmem>>, vector<16x16x16xbf16>
    tpu.vector_store %arg7[%c1, %c1_11, %c0_12], %13 {strides = array<i32>} : memref<18x18x16xbf16, #tpu.memory_space<vmem>>, vector<16x16x16xbf16>,
    %c0_13 = arith.constant 0 : index
    %c0_14 = arith.constant 0 : index
    %c0_15 = arith.constant 0 : index
    %15 = vector.load %arg7[%c0_13, %c0_14, %c0_15] : memref<18x18x16xbf16, #tpu.memory_space<vmem>>, vector<18x18x16xbf16>
    %cst_16 = arith.constant 0.000000e+00 : f32
    %16 = vector.broadcast %cst_16 : f32 to vector<256x4xf32>
    %c0_17 = arith.constant 0 : index
    %c0_18 = arith.constant 0 : index
    %17 = vector.load %arg8[%c0_17, %c0_18] : memref<256x4xf32, #tpu.memory_space<vmem>>, vector<256x4xf32>
    tpu.vector_store %arg8[%c0_17, %c0_18], %16 {strides = array<i32>} : memref<256x4xf32, #tpu.memory_space<vmem>>, vector<256x4xf32>,
    %18 = vector.extract_strided_slice %15 {offsets = [0, 0, 0], sizes = [16, 16, 16], strides = [1, 1, 1]} : vector<18x18x16xbf16> to vector<16x16x16xbf16>
    %19 = vector.shape_cast %18 : vector<16x16x16xbf16> to vector<256x16xbf16>
    %c0_19 = arith.constant 0 : index
    %c0_20 = arith.constant 0 : index
    %20 = vector.load %arg8[%c0_19, %c0_20] : memref<256x4xf32, #tpu.memory_space<vmem>>, vector<256x4xf32>
    %c0_21 = arith.constant 0 : index
    %c0_22 = arith.constant 0 : index
    %c0_23 = arith.constant 0 : index
    %c0_24 = arith.constant 0 : index
    %21 = vector.load %arg4[%c0_21, %c0_22, %c0_23, %c0_24] : memref<3x3x16x4xbf16, #tpu.memory_space<vmem>>, vector<1x1x16x4xbf16>
    %22 = vector.shape_cast %21 : vector<1x1x16x4xbf16> to vector<16x4xbf16>
    %cst_25 = arith.constant dense<0.000000e+00> : vector<256x4xf32>
    %23 = tpu.matmul %19, %22, %cst_25 {dimension_numbers = #tpu.dot_dimension_numbers<[1], [0], [0], [1], [0, 0, 1, 1], [], []>} : vector<256x16xbf16>, vector<16x4xbf16>, vector<256x4xf32> -> vector<256x4xf32>
    %24 = arith.addf %20, %23 : vector<256x4xf32>
    %c0_26 = arith.constant 0 : index
    %c0_27 = arith.constant 0 : index
    %25 = vector.load %arg8[%c0_26, %c0_27] : memref<256x4xf32, #tpu.memory_space<vmem>>, vector<256x4xf32>
    tpu.vector_store %arg8[%c0_26, %c0_27], %24 {strides = array<i32>} : memref<256x4xf32, #tpu.memory_space<vmem>>, vector<256x4xf32>,
    %26 = vector.extract_strided_slice %15 {offsets = [0, 1, 0], sizes = [16, 16, 16], strides = [1, 1, 1]} : vector<18x18x16xbf16> to vector<16x16x16xbf16>
    %27 = vector.shape_cast %26 : vector<16x16x16xbf16> to vector<256x16xbf16>
    %c0_28 = arith.constant 0 : index
    %c0_29 = arith.constant 0 : index
    %28 = vector.load %arg8[%c0_28, %c0_29] : memref<256x4xf32, #tpu.memory_space<vmem>>, vector<256x4xf32>
    %c0_30 = arith.constant 0 : index
    %c1_31 = arith.constant 1 : index
    %c0_32 = arith.constant 0 : index
    %c0_33 = arith.constant 0 : index
    %29 = vector.load %arg4[%c0_30, %c1_31, %c0_32, %c0_33] : memref<3x3x16x4xbf16, #tpu.memory_space<vmem>>, vector<1x1x16x4xbf16>
    %30 = vector.shape_cast %29 : vector<1x1x16x4xbf16> to vector<16x4xbf16>
    %cst_34 = arith.constant dense<0.000000e+00> : vector<256x4xf32>
    %31 = tpu.matmul %27, %30, %cst_34 {dimension_numbers = #tpu.dot_dimension_numbers<[1], [0], [0], [1], [0, 0, 1, 1], [], []>} : vector<256x16xbf16>, vector<16x4xbf16>, vector<256x4xf32> -> vector<256x4xf32>
    %32 = arith.addf %28, %31 : vector<256x4xf32>
    %c0_35 = arith.constant 0 : index
    %c0_36 = arith.constant 0 : index
    %33 = vector.load %arg8[%c0_35, %c0_36] : memref<256x4xf32, #tpu.memory_space<vmem>>, vector<256x4xf32>
    tpu.vector_store %arg8[%c0_35, %c0_36], %32 {strides = array<i32>} : memref<256x4xf32, #tpu.memory_space<vmem>>, vector<256x4xf32>,
    %34 = vector.extract_strided_slice %15 {offsets = [0, 2, 0], sizes = [16, 16, 16], strides = [1, 1, 1]} : vector<18x18x16xbf16> to vector<16x16x16xbf16>
    %35 = vector.shape_cast %34 : vector<16x16x16xbf16> to vector<256x16xbf16>
    %c0_37 = arith.constant 0 : index
    %c0_38 = arith.constant 0 : index
    %36 = vector.load %arg8[%c0_37, %c0_38] : memref<256x4xf32, #tpu.memory_space<vmem>>, vector<256x4xf32>
    %c0_39 = arith.constant 0 : index
    %c2 = arith.constant 2 : index
    %c0_40 = arith.constant 0 : index
    %c0_41 = arith.constant 0 : index
    %37 = vector.load %arg4[%c0_39, %c2, %c0_40, %c0_41] : memref<3x3x16x4xbf16, #tpu.memory_space<vmem>>, vector<1x1x16x4xbf16>
    %38 = vector.shape_cast %37 : vector<1x1x16x4xbf16> to vector<16x4xbf16>
    %cst_42 = arith.constant dense<0.000000e+00> : vector<256x4xf32>
    %39 = tpu.matmul %35, %38, %cst_42 {dimension_numbers = #tpu.dot_dimension_numbers<[1], [0], [0], [1], [0, 0, 1, 1], [], []>} : vector<256x16xbf16>, vector<16x4xbf16>, vector<256x4xf32> -> vector<256x4xf32>
    %40 = arith.addf %36, %39 : vector<256x4xf32>
    %c0_43 = arith.constant 0 : index
    %c0_44 = arith.constant 0 : index
    %41 = vector.load %arg8[%c0_43, %c0_44] : memref<256x4xf32, #tpu.memory_space<vmem>>, vector<256x4xf32>
    tpu.vector_store %arg8[%c0_43, %c0_44], %40 {strides = array<i32>} : memref<256x4xf32, #tpu.memory_space<vmem>>, vector<256x4xf32>,
    %42 = vector.extract_strided_slice %15 {offsets = [1, 0, 0], sizes = [16, 16, 16], strides = [1, 1, 1]} : vector<18x18x16xbf16> to vector<16x16x16xbf16>
    %43 = vector.shape_cast %42 : vector<16x16x16xbf16> to vector<256x16xbf16>
    %c0_45 = arith.constant 0 : index
    %c0_46 = arith.constant 0 : index
    %44 = vector.load %arg8[%c0_45, %c0_46] : memref<256x4xf32, #tpu.memory_space<vmem>>, vector<256x4xf32>
    %c1_47 = arith.constant 1 : index
    %c0_48 = arith.constant 0 : index
    %c0_49 = arith.constant 0 : index
    %c0_50 = arith.constant 0 : index
    %45 = vector.load %arg4[%c1_47, %c0_48, %c0_49, %c0_50] : memref<3x3x16x4xbf16, #tpu.memory_space<vmem>>, vector<1x1x16x4xbf16>
    %46 = vector.shape_cast %45 : vector<1x1x16x4xbf16> to vector<16x4xbf16>
    %cst_51 = arith.constant dense<0.000000e+00> : vector<256x4xf32>
    %47 = tpu.matmul %43, %46, %cst_51 {dimension_numbers = #tpu.dot_dimension_numbers<[1], [0], [0], [1], [0, 0, 1, 1], [], []>} : vector<256x16xbf16>, vector<16x4xbf16>, vector<256x4xf32> -> vector<256x4xf32>
    %48 = arith.addf %44, %47 : vector<256x4xf32>
    %c0_52 = arith.constant 0 : index
    %c0_53 = arith.constant 0 : index
    %49 = vector.load %arg8[%c0_52, %c0_53] : memref<256x4xf32, #tpu.memory_space<vmem>>, vector<256x4xf32>
    tpu.vector_store %arg8[%c0_52, %c0_53], %48 {strides = array<i32>} : memref<256x4xf32, #tpu.memory_space<vmem>>, vector<256x4xf32>,
    %50 = vector.extract_strided_slice %15 {offsets = [1, 1, 0], sizes = [16, 16, 16], strides = [1, 1, 1]} : vector<18x18x16xbf16> to vector<16x16x16xbf16>
    %51 = vector.shape_cast %50 : vector<16x16x16xbf16> to vector<256x16xbf16>
    %c0_54 = arith.constant 0 : index
    %c0_55 = arith.constant 0 : index
    %52 = vector.load %arg8[%c0_54, %c0_55] : memref<256x4xf32, #tpu.memory_space<vmem>>, vector<256x4xf32>
    %c1_56 = arith.constant 1 : index
    %c1_57 = arith.constant 1 : index
    %c0_58 = arith.constant 0 : index
    %c0_59 = arith.constant 0 : index
    %53 = vector.load %arg4[%c1_56, %c1_57, %c0_58, %c0_59] : memref<3x3x16x4xbf16, #tpu.memory_space<vmem>>, vector<1x1x16x4xbf16>
    %54 = vector.shape_cast %53 : vector<1x1x16x4xbf16> to vector<16x4xbf16>
    %cst_60 = arith.constant dense<0.000000e+00> : vector<256x4xf32>
    %55 = tpu.matmul %51, %54, %cst_60 {dimension_numbers = #tpu.dot_dimension_numbers<[1], [0], [0], [1], [0, 0, 1, 1], [], []>} : vector<256x16xbf16>, vector<16x4xbf16>, vector<256x4xf32> -> vector<256x4xf32>
    %56 = arith.addf %52, %55 : vector<256x4xf32>
    %c0_61 = arith.constant 0 : index
    %c0_62 = arith.constant 0 : index
    %57 = vector.load %arg8[%c0_61, %c0_62] : memref<256x4xf32, #tpu.memory_space<vmem>>, vector<256x4xf32>
    tpu.vector_store %arg8[%c0_61, %c0_62], %56 {strides = array<i32>} : memref<256x4xf32, #tpu.memory_space<vmem>>, vector<256x4xf32>,
    %58 = vector.extract_strided_slice %15 {offsets = [1, 2, 0], sizes = [16, 16, 16], strides = [1, 1, 1]} : vector<18x18x16xbf16> to vector<16x16x16xbf16>
    %59 = vector.shape_cast %58 : vector<16x16x16xbf16> to vector<256x16xbf16>
    %c0_63 = arith.constant 0 : index
    %c0_64 = arith.constant 0 : index
    %60 = vector.load %arg8[%c0_63, %c0_64] : memref<256x4xf32, #tpu.memory_space<vmem>>, vector<256x4xf32>
    %c1_65 = arith.constant 1 : index
    %c2_66 = arith.constant 2 : index
    %c0_67 = arith.constant 0 : index
    %c0_68 = arith.constant 0 : index
    %61 = vector.load %arg4[%c1_65, %c2_66, %c0_67, %c0_68] : memref<3x3x16x4xbf16, #tpu.memory_space<vmem>>, vector<1x1x16x4xbf16>
    %62 = vector.shape_cast %61 : vector<1x1x16x4xbf16> to vector<16x4xbf16>
    %cst_69 = arith.constant dense<0.000000e+00> : vector<256x4xf32>
    %63 = tpu.matmul %59, %62, %cst_69 {dimension_numbers = #tpu.dot_dimension_numbers<[1], [0], [0], [1], [0, 0, 1, 1], [], []>} : vector<256x16xbf16>, vector<16x4xbf16>, vector<256x4xf32> -> vector<256x4xf32>
    %64 = arith.addf %60, %63 : vector<256x4xf32>
    %c0_70 = arith.constant 0 : index
    %c0_71 = arith.constant 0 : index
    %65 = vector.load %arg8[%c0_70, %c0_71] : memref<256x4xf32, #tpu.memory_space<vmem>>, vector<256x4xf32>
    tpu.vector_store %arg8[%c0_70, %c0_71], %64 {strides = array<i32>} : memref<256x4xf32, #tpu.memory_space<vmem>>, vector<256x4xf32>,
    %66 = vector.extract_strided_slice %15 {offsets = [2, 0, 0], sizes = [16, 16, 16], strides = [1, 1, 1]} : vector<18x18x16xbf16> to vector<16x16x16xbf16>
    %67 = vector.shape_cast %66 : vector<16x16x16xbf16> to vector<256x16xbf16>
    %c0_72 = arith.constant 0 : index
    %c0_73 = arith.constant 0 : index
    %68 = vector.load %arg8[%c0_72, %c0_73] : memref<256x4xf32, #tpu.memory_space<vmem>>, vector<256x4xf32>
    %c2_74 = arith.constant 2 : index
    %c0_75 = arith.constant 0 : index
    %c0_76 = arith.constant 0 : index
    %c0_77 = arith.constant 0 : index
    %69 = vector.load %arg4[%c2_74, %c0_75, %c0_76, %c0_77] : memref<3x3x16x4xbf16, #tpu.memory_space<vmem>>, vector<1x1x16x4xbf16>
    %70 = vector.shape_cast %69 : vector<1x1x16x4xbf16> to vector<16x4xbf16>
    %cst_78 = arith.constant dense<0.000000e+00> : vector<256x4xf32>
    %71 = tpu.matmul %67, %70, %cst_78 {dimension_numbers = #tpu.dot_dimension_numbers<[1], [0], [0], [1], [0, 0, 1, 1], [], []>} : vector<256x16xbf16>, vector<16x4xbf16>, vector<256x4xf32> -> vector<256x4xf32>
    %72 = arith.addf %68, %71 : vector<256x4xf32>
    %c0_79 = arith.constant 0 : index
    %c0_80 = arith.constant 0 : index
    %73 = vector.load %arg8[%c0_79, %c0_80] : memref<256x4xf32, #tpu.memory_space<vmem>>, vector<256x4xf32>
    tpu.vector_store %arg8[%c0_79, %c0_80], %72 {strides = array<i32>} : memref<256x4xf32, #tpu.memory_space<vmem>>, vector<256x4xf32>,
    %74 = vector.extract_strided_slice %15 {offsets = [2, 1, 0], sizes = [16, 16, 16], strides = [1, 1, 1]} : vector<18x18x16xbf16> to vector<16x16x16xbf16>
    %75 = vector.shape_cast %74 : vector<16x16x16xbf16> to vector<256x16xbf16>
    %c0_81 = arith.constant 0 : index
    %c0_82 = arith.constant 0 : index
    %76 = vector.load %arg8[%c0_81, %c0_82] : memref<256x4xf32, #tpu.memory_space<vmem>>, vector<256x4xf32>
    %c2_83 = arith.constant 2 : index
    %c1_84 = arith.constant 1 : index
    %c0_85 = arith.constant 0 : index
    %c0_86 = arith.constant 0 : index
    %77 = vector.load %arg4[%c2_83, %c1_84, %c0_85, %c0_86] : memref<3x3x16x4xbf16, #tpu.memory_space<vmem>>, vector<1x1x16x4xbf16>
    %78 = vector.shape_cast %77 : vector<1x1x16x4xbf16> to vector<16x4xbf16>
    %cst_87 = arith.constant dense<0.000000e+00> : vector<256x4xf32>
    %79 = tpu.matmul %75, %78, %cst_87 {dimension_numbers = #tpu.dot_dimension_numbers<[1], [0], [0], [1], [0, 0, 1, 1], [], []>} : vector<256x16xbf16>, vector<16x4xbf16>, vector<256x4xf32> -> vector<256x4xf32>
    %80 = arith.addf %76, %79 : vector<256x4xf32>
    %c0_88 = arith.constant 0 : index
    %c0_89 = arith.constant 0 : index
    %81 = vector.load %arg8[%c0_88, %c0_89] : memref<256x4xf32, #tpu.memory_space<vmem>>, vector<256x4xf32>
    tpu.vector_store %arg8[%c0_88, %c0_89], %80 {strides = array<i32>} : memref<256x4xf32, #tpu.memory_space<vmem>>, vector<256x4xf32>,
    %82 = vector.extract_strided_slice %15 {offsets = [2, 2, 0], sizes = [16, 16, 16], strides = [1, 1, 1]} : vector<18x18x16xbf16> to vector<16x16x16xbf16>
    %83 = vector.shape_cast %82 : vector<16x16x16xbf16> to vector<256x16xbf16>
    %c0_90 = arith.constant 0 : index
    %c0_91 = arith.constant 0 : index
    %84 = vector.load %arg8[%c0_90, %c0_91] : memref<256x4xf32, #tpu.memory_space<vmem>>, vector<256x4xf32>
    %c2_92 = arith.constant 2 : index
    %c2_93 = arith.constant 2 : index
    %c0_94 = arith.constant 0 : index
    %c0_95 = arith.constant 0 : index
    %85 = vector.load %arg4[%c2_92, %c2_93, %c0_94, %c0_95] : memref<3x3x16x4xbf16, #tpu.memory_space<vmem>>, vector<1x1x16x4xbf16>
    %86 = vector.shape_cast %85 : vector<1x1x16x4xbf16> to vector<16x4xbf16>
    %cst_96 = arith.constant dense<0.000000e+00> : vector<256x4xf32>
    %87 = tpu.matmul %83, %86, %cst_96 {dimension_numbers = #tpu.dot_dimension_numbers<[1], [0], [0], [1], [0, 0, 1, 1], [], []>} : vector<256x16xbf16>, vector<16x4xbf16>, vector<256x4xf32> -> vector<256x4xf32>
    %88 = arith.addf %84, %87 : vector<256x4xf32>
    %c0_97 = arith.constant 0 : index
    %c0_98 = arith.constant 0 : index
    %89 = vector.load %arg8[%c0_97, %c0_98] : memref<256x4xf32, #tpu.memory_space<vmem>>, vector<256x4xf32>
    tpu.vector_store %arg8[%c0_97, %c0_98], %88 {strides = array<i32>} : memref<256x4xf32, #tpu.memory_space<vmem>>, vector<256x4xf32>,
    %c0_99 = arith.constant 0 : index
    %c0_100 = arith.constant 0 : index
    %90 = vector.load %arg8[%c0_99, %c0_100] : memref<256x4xf32, #tpu.memory_space<vmem>>, vector<256x4xf32>
    %c0_101 = arith.constant 0 : index
    %c0_102 = arith.constant 0 : index
    %91 = vector.load %arg5[%c0_101, %c0_102] : memref<1x4xf32, #tpu.memory_space<vmem>>, vector<1x4xf32>
    %92 = vector.broadcast %91 : vector<1x4xf32> to vector<256x4xf32>
    %93 = arith.addf %90, %92 : vector<256x4xf32>
    %94 = vector.shape_cast %93 : vector<256x4xf32> to vector<1x256x4xf32>
    %c0_103 = arith.constant 0 : index
    %c0_104 = arith.constant 0 : index
    %c0_105 = arith.constant 0 : index
    %95 = vector.load %arg6[%c0_103, %c0_104, %c0_105] : memref<1x256x4xf32, #tpu.memory_space<vmem>>, vector<1x256x4xf32>
    tpu.vector_store %arg6[%c0_103, %c0_104, %c0_105], %94 {strides = array<i32>} : memref<1x256x4xf32, #tpu.memory_space<vmem>>, vector<1x256x4xf32>,
    return
  }
  func.func @transform_0(%arg0: i32) -> (i32, i32, i32, i32) {
    %c0_i32 = arith.constant 0 : i32
    %c0_i32_0 = arith.constant 0 : i32
    %c0_i32_1 = arith.constant 0 : i32
    %c0_i32_2 = arith.constant 0 : i32
    return %arg0, %c0_i32, %c0_i32_0, %c0_i32_1 : i32, i32, i32, i32
  }
  func.func @transform_1(%arg0: i32) -> (i32, i32) {
    %c0_i32 = arith.constant 0 : i32
    %c0_i32_0 = arith.constant 0 : i32
    %c0_i32_1 = arith.constant 0 : i32
    return %c0_i32, %c0_i32_0 : i32, i32
  }
  func.func @transform_2(%arg0: i32) -> (i32, i32) {
    %c0_i32 = arith.constant 0 : i32
    %c0_i32_0 = arith.constant 0 : i32
    %c0_i32_1 = arith.constant 0 : i32
    return %c0_i32, %c0_i32_0 : i32, i32
  }
  func.func @transform_3(%arg0: i32) -> (i32, i32, i32, i32) {
    %c0_i32 = arith.constant 0 : i32
    %c0_i32_0 = arith.constant 0 : i32
    %c0_i32_1 = arith.constant 0 : i32
    %c0_i32_2 = arith.constant 0 : i32
    %c0_i32_3 = arith.constant 0 : i32
    return %c0_i32, %c0_i32_0, %c0_i32_1, %c0_i32_2 : i32, i32, i32, i32
  }
  func.func @transform_4(%arg0: i32) -> (i32, i32) {
    %c0_i32 = arith.constant 0 : i32
    %c0_i32_0 = arith.constant 0 : i32
    %c0_i32_1 = arith.constant 0 : i32
    return %c0_i32, %c0_i32_0 : i32, i32
  }
  func.func @transform_5(%arg0: i32) -> (i32, i32, i32) {
    %c0_i32 = arith.constant 0 : i32
    %c0_i32_0 = arith.constant 0 : i32
    %c0_i32_1 = arith.constant 0 : i32
    return %arg0, %c0_i32, %c0_i32_0 : i32, i32, i32
  }
}

module attributes {stable_mosaic.version = 11 : i64} {
  func.func @_bn_relu_conv1x1_kernel(%arg0: i32, %arg1: memref<256x4xf32, #tpu.memory_space<vmem>>, %arg2: memref<1x4xf32, #tpu.memory_space<vmem>>, %arg3: memref<1x4xf32, #tpu.memory_space<vmem>>, %arg4: memref<4x16xbf16, #tpu.memory_space<vmem>>, %arg5: memref<1x16xf32, #tpu.memory_space<vmem>>, %arg6: memref<256x16xf32, #tpu.memory_space<vmem>>, %arg7: memref<1x2x16xf32, #tpu.memory_space<vmem>>) attributes {dimension_semantics = [#tpu.dimension_semantics<parallel>], iteration_bounds = array<i64: 2>, scalar_prefetch = 0 : i64, scratch_operands = 0 : i64, tpu.core_type = #tpu.core_type<tc>, window_params = [{transform_indices = @transform_0, window_bounds = array<i64: 256, 4>}, {pipeline_mode = #tpu.pipeline_mode<synchronous>, transform_indices = @transform_1, window_bounds = array<i64: 1, 4>}, {pipeline_mode = #tpu.pipeline_mode<synchronous>, transform_indices = @transform_2, window_bounds = array<i64: 1, 4>}, {pipeline_mode = #tpu.pipeline_mode<synchronous>, transform_indices = @transform_3, window_bounds = array<i64: 4, 16>}, {pipeline_mode = #tpu.pipeline_mode<synchronous>, transform_indices = @transform_4, window_bounds = array<i64: 1, 16>}, {transform_indices = @transform_5, window_bounds = array<i64: 256, 16>}, {transform_indices = @transform_6, window_bounds = array<i64: 1, 2, 16>}]} {
    %c0 = arith.constant 0 : index
    %c0_0 = arith.constant 0 : index
    %0 = vector.load %arg1[%c0, %c0_0] : memref<256x4xf32, #tpu.memory_space<vmem>>, vector<256x4xf32>
    %c0_1 = arith.constant 0 : index
    %c0_2 = arith.constant 0 : index
    %1 = vector.load %arg2[%c0_1, %c0_2] : memref<1x4xf32, #tpu.memory_space<vmem>>, vector<1x4xf32>
    %2 = vector.broadcast %1 : vector<1x4xf32> to vector<256x4xf32>
    %3 = arith.mulf %0, %2 : vector<256x4xf32>
    %c0_3 = arith.constant 0 : index
    %c0_4 = arith.constant 0 : index
    %4 = vector.load %arg3[%c0_3, %c0_4] : memref<1x4xf32, #tpu.memory_space<vmem>>, vector<1x4xf32>
    %5 = vector.broadcast %4 : vector<1x4xf32> to vector<256x4xf32>
    %6 = arith.addf %3, %5 : vector<256x4xf32>
    %cst = arith.constant 0.000000e+00 : f32
    %7 = vector.broadcast %cst : f32 to vector<256x4xf32>
    %8 = arith.maximumf %6, %7 : vector<256x4xf32>
    %9 = arith.truncf %8 : vector<256x4xf32> to vector<256x4xbf16>
    %c0_5 = arith.constant 0 : index
    %c0_6 = arith.constant 0 : index
    %10 = vector.load %arg4[%c0_5, %c0_6] : memref<4x16xbf16, #tpu.memory_space<vmem>>, vector<4x16xbf16>
    %cst_7 = arith.constant dense<0.000000e+00> : vector<256x16xf32>
    %11 = tpu.matmul %9, %10, %cst_7 {dimension_numbers = #tpu.dot_dimension_numbers<[1], [0], [0], [1], [0, 0, 1, 1], [], []>} : vector<256x4xbf16>, vector<4x16xbf16>, vector<256x16xf32> -> vector<256x16xf32>
    %c0_8 = arith.constant 0 : index
    %c0_9 = arith.constant 0 : index
    %12 = vector.load %arg5[%c0_8, %c0_9] : memref<1x16xf32, #tpu.memory_space<vmem>>, vector<1x16xf32>
    %13 = vector.broadcast %12 : vector<1x16xf32> to vector<256x16xf32>
    %14 = arith.addf %11, %13 : vector<256x16xf32>
    %c0_10 = arith.constant 0 : index
    %c0_11 = arith.constant 0 : index
    %15 = vector.load %arg6[%c0_10, %c0_11] : memref<256x16xf32, #tpu.memory_space<vmem>>, vector<256x16xf32>
    tpu.vector_store %arg6[%c0_10, %c0_11], %14 {strides = array<i32>} : memref<256x16xf32, #tpu.memory_space<vmem>>, vector<256x16xf32>,
    %cst_12 = arith.constant dense<0.000000e+00> : vector<16xf32>
    %16 = vector.multi_reduction <add>, %14, %cst_12 [0] : vector<256x16xf32> to vector<16xf32>
    %17 = vector.shape_cast %16 : vector<16xf32> to vector<1x16xf32>
    %18 = vector.shape_cast %17 : vector<1x16xf32> to vector<1x1x16xf32>
    %c0_13 = arith.constant 0 : index
    %c0_14 = arith.constant 0 : index
    %c0_15 = arith.constant 0 : index
    %19 = vector.load %arg7[%c0_13, %c0_14, %c0_15] : memref<1x2x16xf32, #tpu.memory_space<vmem>>, vector<1x1x16xf32>
    tpu.vector_store %arg7[%c0_13, %c0_14, %c0_15], %18 {strides = array<i32>} : memref<1x2x16xf32, #tpu.memory_space<vmem>>, vector<1x1x16xf32>,
    %20 = arith.mulf %14, %14 : vector<256x16xf32>
    %cst_16 = arith.constant dense<0.000000e+00> : vector<16xf32>
    %21 = vector.multi_reduction <add>, %20, %cst_16 [0] : vector<256x16xf32> to vector<16xf32>
    %22 = vector.shape_cast %21 : vector<16xf32> to vector<1x16xf32>
    %23 = vector.shape_cast %22 : vector<1x16xf32> to vector<1x1x16xf32>
    %c0_17 = arith.constant 0 : index
    %c1 = arith.constant 1 : index
    %c0_18 = arith.constant 0 : index
    %24 = vector.load %arg7[%c0_17, %c1, %c0_18] : memref<1x2x16xf32, #tpu.memory_space<vmem>>, vector<1x1x16xf32>
    tpu.vector_store %arg7[%c0_17, %c1, %c0_18], %23 {strides = array<i32>} : memref<1x2x16xf32, #tpu.memory_space<vmem>>, vector<1x1x16xf32>,
    return
  }
  func.func @transform_0(%arg0: i32) -> (i32, i32) {
    %c0_i32 = arith.constant 0 : i32
    %c0_i32_0 = arith.constant 0 : i32
    return %arg0, %c0_i32 : i32, i32
  }
  func.func @transform_1(%arg0: i32) -> (i32, i32) {
    %c0_i32 = arith.constant 0 : i32
    %c0_i32_0 = arith.constant 0 : i32
    %c0_i32_1 = arith.constant 0 : i32
    return %c0_i32, %c0_i32_0 : i32, i32
  }
  func.func @transform_2(%arg0: i32) -> (i32, i32) {
    %c0_i32 = arith.constant 0 : i32
    %c0_i32_0 = arith.constant 0 : i32
    %c0_i32_1 = arith.constant 0 : i32
    return %c0_i32, %c0_i32_0 : i32, i32
  }
  func.func @transform_3(%arg0: i32) -> (i32, i32) {
    %c0_i32 = arith.constant 0 : i32
    %c0_i32_0 = arith.constant 0 : i32
    %c0_i32_1 = arith.constant 0 : i32
    return %c0_i32, %c0_i32_0 : i32, i32
  }
  func.func @transform_4(%arg0: i32) -> (i32, i32) {
    %c0_i32 = arith.constant 0 : i32
    %c0_i32_0 = arith.constant 0 : i32
    %c0_i32_1 = arith.constant 0 : i32
    return %c0_i32, %c0_i32_0 : i32, i32
  }
  func.func @transform_5(%arg0: i32) -> (i32, i32) {
    %c0_i32 = arith.constant 0 : i32
    %c0_i32_0 = arith.constant 0 : i32
    return %arg0, %c0_i32 : i32, i32
  }
  func.func @transform_6(%arg0: i32) -> (i32, i32, i32) {
    %c0_i32 = arith.constant 0 : i32
    %c0_i32_0 = arith.constant 0 : i32
    %c0_i32_1 = arith.constant 0 : i32
    return %arg0, %c0_i32, %c0_i32_0 : i32, i32, i32
  }
}

module attributes {stable_mosaic.version = 11 : i64} {
  func.func @_stats_kernel(%arg0: i32, %arg1: memref<256x8xf32, #tpu.memory_space<vmem>>, %arg2: memref<1x2x8xf32, #tpu.memory_space<vmem>>) attributes {dimension_semantics = [#tpu.dimension_semantics<parallel>], iteration_bounds = array<i64: 2>, scalar_prefetch = 0 : i64, scratch_operands = 0 : i64, tpu.core_type = #tpu.core_type<tc>, window_params = [{transform_indices = @transform_0, window_bounds = array<i64: 256, 8>}, {transform_indices = @transform_1, window_bounds = array<i64: 1, 2, 8>}]} {
    %c0 = arith.constant 0 : index
    %c0_0 = arith.constant 0 : index
    %0 = vector.load %arg1[%c0, %c0_0] : memref<256x8xf32, #tpu.memory_space<vmem>>, vector<256x8xf32>
    %cst = arith.constant dense<0.000000e+00> : vector<8xf32>
    %1 = vector.multi_reduction <add>, %0, %cst [0] : vector<256x8xf32> to vector<8xf32>
    %2 = vector.shape_cast %1 : vector<8xf32> to vector<1x8xf32>
    %3 = vector.shape_cast %2 : vector<1x8xf32> to vector<1x1x8xf32>
    %c0_1 = arith.constant 0 : index
    %c0_2 = arith.constant 0 : index
    %c0_3 = arith.constant 0 : index
    %4 = vector.load %arg2[%c0_1, %c0_2, %c0_3] : memref<1x2x8xf32, #tpu.memory_space<vmem>>, vector<1x1x8xf32>
    tpu.vector_store %arg2[%c0_1, %c0_2, %c0_3], %3 {strides = array<i32>} : memref<1x2x8xf32, #tpu.memory_space<vmem>>, vector<1x1x8xf32>,
    %5 = arith.mulf %0, %0 : vector<256x8xf32>
    %cst_4 = arith.constant dense<0.000000e+00> : vector<8xf32>
    %6 = vector.multi_reduction <add>, %5, %cst_4 [0] : vector<256x8xf32> to vector<8xf32>
    %7 = vector.shape_cast %6 : vector<8xf32> to vector<1x8xf32>
    %8 = vector.shape_cast %7 : vector<1x8xf32> to vector<1x1x8xf32>
    %c0_5 = arith.constant 0 : index
    %c1 = arith.constant 1 : index
    %c0_6 = arith.constant 0 : index
    %9 = vector.load %arg2[%c0_5, %c1, %c0_6] : memref<1x2x8xf32, #tpu.memory_space<vmem>>, vector<1x1x8xf32>
    tpu.vector_store %arg2[%c0_5, %c1, %c0_6], %8 {strides = array<i32>} : memref<1x2x8xf32, #tpu.memory_space<vmem>>, vector<1x1x8xf32>,
    return
  }
  func.func @transform_0(%arg0: i32) -> (i32, i32) {
    %c0_i32 = arith.constant 0 : i32
    %c0_i32_0 = arith.constant 0 : i32
    return %arg0, %c0_i32 : i32, i32
  }
  func.func @transform_1(%arg0: i32) -> (i32, i32, i32) {
    %c0_i32 = arith.constant 0 : i32
    %c0_i32_0 = arith.constant 0 : i32
    %c0_i32_1 = arith.constant 0 : i32
    return %arg0, %c0_i32, %c0_i32_0 : i32, i32, i32
  }
}

module attributes {stable_mosaic.version = 11 : i64} {
  func.func @_bn_relu_conv1x1_kernel(%arg0: i32, %arg1: memref<256x8xf32, #tpu.memory_space<vmem>>, %arg2: memref<1x8xf32, #tpu.memory_space<vmem>>, %arg3: memref<1x8xf32, #tpu.memory_space<vmem>>, %arg4: memref<8x16xbf16, #tpu.memory_space<vmem>>, %arg5: memref<1x16xf32, #tpu.memory_space<vmem>>, %arg6: memref<256x16xf32, #tpu.memory_space<vmem>>, %arg7: memref<1x2x16xf32, #tpu.memory_space<vmem>>) attributes {dimension_semantics = [#tpu.dimension_semantics<parallel>], iteration_bounds = array<i64: 2>, scalar_prefetch = 0 : i64, scratch_operands = 0 : i64, tpu.core_type = #tpu.core_type<tc>, window_params = [{transform_indices = @transform_0, window_bounds = array<i64: 256, 8>}, {pipeline_mode = #tpu.pipeline_mode<synchronous>, transform_indices = @transform_1, window_bounds = array<i64: 1, 8>}, {pipeline_mode = #tpu.pipeline_mode<synchronous>, transform_indices = @transform_2, window_bounds = array<i64: 1, 8>}, {pipeline_mode = #tpu.pipeline_mode<synchronous>, transform_indices = @transform_3, window_bounds = array<i64: 8, 16>}, {pipeline_mode = #tpu.pipeline_mode<synchronous>, transform_indices = @transform_4, window_bounds = array<i64: 1, 16>}, {transform_indices = @transform_5, window_bounds = array<i64: 256, 16>}, {transform_indices = @transform_6, window_bounds = array<i64: 1, 2, 16>}]} {
    %c0 = arith.constant 0 : index
    %c0_0 = arith.constant 0 : index
    %0 = vector.load %arg1[%c0, %c0_0] : memref<256x8xf32, #tpu.memory_space<vmem>>, vector<256x8xf32>
    %c0_1 = arith.constant 0 : index
    %c0_2 = arith.constant 0 : index
    %1 = vector.load %arg2[%c0_1, %c0_2] : memref<1x8xf32, #tpu.memory_space<vmem>>, vector<1x8xf32>
    %2 = vector.broadcast %1 : vector<1x8xf32> to vector<256x8xf32>
    %3 = arith.mulf %0, %2 : vector<256x8xf32>
    %c0_3 = arith.constant 0 : index
    %c0_4 = arith.constant 0 : index
    %4 = vector.load %arg3[%c0_3, %c0_4] : memref<1x8xf32, #tpu.memory_space<vmem>>, vector<1x8xf32>
    %5 = vector.broadcast %4 : vector<1x8xf32> to vector<256x8xf32>
    %6 = arith.addf %3, %5 : vector<256x8xf32>
    %cst = arith.constant 0.000000e+00 : f32
    %7 = vector.broadcast %cst : f32 to vector<256x8xf32>
    %8 = arith.maximumf %6, %7 : vector<256x8xf32>
    %9 = arith.truncf %8 : vector<256x8xf32> to vector<256x8xbf16>
    %c0_5 = arith.constant 0 : index
    %c0_6 = arith.constant 0 : index
    %10 = vector.load %arg4[%c0_5, %c0_6] : memref<8x16xbf16, #tpu.memory_space<vmem>>, vector<8x16xbf16>
    %cst_7 = arith.constant dense<0.000000e+00> : vector<256x16xf32>
    %11 = tpu.matmul %9, %10, %cst_7 {dimension_numbers = #tpu.dot_dimension_numbers<[1], [0], [0], [1], [0, 0, 1, 1], [], []>} : vector<256x8xbf16>, vector<8x16xbf16>, vector<256x16xf32> -> vector<256x16xf32>
    %c0_8 = arith.constant 0 : index
    %c0_9 = arith.constant 0 : index
    %12 = vector.load %arg5[%c0_8, %c0_9] : memref<1x16xf32, #tpu.memory_space<vmem>>, vector<1x16xf32>
    %13 = vector.broadcast %12 : vector<1x16xf32> to vector<256x16xf32>
    %14 = arith.addf %11, %13 : vector<256x16xf32>
    %c0_10 = arith.constant 0 : index
    %c0_11 = arith.constant 0 : index
    %15 = vector.load %arg6[%c0_10, %c0_11] : memref<256x16xf32, #tpu.memory_space<vmem>>, vector<256x16xf32>
    tpu.vector_store %arg6[%c0_10, %c0_11], %14 {strides = array<i32>} : memref<256x16xf32, #tpu.memory_space<vmem>>, vector<256x16xf32>,
    %cst_12 = arith.constant dense<0.000000e+00> : vector<16xf32>
    %16 = vector.multi_reduction <add>, %14, %cst_12 [0] : vector<256x16xf32> to vector<16xf32>
    %17 = vector.shape_cast %16 : vector<16xf32> to vector<1x16xf32>
    %18 = vector.shape_cast %17 : vector<1x16xf32> to vector<1x1x16xf32>
    %c0_13 = arith.constant 0 : index
    %c0_14 = arith.constant 0 : index
    %c0_15 = arith.constant 0 : index
    %19 = vector.load %arg7[%c0_13, %c0_14, %c0_15] : memref<1x2x16xf32, #tpu.memory_space<vmem>>, vector<1x1x16xf32>
    tpu.vector_store %arg7[%c0_13, %c0_14, %c0_15], %18 {strides = array<i32>} : memref<1x2x16xf32, #tpu.memory_space<vmem>>, vector<1x1x16xf32>,
    %20 = arith.mulf %14, %14 : vector<256x16xf32>
    %cst_16 = arith.constant dense<0.000000e+00> : vector<16xf32>
    %21 = vector.multi_reduction <add>, %20, %cst_16 [0] : vector<256x16xf32> to vector<16xf32>
    %22 = vector.shape_cast %21 : vector<16xf32> to vector<1x16xf32>
    %23 = vector.shape_cast %22 : vector<1x16xf32> to vector<1x1x16xf32>
    %c0_17 = arith.constant 0 : index
    %c1 = arith.constant 1 : index
    %c0_18 = arith.constant 0 : index
    %24 = vector.load %arg7[%c0_17, %c1, %c0_18] : memref<1x2x16xf32, #tpu.memory_space<vmem>>, vector<1x1x16xf32>
    tpu.vector_store %arg7[%c0_17, %c1, %c0_18], %23 {strides = array<i32>} : memref<1x2x16xf32, #tpu.memory_space<vmem>>, vector<1x1x16xf32>,
    return
  }
  func.func @transform_0(%arg0: i32) -> (i32, i32) {
    %c0_i32 = arith.constant 0 : i32
    %c0_i32_0 = arith.constant 0 : i32
    return %arg0, %c0_i32 : i32, i32
  }
  func.func @transform_1(%arg0: i32) -> (i32, i32) {
    %c0_i32 = arith.constant 0 : i32
    %c0_i32_0 = arith.constant 0 : i32
    %c0_i32_1 = arith.constant 0 : i32
    return %c0_i32, %c0_i32_0 : i32, i32
  }
  func.func @transform_2(%arg0: i32) -> (i32, i32) {
    %c0_i32 = arith.constant 0 : i32
    %c0_i32_0 = arith.constant 0 : i32
    %c0_i32_1 = arith.constant 0 : i32
    return %c0_i32, %c0_i32_0 : i32, i32
  }
  func.func @transform_3(%arg0: i32) -> (i32, i32) {
    %c0_i32 = arith.constant 0 : i32
    %c0_i32_0 = arith.constant 0 : i32
    %c0_i32_1 = arith.constant 0 : i32
    return %c0_i32, %c0_i32_0 : i32, i32
  }
  func.func @transform_4(%arg0: i32) -> (i32, i32) {
    %c0_i32 = arith.constant 0 : i32
    %c0_i32_0 = arith.constant 0 : i32
    %c0_i32_1 = arith.constant 0 : i32
    return %c0_i32, %c0_i32_0 : i32, i32
  }
  func.func @transform_5(%arg0: i32) -> (i32, i32) {
    %c0_i32 = arith.constant 0 : i32
    %c0_i32_0 = arith.constant 0 : i32
    return %arg0, %c0_i32 : i32, i32
  }
  func.func @transform_6(%arg0: i32) -> (i32, i32, i32) {
    %c0_i32 = arith.constant 0 : i32
    %c0_i32_0 = arith.constant 0 : i32
    %c0_i32_1 = arith.constant 0 : i32
    return %arg0, %c0_i32, %c0_i32_0 : i32, i32, i32
  }
}

module attributes {stable_mosaic.version = 11 : i64} {
  func.func @_stats_kernel(%arg0: i32, %arg1: memref<256x12xf32, #tpu.memory_space<vmem>>, %arg2: memref<1x2x12xf32, #tpu.memory_space<vmem>>) attributes {dimension_semantics = [#tpu.dimension_semantics<parallel>], iteration_bounds = array<i64: 2>, scalar_prefetch = 0 : i64, scratch_operands = 0 : i64, tpu.core_type = #tpu.core_type<tc>, window_params = [{transform_indices = @transform_0, window_bounds = array<i64: 256, 12>}, {transform_indices = @transform_1, window_bounds = array<i64: 1, 2, 12>}]} {
    %c0 = arith.constant 0 : index
    %c0_0 = arith.constant 0 : index
    %0 = vector.load %arg1[%c0, %c0_0] : memref<256x12xf32, #tpu.memory_space<vmem>>, vector<256x12xf32>
    %cst = arith.constant dense<0.000000e+00> : vector<12xf32>
    %1 = vector.multi_reduction <add>, %0, %cst [0] : vector<256x12xf32> to vector<12xf32>
    %2 = vector.shape_cast %1 : vector<12xf32> to vector<1x12xf32>
    %3 = vector.shape_cast %2 : vector<1x12xf32> to vector<1x1x12xf32>
    %c0_1 = arith.constant 0 : index
    %c0_2 = arith.constant 0 : index
    %c0_3 = arith.constant 0 : index
    %4 = vector.load %arg2[%c0_1, %c0_2, %c0_3] : memref<1x2x12xf32, #tpu.memory_space<vmem>>, vector<1x1x12xf32>
    tpu.vector_store %arg2[%c0_1, %c0_2, %c0_3], %3 {strides = array<i32>} : memref<1x2x12xf32, #tpu.memory_space<vmem>>, vector<1x1x12xf32>,
    %5 = arith.mulf %0, %0 : vector<256x12xf32>
    %cst_4 = arith.constant dense<0.000000e+00> : vector<12xf32>
    %6 = vector.multi_reduction <add>, %5, %cst_4 [0] : vector<256x12xf32> to vector<12xf32>
    %7 = vector.shape_cast %6 : vector<12xf32> to vector<1x12xf32>
    %8 = vector.shape_cast %7 : vector<1x12xf32> to vector<1x1x12xf32>
    %c0_5 = arith.constant 0 : index
    %c1 = arith.constant 1 : index
    %c0_6 = arith.constant 0 : index
    %9 = vector.load %arg2[%c0_5, %c1, %c0_6] : memref<1x2x12xf32, #tpu.memory_space<vmem>>, vector<1x1x12xf32>
    tpu.vector_store %arg2[%c0_5, %c1, %c0_6], %8 {strides = array<i32>} : memref<1x2x12xf32, #tpu.memory_space<vmem>>, vector<1x1x12xf32>,
    return
  }
  func.func @transform_0(%arg0: i32) -> (i32, i32) {
    %c0_i32 = arith.constant 0 : i32
    %c0_i32_0 = arith.constant 0 : i32
    return %arg0, %c0_i32 : i32, i32
  }
  func.func @transform_1(%arg0: i32) -> (i32, i32, i32) {
    %c0_i32 = arith.constant 0 : i32
    %c0_i32_0 = arith.constant 0 : i32
    %c0_i32_1 = arith.constant 0 : i32
    return %arg0, %c0_i32, %c0_i32_0 : i32, i32, i32
  }
}

module attributes {stable_mosaic.version = 11 : i64} {
  func.func @_bn_relu_conv1x1_kernel(%arg0: i32, %arg1: memref<256x12xf32, #tpu.memory_space<vmem>>, %arg2: memref<1x12xf32, #tpu.memory_space<vmem>>, %arg3: memref<1x12xf32, #tpu.memory_space<vmem>>, %arg4: memref<12x16xbf16, #tpu.memory_space<vmem>>, %arg5: memref<1x16xf32, #tpu.memory_space<vmem>>, %arg6: memref<256x16xf32, #tpu.memory_space<vmem>>, %arg7: memref<1x2x16xf32, #tpu.memory_space<vmem>>) attributes {dimension_semantics = [#tpu.dimension_semantics<parallel>], iteration_bounds = array<i64: 2>, scalar_prefetch = 0 : i64, scratch_operands = 0 : i64, tpu.core_type = #tpu.core_type<tc>, window_params = [{transform_indices = @transform_0, window_bounds = array<i64: 256, 12>}, {pipeline_mode = #tpu.pipeline_mode<synchronous>, transform_indices = @transform_1, window_bounds = array<i64: 1, 12>}, {pipeline_mode = #tpu.pipeline_mode<synchronous>, transform_indices = @transform_2, window_bounds = array<i64: 1, 12>}, {pipeline_mode = #tpu.pipeline_mode<synchronous>, transform_indices = @transform_3, window_bounds = array<i64: 12, 16>}, {pipeline_mode = #tpu.pipeline_mode<synchronous>, transform_indices = @transform_4, window_bounds = array<i64: 1, 16>}, {transform_indices = @transform_5, window_bounds = array<i64: 256, 16>}, {transform_indices = @transform_6, window_bounds = array<i64: 1, 2, 16>}]} {
    %c0 = arith.constant 0 : index
    %c0_0 = arith.constant 0 : index
    %0 = vector.load %arg1[%c0, %c0_0] : memref<256x12xf32, #tpu.memory_space<vmem>>, vector<256x12xf32>
    %c0_1 = arith.constant 0 : index
    %c0_2 = arith.constant 0 : index
    %1 = vector.load %arg2[%c0_1, %c0_2] : memref<1x12xf32, #tpu.memory_space<vmem>>, vector<1x12xf32>
    %2 = vector.broadcast %1 : vector<1x12xf32> to vector<256x12xf32>
    %3 = arith.mulf %0, %2 : vector<256x12xf32>
    %c0_3 = arith.constant 0 : index
    %c0_4 = arith.constant 0 : index
    %4 = vector.load %arg3[%c0_3, %c0_4] : memref<1x12xf32, #tpu.memory_space<vmem>>, vector<1x12xf32>
    %5 = vector.broadcast %4 : vector<1x12xf32> to vector<256x12xf32>
    %6 = arith.addf %3, %5 : vector<256x12xf32>
    %cst = arith.constant 0.000000e+00 : f32
    %7 = vector.broadcast %cst : f32 to vector<256x12xf32>
    %8 = arith.maximumf %6, %7 : vector<256x12xf32>
    %9 = arith.truncf %8 : vector<256x12xf32> to vector<256x12xbf16>
    %c0_5 = arith.constant 0 : index
    %c0_6 = arith.constant 0 : index
    %10 = vector.load %arg4[%c0_5, %c0_6] : memref<12x16xbf16, #tpu.memory_space<vmem>>, vector<12x16xbf16>
    %cst_7 = arith.constant dense<0.000000e+00> : vector<256x16xf32>
    %11 = tpu.matmul %9, %10, %cst_7 {dimension_numbers = #tpu.dot_dimension_numbers<[1], [0], [0], [1], [0, 0, 1, 1], [], []>} : vector<256x12xbf16>, vector<12x16xbf16>, vector<256x16xf32> -> vector<256x16xf32>
    %c0_8 = arith.constant 0 : index
    %c0_9 = arith.constant 0 : index
    %12 = vector.load %arg5[%c0_8, %c0_9] : memref<1x16xf32, #tpu.memory_space<vmem>>, vector<1x16xf32>
    %13 = vector.broadcast %12 : vector<1x16xf32> to vector<256x16xf32>
    %14 = arith.addf %11, %13 : vector<256x16xf32>
    %c0_10 = arith.constant 0 : index
    %c0_11 = arith.constant 0 : index
    %15 = vector.load %arg6[%c0_10, %c0_11] : memref<256x16xf32, #tpu.memory_space<vmem>>, vector<256x16xf32>
    tpu.vector_store %arg6[%c0_10, %c0_11], %14 {strides = array<i32>} : memref<256x16xf32, #tpu.memory_space<vmem>>, vector<256x16xf32>,
    %cst_12 = arith.constant dense<0.000000e+00> : vector<16xf32>
    %16 = vector.multi_reduction <add>, %14, %cst_12 [0] : vector<256x16xf32> to vector<16xf32>
    %17 = vector.shape_cast %16 : vector<16xf32> to vector<1x16xf32>
    %18 = vector.shape_cast %17 : vector<1x16xf32> to vector<1x1x16xf32>
    %c0_13 = arith.constant 0 : index
    %c0_14 = arith.constant 0 : index
    %c0_15 = arith.constant 0 : index
    %19 = vector.load %arg7[%c0_13, %c0_14, %c0_15] : memref<1x2x16xf32, #tpu.memory_space<vmem>>, vector<1x1x16xf32>
    tpu.vector_store %arg7[%c0_13, %c0_14, %c0_15], %18 {strides = array<i32>} : memref<1x2x16xf32, #tpu.memory_space<vmem>>, vector<1x1x16xf32>,
    %20 = arith.mulf %14, %14 : vector<256x16xf32>
    %cst_16 = arith.constant dense<0.000000e+00> : vector<16xf32>
    %21 = vector.multi_reduction <add>, %20, %cst_16 [0] : vector<256x16xf32> to vector<16xf32>
    %22 = vector.shape_cast %21 : vector<16xf32> to vector<1x16xf32>
    %23 = vector.shape_cast %22 : vector<1x16xf32> to vector<1x1x16xf32>
    %c0_17 = arith.constant 0 : index
    %c1 = arith.constant 1 : index
    %c0_18 = arith.constant 0 : index
    %24 = vector.load %arg7[%c0_17, %c1, %c0_18] : memref<1x2x16xf32, #tpu.memory_space<vmem>>, vector<1x1x16xf32>
    tpu.vector_store %arg7[%c0_17, %c1, %c0_18], %23 {strides = array<i32>} : memref<1x2x16xf32, #tpu.memory_space<vmem>>, vector<1x1x16xf32>,
    return
  }
  func.func @transform_0(%arg0: i32) -> (i32, i32) {
    %c0_i32 = arith.constant 0 : i32
    %c0_i32_0 = arith.constant 0 : i32
    return %arg0, %c0_i32 : i32, i32
  }
  func.func @transform_1(%arg0: i32) -> (i32, i32) {
    %c0_i32 = arith.constant 0 : i32
    %c0_i32_0 = arith.constant 0 : i32
    %c0_i32_1 = arith.constant 0 : i32
    return %c0_i32, %c0_i32_0 : i32, i32
  }
  func.func @transform_2(%arg0: i32) -> (i32, i32) {
    %c0_i32 = arith.constant 0 : i32
    %c0_i32_0 = arith.constant 0 : i32
    %c0_i32_1 = arith.constant 0 : i32
    return %c0_i32, %c0_i32_0 : i32, i32
  }
  func.func @transform_3(%arg0: i32) -> (i32, i32) {
    %c0_i32 = arith.constant 0 : i32
    %c0_i32_0 = arith.constant 0 : i32
    %c0_i32_1 = arith.constant 0 : i32
    return %c0_i32, %c0_i32_0 : i32, i32
  }
  func.func @transform_4(%arg0: i32) -> (i32, i32) {
    %c0_i32 = arith.constant 0 : i32
    %c0_i32_0 = arith.constant 0 : i32
    %c0_i32_1 = arith.constant 0 : i32
    return %c0_i32, %c0_i32_0 : i32, i32
  }
  func.func @transform_5(%arg0: i32) -> (i32, i32) {
    %c0_i32 = arith.constant 0 : i32
    %c0_i32_0 = arith.constant 0 : i32
    return %arg0, %c0_i32 : i32, i32
  }
  func.func @transform_6(%arg0: i32) -> (i32, i32, i32) {
    %c0_i32 = arith.constant 0 : i32
    %c0_i32_0 = arith.constant 0 : i32
    %c0_i32_1 = arith.constant 0 : i32
    return %arg0, %c0_i32, %c0_i32_0 : i32, i32, i32
  }
}

</mosaic_0001>

<bundles_post_ra>
// kernel: dense_block_forward.9
= control target key start
LH: loop header
LB: loop body
LE: loop exit
PB: predicated region body
PF: predicated region fallthrough
CT: control target
= control target key end

     0   :  { %s412_s6 = smov 0   ;;  %s534_s0 = inlined_call_operand.vmem [shape: f32[512,4], index: 0, kind: input, shape index: {}]   ;;  %s535_s1 = inlined_call_operand.vmem [shape: f32[2,2,4], index: 1, kind: output, shape index: {}]  }
   0x1 LB: > { %s418_s7 = sadd.s32 4294967295, %s400_s6   ;;  %p380_p0 = scmp.ge.s32.totalorder %s400_s6, 1  ;;  %s400_s6 = sphi %s412_s6, %s11_s6  }
   0x2   : > { %p88_p1 = scmp.lt.s32.totalorder %s400_s6, 3 }
   0x4   : > { %p89_p2 = pnand %p380_p0, %p88_p1 }
   0x5   : > { %s381_s8 = sshll.u32 (!%p89_p2), %s418_s7, 5  ;;  %vm149_vm0 = vcmask (!%p89_p2), 31744   ;;  %p113_p4 = scmp.lt.s32.totalorder (!%p89_p2), %s418_s7, 1  ;;  %vm219_vm1 = vcmask (!%p89_p2), 24576  }
   0x6   : > { %92 = sbr.rel (%p89_p2) target bundleno = 98 (0x62), region = 24  ;;  %p108_p3 = scmp.lt.s32.totalorder (!%p89_p2), %s381_s8, 63 }
   0xd   : > { %s537_s8 = smov (!%p108_p3, %s381_s8), 63  ;;  %s539_s7 = smov (!%p113_p4, %s418_s7), 1 }
   0xe   : > { %s382_s9 = sshll.u32 %s537_s8, 3  ;;  %s383_s13 = sshll.u32 %s539_s7, 1 }
   0xf   : > { %s426_s12 = scalar_lea.vmem %s534_s0, %s382_s9  ;;  %s116_s16 = scalar_lea.vmem %s535_s1, %s383_s13 }
  0x10   : > { %v117_v0 = vld [vmem:[%s426_s12] sm:$0xff]  ;;  %v118_v1 = vld [vmem:[%s426_s12 + $0x8] sm:$0xff]  ;;  %v119_v2 = vld [vmem:[%s426_s12 + $0x10] sm:$0xff] }
  0x11   : > { %v150_v3 = vsel %vm149_vm0, %v117_v0, 0.0  ;;  %v151_v4 = vsel %vm149_vm0, %v118_v1, 0.0  ;;  %v153_v5 = vsel %vm149_vm0, %v119_v2, 0.0  ;;  %v120_v6 = vld [vmem:[%s426_s12 + $0x18] sm:$0xff]  ;;  %v121_v9 = vld [vmem:[%s426_s12 + $0x20] sm:$0xff]  ;;  %v122_v12 = vld [vmem:[%s426_s12 + $0x28] sm:$0xff]  ;;  %v221_v27 = vmul.f32 %v117_v0, %v117_v0 }
  0x12   : > { %v152_v7 = vadd.f32 %v151_v4, %v150_v3  ;;  %v155_v8 = vsel %vm149_vm0, %v120_v6, 0.0  ;;  %v157_v11 = vsel %vm149_vm0, %v121_v9, 0.0  ;;  %v159_v14 = vsel %vm149_vm0, %v122_v12, 0.0  ;;  %v123_v15 = vld [vmem:[%s426_s12 + $0x30] sm:$0xff]  ;;  %v124_v18 = vld [vmem:[%s426_s12 + $0x38] sm:$0xff]  ;;  %v125_v21 = vld [vmem:[%s426_s12 + $0x40] sm:$0xff] }
  0x13   : > { %v161_v17 = vsel %vm149_vm0, %v123_v15, 0.0  ;;  %v163_v20 = vsel %vm149_vm0, %v124_v18, 0.0  ;;  %v165_v23 = vsel %vm149_vm0, %v125_v21, 0.0  ;;  %v126_v24 = vld [vmem:[%s426_s12 + $0x48] sm:$0xff]  ;;  %v222_v28 = vmul.f32 %v118_v1, %v118_v1  ;;  %v127_v30 = vld [vmem:[%s426_s12 + $0x50] sm:$0xff]  ;;  %v128_v32 = vld [vmem:[%s426_s12 + $0x58] sm:$0xff] }
  0x14   : > { %v154_v10 = vadd.f32 %v153_v5, %v152_v7  ;;  %v167_v26 = vsel %vm149_vm0, %v126_v24, 0.0  ;;  %v223_v29 = vmul.f32 %v119_v2, %v119_v2  ;;  %v169_v33 = vsel %vm149_vm0, %v127_v30, 0.0  ;;  %v129_v41 = vld [vmem:[%s426_s12 + $0x60] sm:$0xff]  ;;  %v130_v47 = vld [vmem:[%s426_s12 + $0x68] sm:$0xff]  ;;  %v131_v53 = vld [vmem:[%s426_s12 + $0x70] sm:$0xff] }
  0x15   : > { %v224_v34 = vmul.f32 %v120_v6, %v120_v6  ;;  %v171_v36 = vsel %vm149_vm0, %v128_v32, 0.0  ;;  %v225_v37 = vmul.f32 %v121_v9, %v121_v9  ;;  %v253_v38 = vsel %vm149_vm0, %v221_v27, 0.0  ;;  %v132_v59 = vld [vmem:[%s426_s12 + $0x78] sm:$0xff]  ;;  %v133_v1 = vld [vmem:[%s426_s12 + $0x80] sm:$0xff]  ;;  %v134_v7 = vld [vmem:[%s426_s12 + $0x88] sm:$0xff] }
  0x16   : > { %v156_v13 = vadd.f32 %v155_v8, %v154_v10  ;;  %v254_v39 = vsel %vm149_vm0, %v222_v28, 0.0  ;;  %v256_v40 = vsel %vm149_vm0, %v223_v29, 0.0  ;;  %v173_v44 = vsel %vm149_vm0, %v129_v41, 0.0 }
  0x17   : > { %v255_v43 = vadd.f32 %v254_v39, %v253_v38  ;;  %v226_v45 = vmul.f32 %v122_v12, %v122_v12  ;;  %v258_v46 = vsel %vm149_vm0, %v224_v34, 0.0  ;;  %v175_v50 = vsel %vm149_vm0, %v130_v47, 0.0 }
  0x18   : > { %v158_v16 = vadd.f32 %v157_v11, %v156_v13  ;;  %v227_v51 = vmul.f32 %v123_v15, %v123_v15  ;;  %v260_v52 = vsel %vm149_vm0, %v225_v37, 0.0  ;;  %v177_v56 = vsel %vm149_vm0, %v131_v53, 0.0  ;;  %v135_v13 = vld [vmem:[%s426_s12 + $0x90] sm:$0xff] }
  0x19   : > { %v257_v49 = vadd.f32 %v256_v40, %v255_v43  ;;  %v228_v57 = vmul.f32 %v124_v18, %v124_v18  ;;  %v262_v58 = vsel %vm149_vm0, %v226_v45, 0.0  ;;  %v179_v62 = vsel %vm149_vm0, %v132_v59, 0.0  ;;  %v139_v37 = vld [vmem:[%s426_s12 + $0xb0] sm:$0xff]  ;;  %v140_v43 = vld [vmem:[%s426_s12 + $0xb8] sm:$0xff] }
  0x1a   : > { %v160_v19 = vadd.f32 %v159_v14, %v158_v16  ;;  %v229_v63 = vmul.f32 %v125_v21, %v125_v21  ;;  %v264_v0 = vsel %vm149_vm0, %v227_v51, 0.0  ;;  %v181_v4 = vsel %vm149_vm0, %v133_v1, 0.0 }
  0x1b   : > { %v259_v55 = vadd.f32 %v258_v46, %v257_v49  ;;  %v230_v5 = vmul.f32 %v126_v24, %v126_v24  ;;  %v266_v6 = vsel %vm149_vm0, %v228_v57, 0.0  ;;  %v183_v10 = vsel %vm149_vm0, %v134_v7, 0.0  ;;  %v141_v49 = vld [vmem:[%s426_s12 + $0xc0] sm:$0xff] }
  0x1c   : > { %v162_v22 = vadd.f32 %v161_v17, %v160_v19  ;;  %v231_v11 = vmul.f32 %v127_v30, %v127_v30  ;;  %v268_v12 = vsel %vm149_vm0, %v229_v63, 0.0  ;;  %v185_v16 = vsel %vm149_vm0, %v135_v13, 0.0  ;;  %v136_v19 = vld [vmem:[%s426_s12 + $0x98] sm:$0xff] }
  0x1d   : > { %v261_v61 = vadd.f32 %v260_v52, %v259_v55  ;;  %v232_v17 = vmul.f32 %v128_v32, %v128_v32  ;;  %v270_v18 = vsel %vm149_vm0, %v230_v5, 0.0  ;;  %v234_v29 = vmul.f32 %v130_v47, %v130_v47  ;;  %v142_v55 = vld [vmem:[%s426_s12 + $0xc8] sm:$0xff] }
  0x1e   : > { %v164_v25 = vadd.f32 %v163_v20, %v162_v22  ;;  %v187_v22 = vsel %vm149_vm0, %v136_v19, 0.0  ;;  %v272_v24 = vsel %vm149_vm0, %v231_v11, 0.0  ;;  %v193_v40 = vsel %vm149_vm0, %v139_v37, 0.0 }
  0x1f   : > { %v263_v3 = vadd.f32 %v262_v58, %v261_v61  ;;  %v274_v30 = vsel %vm149_vm0, %v232_v17, 0.0  ;;  %v195_v46 = vsel %vm149_vm0, %v140_v43, 0.0  ;;  %v237_v47 = vmul.f32 %v133_v1, %v133_v1  ;;  %v143_v61 = vld [vmem:[%s426_s12 + $0xd0] sm:$0xff] }
  0x20   : > { %v166_v31 = vadd.f32 %v165_v23, %v164_v25  ;;  %v233_v23 = vmul.f32 %v129_v41, %v129_v41  ;;  %v137_v25 = vld [vmem:[%s426_s12 + $0xa0] sm:$0xff]  ;;  %v236_v41 = vmul.f32 %v132_v59, %v132_v59  ;;  %v197_v52 = vsel %vm149_vm0, %v141_v49, 0.0 }
  0x21   : > { %v265_v9 = vadd.f32 %v264_v0, %v263_v3  ;;  %v189_v28 = vsel %vm149_vm0, %v137_v25, 0.0  ;;  %v199_v58 = vsel %vm149_vm0, %v142_v55, 0.0  ;;  %v239_v59 = vmul.f32 %v135_v13, %v135_v13  ;;  %v144_v3 = vld [vmem:[%s426_s12 + $0xd8] sm:$0xff] }
  0x22   : > { %v168_v35 = vadd.f32 %v167_v26, %v166_v31  ;;  %v138_v31 = vld [vmem:[%s426_s12 + $0xa8] sm:$0xff]  ;;  %v201_v0 = vsel %vm149_vm0, %v143_v61, 0.0  ;;  %v240_v1 = vmul.f32 %v136_v19, %v136_v19  ;;  %v243_v19 = vmul.f32 %v139_v37, %v139_v37 }
  0x23   : > { %v267_v15 = vadd.f32 %v266_v6, %v265_v9  ;;  %v191_v34 = vsel %vm149_vm0, %v138_v31, 0.0  ;;  %v203_v6 = vsel %vm149_vm0, %v144_v3, 0.0  ;;  %v145_v9 = vld [vmem:[%s426_s12 + $0xe0] sm:$0xff]  ;;  %v242_v13 = vmul.f32 %v138_v31, %v138_v31 }
  0x24   : > { %v170_v42 = vadd.f32 %v169_v33, %v168_v35  ;;  %v235_v35 = vmul.f32 %v131_v53, %v131_v53  ;;  %v238_v53 = vmul.f32 %v134_v7, %v134_v7  ;;  %v241_v7 = vmul.f32 %v137_v25, %v137_v25 }
  0x25   : > { %v269_v21 = vadd.f32 %v268_v12, %v267_v15  ;;  %v205_v12 = vsel %vm149_vm0, %v145_v9, 0.0  ;;  %v146_v15 = vld [vmem:[%s426_s12 + $0xe8] sm:$0xff]  ;;  %v244_v25 = vmul.f32 %v140_v43, %v140_v43  ;;  %v245_v31 = vmul.f32 %v141_v49, %v141_v49 }
  0x26   : > { %v172_v48 = vadd.f32 %v171_v36, %v170_v42  ;;  %v276_v36 = vsel %vm149_vm0, %v233_v23, 0.0  ;;  %v278_v42 = vsel %vm149_vm0, %v234_v29, 0.0  ;;  %v248_v43 = vmul.f32 %v144_v3, %v144_v3 }
  0x27   : > { %v271_v27 = vadd.f32 %v270_v18, %v269_v21  ;;  %v207_v18 = vsel %vm149_vm0, %v146_v15, 0.0  ;;  %v147_v21 = vld [vmem:[%s426_s12 + $0xf0] sm:$0xff] }
  0x28   : > { %v174_v54 = vadd.f32 %v173_v44, %v172_v48  ;;  %v280_v48 = vsel %vm149_vm0, %v235_v35, 0.0  ;;  %v246_v35 = vmul.f32 %v142_v55, %v142_v55  ;;  %v251_v55 = vmul.f32 %v147_v21, %v147_v21 }
  0x29   : > { %v273_v33 = vadd.f32 %v272_v24, %v271_v27  ;;  %v209_v24 = vsel %vm149_vm0, %v147_v21, 0.0  ;;  %v148_v27 = vld [vmem:[%s426_s12 + $0xf8] sm:$0xff] }
  0x2a   : > { %v176_v60 = vadd.f32 %v175_v50, %v174_v54  ;;  %v282_v54 = vsel %vm149_vm0, %v236_v41, 0.0 }
  0x2b   : > { %v275_v39 = vadd.f32 %v274_v30, %v273_v33  ;;  %v211_v30 = vsel %vm149_vm0, %v148_v27, 0.0 }
  0x2c   : > { %v178_v2 = vadd.f32 %v177_v56, %v176_v60  ;;  %v284_v60 = vsel %vm149_vm0, %v237_v47, 0.0  ;;  %v249_v47 = vmul.f32 %v145_v9, %v145_v9 }
  0x2d   : > { %v277_v45 = vadd.f32 %v276_v36, %v275_v39  ;;  %v298_v36 = vsel %vm149_vm0, %v244_v25, 0.0  ;;  %v247_v39 = vmul.f32 %v143_v61, %v143_v61 }
  0x2e   : > { %v180_v8 = vadd.f32 %v179_v62, %v178_v2  ;;  %v286_v2 = vsel %vm149_vm0, %v238_v53, 0.0 }
  0x2f   : > { %v279_v51 = vadd.f32 %v278_v42, %v277_v45 }
  0x30   : > { %v182_v14 = vadd.f32 %v181_v4, %v180_v8  ;;  %v288_v8 = vsel %vm149_vm0, %v239_v59, 0.0  ;;  %v252_v59 = vmul.f32 %v148_v27, %v148_v27 }
  0x31   : > { %v281_v57 = vadd.f32 %v280_v48, %v279_v51  ;;  %v304_v48 = vsel %vm149_vm0, %v247_v39, 0.0  ;;  %v250_v51 = vmul.f32 %v146_v15, %v146_v15 }
  0x32   : > { %v184_v20 = vadd.f32 %v183_v10, %v182_v14  ;;  %v290_v14 = vsel %vm149_vm0, %v240_v1, 0.0  ;;  %v314_v1 = vsel %vm149_vm0, %v252_v59, 0.0 }
  0x33   : > { %v283_v63 = vadd.f32 %v282_v54, %v281_v57 }
  0x34   : > { %v186_v26 = vadd.f32 %v185_v16, %v184_v20  ;;  %v292_v20 = vsel %vm149_vm0, %v241_v7, 0.0 }
  0x35   : > { %v285_v5 = vadd.f32 %v284_v60, %v283_v63  ;;  %v310_v60 = vsel %vm149_vm0, %v250_v51, 0.0  ;;  %v312_v63 = vsel %vm149_vm0, %v251_v55, 0.0 }
  0x36   : > { %v188_v32 = vadd.f32 %v187_v22, %v186_v26  ;;  %v294_v26 = vsel %vm149_vm0, %v242_v13, 0.0 }
  0x37   : > { %v287_v11 = vadd.f32 %v286_v2, %v285_v5 }
  0x38   : > { %v190_v38 = vadd.f32 %v189_v28, %v188_v32  ;;  %v296_v32 = vsel %vm149_vm0, %v243_v19, 0.0 }
  0x39   : > { %v289_v17 = vadd.f32 %v288_v8, %v287_v11 }
  0x3a   : > { %v192_v44 = vadd.f32 %v191_v34, %v190_v38 }
  0x3b   : > { %v291_v23 = vadd.f32 %v290_v14, %v289_v17 }
  0x3c   : > { %v194_v50 = vadd.f32 %v193_v40, %v192_v44  ;;  %v300_v40 = vsel %vm149_vm0, %v245_v31, 0.0  ;;  %v302_v44 = vsel %vm149_vm0, %v246_v35, 0.0 }
  0x3d   : > { %v293_v29 = vadd.f32 %v292_v20, %v291_v23 }
  0x3e   : > { %v196_v56 = vadd.f32 %v195_v46, %v194_v50 }
  0x3f   : > { %v295_v34 = vadd.f32 %v294_v26, %v293_v29 }
  0x40   : > { %v198_v62 = vadd.f32 %v197_v52, %v196_v56  ;;  %v306_v52 = vsel %vm149_vm0, %v248_v43, 0.0  ;;  %v308_v56 = vsel %vm149_vm0, %v249_v47, 0.0 }
  0x41   : > { %v297_v38 = vadd.f32 %v296_v32, %v295_v34 }
  0x42   : > { %v200_v4 = vadd.f32 %v199_v58, %v198_v62 }
  0x43   : > { %v299_v42 = vadd.f32 %v298_v36, %v297_v38 }
  0x44   : > { %v202_v10 = vadd.f32 %v201_v0, %v200_v4 }
  0x45   : > { %v301_v46 = vadd.f32 %v300_v40, %v299_v42 }
  0x46   : > { %v204_v16 = vadd.f32 %v203_v6, %v202_v10 }
  0x47   : > { %v303_v50 = vadd.f32 %v302_v44, %v301_v46 }
  0x48   : > { %v206_v22 = vadd.f32 %v205_v12, %v204_v16 }
  0x49   : > { %v305_v54 = vadd.f32 %v304_v48, %v303_v50 }
  0x4a   : > { %v208_v28 = vadd.f32 %v207_v18, %v206_v22 }
  0x4b   : > { %v307_v58 = vadd.f32 %v306_v52, %v305_v54 }
  0x4c   : > { %v210_v33 = vadd.f32 %v209_v24, %v208_v28 }
  0x4d   : > { %v309_v62 = vadd.f32 %v308_v56, %v307_v58 }
  0x4e   : > { %v212_v37 = vadd.f32 %v211_v30, %v210_v33 }
  0x4f   : > { %v311_v0 = vadd.f32 %v310_v60, %v309_v62 }
  0x50   : > { %v213_v41 = vrot.slane %v212_v37, 4 }
  0x51   : > { %v313_v2 = vadd.f32 %v312_v63, %v311_v0 }
  0x52   : > { %v214_v45 = vadd.f32 %v213_v41, %v212_v37 }
  0x53   : > { %v315_v3 = vadd.f32 %v314_v1, %v313_v2 }
  0x54   : > { %v215_v49 = vrot.slane %v214_v45, 2 }
  0x55   : > { %v316_v4 = vrot.slane %v315_v3, 4 }
  0x56   : > { %v216_v53 = vadd.f32 %v215_v49, %v214_v45 }
  0x57   : > { %v317_v5 = vadd.f32 %v316_v4, %v315_v3 }
  0x58   : > { %v217_v57 = vrot.slane %v216_v53, 1 }
  0x59   : > { %v318_v6 = vrot.slane %v317_v5, 2 }
  0x5a   : > { %v218_v61 = vadd.f32 %v217_v57, %v216_v53 }
  0x5b   : > { %v319_v7 = vadd.f32 %v318_v6, %v317_v5 }
  0x5c   : > { %220 = vst.msk [vmem:[%s116_s16] sm:$0x1] %vm219_vm1, %v218_v61 }
  0x5d   : > { %v320_v8 = vrot.slane %v319_v7, 1 }
  0x5f   : > { %v321_v9 = vadd.f32 %v320_v8, %v319_v7 }
  0x61   : > { %322 = vst.msk [vmem:[%s116_s16 + $0x1] sm:$0x1] %vm219_vm1, %v321_v9 }
  0x62 PF: > { %s11_s6 = sadd.s32 1, %s400_s6  }
  0x63   : > { %p8_p5 = scmp.ge.s32.totalorder %s11_s6, 4  }
  0x65   :  { %10 = sbr.rel (!%p8_p5) target bundleno = 1 (0x1), region = 54 }

// kernel: dense_block_forward.10
= control target key start
LH: loop header
LB: loop body
LE: loop exit
PB: predicated region body
PF: predicated region fallthrough
CT: control target
= control target key end

     0   :  { %s1077_s21 = smov 0   ;;  %s1454_s0 = inlined_call_operand.vmem [shape: f32[512,4], index: 0, kind: input, shape index: {}]   ;;  %s1455_s1 = inlined_call_operand.vmem [shape: f32[1,4], index: 1, kind: input, shape index: {}]   ;;  %s1456_s2 = inlined_call_operand.vmem [shape: f32[1,4], index: 2, kind: input, shape index: {}]   ;;  %s1457_s3 = inlined_call_operand.vmem [shape: bf16[4,16], index: 3, kind: input, shape index: {}]   ;;  %s1458_s4 = inlined_call_operand.vmem [shape: f32[1,16], index: 4, kind: input, shape index: {}]   ;;  %s1459_s5 = inlined_call_operand.vmem [shape: f32[512,16], index: 5, kind: output, shape index: {0}]   ;;  %s1460_s6 = inlined_call_operand.vmem [shape: f32[2,2,16], index: 6, kind: output, shape index: {1}]  }
   0x1 LB: > { %s1083_s22 = sadd.s32 4294967295, %s1040_s21   ;;  %p944_p0 = scmp.ge.s32.totalorder %s1040_s21, 1  ;;  %s1040_s21 = sphi %s1077_s21, %s17_s21  }
   0x2   : > { %p216_p1 = scmp.lt.s32.totalorder %s1040_s21, 3 }
   0x4   : > { %p217_p2 = pnand %p944_p0, %p216_p1 }
   0x5   : > { %v425_v0 = vld [vmem:[%s1457_s3] sm:$0x3] (!%p217_p2)  ;;  %vm482_vm0 = vcmask (!%p217_p2), 1041408   ;;  %s945_s25 = sshll.u32 (!%p217_p2), %s1083_s22, 5  ;;  %vm433_vm1 = vcmask (!%p217_p2), 31744   ;;  %vm647_vm2 = vcmask (!%p217_p2), 130048  }
   0x6   : > { %220 = sbr.rel (%p217_p2) target bundleno = 321 (0x141), region = 40  ;;  %1024 = vmatprep.subr.msk.bf16.mxu0 (!%p217_p2), %vm482_vm0, %v425_v0  ;;  %v484_v1 = vsel (!%p217_p2), %vm482_vm0, %v425_v0, 0  ;;  %p251_p3 = scmp.lt.s32.totalorder (!%p217_p2), %s945_s25, 63  ;;  %1025 = vmatprep.subr.msk.bf16.mxu1 (!%p217_p2), %vm482_vm0, %v425_v0  ;;  %v1097_v2 = vld [vmem:[%s1455_s1] ss:$0 sm:$0xff] (!%p217_p2)  ;;  %vm749_vm3 = vcmask (!%p217_p2), 122880  }
   0x7   : > { %989 = vmatpush3.bf16.msra.mxu0 (!%p217_p2), %v484_v1  ;;  %1023 = vmatpush3.bf16.msra.mxu1 (!%p217_p2), %v484_v1  ;;  %v1109_v3 = vld [vmem:[%s1456_s2] ss:$0 sm:$0xff] (!%p217_p2)  ;;  %p262_p4 = scmp.lt.s32.totalorder (!%p217_p2), %s1083_s22, 1 }
   0xd   : > { %s1462_s25 = smov (!%p251_p3, %s945_s25), 63  ;;  %s1464_s22 = smov (!%p262_p4, %s1083_s22), 1 }
   0xe   : > { %s946_s26 = sshll.u32 %s1462_s25, 3  ;;  %s949_s15 = sshll.u32 %s1464_s22, 1 }
   0xf   : > { %s1104_s7 = scalar_lea.vmem %s1454_s0, %s946_s26  ;;  %s1236_s14 = scalar_lea.vmem %s1459_s5, %s946_s26 }
  0x10   : > { %v267_v4 = vld [vmem:[%s1104_s7] sm:$0xff]  ;;  %v268_v5 = vld [vmem:[%s1104_s7 + $0x8] sm:$0xff]  ;;  %v269_v6 = vld [vmem:[%s1104_s7 + $0x10] sm:$0xff]  ;;  %s265_s18 = scalar_lea.vmem %s1460_s6, %s949_s15 }
  0x11   : > { %v306_v7 = vmul.f32 %v1097_v2, %v267_v4  ;;  %v307_v8 = vmul.f32 %v1097_v2, %v268_v5  ;;  %v270_v9 = vld [vmem:[%s1104_s7 + $0x18] sm:$0xff]  ;;  %v308_v10 = vmul.f32 %v1097_v2, %v269_v6  ;;  %v271_v11 = vld [vmem:[%s1104_s7 + $0x20] sm:$0xff]  ;;  %v272_v12 = vld [vmem:[%s1104_s7 + $0x28] sm:$0xff] }
  0x12   : > { %v309_v13 = vmul.f32 %v1097_v2, %v270_v9  ;;  %v310_v14 = vmul.f32 %v1097_v2, %v271_v11  ;;  %v311_v15 = vmul.f32 %v1097_v2, %v272_v12  ;;  %v273_v16 = vld [vmem:[%s1104_s7 + $0x30] sm:$0xff]  ;;  %v274_v17 = vld [vmem:[%s1104_s7 + $0x38] sm:$0xff]  ;;  %v275_v26 = vld [vmem:[%s1104_s7 + $0x40] sm:$0xff] }
  0x13   : > { %v345_v18 = vadd.f32 %v1109_v3, %v306_v7  ;;  %v346_v19 = vadd.f32 %v1109_v3, %v307_v8  ;;  %v347_v20 = vadd.f32 %v1109_v3, %v308_v10  ;;  %v312_v21 = vmul.f32 %v1097_v2, %v273_v16  ;;  %v276_v27 = vld [vmem:[%s1104_s7 + $0x48] sm:$0xff]  ;;  %v277_v32 = vld [vmem:[%s1104_s7 + $0x50] sm:$0xff]  ;;  %v278_v37 = vld [vmem:[%s1104_s7 + $0x58] sm:$0xff] }
  0x14   : > { %v348_v22 = vadd.f32 %v1109_v3, %v309_v13  ;;  %v349_v23 = vadd.f32 %v1109_v3, %v310_v14  ;;  %v350_v24 = vadd.f32 %v1109_v3, %v311_v15  ;;  %v313_v25 = vmul.f32 %v1097_v2, %v274_v17  ;;  %v279_v38 = vld [vmem:[%s1104_s7 + $0x60] sm:$0xff]  ;;  %v280_v43 = vld [vmem:[%s1104_s7 + $0x68] sm:$0xff]  ;;  %v281_v44 = vld [vmem:[%s1104_s7 + $0x70] sm:$0xff] }
  0x15   : > { %v377_v28 = vmax.f32 %v345_v18, 0.0  ;;  %v378_v29 = vmax.f32 %v346_v19, 0.0  ;;  %v379_v30 = vmax.f32 %v347_v20, 0.0  ;;  %v351_v31 = vadd.f32 %v1109_v3, %v312_v21  ;;  %v282_v53 = vld [vmem:[%s1104_s7 + $0x78] sm:$0xff]  ;;  %v283_v57 = vld [vmem:[%s1104_s7 + $0x80] sm:$0xff]  ;;  %v284_v62 = vld [vmem:[%s1104_s7 + $0x88] sm:$0xff] }
  0x16   : > { %v380_v33 = vmax.f32 %v348_v22, 0.0  ;;  %v381_v34 = vmax.f32 %v349_v23, 0.0  ;;  %v382_v35 = vmax.f32 %v350_v24, 0.0  ;;  %v352_v36 = vadd.f32 %v1109_v3, %v313_v25  ;;  %v285_v1 = vld [vmem:[%s1104_s7 + $0x90] sm:$0xff]  ;;  %v286_v4 = vld [vmem:[%s1104_s7 + $0x98] sm:$0xff]  ;;  %v287_v8 = vld [vmem:[%s1104_s7 + $0xa0] sm:$0xff] }
  0x17   : > { %v409_v39 = vpack.c.bf16 %v378_v29, %v377_v28  ;;  %v383_v40 = vmax.f32 %v351_v31, 0.0  ;;  %v314_v41 = vmul.f32 %v1097_v2, %v275_v26  ;;  %v315_v42 = vmul.f32 %v1097_v2, %v276_v27  ;;  %v288_v13 = vld [vmem:[%s1104_s7 + $0xa8] sm:$0xff]  ;;  %v289_v18 = vld [vmem:[%s1104_s7 + $0xb0] sm:$0xff]  ;;  %v290_v23 = vld [vmem:[%s1104_s7 + $0xb8] sm:$0xff] }
  0x18   : > { %v410_v45 = vpack.c.bf16 %v380_v33, %v379_v30  ;;  %v411_v46 = vpack.c.bf16 %v382_v35, %v381_v34  ;;  %v384_v47 = vmax.f32 %v352_v36, 0.0  ;;  %v316_v48 = vmul.f32 %v1097_v2, %v277_v32  ;;  %v291_v28 = vld [vmem:[%s1104_s7 + $0xc0] sm:$0xff]  ;;  %v292_v33 = vld [vmem:[%s1104_s7 + $0xc8] sm:$0xff] }
  0x19   : > { %990 = vmatprep.mubr.msk.bf16.mxu0 %vm433_vm1, %v409_v39  ;;  %v353_v49 = vadd.f32 %v1109_v3, %v314_v41  ;;  %v354_v50 = vadd.f32 %v1109_v3, %v315_v42  ;;  %v317_v51 = vmul.f32 %v1097_v2, %v278_v37  ;;  %v318_v52 = vmul.f32 %v1097_v2, %v279_v38  ;;  %v293_v38 = vld [vmem:[%s1104_s7 + $0xd0] sm:$0xff] }
  0x1a   : > { %991 = vmatmul.mubr.msk.bf16.vlgmr.msra.gmra.mrb[0].mxu0 %vm433_vm1, %v410_v45  ;;  %v355_v54 = vadd.f32 %v1109_v3, %v316_v48  ;;  %v319_v55 = vmul.f32 %v1097_v2, %v280_v43  ;;  %v320_v56 = vmul.f32 %v1097_v2, %v281_v44  ;;  %v321_v0 = vmul.f32 %v1097_v2, %v282_v53  ;;  %v294_v43 = vld [vmem:[%s1104_s7 + $0xd8] sm:$0xff]  ;;  %v295_v48 = vld [vmem:[%s1104_s7 + $0xe0] sm:$0xff] }
  0x1b   : > { %994 = vmatprep.mubr.msk.bf16.mxu0 %vm433_vm1, %v411_v46  ;;  %v385_v58 = vmax.f32 %v353_v49, 0.0  ;;  %v386_v59 = vmax.f32 %v354_v50, 0.0  ;;  %v356_v60 = vadd.f32 %v1109_v3, %v317_v51  ;;  %v357_v61 = vadd.f32 %v1109_v3, %v318_v52  ;;  %v296_v49 = vld [vmem:[%s1104_s7 + $0xe8] sm:$0xff] }
  0x1c   : > { %v358_v63 = vadd.f32 %v1109_v3, %v319_v55  ;;  %v412_v5 = vpack.c.bf16 %v384_v47, %v383_v40  ;;  %v387_v6 = vmax.f32 %v355_v54, 0.0  ;;  %v322_v7 = vmul.f32 %v1097_v2, %v283_v57 }
  0x1d   : > { %v413_v9 = vpack.c.bf16 %v386_v59, %v385_v58  ;;  %v388_v10 = vmax.f32 %v356_v60, 0.0  ;;  %v1167_v11 = vadd.f32 %v1109_v3, %v320_v56  ;;  %v323_v12 = vmul.f32 %v1097_v2, %v284_v62 }
  0x1e   : > { %v389_v14 = vmax.f32 %v357_v61, 0.0  ;;  %v361_v15 = vadd.f32 %v1109_v3, %v322_v7  ;;  %v324_v16 = vmul.f32 %v1097_v2, %v285_v1  ;;  %v325_v17 = vmul.f32 %v1097_v2, %v286_v4 }
  0x1f   : > { %v390_v19 = vmax.f32 %v358_v63, 0.0  ;;  %v360_v20 = vadd.f32 %v1109_v3, %v321_v0  ;;  %v362_v21 = vadd.f32 %v1109_v3, %v323_v12  ;;  %v326_v22 = vmul.f32 %v1097_v2, %v287_v8  ;;  %v297_v8 = vld [vmem:[%s1104_s7 + $0xf0] sm:$0xff] }
  0x20   : > { %v393_v24 = vmax.f32 %v361_v15, 0.0  ;;  %v363_v25 = vadd.f32 %v1109_v3, %v324_v16  ;;  %v364_v26 = vadd.f32 %v1109_v3, %v325_v17  ;;  %v327_v27 = vmul.f32 %v1097_v2, %v288_v13 }
  0x21   : > { %v414_v29 = vpack.c.bf16 %v388_v10, %v387_v6  ;;  %v394_v30 = vmax.f32 %v362_v21, 0.0  ;;  %v365_v31 = vadd.f32 %v1109_v3, %v326_v22  ;;  %v328_v32 = vmul.f32 %v1097_v2, %v289_v18 }
  0x22   : > { %995 = vmatmul.mubr.msk.bf16.gmra.mrb[4].mxu0 %vm433_vm1, %v412_v5  ;;  %v395_v34 = vmax.f32 %v363_v25, 0.0  ;;  %v396_v35 = vmax.f32 %v364_v26, 0.0  ;;  %v366_v36 = vadd.f32 %v1109_v3, %v327_v27  ;;  %v329_v37 = vmul.f32 %v1097_v2, %v290_v23  ;;  %v1229_v23 = vld [vmem:[%s1458_s4] ss:$0 sm:$0xff] }
  0x23   : > { %998 = vmatprep.mubr.msk.bf16.mxu0 %vm433_vm1, %v413_v9  ;;  %v417_v39 = vpack.c.bf16 %v394_v30, %v393_v24  ;;  %v397_v40 = vmax.f32 %v365_v31, 0.0  ;;  %v367_v41 = vadd.f32 %v1109_v3, %v328_v32  ;;  %v330_v42 = vmul.f32 %v1097_v2, %v291_v28  ;;  %v298_v9 = vld [vmem:[%s1104_s7 + $0xf8] sm:$0xff] }
  0x24   : > { %v418_v44 = vpack.c.bf16 %v396_v35, %v395_v34  ;;  %v398_v45 = vmax.f32 %v366_v36, 0.0  ;;  %v368_v46 = vadd.f32 %v1109_v3, %v329_v37  ;;  %v331_v47 = vmul.f32 %v1097_v2, %v292_v33 }
  0x25   : > { %v415_v50 = vpack.c.bf16 %v390_v19, %v389_v14  ;;  %1006 = vmatprep.mubr.msk.bf16.mxu1 %vm433_vm1, %v417_v39  ;;  %v399_v51 = vmax.f32 %v367_v41, 0.0  ;;  %v369_v52 = vadd.f32 %v1109_v3, %v330_v42  ;;  %v332_v53 = vmul.f32 %v1097_v2, %v293_v38 }
  0x26   : > { %1007 = vmatmul.mubr.msk.bf16.vlgmr.msra.gmra.mrb[0].mxu1 %vm433_vm1, %v418_v44  ;;  %v419_v54 = vpack.c.bf16 %v398_v45, %v397_v40  ;;  %v400_v55 = vmax.f32 %v368_v46, 0.0  ;;  %v370_v56 = vadd.f32 %v1109_v3, %v331_v47  ;;  %v333_v57 = vmul.f32 %v1097_v2, %v294_v43 }
  0x27   : > { %v401_v58 = vmax.f32 %v369_v52, 0.0  ;;  %v334_v59 = vmul.f32 %v1097_v2, %v295_v48  ;;  %v335_v60 = vmul.f32 %v1097_v2, %v296_v49  ;;  %v391_v62 = vmax.f32 %v1167_v11, 0.0 }
  0x28   : > { %1010 = vmatprep.mubr.msk.bf16.mxu1 %vm433_vm1, %v419_v54  ;;  %v402_v61 = vmax.f32 %v370_v56, 0.0  ;;  %v392_v63 = vmax.f32 %v360_v20, 0.0  ;;  %v420_v0 = vpack.c.bf16 %v400_v55, %v399_v51  ;;  %v371_v1 = vadd.f32 %v1109_v3, %v332_v53 }
  0x29   : > { %v372_v4 = vadd.f32 %v1109_v3, %v333_v57  ;;  %v373_v6 = vadd.f32 %v1109_v3, %v334_v59  ;;  %v374_v7 = vadd.f32 %v1109_v3, %v335_v60  ;;  %v336_v13 = vmul.f32 %v1097_v2, %v297_v8 }
  0x2a   : > { %999 = vmatmul.mubr.msk.bf16.gmra.mrb[8].mxu0 %vm433_vm1, %v414_v29  ;;  %v421_v5 = vpack.c.bf16 %v402_v61, %v401_v58  ;;  %v416_v10 = vpack.c.bf16 %v392_v63, %v391_v62  ;;  %v403_v12 = vmax.f32 %v371_v1, 0.0  ;;  %v337_v14 = vmul.f32 %v1097_v2, %v298_v9 }
  0x2b   : > { %1002 = vmatprep.mubr.msk.bf16.mxu0 %vm433_vm1, %v415_v50  ;;  %v404_v11 = vmax.f32 %v372_v4, 0.0  ;;  %v405_v15 = vmax.f32 %v373_v6, 0.0  ;;  %v406_v16 = vmax.f32 %v374_v7, 0.0  ;;  %v375_v18 = vadd.f32 %v1109_v3, %v336_v13 }
  0x2c   : > { %v376_v19 = vadd.f32 %v1109_v3, %v337_v14 }
  0x2d   : > { %v422_v17 = vpack.c.bf16 %v404_v11, %v403_v12  ;;  %v423_v20 = vpack.c.bf16 %v406_v16, %v405_v15  ;;  %v407_v21 = vmax.f32 %v375_v18, 0.0 }
  0x2e   : > { %1011 = vmatmul.mubr.msk.bf16.gmra.mrb[4].mxu1 %vm433_vm1, %v420_v0  ;;  %v408_v22 = vmax.f32 %v376_v19, 0.0 }
  0x2f   : > { %1014 = vmatprep.mubr.msk.bf16.mxu1 %vm433_vm1, %v421_v5 }
  0x30   : > { %v424_v2 = vpack.c.bf16 %v408_v22, %v407_v21 }
  0x32   : > { %1003 = vmatmul.mubr.msk.bf16.gmra.mrb[12].mxu0 %vm433_vm1, %v416_v10 }
  0x36   : > { %1015 = vmatmul.mubr.msk.bf16.gmra.mrb[8].mxu1 %vm433_vm1, %v422_v17 }
  0x37   : > { %1018 = vmatprep.mubr.msk.bf16.mxu1 %vm433_vm1, %v423_v20 }
  0x3e   : > { %1019 = vmatmul.mubr.msk.bf16.gmra.mrb[12].mxu1 %vm433_vm1, %v424_v2 }
  0xed   : > { %v992_v3 = vpop.f32.mrb[0].mxu0 }
  0xee   : > { %v529_v24 = vadd.f32 %v992_v3, %v1229_v23  ;;  %v520_v25 = vpop.f32.mrb[1].mxu0 }
  0xef   : > { %v521_v26 = vadd.f32 %v1229_v23, %v520_v25  ;;  %v993_v27 = vpop.f32.mrb[2].mxu0 }
  0xf0   : > { %650 = vst.msk [vmem:[%s1236_s14 + $0x10] sm:$0xff] %vm647_vm2, %v529_v24  ;;  %v532_v28 = vadd.f32 %v993_v27, %v1229_v23  ;;  %v523_v29 = vpop.f32.mrb[3].mxu0  ;;  %v753_v32 = vmul.f32 %v529_v24, %v529_v24  ;;  %v683_v38 = vsel %vm647_vm2, %v529_v24, 0.0 }
  0xf1   : > { %648 = vst.msk [vmem:[%s1236_s14] sm:$0xff] %vm647_vm2, %v521_v26  ;;  %v751_v30 = vmul.f32 %v521_v26, %v521_v26  ;;  %v524_v31 = vadd.f32 %v1229_v23, %v523_v29  ;;  %v680_v33 = vsel %vm647_vm2, %v521_v26, 0.0 }
  0xf2   : > { %651 = vst.msk [vmem:[%s1236_s14 + $0x18] sm:$0xff] %vm647_vm2, %v532_v28  ;;  %v754_v36 = vmul.f32 %v532_v28, %v532_v28  ;;  %v786_v46 = vsel %vm647_vm2, %v753_v32, 0.0  ;;  %v685_v47 = vsel %vm647_vm2, %v532_v28, 0.0 }
  0xf3   : > { %649 = vst.msk [vmem:[%s1236_s14 + $0x8] sm:$0xff] %vm647_vm2, %v524_v31  ;;  %v681_v34 = vsel %vm647_vm2, %v524_v31, 0.0  ;;  %v752_v35 = vmul.f32 %v524_v31, %v524_v31  ;;  %v783_v39 = vsel %vm647_vm2, %v751_v30, 0.0 }
  0xf4   : > { %v682_v37 = vadd.f32 %v681_v34, %v680_v33  ;;  %v788_v50 = vsel %vm647_vm2, %v754_v36, 0.0 }
  0xf5   : > { %v784_v40 = vsel %vm647_vm2, %v752_v35, 0.0  ;;  %v996_v41 = vpop.f32.mrb[4].mxu0 }
  0xf6   : > { %v684_v42 = vadd.f32 %v683_v38, %v682_v37  ;;  %v785_v43 = vadd.f32 %v784_v40, %v783_v39  ;;  %v545_v44 = vadd.f32 %v996_v41, %v1229_v23  ;;  %v536_v45 = vpop.f32.mrb[5].mxu0 }
  0xf7   : > { %v537_v48 = vadd.f32 %v1229_v23, %v536_v45  ;;  %v997_v49 = vpop.f32.mrb[6].mxu0 }
  0xf8   : > { %v787_v51 = vadd.f32 %v786_v46, %v785_v43  ;;  %654 = vst.msk [vmem:[%s1236_s14 + $0x30] sm:$0xff] %vm647_vm2, %v545_v44  ;;  %v686_v52 = vadd.f32 %v685_v47, %v684_v42  ;;  %v539_v53 = vpop.f32.mrb[7].mxu0  ;;  %v548_v56 = vadd.f32 %v997_v49, %v1229_v23  ;;  %v757_v61 = vmul.f32 %v545_v44, %v545_v44 }
  0xf9   : > { %652 = vst.msk [vmem:[%s1236_s14 + $0x20] sm:$0xff] %vm647_vm2, %v537_v48  ;;  %v687_v54 = vsel %vm647_vm2, %v537_v48, 0.0  ;;  %v755_v55 = vmul.f32 %v537_v48, %v537_v48  ;;  %v540_v57 = vadd.f32 %v1229_v23, %v539_v53  ;;  %v1008_v60 = vpop.f32.mrb[0].mxu1  ;;  %v691_v8 = vsel %vm647_vm2, %v545_v44, 0.0 }
  0xfa   : > { %v688_v58 = vadd.f32 %v687_v54, %v686_v52  ;;  %v789_v59 = vadd.f32 %v788_v50, %v787_v51  ;;  %655 = vst.msk [vmem:[%s1236_s14 + $0x38] sm:$0xff] %vm647_vm2, %v548_v56  ;;  %v584_v0 = vpop.f32.mrb[1].mxu1  ;;  %v1274_v6 = vadd.f32 %v1008_v60, %v1229_v23  ;;  %v758_v13 = vmul.f32 %v548_v56, %v548_v56 }
  0xfb   : > { %v790_v62 = vsel %vm647_vm2, %v755_v55, 0.0  ;;  %653 = vst.msk [vmem:[%s1236_s14 + $0x28] sm:$0xff] %vm647_vm2, %v540_v57  ;;  %v689_v63 = vsel %vm647_vm2, %v540_v57, 0.0  ;;  %v756_v5 = vmul.f32 %v540_v57, %v540_v57  ;;  %v1009_v7 = vpop.f32.mrb[2].mxu1  ;;  %v1278_v10 = vadd.f32 %v1229_v23, %v584_v0 }
  0xfc   : > { %v791_v1 = vadd.f32 %v790_v62, %v789_v59  ;;  %v690_v4 = vadd.f32 %v689_v63, %v688_v58  ;;  %v1281_v12 = vadd.f32 %v1009_v7, %v1229_v23  ;;  %v587_v11 = vpop.f32.mrb[3].mxu1  ;;  %666 = vst.msk [vmem:[%s1236_s14 + $0x90] sm:$0xff] %vm647_vm2, %v1274_v6  ;;  %v693_v18 = vsel %vm647_vm2, %v548_v56, 0.0 }
  0xfd   : > { %v1000_v9 = vpop.f32.mrb[8].mxu0  ;;  %v792_v15 = vsel %vm647_vm2, %v756_v5, 0.0  ;;  %664 = vst.msk [vmem:[%s1236_s14 + $0x80] sm:$0xff] %vm647_vm2, %v1278_v10  ;;  %v794_v22 = vsel %vm647_vm2, %v757_v61, 0.0  ;;  %v796_v29 = vsel %vm647_vm2, %v758_v13, 0.0  ;;  %v588_v49 = vadd.f32 %v1229_v23, %v587_v11 }
  0xfe   : > { %v692_v14 = vadd.f32 %v691_v8, %v690_v4  ;;  %v561_v16 = vadd.f32 %v1000_v9, %v1229_v23  ;;  %v552_v17 = vpop.f32.mrb[9].mxu0  ;;  %v793_v19 = vadd.f32 %v792_v15, %v791_v1  ;;  %667 = vst.msk [vmem:[%s1236_s14 + $0x98] sm:$0xff] %vm647_vm2, %v1281_v12 }
  0xff   : > { %v553_v20 = vadd.f32 %v1229_v23, %v552_v17  ;;  %v1001_v21 = vpop.f32.mrb[10].mxu0  ;;  %665 = vst.msk [vmem:[%s1236_s14 + $0x88] sm:$0xff] %vm647_vm2, %v588_v49 }
 0x100   : > { %658 = vst.msk [vmem:[%s1236_s14 + $0x50] sm:$0xff] %vm647_vm2, %v561_v16  ;;  %v694_v2 = vadd.f32 %v693_v18, %v692_v14  ;;  %v564_v3 = vadd.f32 %v1001_v21, %v1229_v23  ;;  %v555_v24 = vpop.f32.mrb[11].mxu0  ;;  %v795_v25 = vadd.f32 %v794_v22, %v793_v19  ;;  %v761_v37 = vmul.f32 %v561_v16, %v561_v16 }
 0x101   : > { %656 = vst.msk [vmem:[%s1236_s14 + $0x40] sm:$0xff] %vm647_vm2, %v553_v20  ;;  %v695_v26 = vsel %vm647_vm2, %v553_v20, 0.0  ;;  %v759_v27 = vmul.f32 %v553_v20, %v553_v20  ;;  %v556_v28 = vadd.f32 %v1229_v23, %v555_v24  ;;  %v1012_v31 = vpop.f32.mrb[4].mxu1  ;;  %v699_v40 = vsel %vm647_vm2, %v561_v16, 0.0 }
 0x102   : > { %v696_v30 = vadd.f32 %v695_v26, %v694_v2  ;;  %659 = vst.msk [vmem:[%s1236_s14 + $0x58] sm:$0xff] %vm647_vm2, %v564_v3  ;;  %v797_v32 = vadd.f32 %v796_v29, %v795_v25  ;;  %v600_v36 = vpop.f32.mrb[5].mxu1  ;;  %v762_v45 = vmul.f32 %v564_v3, %v564_v3  ;;  %v701_v50 = vsel %vm647_vm2, %v564_v3, 0.0 }
 0x103   : > { %v798_v33 = vsel %vm647_vm2, %v759_v27, 0.0  ;;  %657 = vst.msk [vmem:[%s1236_s14 + $0x48] sm:$0xff] %vm647_vm2, %v556_v28  ;;  %v697_v34 = vsel %vm647_vm2, %v556_v28, 0.0  ;;  %v760_v35 = vmul.f32 %v556_v28, %v556_v28  ;;  %v1013_v39 = vpop.f32.mrb[6].mxu1  ;;  %v1318_v54 = vadd.f32 %v1012_v31, %v1229_v23 }
 0x104   : > { %v698_v38 = vadd.f32 %v697_v34, %v696_v30  ;;  %v799_v41 = vadd.f32 %v798_v33, %v797_v32  ;;  %v603_v44 = vpop.f32.mrb[7].mxu1  ;;  %v802_v55 = vsel %vm647_vm2, %v761_v37, 0.0  ;;  %v804_v63 = vsel %vm647_vm2, %v762_v45, 0.0 }
 0x105   : > { %v800_v42 = vsel %vm647_vm2, %v760_v35, 0.0  ;;  %v1004_v43 = vpop.f32.mrb[12].mxu0  ;;  %670 = vst.msk [vmem:[%s1236_s14 + $0xb0] sm:$0xff] %vm647_vm2, %v1318_v54  ;;  %v711_v14 = vsel %vm647_vm2, %v1278_v10, 0.0  ;;  %v767_v19 = vmul.f32 %v1278_v10, %v1278_v10  ;;  %v601_v2 = vadd.f32 %v1229_v23, %v600_v36 }
 0x106   : > { %v700_v46 = vadd.f32 %v699_v40, %v698_v38  ;;  %v577_v47 = vadd.f32 %v1004_v43, %v1229_v23  ;;  %v568_v48 = vpop.f32.mrb[13].mxu0  ;;  %v801_v51 = vadd.f32 %v800_v42, %v799_v41  ;;  %v1348_v3 = vadd.f32 %v1013_v39, %v1229_v23 }
 0x107   : > { %v569_v52 = vadd.f32 %v1229_v23, %v568_v48  ;;  %v1005_v53 = vpop.f32.mrb[14].mxu0  ;;  %v604_v26 = vadd.f32 %v1229_v23, %v603_v44  ;;  %668 = vst.msk [vmem:[%s1236_s14 + $0xa0] sm:$0xff] %vm647_vm2, %v601_v2  ;;  %v814_v32 = vsel %vm647_vm2, %v767_v19, 0.0  ;;  %v768_v33 = vmul.f32 %v588_v49, %v588_v49 }
 0x108   : > { %662 = vst.msk [vmem:[%s1236_s14 + $0x70] sm:$0xff] %vm647_vm2, %v577_v47  ;;  %v702_v56 = vadd.f32 %v701_v50, %v700_v46  ;;  %v580_v57 = vadd.f32 %v1005_v53, %v1229_v23  ;;  %v571_v58 = vpop.f32.mrb[15].mxu0  ;;  %v803_v59 = vadd.f32 %v802_v55, %v801_v51  ;;  %v765_v11 = vmul.f32 %v577_v47, %v577_v47 }
 0x109   : > { %660 = vst.msk [vmem:[%s1236_s14 + $0x60] sm:$0xff] %vm647_vm2, %v569_v52  ;;  %v703_v60 = vsel %vm647_vm2, %v569_v52, 0.0  ;;  %v763_v61 = vmul.f32 %v569_v52, %v569_v52  ;;  %v572_v62 = vadd.f32 %v1229_v23, %v571_v58  ;;  %v1016_v1 = vpop.f32.mrb[8].mxu1  ;;  %v707_v16 = vsel %vm647_vm2, %v577_v47, 0.0  ;;  %671 = vst.msk [vmem:[%s1236_s14 + $0xb8] sm:$0xff] %vm647_vm2, %v1348_v3 }
 0x10a   : > { %v704_v0 = vadd.f32 %v703_v60, %v702_v56  ;;  %663 = vst.msk [vmem:[%s1236_s14 + $0x78] sm:$0xff] %vm647_vm2, %v580_v57  ;;  %v805_v4 = vadd.f32 %v804_v63, %v803_v59  ;;  %v616_v9 = vpop.f32.mrb[9].mxu1  ;;  %v766_v21 = vmul.f32 %v580_v57, %v580_v57  ;;  %v709_v24 = vsel %vm647_vm2, %v580_v57, 0.0  ;;  %669 = vst.msk [vmem:[%s1236_s14 + $0xa8] sm:$0xff] %vm647_vm2, %v604_v26 }
 0x10b   : > { %v806_v5 = vsel %vm647_vm2, %v763_v61, 0.0  ;;  %661 = vst.msk [vmem:[%s1236_s14 + $0x68] sm:$0xff] %vm647_vm2, %v572_v62  ;;  %v705_v7 = vsel %vm647_vm2, %v572_v62, 0.0  ;;  %v764_v8 = vmul.f32 %v572_v62, %v572_v62  ;;  %v1017_v15 = vpop.f32.mrb[10].mxu1  ;;  %v1353_v27 = vadd.f32 %v1016_v1, %v1229_v23 }
 0x10c   : > { %v706_v13 = vadd.f32 %v705_v7, %v704_v0  ;;  %v807_v17 = vadd.f32 %v806_v5, %v805_v4  ;;  %v619_v20 = vpop.f32.mrb[11].mxu1  ;;  %v810_v28 = vsel %vm647_vm2, %v765_v11, 0.0  ;;  %v812_v30 = vsel %vm647_vm2, %v766_v21, 0.0 }
 0x10d   : > { %v808_v18 = vsel %vm647_vm2, %v764_v8, 0.0  ;;  %674 = vst.msk [vmem:[%s1236_s14 + $0xd0] sm:$0xff] %vm647_vm2, %v1353_v27  ;;  %v713_v36 = vsel %vm647_vm2, %v588_v49, 0.0  ;;  %v617_v37 = vadd.f32 %v1229_v23, %v616_v9  ;;  %v769_v39 = vmul.f32 %v1274_v6, %v1274_v6 }
 0x10e   : > { %v708_v22 = vadd.f32 %v707_v16, %v706_v13  ;;  %v809_v25 = vadd.f32 %v808_v18, %v807_v17  ;;  %v1373_v41 = vadd.f32 %v1017_v15, %v1229_v23  ;;  %v620_v42 = vadd.f32 %v1229_v23, %v619_v20 }
 0x10f   : > { %v715_v44 = vsel %vm647_vm2, %v1274_v6, 0.0  ;;  %v770_v46 = vmul.f32 %v1281_v12, %v1281_v12  ;;  %672 = vst.msk [vmem:[%s1236_s14 + $0xc0] sm:$0xff] %vm647_vm2, %v617_v37  ;;  %v816_v50 = vsel %vm647_vm2, %v768_v33, 0.0  ;;  %v771_v51 = vmul.f32 %v601_v2, %v601_v2 }
 0x110   : > { %v710_v10 = vadd.f32 %v709_v24, %v708_v22  ;;  %v811_v29 = vadd.f32 %v810_v28, %v809_v25  ;;  %675 = vst.msk [vmem:[%s1236_s14 + $0xd8] sm:$0xff] %vm647_vm2, %v1373_v41  ;;  %673 = vst.msk [vmem:[%s1236_s14 + $0xc8] sm:$0xff] %vm647_vm2, %v620_v42  ;;  %v717_v6 = vsel %vm647_vm2, %v1281_v12, 0.0  ;;  %v719_v53 = vsel %vm647_vm2, %v601_v2, 0.0 }
 0x111   : > { %v1020_v34 = vpop.f32.mrb[12].mxu1  ;;  %v818_v55 = vsel %vm647_vm2, %v769_v39, 0.0  ;;  %v820_v59 = vsel %vm647_vm2, %v770_v46, 0.0  ;;  %v822_v63 = vsel %vm647_vm2, %v771_v51, 0.0  ;;  %v772_v0 = vmul.f32 %v604_v26, %v604_v26 }
 0x112   : > { %v712_v31 = vadd.f32 %v711_v14, %v710_v10  ;;  %v813_v35 = vadd.f32 %v812_v30, %v811_v29  ;;  %v632_v38 = vpop.f32.mrb[13].mxu1  ;;  %v1383_v47 = vadd.f32 %v1020_v34, %v1229_v23  ;;  %v721_v5 = vsel %vm647_vm2, %v604_v26, 0.0 }
 0x113   : > { %v1021_v43 = vpop.f32.mrb[14].mxu1  ;;  %v633_v58 = vadd.f32 %v1229_v23, %v632_v38  ;;  %v773_v8 = vmul.f32 %v1318_v54, %v1318_v54  ;;  %v723_v9 = vsel %vm647_vm2, %v1318_v54, 0.0  ;;  %v774_v14 = vmul.f32 %v1348_v3, %v1348_v3 }
 0x114   : > { %v714_v40 = vadd.f32 %v713_v36, %v712_v31  ;;  %v815_v45 = vadd.f32 %v814_v32, %v813_v35  ;;  %v635_v48 = vpop.f32.mrb[15].mxu1  ;;  %678 = vst.msk [vmem:[%s1236_s14 + $0xf0] sm:$0xff] %vm647_vm2, %v1383_v47  ;;  %v781_v57 = vmul.f32 %v1383_v47, %v1383_v47  ;;  %v644_v60 = vadd.f32 %v1021_v43, %v1229_v23 }
 0x115   : > { %v636_v61 = vadd.f32 %v1229_v23, %v635_v48  ;;  %676 = vst.msk [vmem:[%s1236_s14 + $0xe0] sm:$0xff] %vm647_vm2, %v633_v58  ;;  %v824_v16 = vsel %vm647_vm2, %v772_v0, 0.0  ;;  %v775_v17 = vmul.f32 %v617_v37, %v617_v37  ;;  %v725_v18 = vsel %vm647_vm2, %v1348_v3, 0.0 }
 0x116   : > { %v716_v49 = vadd.f32 %v715_v44, %v714_v40  ;;  %v817_v52 = vadd.f32 %v816_v50, %v815_v45  ;;  %v842_v1 = vsel %vm647_vm2, %v781_v57, 0.0  ;;  %679 = vst.msk [vmem:[%s1236_s14 + $0xf8] sm:$0xff] %vm647_vm2, %v644_v60  ;;  %v782_v7 = vmul.f32 %v644_v60, %v644_v60 }
 0x117   : > { %677 = vst.msk [vmem:[%s1236_s14 + $0xe8] sm:$0xff] %vm647_vm2, %v636_v61  ;;  %v727_v20 = vsel %vm647_vm2, %v617_v37, 0.0  ;;  %v826_v21 = vsel %vm647_vm2, %v773_v8, 0.0  ;;  %v828_v2 = vsel %vm647_vm2, %v774_v14, 0.0  ;;  %v830_v25 = vsel %vm647_vm2, %v775_v17, 0.0 }
 0x118   : > { %v718_v56 = vadd.f32 %v717_v6, %v716_v49  ;;  %v819_v12 = vadd.f32 %v818_v55, %v817_v52  ;;  %v844_v13 = vsel %vm647_vm2, %v782_v7, 0.0  ;;  %v776_v26 = vmul.f32 %v620_v42, %v620_v42 }
 0x119   : > { %v729_v10 = vsel %vm647_vm2, %v620_v42, 0.0  ;;  %v777_v29 = vmul.f32 %v1353_v27, %v1353_v27  ;;  %v731_v30 = vsel %vm647_vm2, %v1353_v27, 0.0  ;;  %v778_v32 = vmul.f32 %v1373_v41, %v1373_v41 }
 0x11a   : > { %v720_v62 = vadd.f32 %v719_v53, %v718_v56  ;;  %v821_v4 = vadd.f32 %v820_v59, %v819_v12  ;;  %v832_v34 = vsel %vm647_vm2, %v776_v26, 0.0  ;;  %v779_v35 = vmul.f32 %v633_v58, %v633_v58 }
 0x11b   : > { %v733_v36 = vsel %vm647_vm2, %v1373_v41, 0.0  ;;  %v735_v38 = vsel %vm647_vm2, %v633_v58, 0.0  ;;  %v834_v39 = vsel %vm647_vm2, %v777_v29, 0.0  ;;  %v836_v27 = vsel %vm647_vm2, %v778_v32, 0.0 }
 0x11c   : > { %v722_v23 = vadd.f32 %v721_v5, %v720_v62  ;;  %v823_v11 = vadd.f32 %v822_v63, %v821_v4  ;;  %v838_v44 = vsel %vm647_vm2, %v779_v35, 0.0  ;;  %v780_v45 = vmul.f32 %v636_v61, %v636_v61 }
 0x11d   : > { %v737_v48 = vsel %vm647_vm2, %v636_v61, 0.0  ;;  %v739_v41 = vsel %vm647_vm2, %v1383_v47, 0.0  ;;  %v741_v52 = vsel %vm647_vm2, %v644_v60, 0.0 }
 0x11e   : > { %v724_v15 = vadd.f32 %v723_v9, %v722_v23  ;;  %v825_v19 = vadd.f32 %v824_v16, %v823_v11  ;;  %v840_v6 = vsel %vm647_vm2, %v780_v45, 0.0 }
 0x120   : > { %v726_v22 = vadd.f32 %v725_v18, %v724_v15  ;;  %v827_v54 = vadd.f32 %v826_v21, %v825_v19 }
 0x122   : > { %v728_v24 = vadd.f32 %v727_v20, %v726_v22  ;;  %v829_v28 = vadd.f32 %v828_v2, %v827_v54 }
 0x124   : > { %v730_v3 = vadd.f32 %v729_v10, %v728_v24  ;;  %v831_v31 = vadd.f32 %v830_v25, %v829_v28 }
 0x126   : > { %v732_v33 = vadd.f32 %v731_v30, %v730_v3  ;;  %v833_v37 = vadd.f32 %v832_v34, %v831_v31 }
 0x128   : > { %v734_v40 = vadd.f32 %v733_v36, %v732_v33  ;;  %v835_v42 = vadd.f32 %v834_v39, %v833_v37 }
 0x12a   : > { %v736_v43 = vadd.f32 %v735_v38, %v734_v40  ;;  %v837_v46 = vadd.f32 %v836_v27, %v835_v42 }
 0x12c   : > { %v738_v49 = vadd.f32 %v737_v48, %v736_v43  ;;  %v839_v50 = vadd.f32 %v838_v44, %v837_v46 }
 0x12e   : > { %v740_v51 = vadd.f32 %v739_v41, %v738_v49  ;;  %v841_v53 = vadd.f32 %v840_v6, %v839_v50 }
 0x130   : > { %v742_v55 = vadd.f32 %v741_v52, %v740_v51  ;;  %v843_v56 = vadd.f32 %v842_v1, %v841_v53 }
 0x132   : > { %v743_v57 = vrot.slane %v742_v55, 4  ;;  %v845_v58 = vadd.f32 %v844_v13, %v843_v56 }
 0x134   : > { %v744_v59 = vadd.f32 %v743_v57, %v742_v55  ;;  %v846_v12 = vrot.slane %v845_v58, 4 }
 0x136   : > { %v745_v61 = vrot.slane %v744_v59, 2  ;;  %v847_v62 = vadd.f32 %v846_v12, %v845_v58 }
 0x138   : > { %v746_v63 = vadd.f32 %v745_v61, %v744_v59  ;;  %v848_v47 = vrot.slane %v847_v62, 2 }
 0x13a   : > { %v747_v0 = vrot.slane %v746_v63, 1  ;;  %v849_v60 = vadd.f32 %v848_v47, %v847_v62 }
 0x13c   : > { %v748_v4 = vadd.f32 %v747_v0, %v746_v63  ;;  %v850_v5 = vrot.slane %v849_v60, 1 }
 0x13e   : > { %750 = vst.msk [vmem:[%s265_s18] sm:$0x1] %vm749_vm3, %v748_v4  ;;  %v851_v1 = vadd.f32 %v850_v5, %v849_v60 }
 0x140   : > { %852 = vst.msk [vmem:[%s265_s18 + $0x1] sm:$0x1] %vm749_vm3, %v851_v1 }
 0x141 PF: > { %s17_s21 = sadd.s32 1, %s1040_s21  }
 0x142   : > { %p14_p5 = scmp.ge.s32.totalorder %s17_s21, 4  }
 0x144   :  { %16 = sbr.rel (!%p14_p5) target bundleno = 1 (0x1), region = 82 }

// kernel: dense_block_forward.12
= control target key start
LH: loop header
LB: loop body
LE: loop exit
PB: predicated region body
PF: predicated region fallthrough
CT: control target
= control target key end

     0   :  { %s412_s6 = smov 0   ;;  %s534_s0 = inlined_call_operand.vmem [shape: f32[512,8], index: 0, kind: input, shape index: {}]   ;;  %s535_s1 = inlined_call_operand.vmem [shape: f32[2,2,8], index: 1, kind: output, shape index: {}]  }
   0x1 LB: > { %s418_s7 = sadd.s32 4294967295, %s400_s6   ;;  %p380_p0 = scmp.ge.s32.totalorder %s400_s6, 1  ;;  %s400_s6 = sphi %s412_s6, %s11_s6  }
   0x2   : > { %p88_p1 = scmp.lt.s32.totalorder %s400_s6, 3 }
   0x4   : > { %p89_p2 = pnand %p380_p0, %p88_p1 }
   0x5   : > { %s381_s8 = sshll.u32 (!%p89_p2), %s418_s7, 5  ;;  %vm149_vm0 = vcmask (!%p89_p2), 64512   ;;  %p113_p4 = scmp.lt.s32.totalorder (!%p89_p2), %s418_s7, 1  ;;  %vm219_vm1 = vcmask (!%p89_p2), 57344  }
   0x6   : > { %92 = sbr.rel (%p89_p2) target bundleno = 98 (0x62), region = 24  ;;  %p108_p3 = scmp.lt.s32.totalorder (!%p89_p2), %s381_s8, 63 }
   0xd   : > { %s537_s8 = smov (!%p108_p3, %s381_s8), 63  ;;  %s539_s7 = smov (!%p113_p4, %s418_s7), 1 }
   0xe   : > { %s382_s9 = sshll.u32 %s537_s8, 3  ;;  %s383_s13 = sshll.u32 %s539_s7, 1 }
   0xf   : > { %s426_s12 = scalar_lea.vmem %s534_s0, %s382_s9  ;;  %s116_s16 = scalar_lea.vmem %s535_s1, %s383_s13 }
  0x10   : > { %v117_v0 = vld [vmem:[%s426_s12] sm:$0xff]  ;;  %v118_v1 = vld [vmem:[%s426_s12 + $0x8] sm:$0xff]  ;;  %v119_v2 = vld [vmem:[%s426_s12 + $0x10] sm:$0xff] }
  0x11   : > { %v150_v3 = vsel %vm149_vm0, %v117_v0, 0.0  ;;  %v151_v4 = vsel %vm149_vm0, %v118_v1, 0.0  ;;  %v153_v5 = vsel %vm149_vm0, %v119_v2, 0.0  ;;  %v120_v6 = vld [vmem:[%s426_s12 + $0x18] sm:$0xff]  ;;  %v121_v9 = vld [vmem:[%s426_s12 + $0x20] sm:$0xff]  ;;  %v122_v12 = vld [vmem:[%s426_s12 + $0x28] sm:$0xff]  ;;  %v221_v27 = vmul.f32 %v117_v0, %v117_v0 }
  0x12   : > { %v152_v7 = vadd.f32 %v151_v4, %v150_v3  ;;  %v155_v8 = vsel %vm149_vm0, %v120_v6, 0.0  ;;  %v157_v11 = vsel %vm149_vm0, %v121_v9, 0.0  ;;  %v159_v14 = vsel %vm149_vm0, %v122_v12, 0.0  ;;  %v123_v15 = vld [vmem:[%s426_s12 + $0x30] sm:$0xff]  ;;  %v124_v18 = vld [vmem:[%s426_s12 + $0x38] sm:$0xff]  ;;  %v125_v21 = vld [vmem:[%s426_s12 + $0x40] sm:$0xff] }
  0x13   : > { %v161_v17 = vsel %vm149_vm0, %v123_v15, 0.0  ;;  %v163_v20 = vsel %vm149_vm0, %v124_v18, 0.0  ;;  %v165_v23 = vsel %vm149_vm0, %v125_v21, 0.0  ;;  %v126_v24 = vld [vmem:[%s426_s12 + $0x48] sm:$0xff]  ;;  %v222_v28 = vmul.f32 %v118_v1, %v118_v1  ;;  %v127_v30 = vld [vmem:[%s426_s12 + $0x50] sm:$0xff]  ;;  %v128_v32 = vld [vmem:[%s426_s12 + $0x58] sm:$0xff] }
  0x14   : > { %v154_v10 = vadd.f32 %v153_v5, %v152_v7  ;;  %v167_v26 = vsel %vm149_vm0, %v126_v24, 0.0  ;;  %v223_v29 = vmul.f32 %v119_v2, %v119_v2  ;;  %v169_v33 = vsel %vm149_vm0, %v127_v30, 0.0  ;;  %v129_v41 = vld [vmem:[%s426_s12 + $0x60] sm:$0xff]  ;;  %v130_v47 = vld [vmem:[%s426_s12 + $0x68] sm:$0xff]  ;;  %v131_v53 = vld [vmem:[%s426_s12 + $0x70] sm:$0xff] }
  0x15   : > { %v224_v34 = vmul.f32 %v120_v6, %v120_v6  ;;  %v171_v36 = vsel %vm149_vm0, %v128_v32, 0.0  ;;  %v225_v37 = vmul.f32 %v121_v9, %v121_v9  ;;  %v253_v38 = vsel %vm149_vm0, %v221_v27, 0.0  ;;  %v132_v59 = vld [vmem:[%s426_s12 + $0x78] sm:$0xff]  ;;  %v133_v1 = vld [vmem:[%s426_s12 + $0x80] sm:$0xff]  ;;  %v134_v7 = vld [vmem:[%s426_s12 + $0x88] sm:$0xff] }
  0x16   : > { %v156_v13 = vadd.f32 %v155_v8, %v154_v10  ;;  %v254_v39 = vsel %vm149_vm0, %v222_v28, 0.0  ;;  %v256_v40 = vsel %vm149_vm0, %v223_v29, 0.0  ;;  %v173_v44 = vsel %vm149_vm0, %v129_v41, 0.0 }
  0x17   : > { %v255_v43 = vadd.f32 %v254_v39, %v253_v38  ;;  %v226_v45 = vmul.f32 %v122_v12, %v122_v12  ;;  %v258_v46 = vsel %vm149_vm0, %v224_v34, 0.0  ;;  %v175_v50 = vsel %vm149_vm0, %v130_v47, 0.0 }
  0x18   : > { %v158_v16 = vadd.f32 %v157_v11, %v156_v13  ;;  %v227_v51 = vmul.f32 %v123_v15, %v123_v15  ;;  %v260_v52 = vsel %vm149_vm0, %v225_v37, 0.0  ;;  %v177_v56 = vsel %vm149_vm0, %v131_v53, 0.0  ;;  %v135_v13 = vld [vmem:[%s426_s12 + $0x90] sm:$0xff] }
  0x19   : > { %v257_v49 = vadd.f32 %v256_v40, %v255_v43  ;;  %v228_v57 = vmul.f32 %v124_v18, %v124_v18  ;;  %v262_v58 = vsel %vm149_vm0, %v226_v45, 0.0  ;;  %v179_v62 = vsel %vm149_vm0, %v132_v59, 0.0  ;;  %v139_v37 = vld [vmem:[%s426_s12 + $0xb0] sm:$0xff]  ;;  %v140_v43 = vld [vmem:[%s426_s12 + $0xb8] sm:$0xff] }
  0x1a   : > { %v160_v19 = vadd.f32 %v159_v14, %v158_v16  ;;  %v229_v63 = vmul.f32 %v125_v21, %v125_v21  ;;  %v264_v0 = vsel %vm149_vm0, %v227_v51, 0.0  ;;  %v181_v4 = vsel %vm149_vm0, %v133_v1, 0.0 }
  0x1b   : > { %v259_v55 = vadd.f32 %v258_v46, %v257_v49  ;;  %v230_v5 = vmul.f32 %v126_v24, %v126_v24  ;;  %v266_v6 = vsel %vm149_vm0, %v228_v57, 0.0  ;;  %v183_v10 = vsel %vm149_vm0, %v134_v7, 0.0  ;;  %v141_v49 = vld [vmem:[%s426_s12 + $0xc0] sm:$0xff] }
  0x1c   : > { %v162_v22 = vadd.f32 %v161_v17, %v160_v19  ;;  %v231_v11 = vmul.f32 %v127_v30, %v127_v30  ;;  %v268_v12 = vsel %vm149_vm0, %v229_v63, 0.0  ;;  %v185_v16 = vsel %vm149_vm0, %v135_v13, 0.0  ;;  %v136_v19 = vld [vmem:[%s426_s12 + $0x98] sm:$0xff] }
  0x1d   : > { %v261_v61 = vadd.f32 %v260_v52, %v259_v55  ;;  %v232_v17 = vmul.f32 %v128_v32, %v128_v32  ;;  %v270_v18 = vsel %vm149_vm0, %v230_v5, 0.0  ;;  %v234_v29 = vmul.f32 %v130_v47, %v130_v47  ;;  %v142_v55 = vld [vmem:[%s426_s12 + $0xc8] sm:$0xff] }
  0x1e   : > { %v164_v25 = vadd.f32 %v163_v20, %v162_v22  ;;  %v187_v22 = vsel %vm149_vm0, %v136_v19, 0.0  ;;  %v272_v24 = vsel %vm149_vm0, %v231_v11, 0.0  ;;  %v193_v40 = vsel %vm149_vm0, %v139_v37, 0.0 }
  0x1f   : > { %v263_v3 = vadd.f32 %v262_v58, %v261_v61  ;;  %v274_v30 = vsel %vm149_vm0, %v232_v17, 0.0  ;;  %v195_v46 = vsel %vm149_vm0, %v140_v43, 0.0  ;;  %v237_v47 = vmul.f32 %v133_v1, %v133_v1  ;;  %v143_v61 = vld [vmem:[%s426_s12 + $0xd0] sm:$0xff] }
  0x20   : > { %v166_v31 = vadd.f32 %v165_v23, %v164_v25  ;;  %v233_v23 = vmul.f32 %v129_v41, %v129_v41  ;;  %v137_v25 = vld [vmem:[%s426_s12 + $0xa0] sm:$0xff]  ;;  %v236_v41 = vmul.f32 %v132_v59, %v132_v59  ;;  %v197_v52 = vsel %vm149_vm0, %v141_v49, 0.0 }
  0x21   : > { %v265_v9 = vadd.f32 %v264_v0, %v263_v3  ;;  %v189_v28 = vsel %vm149_vm0, %v137_v25, 0.0  ;;  %v199_v58 = vsel %vm149_vm0, %v142_v55, 0.0  ;;  %v239_v59 = vmul.f32 %v135_v13, %v135_v13  ;;  %v144_v3 = vld [vmem:[%s426_s12 + $0xd8] sm:$0xff] }
  0x22   : > { %v168_v35 = vadd.f32 %v167_v26, %v166_v31  ;;  %v138_v31 = vld [vmem:[%s426_s12 + $0xa8] sm:$0xff]  ;;  %v201_v0 = vsel %vm149_vm0, %v143_v61, 0.0  ;;  %v240_v1 = vmul.f32 %v136_v19, %v136_v19  ;;  %v243_v19 = vmul.f32 %v139_v37, %v139_v37 }
  0x23   : > { %v267_v15 = vadd.f32 %v266_v6, %v265_v9  ;;  %v191_v34 = vsel %vm149_vm0, %v138_v31, 0.0  ;;  %v203_v6 = vsel %vm149_vm0, %v144_v3, 0.0  ;;  %v145_v9 = vld [vmem:[%s426_s12 + $0xe0] sm:$0xff]  ;;  %v242_v13 = vmul.f32 %v138_v31, %v138_v31 }
  0x24   : > { %v170_v42 = vadd.f32 %v169_v33, %v168_v35  ;;  %v235_v35 = vmul.f32 %v131_v53, %v131_v53  ;;  %v238_v53 = vmul.f32 %v134_v7, %v134_v7  ;;  %v241_v7 = vmul.f32 %v137_v25, %v137_v25 }
  0x25   : > { %v269_v21 = vadd.f32 %v268_v12, %v267_v15  ;;  %v205_v12 = vsel %vm149_vm0, %v145_v9, 0.0  ;;  %v146_v15 = vld [vmem:[%s426_s12 + $0xe8] sm:$0xff]  ;;  %v244_v25 = vmul.f32 %v140_v43, %v140_v43  ;;  %v245_v31 = vmul.f32 %v141_v49, %v141_v49 }
  0x26   : > { %v172_v48 = vadd.f32 %v171_v36, %v170_v42  ;;  %v276_v36 = vsel %vm149_vm0, %v233_v23, 0.0  ;;  %v278_v42 = vsel %vm149_vm0, %v234_v29, 0.0  ;;  %v248_v43 = vmul.f32 %v144_v3, %v144_v3 }
  0x27   : > { %v271_v27 = vadd.f32 %v270_v18, %v269_v21  ;;  %v207_v18 = vsel %vm149_vm0, %v146_v15, 0.0  ;;  %v147_v21 = vld [vmem:[%s426_s12 + $0xf0] sm:$0xff] }
  0x28   : > { %v174_v54 = vadd.f32 %v173_v44, %v172_v48  ;;  %v280_v48 = vsel %vm149_vm0, %v235_v35, 0.0  ;;  %v246_v35 = vmul.f32 %v142_v55, %v142_v55  ;;  %v251_v55 = vmul.f32 %v147_v21, %v147_v21 }
  0x29   : > { %v273_v33 = vadd.f32 %v272_v24, %v271_v27  ;;  %v209_v24 = vsel %vm149_vm0, %v147_v21, 0.0  ;;  %v148_v27 = vld [vmem:[%s426_s12 + $0xf8] sm:$0xff] }
  0x2a   : > { %v176_v60 = vadd.f32 %v175_v50, %v174_v54  ;;  %v282_v54 = vsel %vm149_vm0, %v236_v41, 0.0 }
  0x2b   : > { %v275_v39 = vadd.f32 %v274_v30, %v273_v33  ;;  %v211_v30 = vsel %vm149_vm0, %v148_v27, 0.0 }
  0x2c   : > { %v178_v2 = vadd.f32 %v177_v56, %v176_v60  ;;  %v284_v60 = vsel %vm149_vm0, %v237_v47, 0.0  ;;  %v249_v47 = vmul.f32 %v145_v9, %v145_v9 }
  0x2d   : > { %v277_v45 = vadd.f32 %v276_v36, %v275_v39  ;;  %v298_v36 = vsel %vm149_vm0, %v244_v25, 0.0  ;;  %v247_v39 = vmul.f32 %v143_v61, %v143_v61 }
  0x2e   : > { %v180_v8 = vadd.f32 %v179_v62, %v178_v2  ;;  %v286_v2 = vsel %vm149_vm0, %v238_v53, 0.0 }
  0x2f   : > { %v279_v51 = vadd.f32 %v278_v42, %v277_v45 }
  0x30   : > { %v182_v14 = vadd.f32 %v181_v4, %v180_v8  ;;  %v288_v8 = vsel %vm149_vm0, %v239_v59, 0.0  ;;  %v252_v59 = vmul.f32 %v148_v27, %v148_v27 }
  0x31   : > { %v281_v57 = vadd.f32 %v280_v48, %v279_v51  ;;  %v304_v48 = vsel %vm149_vm0, %v247_v39, 0.0  ;;  %v250_v51 = vmul.f32 %v146_v15, %v146_v15 }
  0x32   : > { %v184_v20 = vadd.f32 %v183_v10, %v182_v14  ;;  %v290_v14 = vsel %vm149_vm0, %v240_v1, 0.0  ;;  %v314_v1 = vsel %vm149_vm0, %v252_v59, 0.0 }
  0x33   : > { %v283_v63 = vadd.f32 %v282_v54, %v281_v57 }
  0x34   : > { %v186_v26 = vadd.f32 %v185_v16, %v184_v20  ;;  %v292_v20 = vsel %vm149_vm0, %v241_v7, 0.0 }
  0x35   : > { %v285_v5 = vadd.f32 %v284_v60, %v283_v63  ;;  %v310_v60 = vsel %vm149_vm0, %v250_v51, 0.0  ;;  %v312_v63 = vsel %vm149_vm0, %v251_v55, 0.0 }
  0x36   : > { %v188_v32 = vadd.f32 %v187_v22, %v186_v26  ;;  %v294_v26 = vsel %vm149_vm0, %v242_v13, 0.0 }
  0x37   : > { %v287_v11 = vadd.f32 %v286_v2, %v285_v5 }
  0x38   : > { %v190_v38 = vadd.f32 %v189_v28, %v188_v32  ;;  %v296_v32 = vsel %vm149_vm0, %v243_v19, 0.0 }
  0x39   : > { %v289_v17 = vadd.f32 %v288_v8, %v287_v11 }
  0x3a   : > { %v192_v44 = vadd.f32 %v191_v34, %v190_v38 }
  0x3b   : > { %v291_v23 = vadd.f32 %v290_v14, %v289_v17 }
  0x3c   : > { %v194_v50 = vadd.f32 %v193_v40, %v192_v44  ;;  %v300_v40 = vsel %vm149_vm0, %v245_v31, 0.0  ;;  %v302_v44 = vsel %vm149_vm0, %v246_v35, 0.0 }
  0x3d   : > { %v293_v29 = vadd.f32 %v292_v20, %v291_v23 }
  0x3e   : > { %v196_v56 = vadd.f32 %v195_v46, %v194_v50 }
  0x3f   : > { %v295_v34 = vadd.f32 %v294_v26, %v293_v29 }
  0x40   : > { %v198_v62 = vadd.f32 %v197_v52, %v196_v56  ;;  %v306_v52 = vsel %vm149_vm0, %v248_v43, 0.0  ;;  %v308_v56 = vsel %vm149_vm0, %v249_v47, 0.0 }
  0x41   : > { %v297_v38 = vadd.f32 %v296_v32, %v295_v34 }
  0x42   : > { %v200_v4 = vadd.f32 %v199_v58, %v198_v62 }
  0x43   : > { %v299_v42 = vadd.f32 %v298_v36, %v297_v38 }
  0x44   : > { %v202_v10 = vadd.f32 %v201_v0, %v200_v4 }
  0x45   : > { %v301_v46 = vadd.f32 %v300_v40, %v299_v42 }
  0x46   : > { %v204_v16 = vadd.f32 %v203_v6, %v202_v10 }
  0x47   : > { %v303_v50 = vadd.f32 %v302_v44, %v301_v46 }
  0x48   : > { %v206_v22 = vadd.f32 %v205_v12, %v204_v16 }
  0x49   : > { %v305_v54 = vadd.f32 %v304_v48, %v303_v50 }
  0x4a   : > { %v208_v28 = vadd.f32 %v207_v18, %v206_v22 }
  0x4b   : > { %v307_v58 = vadd.f32 %v306_v52, %v305_v54 }
  0x4c   : > { %v210_v33 = vadd.f32 %v209_v24, %v208_v28 }
  0x4d   : > { %v309_v62 = vadd.f32 %v308_v56, %v307_v58 }
  0x4e   : > { %v212_v37 = vadd.f32 %v211_v30, %v210_v33 }
  0x4f   : > { %v311_v0 = vadd.f32 %v310_v60, %v309_v62 }
  0x50   : > { %v213_v41 = vrot.slane %v212_v37, 4 }
  0x51   : > { %v313_v2 = vadd.f32 %v312_v63, %v311_v0 }
  0x52   : > { %v214_v45 = vadd.f32 %v213_v41, %v212_v37 }
  0x53   : > { %v315_v3 = vadd.f32 %v314_v1, %v313_v2 }
  0x54   : > { %v215_v49 = vrot.slane %v214_v45, 2 }
  0x55   : > { %v316_v4 = vrot.slane %v315_v3, 4 }
  0x56   : > { %v216_v53 = vadd.f32 %v215_v49, %v214_v45 }
  0x57   : > { %v317_v5 = vadd.f32 %v316_v4, %v315_v3 }
  0x58   : > { %v217_v57 = vrot.slane %v216_v53, 1 }
  0x59   : > { %v318_v6 = vrot.slane %v317_v5, 2 }
  0x5a   : > { %v218_v61 = vadd.f32 %v217_v57, %v216_v53 }
  0x5b   : > { %v319_v7 = vadd.f32 %v318_v6, %v317_v5 }
  0x5c   : > { %220 = vst.msk [vmem:[%s116_s16] sm:$0x1] %vm219_vm1, %v218_v61 }
  0x5d   : > { %v320_v8 = vrot.slane %v319_v7, 1 }
  0x5f   : > { %v321_v9 = vadd.f32 %v320_v8, %v319_v7 }
  0x61   : > { %322 = vst.msk [vmem:[%s116_s16 + $0x1] sm:$0x1] %vm219_vm1, %v321_v9 }
  0x62 PF: > { %s11_s6 = sadd.s32 1, %s400_s6  }
  0x63   : > { %p8_p5 = scmp.ge.s32.totalorder %s11_s6, 4  }
  0x65   :  { %10 = sbr.rel (!%p8_p5) target bundleno = 1 (0x1), region = 54 }

// kernel: dense_block_forward.13
= control target key start
LH: loop header
LB: loop body
LE: loop exit
PB: predicated region body
PF: predicated region fallthrough
CT: control target
= control target key end

     0   :  { %s1077_s21 = smov 0   ;;  %s1454_s0 = inlined_call_operand.vmem [shape: f32[512,8], index: 0, kind: input, shape index: {}]   ;;  %s1455_s1 = inlined_call_operand.vmem [shape: f32[1,8], index: 1, kind: input, shape index: {}]   ;;  %s1456_s2 = inlined_call_operand.vmem [shape: f32[1,8], index: 2, kind: input, shape index: {}]   ;;  %s1457_s3 = inlined_call_operand.vmem [shape: bf16[8,16], index: 3, kind: input, shape index: {}]   ;;  %s1458_s4 = inlined_call_operand.vmem [shape: f32[1,16], index: 4, kind: input, shape index: {}]   ;;  %s1459_s5 = inlined_call_operand.vmem [shape: f32[512,16], index: 5, kind: output, shape index: {0}]   ;;  %s1460_s6 = inlined_call_operand.vmem [shape: f32[2,2,16], index: 6, kind: output, shape index: {1}]  }
   0x1 LB: > { %s1083_s22 = sadd.s32 4294967295, %s1040_s21   ;;  %p944_p0 = scmp.ge.s32.totalorder %s1040_s21, 1  ;;  %s1040_s21 = sphi %s1077_s21, %s17_s21  }
   0x2   : > { %p216_p1 = scmp.lt.s32.totalorder %s1040_s21, 3 }
   0x4   : > { %p217_p2 = pnand %p944_p0, %p216_p1 }
   0x5   : > { %v425_v0 = vld [vmem:[%s1457_s3] sm:$0xf] (!%p217_p2)  ;;  %vm482_vm0 = vcmask (!%p217_p2), 1043456   ;;  %s945_s25 = sshll.u32 (!%p217_p2), %s1083_s22, 5  ;;  %vm433_vm1 = vcmask (!%p217_p2), 64512   ;;  %vm647_vm2 = vcmask (!%p217_p2), 130048  }
   0x6   : > { %220 = sbr.rel (%p217_p2) target bundleno = 321 (0x141), region = 40  ;;  %1024 = vmatprep.subr.msk.bf16.mxu0 (!%p217_p2), %vm482_vm0, %v425_v0  ;;  %v484_v1 = vsel (!%p217_p2), %vm482_vm0, %v425_v0, 0  ;;  %p251_p3 = scmp.lt.s32.totalorder (!%p217_p2), %s945_s25, 63  ;;  %1025 = vmatprep.subr.msk.bf16.mxu1 (!%p217_p2), %vm482_vm0, %v425_v0  ;;  %v1097_v2 = vld [vmem:[%s1455_s1] ss:$0 sm:$0xff] (!%p217_p2)  ;;  %vm749_vm3 = vcmask (!%p217_p2), 122880  }
   0x7   : > { %989 = vmatpush3.bf16.msra.mxu0 (!%p217_p2), %v484_v1  ;;  %1023 = vmatpush3.bf16.msra.mxu1 (!%p217_p2), %v484_v1  ;;  %v1109_v3 = vld [vmem:[%s1456_s2] ss:$0 sm:$0xff] (!%p217_p2)  ;;  %p262_p4 = scmp.lt.s32.totalorder (!%p217_p2), %s1083_s22, 1 }
   0xd   : > { %s1462_s25 = smov (!%p251_p3, %s945_s25), 63  ;;  %s1464_s22 = smov (!%p262_p4, %s1083_s22), 1 }
   0xe   : > { %s946_s26 = sshll.u32 %s1462_s25, 3  ;;  %s949_s15 = sshll.u32 %s1464_s22, 1 }
   0xf   : > { %s1104_s7 = scalar_lea.vmem %s1454_s0, %s946_s26  ;;  %s1236_s14 = scalar_lea.vmem %s1459_s5, %s946_s26 }
  0x10   : > { %v267_v4 = vld [vmem:[%s1104_s7] sm:$0xff]  ;;  %v268_v5 = vld [vmem:[%s1104_s7 + $0x8] sm:$0xff]  ;;  %v269_v6 = vld [vmem:[%s1104_s7 + $0x10] sm:$0xff]  ;;  %s265_s18 = scalar_lea.vmem %s1460_s6, %s949_s15 }
  0x11   : > { %v306_v7 = vmul.f32 %v1097_v2, %v267_v4  ;;  %v307_v8 = vmul.f32 %v1097_v2, %v268_v5  ;;  %v270_v9 = vld [vmem:[%s1104_s7 + $0x18] sm:$0xff]  ;;  %v308_v10 = vmul.f32 %v1097_v2, %v269_v6  ;;  %v271_v11 = vld [vmem:[%s1104_s7 + $0x20] sm:$0xff]  ;;  %v272_v12 = vld [vmem:[%s1104_s7 + $0x28] sm:$0xff] }
  0x12   : > { %v309_v13 = vmul.f32 %v1097_v2, %v270_v9  ;;  %v310_v14 = vmul.f32 %v1097_v2, %v271_v11  ;;  %v311_v15 = vmul.f32 %v1097_v2, %v272_v12  ;;  %v273_v16 = vld [vmem:[%s1104_s7 + $0x30] sm:$0xff]  ;;  %v274_v17 = vld [vmem:[%s1104_s7 + $0x38] sm:$0xff]  ;;  %v275_v26 = vld [vmem:[%s1104_s7 + $0x40] sm:$0xff] }
  0x13   : > { %v345_v18 = vadd.f32 %v1109_v3, %v306_v7  ;;  %v346_v19 = vadd.f32 %v1109_v3, %v307_v8  ;;  %v347_v20 = vadd.f32 %v1109_v3, %v308_v10  ;;  %v312_v21 = vmul.f32 %v1097_v2, %v273_v16  ;;  %v276_v27 = vld [vmem:[%s1104_s7 + $0x48] sm:$0xff]  ;;  %v277_v32 = vld [vmem:[%s1104_s7 + $0x50] sm:$0xff]  ;;  %v278_v37 = vld [vmem:[%s1104_s7 + $0x58] sm:$0xff] }
  0x14   : > { %v348_v22 = vadd.f32 %v1109_v3, %v309_v13  ;;  %v349_v23 = vadd.f32 %v1109_v3, %v310_v14  ;;  %v350_v24 = vadd.f32 %v1109_v3, %v311_v15  ;;  %v313_v25 = vmul.f32 %v1097_v2, %v274_v17  ;;  %v279_v38 = vld [vmem:[%s1104_s7 + $0x60] sm:$0xff]  ;;  %v280_v43 = vld [vmem:[%s1104_s7 + $0x68] sm:$0xff]  ;;  %v281_v44 = vld [vmem:[%s1104_s7 + $0x70] sm:$0xff] }
  0x15   : > { %v377_v28 = vmax.f32 %v345_v18, 0.0  ;;  %v378_v29 = vmax.f32 %v346_v19, 0.0  ;;  %v379_v30 = vmax.f32 %v347_v20, 0.0  ;;  %v351_v31 = vadd.f32 %v1109_v3, %v312_v21  ;;  %v282_v53 = vld [vmem:[%s1104_s7 + $0x78] sm:$0xff]  ;;  %v283_v57 = vld [vmem:[%s1104_s7 + $0x80] sm:$0xff]  ;;  %v284_v62 = vld [vmem:[%s1104_s7 + $0x88] sm:$0xff] }
  0x16   : > { %v380_v33 = vmax.f32 %v348_v22, 0.0  ;;  %v381_v34 = vmax.f32 %v349_v23, 0.0  ;;  %v382_v35 = vmax.f32 %v350_v24, 0.0  ;;  %v352_v36 = vadd.f32 %v1109_v3, %v313_v25  ;;  %v285_v1 = vld [vmem:[%s1104_s7 + $0x90] sm:$0xff]  ;;  %v286_v4 = vld [vmem:[%s1104_s7 + $0x98] sm:$0xff]  ;;  %v287_v8 = vld [vmem:[%s1104_s7 + $0xa0] sm:$0xff] }
  0x17   : > { %v409_v39 = vpack.c.bf16 %v378_v29, %v377_v28  ;;  %v383_v40 = vmax.f32 %v351_v31, 0.0  ;;  %v314_v41 = vmul.f32 %v1097_v2, %v275_v26  ;;  %v315_v42 = vmul.f32 %v1097_v2, %v276_v27  ;;  %v288_v13 = vld [vmem:[%s1104_s7 + $0xa8] sm:$0xff]  ;;  %v289_v18 = vld [vmem:[%s1104_s7 + $0xb0] sm:$0xff]  ;;  %v290_v23 = vld [vmem:[%s1104_s7 + $0xb8] sm:$0xff] }
  0x18   : > { %v410_v45 = vpack.c.bf16 %v380_v33, %v379_v30  ;;  %v411_v46 = vpack.c.bf16 %v382_v35, %v381_v34  ;;  %v384_v47 = vmax.f32 %v352_v36, 0.0  ;;  %v316_v48 = vmul.f32 %v1097_v2, %v277_v32  ;;  %v291_v28 = vld [vmem:[%s1104_s7 + $0xc0] sm:$0xff]  ;;  %v292_v33 = vld [vmem:[%s1104_s7 + $0xc8] sm:$0xff] }
  0x19   : > { %990 = vmatprep.mubr.msk.bf16.mxu0 %vm433_vm1, %v409_v39  ;;  %v353_v49 = vadd.f32 %v1109_v3, %v314_v41  ;;  %v354_v50 = vadd.f32 %v1109_v3, %v315_v42  ;;  %v317_v51 = vmul.f32 %v1097_v2, %v278_v37  ;;  %v318_v52 = vmul.f32 %v1097_v2, %v279_v38  ;;  %v293_v38 = vld [vmem:[%s1104_s7 + $0xd0] sm:$0xff] }
  0x1a   : > { %991 = vmatmul.mubr.msk.bf16.vlgmr.msra.gmra.mrb[0].mxu0 %vm433_vm1, %v410_v45  ;;  %v355_v54 = vadd.f32 %v1109_v3, %v316_v48  ;;  %v319_v55 = vmul.f32 %v1097_v2, %v280_v43  ;;  %v320_v56 = vmul.f32 %v1097_v2, %v281_v44  ;;  %v321_v0 = vmul.f32 %v1097_v2, %v282_v53  ;;  %v294_v43 = vld [vmem:[%s1104_s7 + $0xd8] sm:$0xff]  ;;  %v295_v48 = vld [vmem:[%s1104_s7 + $0xe0] sm:$0xff] }
  0x1b   : > { %994 = vmatprep.mubr.msk.bf16.mxu0 %vm433_vm1, %v411_v46  ;;  %v385_v58 = vmax.f32 %v353_v49, 0.0  ;;  %v386_v59 = vmax.f32 %v354_v50, 0.0  ;;  %v356_v60 = vadd.f32 %v1109_v3, %v317_v51  ;;  %v357_v61 = vadd.f32 %v1109_v3, %v318_v52  ;;  %v296_v49 = vld [vmem:[%s1104_s7 + $0xe8] sm:$0xff] }
  0x1c   : > { %v358_v63 = vadd.f32 %v1109_v3, %v319_v55  ;;  %v412_v5 = vpack.c.bf16 %v384_v47, %v383_v40  ;;  %v387_v6 = vmax.f32 %v355_v54, 0.0  ;;  %v322_v7 = vmul.f32 %v1097_v2, %v283_v57 }
  0x1d   : > { %v413_v9 = vpack.c.bf16 %v386_v59, %v385_v58  ;;  %v388_v10 = vmax.f32 %v356_v60, 0.0  ;;  %v1167_v11 = vadd.f32 %v1109_v3, %v320_v56  ;;  %v323_v12 = vmul.f32 %v1097_v2, %v284_v62 }
  0x1e   : > { %v389_v14 = vmax.f32 %v357_v61, 0.0  ;;  %v361_v15 = vadd.f32 %v1109_v3, %v322_v7  ;;  %v324_v16 = vmul.f32 %v1097_v2, %v285_v1  ;;  %v325_v17 = vmul.f32 %v1097_v2, %v286_v4 }
  0x1f   : > { %v390_v19 = vmax.f32 %v358_v63, 0.0  ;;  %v360_v20 = vadd.f32 %v1109_v3, %v321_v0  ;;  %v362_v21 = vadd.f32 %v1109_v3, %v323_v12  ;;  %v326_v22 = vmul.f32 %v1097_v2, %v287_v8  ;;  %v297_v8 = vld [vmem:[%s1104_s7 + $0xf0] sm:$0xff] }
  0x20   : > { %v393_v24 = vmax.f32 %v361_v15, 0.0  ;;  %v363_v25 = vadd.f32 %v1109_v3, %v324_v16  ;;  %v364_v26 = vadd.f32 %v1109_v3, %v325_v17  ;;  %v327_v27 = vmul.f32 %v1097_v2, %v288_v13 }
  0x21   : > { %v414_v29 = vpack.c.bf16 %v388_v10, %v387_v6  ;;  %v394_v30 = vmax.f32 %v362_v21, 0.0  ;;  %v365_v31 = vadd.f32 %v1109_v3, %v326_v22  ;;  %v328_v32 = vmul.f32 %v1097_v2, %v289_v18 }
  0x22   : > { %995 = vmatmul.mubr.msk.bf16.gmra.mrb[4].mxu0 %vm433_vm1, %v412_v5  ;;  %v395_v34 = vmax.f32 %v363_v25, 0.0  ;;  %v396_v35 = vmax.f32 %v364_v26, 0.0  ;;  %v366_v36 = vadd.f32 %v1109_v3, %v327_v27  ;;  %v329_v37 = vmul.f32 %v1097_v2, %v290_v23  ;;  %v1229_v23 = vld [vmem:[%s1458_s4] ss:$0 sm:$0xff] }
  0x23   : > { %998 = vmatprep.mubr.msk.bf16.mxu0 %vm433_vm1, %v413_v9  ;;  %v417_v39 = vpack.c.bf16 %v394_v30, %v393_v24  ;;  %v397_v40 = vmax.f32 %v365_v31, 0.0  ;;  %v367_v41 = vadd.f32 %v1109_v3, %v328_v32  ;;  %v330_v42 = vmul.f32 %v1097_v2, %v291_v28  ;;  %v298_v9 = vld [vmem:[%s1104_s7 + $0xf8] sm:$0xff] }
  0x24   : > { %v418_v44 = vpack.c.bf16 %v396_v35, %v395_v34  ;;  %v398_v45 = vmax.f32 %v366_v36, 0.0  ;;  %v368_v46 = vadd.f32 %v1109_v3, %v329_v37  ;;  %v331_v47 = vmul.f32 %v1097_v2, %v292_v33 }
  0x25   : > { %v415_v50 = vpack.c.bf16 %v390_v19, %v389_v14  ;;  %1006 = vmatprep.mubr.msk.bf16.mxu1 %vm433_vm1, %v417_v39  ;;  %v399_v51 = vmax.f32 %v367_v41, 0.0  ;;  %v369_v52 = vadd.f32 %v1109_v3, %v330_v42  ;;  %v332_v53 = vmul.f32 %v1097_v2, %v293_v38 }
  0x26   : > { %1007 = vmatmul.mubr.msk.bf16.vlgmr.msra.gmra.mrb[0].mxu1 %vm433_vm1, %v418_v44  ;;  %v419_v54 = vpack.c.bf16 %v398_v45, %v397_v40  ;;  %v400_v55 = vmax.f32 %v368_v46, 0.0  ;;  %v370_v56 = vadd.f32 %v1109_v3, %v331_v47  ;;  %v333_v57 = vmul.f32 %v1097_v2, %v294_v43 }
  0x27   : > { %v401_v58 = vmax.f32 %v369_v52, 0.0  ;;  %v334_v59 = vmul.f32 %v1097_v2, %v295_v48  ;;  %v335_v60 = vmul.f32 %v1097_v2, %v296_v49  ;;  %v391_v62 = vmax.f32 %v1167_v11, 0.0 }
  0x28   : > { %1010 = vmatprep.mubr.msk.bf16.mxu1 %vm433_vm1, %v419_v54  ;;  %v402_v61 = vmax.f32 %v370_v56, 0.0  ;;  %v392_v63 = vmax.f32 %v360_v20, 0.0  ;;  %v420_v0 = vpack.c.bf16 %v400_v55, %v399_v51  ;;  %v371_v1 = vadd.f32 %v1109_v3, %v332_v53 }
  0x29   : > { %v372_v4 = vadd.f32 %v1109_v3, %v333_v57  ;;  %v373_v6 = vadd.f32 %v1109_v3, %v334_v59  ;;  %v374_v7 = vadd.f32 %v1109_v3, %v335_v60  ;;  %v336_v13 = vmul.f32 %v1097_v2, %v297_v8 }
  0x2a   : > { %999 = vmatmul.mubr.msk.bf16.gmra.mrb[8].mxu0 %vm433_vm1, %v414_v29  ;;  %v421_v5 = vpack.c.bf16 %v402_v61, %v401_v58  ;;  %v416_v10 = vpack.c.bf16 %v392_v63, %v391_v62  ;;  %v403_v12 = vmax.f32 %v371_v1, 0.0  ;;  %v337_v14 = vmul.f32 %v1097_v2, %v298_v9 }
  0x2b   : > { %1002 = vmatprep.mubr.msk.bf16.mxu0 %vm433_vm1, %v415_v50  ;;  %v404_v11 = vmax.f32 %v372_v4, 0.0  ;;  %v405_v15 = vmax.f32 %v373_v6, 0.0  ;;  %v406_v16 = vmax.f32 %v374_v7, 0.0  ;;  %v375_v18 = vadd.f32 %v1109_v3, %v336_v13 }
  0x2c   : > { %v376_v19 = vadd.f32 %v1109_v3, %v337_v14 }
  0x2d   : > { %v422_v17 = vpack.c.bf16 %v404_v11, %v403_v12  ;;  %v423_v20 = vpack.c.bf16 %v406_v16, %v405_v15  ;;  %v407_v21 = vmax.f32 %v375_v18, 0.0 }
  0x2e   : > { %1011 = vmatmul.mubr.msk.bf16.gmra.mrb[4].mxu1 %vm433_vm1, %v420_v0  ;;  %v408_v22 = vmax.f32 %v376_v19, 0.0 }
  0x2f   : > { %1014 = vmatprep.mubr.msk.bf16.mxu1 %vm433_vm1, %v421_v5 }
  0x30   : > { %v424_v2 = vpack.c.bf16 %v408_v22, %v407_v21 }
  0x32   : > { %1003 = vmatmul.mubr.msk.bf16.gmra.mrb[12].mxu0 %vm433_vm1, %v416_v10 }
  0x36   : > { %1015 = vmatmul.mubr.msk.bf16.gmra.mrb[8].mxu1 %vm433_vm1, %v422_v17 }
  0x37   : > { %1018 = vmatprep.mubr.msk.bf16.mxu1 %vm433_vm1, %v423_v20 }
  0x3e   : > { %1019 = vmatmul.mubr.msk.bf16.gmra.mrb[12].mxu1 %vm433_vm1, %v424_v2 }
  0xed   : > { %v992_v3 = vpop.f32.mrb[0].mxu0 }
  0xee   : > { %v529_v24 = vadd.f32 %v992_v3, %v1229_v23  ;;  %v520_v25 = vpop.f32.mrb[1].mxu0 }
  0xef   : > { %v521_v26 = vadd.f32 %v1229_v23, %v520_v25  ;;  %v993_v27 = vpop.f32.mrb[2].mxu0 }
  0xf0   : > { %650 = vst.msk [vmem:[%s1236_s14 + $0x10] sm:$0xff] %vm647_vm2, %v529_v24  ;;  %v532_v28 = vadd.f32 %v993_v27, %v1229_v23  ;;  %v523_v29 = vpop.f32.mrb[3].mxu0  ;;  %v753_v32 = vmul.f32 %v529_v24, %v529_v24  ;;  %v683_v38 = vsel %vm647_vm2, %v529_v24, 0.0 }
  0xf1   : > { %648 = vst.msk [vmem:[%s1236_s14] sm:$0xff] %vm647_vm2, %v521_v26  ;;  %v751_v30 = vmul.f32 %v521_v26, %v521_v26  ;;  %v524_v31 = vadd.f32 %v1229_v23, %v523_v29  ;;  %v680_v33 = vsel %vm647_vm2, %v521_v26, 0.0 }
  0xf2   : > { %651 = vst.msk [vmem:[%s1236_s14 + $0x18] sm:$0xff] %vm647_vm2, %v532_v28  ;;  %v754_v36 = vmul.f32 %v532_v28, %v532_v28  ;;  %v786_v46 = vsel %vm647_vm2, %v753_v32, 0.0  ;;  %v685_v47 = vsel %vm647_vm2, %v532_v28, 0.0 }
  0xf3   : > { %649 = vst.msk [vmem:[%s1236_s14 + $0x8] sm:$0xff] %vm647_vm2, %v524_v31  ;;  %v681_v34 = vsel %vm647_vm2, %v524_v31, 0.0  ;;  %v752_v35 = vmul.f32 %v524_v31, %v524_v31  ;;  %v783_v39 = vsel %vm647_vm2, %v751_v30, 0.0 }
  0xf4   : > { %v682_v37 = vadd.f32 %v681_v34, %v680_v33  ;;  %v788_v50 = vsel %vm647_vm2, %v754_v36, 0.0 }
  0xf5   : > { %v784_v40 = vsel %vm647_vm2, %v752_v35, 0.0  ;;  %v996_v41 = vpop.f32.mrb[4].mxu0 }
  0xf6   : > { %v684_v42 = vadd.f32 %v683_v38, %v682_v37  ;;  %v785_v43 = vadd.f32 %v784_v40, %v783_v39  ;;  %v545_v44 = vadd.f32 %v996_v41, %v1229_v23  ;;  %v536_v45 = vpop.f32.mrb[5].mxu0 }
  0xf7   : > { %v537_v48 = vadd.f32 %v1229_v23, %v536_v45  ;;  %v997_v49 = vpop.f32.mrb[6].mxu0 }
  0xf8   : > { %v787_v51 = vadd.f32 %v786_v46, %v785_v43  ;;  %654 = vst.msk [vmem:[%s1236_s14 + $0x30] sm:$0xff] %vm647_vm2, %v545_v44  ;;  %v686_v52 = vadd.f32 %v685_v47, %v684_v42  ;;  %v539_v53 = vpop.f32.mrb[7].mxu0  ;;  %v548_v56 = vadd.f32 %v997_v49, %v1229_v23  ;;  %v757_v61 = vmul.f32 %v545_v44, %v545_v44 }
  0xf9   : > { %652 = vst.msk [vmem:[%s1236_s14 + $0x20] sm:$0xff] %vm647_vm2, %v537_v48  ;;  %v687_v54 = vsel %vm647_vm2, %v537_v48, 0.0  ;;  %v755_v55 = vmul.f32 %v537_v48, %v537_v48  ;;  %v540_v57 = vadd.f32 %v1229_v23, %v539_v53  ;;  %v1008_v60 = vpop.f32.mrb[0].mxu1  ;;  %v691_v8 = vsel %vm647_vm2, %v545_v44, 0.0 }
  0xfa   : > { %v688_v58 = vadd.f32 %v687_v54, %v686_v52  ;;  %v789_v59 = vadd.f32 %v788_v50, %v787_v51  ;;  %655 = vst.msk [vmem:[%s1236_s14 + $0x38] sm:$0xff] %vm647_vm2, %v548_v56  ;;  %v584_v0 = vpop.f32.mrb[1].mxu1  ;;  %v1274_v6 = vadd.f32 %v1008_v60, %v1229_v23  ;;  %v758_v13 = vmul.f32 %v548_v56, %v548_v56 }
  0xfb   : > { %v790_v62 = vsel %vm647_vm2, %v755_v55, 0.0  ;;  %653 = vst.msk [vmem:[%s1236_s14 + $0x28] sm:$0xff] %vm647_vm2, %v540_v57  ;;  %v689_v63 = vsel %vm647_vm2, %v540_v57, 0.0  ;;  %v756_v5 = vmul.f32 %v540_v57, %v540_v57  ;;  %v1009_v7 = vpop.f32.mrb[2].mxu1  ;;  %v1278_v10 = vadd.f32 %v1229_v23, %v584_v0 }
  0xfc   : > { %v791_v1 = vadd.f32 %v790_v62, %v789_v59  ;;  %v690_v4 = vadd.f32 %v689_v63, %v688_v58  ;;  %v1281_v12 = vadd.f32 %v1009_v7, %v1229_v23  ;;  %v587_v11 = vpop.f32.mrb[3].mxu1  ;;  %666 = vst.msk [vmem:[%s1236_s14 + $0x90] sm:$0xff] %vm647_vm2, %v1274_v6  ;;  %v693_v18 = vsel %vm647_vm2, %v548_v56, 0.0 }
  0xfd   : > { %v1000_v9 = vpop.f32.mrb[8].mxu0  ;;  %v792_v15 = vsel %vm647_vm2, %v756_v5, 0.0  ;;  %664 = vst.msk [vmem:[%s1236_s14 + $0x80] sm:$0xff] %vm647_vm2, %v1278_v10  ;;  %v794_v22 = vsel %vm647_vm2, %v757_v61, 0.0  ;;  %v796_v29 = vsel %vm647_vm2, %v758_v13, 0.0  ;;  %v588_v49 = vadd.f32 %v1229_v23, %v587_v11 }
  0xfe   : > { %v692_v14 = vadd.f32 %v691_v8, %v690_v4  ;;  %v561_v16 = vadd.f32 %v1000_v9, %v1229_v23  ;;  %v552_v17 = vpop.f32.mrb[9].mxu0  ;;  %v793_v19 = vadd.f32 %v792_v15, %v791_v1  ;;  %667 = vst.msk [vmem:[%s1236_s14 + $0x98] sm:$0xff] %vm647_vm2, %v1281_v12 }
  0xff   : > { %v553_v20 = vadd.f32 %v1229_v23, %v552_v17  ;;  %v1001_v21 = vpop.f32.mrb[10].mxu0  ;;  %665 = vst.msk [vmem:[%s1236_s14 + $0x88] sm:$0xff] %vm647_vm2, %v588_v49 }
 0x100   : > { %658 = vst.msk [vmem:[%s1236_s14 + $0x50] sm:$0xff] %vm647_vm2, %v561_v16  ;;  %v694_v2 = vadd.f32 %v693_v18, %v692_v14  ;;  %v564_v3 = vadd.f32 %v1001_v21, %v1229_v23  ;;  %v555_v24 = vpop.f32.mrb[11].mxu0  ;;  %v795_v25 = vadd.f32 %v794_v22, %v793_v19  ;;  %v761_v37 = vmul.f32 %v561_v16, %v561_v16 }
 0x101   : > { %656 = vst.msk [vmem:[%s1236_s14 + $0x40] sm:$0xff] %vm647_vm2, %v553_v20  ;;  %v695_v26 = vsel %vm647_vm2, %v553_v20, 0.0  ;;  %v759_v27 = vmul.f32 %v553_v20, %v553_v20  ;;  %v556_v28 = vadd.f32 %v1229_v23, %v555_v24  ;;  %v1012_v31 = vpop.f32.mrb[4].mxu1  ;;  %v699_v40 = vsel %vm647_vm2, %v561_v16, 0.0 }
 0x102   : > { %v696_v30 = vadd.f32 %v695_v26, %v694_v2  ;;  %659 = vst.msk [vmem:[%s1236_s14 + $0x58] sm:$0xff] %vm647_vm2, %v564_v3  ;;  %v797_v32 = vadd.f32 %v796_v29, %v795_v25  ;;  %v600_v36 = vpop.f32.mrb[5].mxu1  ;;  %v762_v45 = vmul.f32 %v564_v3, %v564_v3  ;;  %v701_v50 = vsel %vm647_vm2, %v564_v3, 0.0 }
 0x103   : > { %v798_v33 = vsel %vm647_vm2, %v759_v27, 0.0  ;;  %657 = vst.msk [vmem:[%s1236_s14 + $0x48] sm:$0xff] %vm647_vm2, %v556_v28  ;;  %v697_v34 = vsel %vm647_vm2, %v556_v28, 0.0  ;;  %v760_v35 = vmul.f32 %v556_v28, %v556_v28  ;;  %v1013_v39 = vpop.f32.mrb[6].mxu1  ;;  %v1318_v54 = vadd.f32 %v1012_v31, %v1229_v23 }
 0x104   : > { %v698_v38 = vadd.f32 %v697_v34, %v696_v30  ;;  %v799_v41 = vadd.f32 %v798_v33, %v797_v32  ;;  %v603_v44 = vpop.f32.mrb[7].mxu1  ;;  %v802_v55 = vsel %vm647_vm2, %v761_v37, 0.0  ;;  %v804_v63 = vsel %vm647_vm2, %v762_v45, 0.0 }
 0x105   : > { %v800_v42 = vsel %vm647_vm2, %v760_v35, 0.0  ;;  %v1004_v43 = vpop.f32.mrb[12].mxu0  ;;  %670 = vst.msk [vmem:[%s1236_s14 + $0xb0] sm:$0xff] %vm647_vm2, %v1318_v54  ;;  %v711_v14 = vsel %vm647_vm2, %v1278_v10, 0.0  ;;  %v767_v19 = vmul.f32 %v1278_v10, %v1278_v10  ;;  %v601_v2 = vadd.f32 %v1229_v23, %v600_v36 }
 0x106   : > { %v700_v46 = vadd.f32 %v699_v40, %v698_v38  ;;  %v577_v47 = vadd.f32 %v1004_v43, %v1229_v23  ;;  %v568_v48 = vpop.f32.mrb[13].mxu0  ;;  %v801_v51 = vadd.f32 %v800_v42, %v799_v41  ;;  %v1348_v3 = vadd.f32 %v1013_v39, %v1229_v23 }
 0x107   : > { %v569_v52 = vadd.f32 %v1229_v23, %v568_v48  ;;  %v1005_v53 = vpop.f32.mrb[14].mxu0  ;;  %v604_v26 = vadd.f32 %v1229_v23, %v603_v44  ;;  %668 = vst.msk [vmem:[%s1236_s14 + $0xa0] sm:$0xff] %vm647_vm2, %v601_v2  ;;  %v814_v32 = vsel %vm647_vm2, %v767_v19, 0.0  ;;  %v768_v33 = vmul.f32 %v588_v49, %v588_v49 }
 0x108   : > { %662 = vst.msk [vmem:[%s1236_s14 + $0x70] sm:$0xff] %vm647_vm2, %v577_v47  ;;  %v702_v56 = vadd.f32 %v701_v50, %v700_v46  ;;  %v580_v57 = vadd.f32 %v1005_v53, %v1229_v23  ;;  %v571_v58 = vpop.f32.mrb[15].mxu0  ;;  %v803_v59 = vadd.f32 %v802_v55, %v801_v51  ;;  %v765_v11 = vmul.f32 %v577_v47, %v577_v47 }
 0x109   : > { %660 = vst.msk [vmem:[%s1236_s14 + $0x60] sm:$0xff] %vm647_vm2, %v569_v52  ;;  %v703_v60 = vsel %vm647_vm2, %v569_v52, 0.0  ;;  %v763_v61 = vmul.f32 %v569_v52, %v569_v52  ;;  %v572_v62 = vadd.f32 %v1229_v23, %v571_v58  ;;  %v1016_v1 = vpop.f32.mrb[8].mxu1  ;;  %v707_v16 = vsel %vm647_vm2, %v577_v47, 0.0  ;;  %671 = vst.msk [vmem:[%s1236_s14 + $0xb8] sm:$0xff] %vm647_vm2, %v1348_v3 }
 0x10a   : > { %v704_v0 = vadd.f32 %v703_v60, %v702_v56  ;;  %663 = vst.msk [vmem:[%s1236_s14 + $0x78] sm:$0xff] %vm647_vm2, %v580_v57  ;;  %v805_v4 = vadd.f32 %v804_v63, %v803_v59  ;;  %v616_v9 = vpop.f32.mrb[9].mxu1  ;;  %v766_v21 = vmul.f32 %v580_v57, %v580_v57  ;;  %v709_v24 = vsel %vm647_vm2, %v580_v57, 0.0  ;;  %669 = vst.msk [vmem:[%s1236_s14 + $0xa8] sm:$0xff] %vm647_vm2, %v604_v26 }
 0x10b   : > { %v806_v5 = vsel %vm647_vm2, %v763_v61, 0.0  ;;  %661 = vst.msk [vmem:[%s1236_s14 + $0x68] sm:$0xff] %vm647_vm2, %v572_v62  ;;  %v705_v7 = vsel %vm647_vm2, %v572_v62, 0.0  ;;  %v764_v8 = vmul.f32 %v572_v62, %v572_v62  ;;  %v1017_v15 = vpop.f32.mrb[10].mxu1  ;;  %v1353_v27 = vadd.f32 %v1016_v1, %v1229_v23 }
 0x10c   : > { %v706_v13 = vadd.f32 %v705_v7, %v704_v0  ;;  %v807_v17 = vadd.f32 %v806_v5, %v805_v4  ;;  %v619_v20 = vpop.f32.mrb[11].mxu1  ;;  %v810_v28 = vsel %vm647_vm2, %v765_v11, 0.0  ;;  %v812_v30 = vsel %vm647_vm2, %v766_v21, 0.0 }
 0x10d   : > { %v808_v18 = vsel %vm647_vm2, %v764_v8, 0.0  ;;  %674 = vst.msk [vmem:[%s1236_s14 + $0xd0] sm:$0xff] %vm647_vm2, %v1353_v27  ;;  %v713_v36 = vsel %vm647_vm2, %v588_v49, 0.0  ;;  %v617_v37 = vadd.f32 %v1229_v23, %v616_v9  ;;  %v769_v39 = vmul.f32 %v1274_v6, %v1274_v6 }
 0x10e   : > { %v708_v22 = vadd.f32 %v707_v16, %v706_v13  ;;  %v809_v25 = vadd.f32 %v808_v18, %v807_v17  ;;  %v1373_v41 = vadd.f32 %v1017_v15, %v1229_v23  ;;  %v620_v42 = vadd.f32 %v1229_v23, %v619_v20 }
 0x10f   : > { %v715_v44 = vsel %vm647_vm2, %v1274_v6, 0.0  ;;  %v770_v46 = vmul.f32 %v1281_v12, %v1281_v12  ;;  %672 = vst.msk [vmem:[%s1236_s14 + $0xc0] sm:$0xff] %vm647_vm2, %v617_v37  ;;  %v816_v50 = vsel %vm647_vm2, %v768_v33, 0.0  ;;  %v771_v51 = vmul.f32 %v601_v2, %v601_v2 }
 0x110   : > { %v710_v10 = vadd.f32 %v709_v24, %v708_v22  ;;  %v811_v29 = vadd.f32 %v810_v28, %v809_v25  ;;  %675 = vst.msk [vmem:[%s1236_s14 + $0xd8] sm:$0xff] %vm647_vm2, %v1373_v41  ;;  %673 = vst.msk [vmem:[%s1236_s14 + $0xc8] sm:$0xff] %vm647_vm2, %v620_v42  ;;  %v717_v6 = vsel %vm647_vm2, %v1281_v12, 0.0  ;;  %v719_v53 = vsel %vm647_vm2, %v601_v2, 0.0 }
 0x111   : > { %v1020_v34 = vpop.f32.mrb[12].mxu1  ;;  %v818_v55 = vsel %vm647_vm2, %v769_v39, 0.0  ;;  %v820_v59 = vsel %vm647_vm2, %v770_v46, 0.0  ;;  %v822_v63 = vsel %vm647_vm2, %v771_v51, 0.0  ;;  %v772_v0 = vmul.f32 %v604_v26, %v604_v26 }
 0x112   : > { %v712_v31 = vadd.f32 %v711_v14, %v710_v10  ;;  %v813_v35 = vadd.f32 %v812_v30, %v811_v29  ;;  %v632_v38 = vpop.f32.mrb[13].mxu1  ;;  %v1383_v47 = vadd.f32 %v1020_v34, %v1229_v23  ;;  %v721_v5 = vsel %vm647_vm2, %v604_v26, 0.0 }
 0x113   : > { %v1021_v43 = vpop.f32.mrb[14].mxu1  ;;  %v633_v58 = vadd.f32 %v1229_v23, %v632_v38  ;;  %v773_v8 = vmul.f32 %v1318_v54, %v1318_v54  ;;  %v723_v9 = vsel %vm647_vm2, %v1318_v54, 0.0  ;;  %v774_v14 = vmul.f32 %v1348_v3, %v1348_v3 }
 0x114   : > { %v714_v40 = vadd.f32 %v713_v36, %v712_v31  ;;  %v815_v45 = vadd.f32 %v814_v32, %v813_v35  ;;  %v635_v48 = vpop.f32.mrb[15].mxu1  ;;  %678 = vst.msk [vmem:[%s1236_s14 + $0xf0] sm:$0xff] %vm647_vm2, %v1383_v47  ;;  %v781_v57 = vmul.f32 %v1383_v47, %v1383_v47  ;;  %v644_v60 = vadd.f32 %v1021_v43, %v1229_v23 }
 0x115   : > { %v636_v61 = vadd.f32 %v1229_v23, %v635_v48  ;;  %676 = vst.msk [vmem:[%s1236_s14 + $0xe0] sm:$0xff] %vm647_vm2, %v633_v58  ;;  %v824_v16 = vsel %vm647_vm2, %v772_v0, 0.0  ;;  %v775_v17 = vmul.f32 %v617_v37, %v617_v37  ;;  %v725_v18 = vsel %vm647_vm2, %v1348_v3, 0.0 }
 0x116   : > { %v716_v49 = vadd.f32 %v715_v44, %v714_v40  ;;  %v817_v52 = vadd.f32 %v816_v50, %v815_v45  ;;  %v842_v1 = vsel %vm647_vm2, %v781_v57, 0.0  ;;  %679 = vst.msk [vmem:[%s1236_s14 + $0xf8] sm:$0xff] %vm647_vm2, %v644_v60  ;;  %v782_v7 = vmul.f32 %v644_v60, %v644_v60 }
 0x117   : > { %677 = vst.msk [vmem:[%s1236_s14 + $0xe8] sm:$0xff] %vm647_vm2, %v636_v61  ;;  %v727_v20 = vsel %vm647_vm2, %v617_v37, 0.0  ;;  %v826_v21 = vsel %vm647_vm2, %v773_v8, 0.0  ;;  %v828_v2 = vsel %vm647_vm2, %v774_v14, 0.0  ;;  %v830_v25 = vsel %vm647_vm2, %v775_v17, 0.0 }
 0x118   : > { %v718_v56 = vadd.f32 %v717_v6, %v716_v49  ;;  %v819_v12 = vadd.f32 %v818_v55, %v817_v52  ;;  %v844_v13 = vsel %vm647_vm2, %v782_v7, 0.0  ;;  %v776_v26 = vmul.f32 %v620_v42, %v620_v42 }
 0x119   : > { %v729_v10 = vsel %vm647_vm2, %v620_v42, 0.0  ;;  %v777_v29 = vmul.f32 %v1353_v27, %v1353_v27  ;;  %v731_v30 = vsel %vm647_vm2, %v1353_v27, 0.0  ;;  %v778_v32 = vmul.f32 %v1373_v41, %v1373_v41 }
 0x11a   : > { %v720_v62 = vadd.f32 %v719_v53, %v718_v56  ;;  %v821_v4 = vadd.f32 %v820_v59, %v819_v12  ;;  %v832_v34 = vsel %vm647_vm2, %v776_v26, 0.0  ;;  %v779_v35 = vmul.f32 %v633_v58, %v633_v58 }
 0x11b   : > { %v733_v36 = vsel %vm647_vm2, %v1373_v41, 0.0  ;;  %v735_v38 = vsel %vm647_vm2, %v633_v58, 0.0  ;;  %v834_v39 = vsel %vm647_vm2, %v777_v29, 0.0  ;;  %v836_v27 = vsel %vm647_vm2, %v778_v32, 0.0 }
 0x11c   : > { %v722_v23 = vadd.f32 %v721_v5, %v720_v62  ;;  %v823_v11 = vadd.f32 %v822_v63, %v821_v4  ;;  %v838_v44 = vsel %vm647_vm2, %v779_v35, 0.0  ;;  %v780_v45 = vmul.f32 %v636_v61, %v636_v61 }
 0x11d   : > { %v737_v48 = vsel %vm647_vm2, %v636_v61, 0.0  ;;  %v739_v41 = vsel %vm647_vm2, %v1383_v47, 0.0  ;;  %v741_v52 = vsel %vm647_vm2, %v644_v60, 0.0 }
 0x11e   : > { %v724_v15 = vadd.f32 %v723_v9, %v722_v23  ;;  %v825_v19 = vadd.f32 %v824_v16, %v823_v11  ;;  %v840_v6 = vsel %vm647_vm2, %v780_v45, 0.0 }
 0x120   : > { %v726_v22 = vadd.f32 %v725_v18, %v724_v15  ;;  %v827_v54 = vadd.f32 %v826_v21, %v825_v19 }
 0x122   : > { %v728_v24 = vadd.f32 %v727_v20, %v726_v22  ;;  %v829_v28 = vadd.f32 %v828_v2, %v827_v54 }
 0x124   : > { %v730_v3 = vadd.f32 %v729_v10, %v728_v24  ;;  %v831_v31 = vadd.f32 %v830_v25, %v829_v28 }
 0x126   : > { %v732_v33 = vadd.f32 %v731_v30, %v730_v3  ;;  %v833_v37 = vadd.f32 %v832_v34, %v831_v31 }
 0x128   : > { %v734_v40 = vadd.f32 %v733_v36, %v732_v33  ;;  %v835_v42 = vadd.f32 %v834_v39, %v833_v37 }
 0x12a   : > { %v736_v43 = vadd.f32 %v735_v38, %v734_v40  ;;  %v837_v46 = vadd.f32 %v836_v27, %v835_v42 }
 0x12c   : > { %v738_v49 = vadd.f32 %v737_v48, %v736_v43  ;;  %v839_v50 = vadd.f32 %v838_v44, %v837_v46 }
 0x12e   : > { %v740_v51 = vadd.f32 %v739_v41, %v738_v49  ;;  %v841_v53 = vadd.f32 %v840_v6, %v839_v50 }
 0x130   : > { %v742_v55 = vadd.f32 %v741_v52, %v740_v51  ;;  %v843_v56 = vadd.f32 %v842_v1, %v841_v53 }
 0x132   : > { %v743_v57 = vrot.slane %v742_v55, 4  ;;  %v845_v58 = vadd.f32 %v844_v13, %v843_v56 }
 0x134   : > { %v744_v59 = vadd.f32 %v743_v57, %v742_v55  ;;  %v846_v12 = vrot.slane %v845_v58, 4 }
 0x136   : > { %v745_v61 = vrot.slane %v744_v59, 2  ;;  %v847_v62 = vadd.f32 %v846_v12, %v845_v58 }
 0x138   : > { %v746_v63 = vadd.f32 %v745_v61, %v744_v59  ;;  %v848_v47 = vrot.slane %v847_v62, 2 }
 0x13a   : > { %v747_v0 = vrot.slane %v746_v63, 1  ;;  %v849_v60 = vadd.f32 %v848_v47, %v847_v62 }
 0x13c   : > { %v748_v4 = vadd.f32 %v747_v0, %v746_v63  ;;  %v850_v5 = vrot.slane %v849_v60, 1 }
 0x13e   : > { %750 = vst.msk [vmem:[%s265_s18] sm:$0x1] %vm749_vm3, %v748_v4  ;;  %v851_v1 = vadd.f32 %v850_v5, %v849_v60 }
 0x140   : > { %852 = vst.msk [vmem:[%s265_s18 + $0x1] sm:$0x1] %vm749_vm3, %v851_v1 }
 0x141 PF: > { %s17_s21 = sadd.s32 1, %s1040_s21  }
 0x142   : > { %p14_p5 = scmp.ge.s32.totalorder %s17_s21, 4  }
 0x144   :  { %16 = sbr.rel (!%p14_p5) target bundleno = 1 (0x1), region = 82 }

// kernel: dense_block_forward.15
= control target key start
LH: loop header
LB: loop body
LE: loop exit
PB: predicated region body
PF: predicated region fallthrough
CT: control target
= control target key end

     0   :  { %s412_s6 = smov 0   ;;  %s534_s0 = inlined_call_operand.vmem [shape: f32[512,12], index: 0, kind: input, shape index: {}]   ;;  %s535_s1 = inlined_call_operand.vmem [shape: f32[2,2,12], index: 1, kind: output, shape index: {}]  }
   0x1 LB: > { %s418_s7 = sadd.s32 4294967295, %s400_s6   ;;  %p380_p0 = scmp.ge.s32.totalorder %s400_s6, 1  ;;  %s400_s6 = sphi %s412_s6, %s11_s6  }
   0x2   : > { %p88_p1 = scmp.lt.s32.totalorder %s400_s6, 3 }
   0x4   : > { %p89_p2 = pnand %p380_p0, %p88_p1 }
   0x5   : > { %s381_s8 = sshll.u32 (!%p89_p2), %s418_s7, 5  ;;  %vm149_vm0 = vcmask (!%p89_p2), 97280   ;;  %p113_p4 = scmp.lt.s32.totalorder (!%p89_p2), %s418_s7, 1  ;;  %vm219_vm1 = vcmask (!%p89_p2), 90112  }
   0x6   : > { %92 = sbr.rel (%p89_p2) target bundleno = 98 (0x62), region = 24  ;;  %p108_p3 = scmp.lt.s32.totalorder (!%p89_p2), %s381_s8, 63 }
   0xd   : > { %s537_s8 = smov (!%p108_p3, %s381_s8), 63  ;;  %s539_s7 = smov (!%p113_p4, %s418_s7), 1 }
   0xe   : > { %s382_s9 = sshll.u32 %s537_s8, 3  ;;  %s383_s13 = sshll.u32 %s539_s7, 1 }
   0xf   : > { %s426_s12 = scalar_lea.vmem %s534_s0, %s382_s9  ;;  %s116_s16 = scalar_lea.vmem %s535_s1, %s383_s13 }
  0x10   : > { %v117_v0 = vld [vmem:[%s426_s12] sm:$0xff]  ;;  %v118_v1 = vld [vmem:[%s426_s12 + $0x8] sm:$0xff]  ;;  %v119_v2 = vld [vmem:[%s426_s12 + $0x10] sm:$0xff] }
  0x11   : > { %v150_v3 = vsel %vm149_vm0, %v117_v0, 0.0  ;;  %v151_v4 = vsel %vm149_vm0, %v118_v1, 0.0  ;;  %v153_v5 = vsel %vm149_vm0, %v119_v2, 0.0  ;;  %v120_v6 = vld [vmem:[%s426_s12 + $0x18] sm:$0xff]  ;;  %v121_v9 = vld [vmem:[%s426_s12 + $0x20] sm:$0xff]  ;;  %v122_v12 = vld [vmem:[%s426_s12 + $0x28] sm:$0xff]  ;;  %v221_v27 = vmul.f32 %v117_v0, %v117_v0 }
  0x12   : > { %v152_v7 = vadd.f32 %v151_v4, %v150_v3  ;;  %v155_v8 = vsel %vm149_vm0, %v120_v6, 0.0  ;;  %v157_v11 = vsel %vm149_vm0, %v121_v9, 0.0  ;;  %v159_v14 = vsel %vm149_vm0, %v122_v12, 0.0  ;;  %v123_v15 = vld [vmem:[%s426_s12 + $0x30] sm:$0xff]  ;;  %v124_v18 = vld [vmem:[%s426_s12 + $0x38] sm:$0xff]  ;;  %v125_v21 = vld [vmem:[%s426_s12 + $0x40] sm:$0xff] }
  0x13   : > { %v161_v17 = vsel %vm149_vm0, %v123_v15, 0.0  ;;  %v163_v20 = vsel %vm149_vm0, %v124_v18, 0.0  ;;  %v165_v23 = vsel %vm149_vm0, %v125_v21, 0.0  ;;  %v126_v24 = vld [vmem:[%s426_s12 + $0x48] sm:$0xff]  ;;  %v222_v28 = vmul.f32 %v118_v1, %v118_v1  ;;  %v127_v30 = vld [vmem:[%s426_s12 + $0x50] sm:$0xff]  ;;  %v128_v32 = vld [vmem:[%s426_s12 + $0x58] sm:$0xff] }
  0x14   : > { %v154_v10 = vadd.f32 %v153_v5, %v152_v7  ;;  %v167_v26 = vsel %vm149_vm0, %v126_v24, 0.0  ;;  %v223_v29 = vmul.f32 %v119_v2, %v119_v2  ;;  %v169_v33 = vsel %vm149_vm0, %v127_v30, 0.0  ;;  %v129_v41 = vld [vmem:[%s426_s12 + $0x60] sm:$0xff]  ;;  %v130_v47 = vld [vmem:[%s426_s12 + $0x68] sm:$0xff]  ;;  %v131_v53 = vld [vmem:[%s426_s12 + $0x70] sm:$0xff] }
  0x15   : > { %v224_v34 = vmul.f32 %v120_v6, %v120_v6  ;;  %v171_v36 = vsel %vm149_vm0, %v128_v32, 0.0  ;;  %v225_v37 = vmul.f32 %v121_v9, %v121_v9  ;;  %v253_v38 = vsel %vm149_vm0, %v221_v27, 0.0  ;;  %v132_v59 = vld [vmem:[%s426_s12 + $0x78] sm:$0xff]  ;;  %v133_v1 = vld [vmem:[%s426_s12 + $0x80] sm:$0xff]  ;;  %v134_v7 = vld [vmem:[%s426_s12 + $0x88] sm:$0xff] }
  0x16   : > { %v156_v13 = vadd.f32 %v155_v8, %v154_v10  ;;  %v254_v39 = vsel %vm149_vm0, %v222_v28, 0.0  ;;  %v256_v40 = vsel %vm149_vm0, %v223_v29, 0.0  ;;  %v173_v44 = vsel %vm149_vm0, %v129_v41, 0.0 }
  0x17   : > { %v255_v43 = vadd.f32 %v254_v39, %v253_v38  ;;  %v226_v45 = vmul.f32 %v122_v12, %v122_v12  ;;  %v258_v46 = vsel %vm149_vm0, %v224_v34, 0.0  ;;  %v175_v50 = vsel %vm149_vm0, %v130_v47, 0.0 }
  0x18   : > { %v158_v16 = vadd.f32 %v157_v11, %v156_v13  ;;  %v227_v51 = vmul.f32 %v123_v15, %v123_v15  ;;  %v260_v52 = vsel %vm149_vm0, %v225_v37, 0.0  ;;  %v177_v56 = vsel %vm149_vm0, %v131_v53, 0.0  ;;  %v135_v13 = vld [vmem:[%s426_s12 + $0x90] sm:$0xff] }
  0x19   : > { %v257_v49 = vadd.f32 %v256_v40, %v255_v43  ;;  %v228_v57 = vmul.f32 %v124_v18, %v124_v18  ;;  %v262_v58 = vsel %vm149_vm0, %v226_v45, 0.0  ;;  %v179_v62 = vsel %vm149_vm0, %v132_v59, 0.0  ;;  %v139_v37 = vld [vmem:[%s426_s12 + $0xb0] sm:$0xff]  ;;  %v140_v43 = vld [vmem:[%s426_s12 + $0xb8] sm:$0xff] }
  0x1a   : > { %v160_v19 = vadd.f32 %v159_v14, %v158_v16  ;;  %v229_v63 = vmul.f32 %v125_v21, %v125_v21  ;;  %v264_v0 = vsel %vm149_vm0, %v227_v51, 0.0  ;;  %v181_v4 = vsel %vm149_vm0, %v133_v1, 0.0 }
  0x1b   : > { %v259_v55 = vadd.f32 %v258_v46, %v257_v49  ;;  %v230_v5 = vmul.f32 %v126_v24, %v126_v24  ;;  %v266_v6 = vsel %vm149_vm0, %v228_v57, 0.0  ;;  %v183_v10 = vsel %vm149_vm0, %v134_v7, 0.0  ;;  %v141_v49 = vld [vmem:[%s426_s12 + $0xc0] sm:$0xff] }
  0x1c   : > { %v162_v22 = vadd.f32 %v161_v17, %v160_v19  ;;  %v231_v11 = vmul.f32 %v127_v30, %v127_v30  ;;  %v268_v12 = vsel %vm149_vm0, %v229_v63, 0.0  ;;  %v185_v16 = vsel %vm149_vm0, %v135_v13, 0.0  ;;  %v136_v19 = vld [vmem:[%s426_s12 + $0x98] sm:$0xff] }
  0x1d   : > { %v261_v61 = vadd.f32 %v260_v52, %v259_v55  ;;  %v232_v17 = vmul.f32 %v128_v32, %v128_v32  ;;  %v270_v18 = vsel %vm149_vm0, %v230_v5, 0.0  ;;  %v234_v29 = vmul.f32 %v130_v47, %v130_v47  ;;  %v142_v55 = vld [vmem:[%s426_s12 + $0xc8] sm:$0xff] }
  0x1e   : > { %v164_v25 = vadd.f32 %v163_v20, %v162_v22  ;;  %v187_v22 = vsel %vm149_vm0, %v136_v19, 0.0  ;;  %v272_v24 = vsel %vm149_vm0, %v231_v11, 0.0  ;;  %v193_v40 = vsel %vm149_vm0, %v139_v37, 0.0 }
  0x1f   : > { %v263_v3 = vadd.f32 %v262_v58, %v261_v61  ;;  %v274_v30 = vsel %vm149_vm0, %v232_v17, 0.0  ;;  %v195_v46 = vsel %vm149_vm0, %v140_v43, 0.0  ;;  %v237_v47 = vmul.f32 %v133_v1, %v133_v1  ;;  %v143_v61 = vld [vmem:[%s426_s12 + $0xd0] sm:$0xff] }
  0x20   : > { %v166_v31 = vadd.f32 %v165_v23, %v164_v25  ;;  %v233_v23 = vmul.f32 %v129_v41, %v129_v41  ;;  %v137_v25 = vld [vmem:[%s426_s12 + $0xa0] sm:$0xff]  ;;  %v236_v41 = vmul.f32 %v132_v59, %v132_v59  ;;  %v197_v52 = vsel %vm149_vm0, %v141_v49, 0.0 }
  0x21   : > { %v265_v9 = vadd.f32 %v264_v0, %v263_v3  ;;  %v189_v28 = vsel %vm149_vm0, %v137_v25, 0.0  ;;  %v199_v58 = vsel %vm149_vm0, %v142_v55, 0.0  ;;  %v239_v59 = vmul.f32 %v135_v13, %v135_v13  ;;  %v144_v3 = vld [vmem:[%s426_s12 + $0xd8] sm:$0xff] }
  0x22   : > { %v168_v35 = vadd.f32 %v167_v26, %v166_v31  ;;  %v138_v31 = vld [vmem:[%s426_s12 + $0xa8] sm:$0xff]  ;;  %v201_v0 = vsel %vm149_vm0, %v143_v61, 0.0  ;;  %v240_v1 = vmul.f32 %v136_v19, %v136_v19  ;;  %v243_v19 = vmul.f32 %v139_v37, %v139_v37 }
  0x23   : > { %v267_v15 = vadd.f32 %v266_v6, %v265_v9  ;;  %v191_v34 = vsel %vm149_vm0, %v138_v31, 0.0  ;;  %v203_v6 = vsel %vm149_vm0, %v144_v3, 0.0  ;;  %v145_v9 = vld [vmem:[%s426_s12 + $0xe0] sm:$0xff]  ;;  %v242_v13 = vmul.f32 %v138_v31, %v138_v31 }
  0x24   : > { %v170_v42 = vadd.f32 %v169_v33, %v168_v35  ;;  %v235_v35 = vmul.f32 %v131_v53, %v131_v53  ;;  %v238_v53 = vmul.f32 %v134_v7, %v134_v7  ;;  %v241_v7 = vmul.f32 %v137_v25, %v137_v25 }
  0x25   : > { %v269_v21 = vadd.f32 %v268_v12, %v267_v15  ;;  %v205_v12 = vsel %vm149_vm0, %v145_v9, 0.0  ;;  %v146_v15 = vld [vmem:[%s426_s12 + $0xe8] sm:$0xff]  ;;  %v244_v25 = vmul.f32 %v140_v43, %v140_v43  ;;  %v245_v31 = vmul.f32 %v141_v49, %v141_v49 }
  0x26   : > { %v172_v48 = vadd.f32 %v171_v36, %v170_v42  ;;  %v276_v36 = vsel %vm149_vm0, %v233_v23, 0.0  ;;  %v278_v42 = vsel %vm149_vm0, %v234_v29, 0.0  ;;  %v248_v43 = vmul.f32 %v144_v3, %v144_v3 }
  0x27   : > { %v271_v27 = vadd.f32 %v270_v18, %v269_v21  ;;  %v207_v18 = vsel %vm149_vm0, %v146_v15, 0.0  ;;  %v147_v21 = vld [vmem:[%s426_s12 + $0xf0] sm:$0xff] }
  0x28   : > { %v174_v54 = vadd.f32 %v173_v44, %v172_v48  ;;  %v280_v48 = vsel %vm149_vm0, %v235_v35, 0.0  ;;  %v246_v35 = vmul.f32 %v142_v55, %v142_v55  ;;  %v251_v55 = vmul.f32 %v147_v21, %v147_v21 }
  0x29   : > { %v273_v33 = vadd.f32 %v272_v24, %v271_v27  ;;  %v209_v24 = vsel %vm149_vm0, %v147_v21, 0.0  ;;  %v148_v27 = vld [vmem:[%s426_s12 + $0xf8] sm:$0xff] }
  0x2a   : > { %v176_v60 = vadd.f32 %v175_v50, %v174_v54  ;;  %v282_v54 = vsel %vm149_vm0, %v236_v41, 0.0 }
  0x2b   : > { %v275_v39 = vadd.f32 %v274_v30, %v273_v33  ;;  %v211_v30 = vsel %vm149_vm0, %v148_v27, 0.0 }
  0x2c   : > { %v178_v2 = vadd.f32 %v177_v56, %v176_v60  ;;  %v284_v60 = vsel %vm149_vm0, %v237_v47, 0.0  ;;  %v249_v47 = vmul.f32 %v145_v9, %v145_v9 }
  0x2d   : > { %v277_v45 = vadd.f32 %v276_v36, %v275_v39  ;;  %v298_v36 = vsel %vm149_vm0, %v244_v25, 0.0  ;;  %v247_v39 = vmul.f32 %v143_v61, %v143_v61 }
  0x2e   : > { %v180_v8 = vadd.f32 %v179_v62, %v178_v2  ;;  %v286_v2 = vsel %vm149_vm0, %v238_v53, 0.0 }
  0x2f   : > { %v279_v51 = vadd.f32 %v278_v42, %v277_v45 }
  0x30   : > { %v182_v14 = vadd.f32 %v181_v4, %v180_v8  ;;  %v288_v8 = vsel %vm149_vm0, %v239_v59, 0.0  ;;  %v252_v59 = vmul.f32 %v148_v27, %v148_v27 }
  0x31   : > { %v281_v57 = vadd.f32 %v280_v48, %v279_v51  ;;  %v304_v48 = vsel %vm149_vm0, %v247_v39, 0.0  ;;  %v250_v51 = vmul.f32 %v146_v15, %v146_v15 }
  0x32   : > { %v184_v20 = vadd.f32 %v183_v10, %v182_v14  ;;  %v290_v14 = vsel %vm149_vm0, %v240_v1, 0.0  ;;  %v314_v1 = vsel %vm149_vm0, %v252_v59, 0.0 }
  0x33   : > { %v283_v63 = vadd.f32 %v282_v54, %v281_v57 }
  0x34   : > { %v186_v26 = vadd.f32 %v185_v16, %v184_v20  ;;  %v292_v20 = vsel %vm149_vm0, %v241_v7, 0.0 }
  0x35   : > { %v285_v5 = vadd.f32 %v284_v60, %v283_v63  ;;  %v310_v60 = vsel %vm149_vm0, %v250_v51, 0.0  ;;  %v312_v63 = vsel %vm149_vm0, %v251_v55, 0.0 }
  0x36   : > { %v188_v32 = vadd.f32 %v187_v22, %v186_v26  ;;  %v294_v26 = vsel %vm149_vm0, %v242_v13, 0.0 }
  0x37   : > { %v287_v11 = vadd.f32 %v286_v2, %v285_v5 }
  0x38   : > { %v190_v38 = vadd.f32 %v189_v28, %v188_v32  ;;  %v296_v32 = vsel %vm149_vm0, %v243_v19, 0.0 }
  0x39   : > { %v289_v17 = vadd.f32 %v288_v8, %v287_v11 }
  0x3a   : > { %v192_v44 = vadd.f32 %v191_v34, %v190_v38 }
  0x3b   : > { %v291_v23 = vadd.f32 %v290_v14, %v289_v17 }
  0x3c   : > { %v194_v50 = vadd.f32 %v193_v40, %v192_v44  ;;  %v300_v40 = vsel %vm149_vm0, %v245_v31, 0.0  ;;  %v302_v44 = vsel %vm149_vm0, %v246_v35, 0.0 }
  0x3d   : > { %v293_v29 = vadd.f32 %v292_v20, %v291_v23 }
  0x3e   : > { %v196_v56 = vadd.f32 %v195_v46, %v194_v50 }
  0x3f   : > { %v295_v34 = vadd.f32 %v294_v26, %v293_v29 }
  0x40   : > { %v198_v62 = vadd.f32 %v197_v52, %v196_v56  ;;  %v306_v52 = vsel %vm149_vm0, %v248_v43, 0.0  ;;  %v308_v56 = vsel %vm149_vm0, %v249_v47, 0.0 }
  0x41   : > { %v297_v38 = vadd.f32 %v296_v32, %v295_v34 }
  0x42   : > { %v200_v4 = vadd.f32 %v199_v58, %v198_v62 }
  0x43   : > { %v299_v42 = vadd.f32 %v298_v36, %v297_v38 }
  0x44   : > { %v202_v10 = vadd.f32 %v201_v0, %v200_v4 }
  0x45   : > { %v301_v46 = vadd.f32 %v300_v40, %v299_v42 }
  0x46   : > { %v204_v16 = vadd.f32 %v203_v6, %v202_v10 }
  0x47   : > { %v303_v50 = vadd.f32 %v302_v44, %v301_v46 }
  0x48   : > { %v206_v22 = vadd.f32 %v205_v12, %v204_v16 }
  0x49   : > { %v305_v54 = vadd.f32 %v304_v48, %v303_v50 }
  0x4a   : > { %v208_v28 = vadd.f32 %v207_v18, %v206_v22 }
  0x4b   : > { %v307_v58 = vadd.f32 %v306_v52, %v305_v54 }
  0x4c   : > { %v210_v33 = vadd.f32 %v209_v24, %v208_v28 }
  0x4d   : > { %v309_v62 = vadd.f32 %v308_v56, %v307_v58 }
  0x4e   : > { %v212_v37 = vadd.f32 %v211_v30, %v210_v33 }
  0x4f   : > { %v311_v0 = vadd.f32 %v310_v60, %v309_v62 }
  0x50   : > { %v213_v41 = vrot.slane %v212_v37, 4 }
  0x51   : > { %v313_v2 = vadd.f32 %v312_v63, %v311_v0 }
  0x52   : > { %v214_v45 = vadd.f32 %v213_v41, %v212_v37 }
  0x53   : > { %v315_v3 = vadd.f32 %v314_v1, %v313_v2 }
  0x54   : > { %v215_v49 = vrot.slane %v214_v45, 2 }
  0x55   : > { %v316_v4 = vrot.slane %v315_v3, 4 }
  0x56   : > { %v216_v53 = vadd.f32 %v215_v49, %v214_v45 }
  0x57   : > { %v317_v5 = vadd.f32 %v316_v4, %v315_v3 }
  0x58   : > { %v217_v57 = vrot.slane %v216_v53, 1 }
  0x59   : > { %v318_v6 = vrot.slane %v317_v5, 2 }
  0x5a   : > { %v218_v61 = vadd.f32 %v217_v57, %v216_v53 }
  0x5b   : > { %v319_v7 = vadd.f32 %v318_v6, %v317_v5 }
  0x5c   : > { %220 = vst.msk [vmem:[%s116_s16] sm:$0x1] %vm219_vm1, %v218_v61 }
  0x5d   : > { %v320_v8 = vrot.slane %v319_v7, 1 }
  0x5f   : > { %v321_v9 = vadd.f32 %v320_v8, %v319_v7 }
  0x61   : > { %322 = vst.msk [vmem:[%s116_s16 + $0x1] sm:$0x1] %vm219_vm1, %v321_v9 }
  0x62 PF: > { %s11_s6 = sadd.s32 1, %s400_s6  }
  0x63   : > { %p8_p5 = scmp.ge.s32.totalorder %s11_s6, 4  }
  0x65   :  { %10 = sbr.rel (!%p8_p5) target bundleno = 1 (0x1), region = 54 }

// kernel: dense_block_forward.16
= control target key start
LH: loop header
LB: loop body
LE: loop exit
PB: predicated region body
PF: predicated region fallthrough
CT: control target
= control target key end

     0   :  { %s1085_s21 = smov 0   ;;  %s1462_s0 = inlined_call_operand.vmem [shape: f32[512,12], index: 0, kind: input, shape index: {}]   ;;  %s1463_s1 = inlined_call_operand.vmem [shape: f32[1,12], index: 1, kind: input, shape index: {}]   ;;  %s1464_s2 = inlined_call_operand.vmem [shape: f32[1,12], index: 2, kind: input, shape index: {}]   ;;  %s1465_s3 = inlined_call_operand.vmem [shape: bf16[12,16], index: 3, kind: input, shape index: {}]   ;;  %s1466_s4 = inlined_call_operand.vmem [shape: f32[1,16], index: 4, kind: input, shape index: {}]   ;;  %s1467_s5 = inlined_call_operand.vmem [shape: f32[512,16], index: 5, kind: output, shape index: {0}]   ;;  %s1468_s6 = inlined_call_operand.vmem [shape: f32[2,2,16], index: 6, kind: output, shape index: {1}]  }
   0x1 LB: > { %s1091_s22 = sadd.s32 4294967295, %s1048_s21   ;;  %p950_p0 = scmp.ge.s32.totalorder %s1048_s21, 1  ;;  %s1048_s21 = sphi %s1085_s21, %s17_s21  }
   0x2   : > { %p216_p1 = scmp.lt.s32.totalorder %s1048_s21, 3 }
   0x4   : > { %p217_p2 = pnand %p950_p0, %p216_p1 }
   0x5   : > { %v1041_v0 = vld [vmem:[%s1465_s3] sm:$0x3f] (!%p217_p2)   ;;  %vm488_vm0 = vcmask (!%p217_p2), 1045504   ;;  %s951_s25 = sshll.u32 (!%p217_p2), %s1091_s22, 5  ;;  %vm439_vm1 = vcmask (!%p217_p2), 97280   ;;  %vm653_vm2 = vcmask (!%p217_p2), 130048  }
   0x6   : > { %220 = sbr.rel (%p217_p2) target bundleno = 321 (0x141), region = 40  ;;  %1031 = vmatprep.subr.msk.bf16.mxu0 (!%p217_p2), %vm488_vm0, %v1041_v0  ;;  %v490_v1 = vsel (!%p217_p2), %vm488_vm0, %v1041_v0, 0  ;;  %p251_p3 = scmp.lt.s32.totalorder (!%p217_p2), %s951_s25, 63  ;;  %1032 = vmatprep.subr.msk.bf16.mxu1 (!%p217_p2), %vm488_vm0, %v1041_v0  ;;  %v1105_v2 = vld [vmem:[%s1463_s1] ss:$0 sm:$0xff] (!%p217_p2)  ;;  %vm755_vm3 = vcmask (!%p217_p2), 122880  }
   0x7   : > { %996 = vmatpush3.bf16.msra.mxu0 (!%p217_p2), %v490_v1  ;;  %1030 = vmatpush3.bf16.msra.mxu1 (!%p217_p2), %v490_v1  ;;  %v1117_v3 = vld [vmem:[%s1464_s2] ss:$0 sm:$0xff] (!%p217_p2)  ;;  %p262_p4 = scmp.lt.s32.totalorder (!%p217_p2), %s1091_s22, 1 }
   0xd   : > { %s1470_s25 = smov (!%p251_p3, %s951_s25), 63  ;;  %s1472_s22 = smov (!%p262_p4, %s1091_s22), 1 }
   0xe   : > { %s952_s26 = sshll.u32 %s1470_s25, 3  ;;  %s955_s15 = sshll.u32 %s1472_s22, 1 }
   0xf   : > { %s1112_s7 = scalar_lea.vmem %s1462_s0, %s952_s26  ;;  %s1244_s14 = scalar_lea.vmem %s1467_s5, %s952_s26 }
  0x10   : > { %v267_v4 = vld [vmem:[%s1112_s7] sm:$0xff]  ;;  %v268_v5 = vld [vmem:[%s1112_s7 + $0x8] sm:$0xff]  ;;  %v269_v6 = vld [vmem:[%s1112_s7 + $0x10] sm:$0xff]  ;;  %s265_s18 = scalar_lea.vmem %s1468_s6, %s955_s15 }
  0x11   : > { %v306_v7 = vmul.f32 %v1105_v2, %v267_v4  ;;  %v307_v8 = vmul.f32 %v1105_v2, %v268_v5  ;;  %v270_v9 = vld [vmem:[%s1112_s7 + $0x18] sm:$0xff]  ;;  %v308_v10 = vmul.f32 %v1105_v2, %v269_v6  ;;  %v271_v11 = vld [vmem:[%s1112_s7 + $0x20] sm:$0xff]  ;;  %v272_v12 = vld [vmem:[%s1112_s7 + $0x28] sm:$0xff] }
  0x12   : > { %v309_v13 = vmul.f32 %v1105_v2, %v270_v9  ;;  %v310_v14 = vmul.f32 %v1105_v2, %v271_v11  ;;  %v311_v15 = vmul.f32 %v1105_v2, %v272_v12  ;;  %v273_v16 = vld [vmem:[%s1112_s7 + $0x30] sm:$0xff]  ;;  %v274_v17 = vld [vmem:[%s1112_s7 + $0x38] sm:$0xff]  ;;  %v275_v26 = vld [vmem:[%s1112_s7 + $0x40] sm:$0xff] }
  0x13   : > { %v345_v18 = vadd.f32 %v1117_v3, %v306_v7  ;;  %v346_v19 = vadd.f32 %v1117_v3, %v307_v8  ;;  %v347_v20 = vadd.f32 %v1117_v3, %v308_v10  ;;  %v312_v21 = vmul.f32 %v1105_v2, %v273_v16  ;;  %v276_v27 = vld [vmem:[%s1112_s7 + $0x48] sm:$0xff]  ;;  %v277_v32 = vld [vmem:[%s1112_s7 + $0x50] sm:$0xff]  ;;  %v278_v37 = vld [vmem:[%s1112_s7 + $0x58] sm:$0xff] }
  0x14   : > { %v348_v22 = vadd.f32 %v1117_v3, %v309_v13  ;;  %v349_v23 = vadd.f32 %v1117_v3, %v310_v14  ;;  %v350_v24 = vadd.f32 %v1117_v3, %v311_v15  ;;  %v313_v25 = vmul.f32 %v1105_v2, %v274_v17  ;;  %v279_v38 = vld [vmem:[%s1112_s7 + $0x60] sm:$0xff]  ;;  %v280_v43 = vld [vmem:[%s1112_s7 + $0x68] sm:$0xff]  ;;  %v281_v44 = vld [vmem:[%s1112_s7 + $0x70] sm:$0xff] }
  0x15   : > { %v377_v28 = vmax.f32 %v345_v18, 0.0  ;;  %v378_v29 = vmax.f32 %v346_v19, 0.0  ;;  %v379_v30 = vmax.f32 %v347_v20, 0.0  ;;  %v351_v31 = vadd.f32 %v1117_v3, %v312_v21  ;;  %v282_v53 = vld [vmem:[%s1112_s7 + $0x78] sm:$0xff]  ;;  %v283_v57 = vld [vmem:[%s1112_s7 + $0x80] sm:$0xff]  ;;  %v284_v62 = vld [vmem:[%s1112_s7 + $0x88] sm:$0xff] }
  0x16   : > { %v380_v33 = vmax.f32 %v348_v22, 0.0  ;;  %v381_v34 = vmax.f32 %v349_v23, 0.0  ;;  %v382_v35 = vmax.f32 %v350_v24, 0.0  ;;  %v352_v36 = vadd.f32 %v1117_v3, %v313_v25  ;;  %v285_v1 = vld [vmem:[%s1112_s7 + $0x90] sm:$0xff]  ;;  %v286_v4 = vld [vmem:[%s1112_s7 + $0x98] sm:$0xff]  ;;  %v287_v8 = vld [vmem:[%s1112_s7 + $0xa0] sm:$0xff] }
  0x17   : > { %v409_v39 = vpack.c.bf16 %v378_v29, %v377_v28  ;;  %v383_v40 = vmax.f32 %v351_v31, 0.0  ;;  %v314_v41 = vmul.f32 %v1105_v2, %v275_v26  ;;  %v315_v42 = vmul.f32 %v1105_v2, %v276_v27  ;;  %v288_v13 = vld [vmem:[%s1112_s7 + $0xa8] sm:$0xff]  ;;  %v289_v18 = vld [vmem:[%s1112_s7 + $0xb0] sm:$0xff]  ;;  %v290_v23 = vld [vmem:[%s1112_s7 + $0xb8] sm:$0xff] }
  0x18   : > { %v410_v45 = vpack.c.bf16 %v380_v33, %v379_v30  ;;  %v411_v46 = vpack.c.bf16 %v382_v35, %v381_v34  ;;  %v384_v47 = vmax.f32 %v352_v36, 0.0  ;;  %v316_v48 = vmul.f32 %v1105_v2, %v277_v32  ;;  %v291_v28 = vld [vmem:[%s1112_s7 + $0xc0] sm:$0xff]  ;;  %v292_v33 = vld [vmem:[%s1112_s7 + $0xc8] sm:$0xff] }
  0x19   : > { %997 = vmatprep.mubr.msk.bf16.mxu0 %vm439_vm1, %v409_v39  ;;  %v353_v49 = vadd.f32 %v1117_v3, %v314_v41  ;;  %v354_v50 = vadd.f32 %v1117_v3, %v315_v42  ;;  %v317_v51 = vmul.f32 %v1105_v2, %v278_v37  ;;  %v318_v52 = vmul.f32 %v1105_v2, %v279_v38  ;;  %v293_v38 = vld [vmem:[%s1112_s7 + $0xd0] sm:$0xff] }
  0x1a   : > { %998 = vmatmul.mubr.msk.bf16.vlgmr.msra.gmra.mrb[0].mxu0 %vm439_vm1, %v410_v45  ;;  %v355_v54 = vadd.f32 %v1117_v3, %v316_v48  ;;  %v319_v55 = vmul.f32 %v1105_v2, %v280_v43  ;;  %v320_v56 = vmul.f32 %v1105_v2, %v281_v44  ;;  %v321_v0 = vmul.f32 %v1105_v2, %v282_v53  ;;  %v294_v43 = vld [vmem:[%s1112_s7 + $0xd8] sm:$0xff]  ;;  %v295_v48 = vld [vmem:[%s1112_s7 + $0xe0] sm:$0xff] }
  0x1b   : > { %1001 = vmatprep.mubr.msk.bf16.mxu0 %vm439_vm1, %v411_v46  ;;  %v385_v58 = vmax.f32 %v353_v49, 0.0  ;;  %v386_v59 = vmax.f32 %v354_v50, 0.0  ;;  %v356_v60 = vadd.f32 %v1117_v3, %v317_v51  ;;  %v357_v61 = vadd.f32 %v1117_v3, %v318_v52  ;;  %v296_v49 = vld [vmem:[%s1112_s7 + $0xe8] sm:$0xff] }
  0x1c   : > { %v358_v63 = vadd.f32 %v1117_v3, %v319_v55  ;;  %v412_v5 = vpack.c.bf16 %v384_v47, %v383_v40  ;;  %v387_v6 = vmax.f32 %v355_v54, 0.0  ;;  %v322_v7 = vmul.f32 %v1105_v2, %v283_v57 }
  0x1d   : > { %v413_v9 = vpack.c.bf16 %v386_v59, %v385_v58  ;;  %v388_v10 = vmax.f32 %v356_v60, 0.0  ;;  %v1175_v11 = vadd.f32 %v1117_v3, %v320_v56  ;;  %v323_v12 = vmul.f32 %v1105_v2, %v284_v62 }
  0x1e   : > { %v389_v14 = vmax.f32 %v357_v61, 0.0  ;;  %v361_v15 = vadd.f32 %v1117_v3, %v322_v7  ;;  %v324_v16 = vmul.f32 %v1105_v2, %v285_v1  ;;  %v325_v17 = vmul.f32 %v1105_v2, %v286_v4 }
  0x1f   : > { %v390_v19 = vmax.f32 %v358_v63, 0.0  ;;  %v360_v20 = vadd.f32 %v1117_v3, %v321_v0  ;;  %v362_v21 = vadd.f32 %v1117_v3, %v323_v12  ;;  %v326_v22 = vmul.f32 %v1105_v2, %v287_v8  ;;  %v297_v8 = vld [vmem:[%s1112_s7 + $0xf0] sm:$0xff] }
  0x20   : > { %v393_v24 = vmax.f32 %v361_v15, 0.0  ;;  %v363_v25 = vadd.f32 %v1117_v3, %v324_v16  ;;  %v364_v26 = vadd.f32 %v1117_v3, %v325_v17  ;;  %v327_v27 = vmul.f32 %v1105_v2, %v288_v13 }
  0x21   : > { %v414_v29 = vpack.c.bf16 %v388_v10, %v387_v6  ;;  %v394_v30 = vmax.f32 %v362_v21, 0.0  ;;  %v365_v31 = vadd.f32 %v1117_v3, %v326_v22  ;;  %v328_v32 = vmul.f32 %v1105_v2, %v289_v18 }
  0x22   : > { %1002 = vmatmul.mubr.msk.bf16.gmra.mrb[4].mxu0 %vm439_vm1, %v412_v5  ;;  %v395_v34 = vmax.f32 %v363_v25, 0.0  ;;  %v396_v35 = vmax.f32 %v364_v26, 0.0  ;;  %v366_v36 = vadd.f32 %v1117_v3, %v327_v27  ;;  %v329_v37 = vmul.f32 %v1105_v2, %v290_v23  ;;  %v1237_v23 = vld [vmem:[%s1466_s4] ss:$0 sm:$0xff] }
  0x23   : > { %1005 = vmatprep.mubr.msk.bf16.mxu0 %vm439_vm1, %v413_v9  ;;  %v417_v39 = vpack.c.bf16 %v394_v30, %v393_v24  ;;  %v397_v40 = vmax.f32 %v365_v31, 0.0  ;;  %v367_v41 = vadd.f32 %v1117_v3, %v328_v32  ;;  %v330_v42 = vmul.f32 %v1105_v2, %v291_v28  ;;  %v298_v9 = vld [vmem:[%s1112_s7 + $0xf8] sm:$0xff] }
  0x24   : > { %v418_v44 = vpack.c.bf16 %v396_v35, %v395_v34  ;;  %v398_v45 = vmax.f32 %v366_v36, 0.0  ;;  %v368_v46 = vadd.f32 %v1117_v3, %v329_v37  ;;  %v331_v47 = vmul.f32 %v1105_v2, %v292_v33 }
  0x25   : > { %v415_v50 = vpack.c.bf16 %v390_v19, %v389_v14  ;;  %1013 = vmatprep.mubr.msk.bf16.mxu1 %vm439_vm1, %v417_v39  ;;  %v399_v51 = vmax.f32 %v367_v41, 0.0  ;;  %v369_v52 = vadd.f32 %v1117_v3, %v330_v42  ;;  %v332_v53 = vmul.f32 %v1105_v2, %v293_v38 }
  0x26   : > { %1014 = vmatmul.mubr.msk.bf16.vlgmr.msra.gmra.mrb[0].mxu1 %vm439_vm1, %v418_v44  ;;  %v419_v54 = vpack.c.bf16 %v398_v45, %v397_v40  ;;  %v400_v55 = vmax.f32 %v368_v46, 0.0  ;;  %v370_v56 = vadd.f32 %v1117_v3, %v331_v47  ;;  %v333_v57 = vmul.f32 %v1105_v2, %v294_v43 }
  0x27   : > { %v401_v58 = vmax.f32 %v369_v52, 0.0  ;;  %v334_v59 = vmul.f32 %v1105_v2, %v295_v48  ;;  %v335_v60 = vmul.f32 %v1105_v2, %v296_v49  ;;  %v391_v62 = vmax.f32 %v1175_v11, 0.0 }
  0x28   : > { %1017 = vmatprep.mubr.msk.bf16.mxu1 %vm439_vm1, %v419_v54  ;;  %v402_v61 = vmax.f32 %v370_v56, 0.0  ;;  %v392_v63 = vmax.f32 %v360_v20, 0.0  ;;  %v420_v0 = vpack.c.bf16 %v400_v55, %v399_v51  ;;  %v371_v1 = vadd.f32 %v1117_v3, %v332_v53 }
  0x29   : > { %v372_v4 = vadd.f32 %v1117_v3, %v333_v57  ;;  %v373_v6 = vadd.f32 %v1117_v3, %v334_v59  ;;  %v374_v7 = vadd.f32 %v1117_v3, %v335_v60  ;;  %v336_v13 = vmul.f32 %v1105_v2, %v297_v8 }
  0x2a   : > { %1006 = vmatmul.mubr.msk.bf16.gmra.mrb[8].mxu0 %vm439_vm1, %v414_v29  ;;  %v421_v5 = vpack.c.bf16 %v402_v61, %v401_v58  ;;  %v416_v10 = vpack.c.bf16 %v392_v63, %v391_v62  ;;  %v403_v12 = vmax.f32 %v371_v1, 0.0  ;;  %v337_v14 = vmul.f32 %v1105_v2, %v298_v9 }
  0x2b   : > { %1009 = vmatprep.mubr.msk.bf16.mxu0 %vm439_vm1, %v415_v50  ;;  %v404_v11 = vmax.f32 %v372_v4, 0.0  ;;  %v405_v15 = vmax.f32 %v373_v6, 0.0  ;;  %v406_v16 = vmax.f32 %v374_v7, 0.0  ;;  %v375_v18 = vadd.f32 %v1117_v3, %v336_v13 }
  0x2c   : > { %v376_v19 = vadd.f32 %v1117_v3, %v337_v14 }
  0x2d   : > { %v422_v17 = vpack.c.bf16 %v404_v11, %v403_v12  ;;  %v423_v20 = vpack.c.bf16 %v406_v16, %v405_v15  ;;  %v407_v21 = vmax.f32 %v375_v18, 0.0 }
  0x2e   : > { %1018 = vmatmul.mubr.msk.bf16.gmra.mrb[4].mxu1 %vm439_vm1, %v420_v0  ;;  %v408_v22 = vmax.f32 %v376_v19, 0.0 }
  0x2f   : > { %1021 = vmatprep.mubr.msk.bf16.mxu1 %vm439_vm1, %v421_v5 }
  0x30   : > { %v424_v2 = vpack.c.bf16 %v408_v22, %v407_v21 }
  0x32   : > { %1010 = vmatmul.mubr.msk.bf16.gmra.mrb[12].mxu0 %vm439_vm1, %v416_v10 }
  0x36   : > { %1022 = vmatmul.mubr.msk.bf16.gmra.mrb[8].mxu1 %vm439_vm1, %v422_v17 }
  0x37   : > { %1025 = vmatprep.mubr.msk.bf16.mxu1 %vm439_vm1, %v423_v20 }
  0x3e   : > { %1026 = vmatmul.mubr.msk.bf16.gmra.mrb[12].mxu1 %vm439_vm1, %v424_v2 }
  0xed   : > { %v999_v3 = vpop.f32.mrb[0].mxu0 }
  0xee   : > { %v535_v24 = vadd.f32 %v999_v3, %v1237_v23  ;;  %v526_v25 = vpop.f32.mrb[1].mxu0 }
  0xef   : > { %v527_v26 = vadd.f32 %v1237_v23, %v526_v25  ;;  %v1000_v27 = vpop.f32.mrb[2].mxu0 }
  0xf0   : > { %656 = vst.msk [vmem:[%s1244_s14 + $0x10] sm:$0xff] %vm653_vm2, %v535_v24  ;;  %v538_v28 = vadd.f32 %v1000_v27, %v1237_v23  ;;  %v529_v29 = vpop.f32.mrb[3].mxu0  ;;  %v759_v32 = vmul.f32 %v535_v24, %v535_v24  ;;  %v689_v38 = vsel %vm653_vm2, %v535_v24, 0.0 }
  0xf1   : > { %654 = vst.msk [vmem:[%s1244_s14] sm:$0xff] %vm653_vm2, %v527_v26  ;;  %v757_v30 = vmul.f32 %v527_v26, %v527_v26  ;;  %v530_v31 = vadd.f32 %v1237_v23, %v529_v29  ;;  %v686_v33 = vsel %vm653_vm2, %v527_v26, 0.0 }
  0xf2   : > { %657 = vst.msk [vmem:[%s1244_s14 + $0x18] sm:$0xff] %vm653_vm2, %v538_v28  ;;  %v760_v36 = vmul.f32 %v538_v28, %v538_v28  ;;  %v792_v46 = vsel %vm653_vm2, %v759_v32, 0.0  ;;  %v691_v47 = vsel %vm653_vm2, %v538_v28, 0.0 }
  0xf3   : > { %655 = vst.msk [vmem:[%s1244_s14 + $0x8] sm:$0xff] %vm653_vm2, %v530_v31  ;;  %v687_v34 = vsel %vm653_vm2, %v530_v31, 0.0  ;;  %v758_v35 = vmul.f32 %v530_v31, %v530_v31  ;;  %v789_v39 = vsel %vm653_vm2, %v757_v30, 0.0 }
  0xf4   : > { %v688_v37 = vadd.f32 %v687_v34, %v686_v33  ;;  %v794_v50 = vsel %vm653_vm2, %v760_v36, 0.0 }
  0xf5   : > { %v790_v40 = vsel %vm653_vm2, %v758_v35, 0.0  ;;  %v1003_v41 = vpop.f32.mrb[4].mxu0 }
  0xf6   : > { %v690_v42 = vadd.f32 %v689_v38, %v688_v37  ;;  %v791_v43 = vadd.f32 %v790_v40, %v789_v39  ;;  %v551_v44 = vadd.f32 %v1003_v41, %v1237_v23  ;;  %v542_v45 = vpop.f32.mrb[5].mxu0 }
  0xf7   : > { %v543_v48 = vadd.f32 %v1237_v23, %v542_v45  ;;  %v1004_v49 = vpop.f32.mrb[6].mxu0 }
  0xf8   : > { %v793_v51 = vadd.f32 %v792_v46, %v791_v43  ;;  %660 = vst.msk [vmem:[%s1244_s14 + $0x30] sm:$0xff] %vm653_vm2, %v551_v44  ;;  %v692_v52 = vadd.f32 %v691_v47, %v690_v42  ;;  %v545_v53 = vpop.f32.mrb[7].mxu0  ;;  %v554_v56 = vadd.f32 %v1004_v49, %v1237_v23  ;;  %v763_v61 = vmul.f32 %v551_v44, %v551_v44 }
  0xf9   : > { %658 = vst.msk [vmem:[%s1244_s14 + $0x20] sm:$0xff] %vm653_vm2, %v543_v48  ;;  %v693_v54 = vsel %vm653_vm2, %v543_v48, 0.0  ;;  %v761_v55 = vmul.f32 %v543_v48, %v543_v48  ;;  %v546_v57 = vadd.f32 %v1237_v23, %v545_v53  ;;  %v1015_v60 = vpop.f32.mrb[0].mxu1  ;;  %v697_v8 = vsel %vm653_vm2, %v551_v44, 0.0 }
  0xfa   : > { %v694_v58 = vadd.f32 %v693_v54, %v692_v52  ;;  %v795_v59 = vadd.f32 %v794_v50, %v793_v51  ;;  %661 = vst.msk [vmem:[%s1244_s14 + $0x38] sm:$0xff] %vm653_vm2, %v554_v56  ;;  %v590_v0 = vpop.f32.mrb[1].mxu1  ;;  %v1282_v6 = vadd.f32 %v1015_v60, %v1237_v23  ;;  %v764_v13 = vmul.f32 %v554_v56, %v554_v56 }
  0xfb   : > { %v796_v62 = vsel %vm653_vm2, %v761_v55, 0.0  ;;  %659 = vst.msk [vmem:[%s1244_s14 + $0x28] sm:$0xff] %vm653_vm2, %v546_v57  ;;  %v695_v63 = vsel %vm653_vm2, %v546_v57, 0.0  ;;  %v762_v5 = vmul.f32 %v546_v57, %v546_v57  ;;  %v1016_v7 = vpop.f32.mrb[2].mxu1  ;;  %v1286_v10 = vadd.f32 %v1237_v23, %v590_v0 }
  0xfc   : > { %v797_v1 = vadd.f32 %v796_v62, %v795_v59  ;;  %v696_v4 = vadd.f32 %v695_v63, %v694_v58  ;;  %v1289_v12 = vadd.f32 %v1016_v7, %v1237_v23  ;;  %v593_v11 = vpop.f32.mrb[3].mxu1  ;;  %672 = vst.msk [vmem:[%s1244_s14 + $0x90] sm:$0xff] %vm653_vm2, %v1282_v6  ;;  %v699_v18 = vsel %vm653_vm2, %v554_v56, 0.0 }
  0xfd   : > { %v1007_v9 = vpop.f32.mrb[8].mxu0  ;;  %v798_v15 = vsel %vm653_vm2, %v762_v5, 0.0  ;;  %670 = vst.msk [vmem:[%s1244_s14 + $0x80] sm:$0xff] %vm653_vm2, %v1286_v10  ;;  %v800_v22 = vsel %vm653_vm2, %v763_v61, 0.0  ;;  %v802_v29 = vsel %vm653_vm2, %v764_v13, 0.0  ;;  %v594_v49 = vadd.f32 %v1237_v23, %v593_v11 }
  0xfe   : > { %v698_v14 = vadd.f32 %v697_v8, %v696_v4  ;;  %v567_v16 = vadd.f32 %v1007_v9, %v1237_v23  ;;  %v558_v17 = vpop.f32.mrb[9].mxu0  ;;  %v799_v19 = vadd.f32 %v798_v15, %v797_v1  ;;  %673 = vst.msk [vmem:[%s1244_s14 + $0x98] sm:$0xff] %vm653_vm2, %v1289_v12 }
  0xff   : > { %v559_v20 = vadd.f32 %v1237_v23, %v558_v17  ;;  %v1008_v21 = vpop.f32.mrb[10].mxu0  ;;  %671 = vst.msk [vmem:[%s1244_s14 + $0x88] sm:$0xff] %vm653_vm2, %v594_v49 }
 0x100   : > { %664 = vst.msk [vmem:[%s1244_s14 + $0x50] sm:$0xff] %vm653_vm2, %v567_v16  ;;  %v700_v2 = vadd.f32 %v699_v18, %v698_v14  ;;  %v570_v3 = vadd.f32 %v1008_v21, %v1237_v23  ;;  %v561_v24 = vpop.f32.mrb[11].mxu0  ;;  %v801_v25 = vadd.f32 %v800_v22, %v799_v19  ;;  %v767_v37 = vmul.f32 %v567_v16, %v567_v16 }
 0x101   : > { %662 = vst.msk [vmem:[%s1244_s14 + $0x40] sm:$0xff] %vm653_vm2, %v559_v20  ;;  %v701_v26 = vsel %vm653_vm2, %v559_v20, 0.0  ;;  %v765_v27 = vmul.f32 %v559_v20, %v559_v20  ;;  %v562_v28 = vadd.f32 %v1237_v23, %v561_v24  ;;  %v1019_v31 = vpop.f32.mrb[4].mxu1  ;;  %v705_v40 = vsel %vm653_vm2, %v567_v16, 0.0 }
 0x102   : > { %v702_v30 = vadd.f32 %v701_v26, %v700_v2  ;;  %665 = vst.msk [vmem:[%s1244_s14 + $0x58] sm:$0xff] %vm653_vm2, %v570_v3  ;;  %v803_v32 = vadd.f32 %v802_v29, %v801_v25  ;;  %v606_v36 = vpop.f32.mrb[5].mxu1  ;;  %v768_v45 = vmul.f32 %v570_v3, %v570_v3  ;;  %v707_v50 = vsel %vm653_vm2, %v570_v3, 0.0 }
 0x103   : > { %v804_v33 = vsel %vm653_vm2, %v765_v27, 0.0  ;;  %663 = vst.msk [vmem:[%s1244_s14 + $0x48] sm:$0xff] %vm653_vm2, %v562_v28  ;;  %v703_v34 = vsel %vm653_vm2, %v562_v28, 0.0  ;;  %v766_v35 = vmul.f32 %v562_v28, %v562_v28  ;;  %v1020_v39 = vpop.f32.mrb[6].mxu1  ;;  %v1326_v54 = vadd.f32 %v1019_v31, %v1237_v23 }
 0x104   : > { %v704_v38 = vadd.f32 %v703_v34, %v702_v30  ;;  %v805_v41 = vadd.f32 %v804_v33, %v803_v32  ;;  %v609_v44 = vpop.f32.mrb[7].mxu1  ;;  %v808_v55 = vsel %vm653_vm2, %v767_v37, 0.0  ;;  %v810_v63 = vsel %vm653_vm2, %v768_v45, 0.0 }
 0x105   : > { %v806_v42 = vsel %vm653_vm2, %v766_v35, 0.0  ;;  %v1011_v43 = vpop.f32.mrb[12].mxu0  ;;  %676 = vst.msk [vmem:[%s1244_s14 + $0xb0] sm:$0xff] %vm653_vm2, %v1326_v54  ;;  %v717_v14 = vsel %vm653_vm2, %v1286_v10, 0.0  ;;  %v773_v19 = vmul.f32 %v1286_v10, %v1286_v10  ;;  %v607_v2 = vadd.f32 %v1237_v23, %v606_v36 }
 0x106   : > { %v706_v46 = vadd.f32 %v705_v40, %v704_v38  ;;  %v583_v47 = vadd.f32 %v1011_v43, %v1237_v23  ;;  %v574_v48 = vpop.f32.mrb[13].mxu0  ;;  %v807_v51 = vadd.f32 %v806_v42, %v805_v41  ;;  %v1356_v3 = vadd.f32 %v1020_v39, %v1237_v23 }
 0x107   : > { %v575_v52 = vadd.f32 %v1237_v23, %v574_v48  ;;  %v1012_v53 = vpop.f32.mrb[14].mxu0  ;;  %v610_v26 = vadd.f32 %v1237_v23, %v609_v44  ;;  %674 = vst.msk [vmem:[%s1244_s14 + $0xa0] sm:$0xff] %vm653_vm2, %v607_v2  ;;  %v820_v32 = vsel %vm653_vm2, %v773_v19, 0.0  ;;  %v774_v33 = vmul.f32 %v594_v49, %v594_v49 }
 0x108   : > { %668 = vst.msk [vmem:[%s1244_s14 + $0x70] sm:$0xff] %vm653_vm2, %v583_v47  ;;  %v708_v56 = vadd.f32 %v707_v50, %v706_v46  ;;  %v586_v57 = vadd.f32 %v1012_v53, %v1237_v23  ;;  %v577_v58 = vpop.f32.mrb[15].mxu0  ;;  %v809_v59 = vadd.f32 %v808_v55, %v807_v51  ;;  %v771_v11 = vmul.f32 %v583_v47, %v583_v47 }
 0x109   : > { %666 = vst.msk [vmem:[%s1244_s14 + $0x60] sm:$0xff] %vm653_vm2, %v575_v52  ;;  %v709_v60 = vsel %vm653_vm2, %v575_v52, 0.0  ;;  %v769_v61 = vmul.f32 %v575_v52, %v575_v52  ;;  %v578_v62 = vadd.f32 %v1237_v23, %v577_v58  ;;  %v1023_v1 = vpop.f32.mrb[8].mxu1  ;;  %v713_v16 = vsel %vm653_vm2, %v583_v47, 0.0  ;;  %677 = vst.msk [vmem:[%s1244_s14 + $0xb8] sm:$0xff] %vm653_vm2, %v1356_v3 }
 0x10a   : > { %v710_v0 = vadd.f32 %v709_v60, %v708_v56  ;;  %669 = vst.msk [vmem:[%s1244_s14 + $0x78] sm:$0xff] %vm653_vm2, %v586_v57  ;;  %v811_v4 = vadd.f32 %v810_v63, %v809_v59  ;;  %v622_v9 = vpop.f32.mrb[9].mxu1  ;;  %v772_v21 = vmul.f32 %v586_v57, %v586_v57  ;;  %v715_v24 = vsel %vm653_vm2, %v586_v57, 0.0  ;;  %675 = vst.msk [vmem:[%s1244_s14 + $0xa8] sm:$0xff] %vm653_vm2, %v610_v26 }
 0x10b   : > { %v812_v5 = vsel %vm653_vm2, %v769_v61, 0.0  ;;  %667 = vst.msk [vmem:[%s1244_s14 + $0x68] sm:$0xff] %vm653_vm2, %v578_v62  ;;  %v711_v7 = vsel %vm653_vm2, %v578_v62, 0.0  ;;  %v770_v8 = vmul.f32 %v578_v62, %v578_v62  ;;  %v1024_v15 = vpop.f32.mrb[10].mxu1  ;;  %v1361_v27 = vadd.f32 %v1023_v1, %v1237_v23 }
 0x10c   : > { %v712_v13 = vadd.f32 %v711_v7, %v710_v0  ;;  %v813_v17 = vadd.f32 %v812_v5, %v811_v4  ;;  %v625_v20 = vpop.f32.mrb[11].mxu1  ;;  %v816_v28 = vsel %vm653_vm2, %v771_v11, 0.0  ;;  %v818_v30 = vsel %vm653_vm2, %v772_v21, 0.0 }
 0x10d   : > { %v814_v18 = vsel %vm653_vm2, %v770_v8, 0.0  ;;  %680 = vst.msk [vmem:[%s1244_s14 + $0xd0] sm:$0xff] %vm653_vm2, %v1361_v27  ;;  %v719_v36 = vsel %vm653_vm2, %v594_v49, 0.0  ;;  %v623_v37 = vadd.f32 %v1237_v23, %v622_v9  ;;  %v775_v39 = vmul.f32 %v1282_v6, %v1282_v6 }
 0x10e   : > { %v714_v22 = vadd.f32 %v713_v16, %v712_v13  ;;  %v815_v25 = vadd.f32 %v814_v18, %v813_v17  ;;  %v1381_v41 = vadd.f32 %v1024_v15, %v1237_v23  ;;  %v626_v42 = vadd.f32 %v1237_v23, %v625_v20 }
 0x10f   : > { %v721_v44 = vsel %vm653_vm2, %v1282_v6, 0.0  ;;  %v776_v46 = vmul.f32 %v1289_v12, %v1289_v12  ;;  %678 = vst.msk [vmem:[%s1244_s14 + $0xc0] sm:$0xff] %vm653_vm2, %v623_v37  ;;  %v822_v50 = vsel %vm653_vm2, %v774_v33, 0.0  ;;  %v777_v51 = vmul.f32 %v607_v2, %v607_v2 }
 0x110   : > { %v716_v10 = vadd.f32 %v715_v24, %v714_v22  ;;  %v817_v29 = vadd.f32 %v816_v28, %v815_v25  ;;  %681 = vst.msk [vmem:[%s1244_s14 + $0xd8] sm:$0xff] %vm653_vm2, %v1381_v41  ;;  %679 = vst.msk [vmem:[%s1244_s14 + $0xc8] sm:$0xff] %vm653_vm2, %v626_v42  ;;  %v723_v6 = vsel %vm653_vm2, %v1289_v12, 0.0  ;;  %v725_v53 = vsel %vm653_vm2, %v607_v2, 0.0 }
 0x111   : > { %v1027_v34 = vpop.f32.mrb[12].mxu1  ;;  %v824_v55 = vsel %vm653_vm2, %v775_v39, 0.0  ;;  %v826_v59 = vsel %vm653_vm2, %v776_v46, 0.0  ;;  %v828_v63 = vsel %vm653_vm2, %v777_v51, 0.0  ;;  %v778_v0 = vmul.f32 %v610_v26, %v610_v26 }
 0x112   : > { %v718_v31 = vadd.f32 %v717_v14, %v716_v10  ;;  %v819_v35 = vadd.f32 %v818_v30, %v817_v29  ;;  %v638_v38 = vpop.f32.mrb[13].mxu1  ;;  %v1391_v47 = vadd.f32 %v1027_v34, %v1237_v23  ;;  %v727_v5 = vsel %vm653_vm2, %v610_v26, 0.0 }
 0x113   : > { %v1028_v43 = vpop.f32.mrb[14].mxu1  ;;  %v639_v58 = vadd.f32 %v1237_v23, %v638_v38  ;;  %v779_v8 = vmul.f32 %v1326_v54, %v1326_v54  ;;  %v729_v9 = vsel %vm653_vm2, %v1326_v54, 0.0  ;;  %v780_v14 = vmul.f32 %v1356_v3, %v1356_v3 }
 0x114   : > { %v720_v40 = vadd.f32 %v719_v36, %v718_v31  ;;  %v821_v45 = vadd.f32 %v820_v32, %v819_v35  ;;  %v641_v48 = vpop.f32.mrb[15].mxu1  ;;  %684 = vst.msk [vmem:[%s1244_s14 + $0xf0] sm:$0xff] %vm653_vm2, %v1391_v47  ;;  %v787_v57 = vmul.f32 %v1391_v47, %v1391_v47  ;;  %v650_v60 = vadd.f32 %v1028_v43, %v1237_v23 }
 0x115   : > { %v642_v61 = vadd.f32 %v1237_v23, %v641_v48  ;;  %682 = vst.msk [vmem:[%s1244_s14 + $0xe0] sm:$0xff] %vm653_vm2, %v639_v58  ;;  %v830_v16 = vsel %vm653_vm2, %v778_v0, 0.0  ;;  %v781_v17 = vmul.f32 %v623_v37, %v623_v37  ;;  %v731_v18 = vsel %vm653_vm2, %v1356_v3, 0.0 }
 0x116   : > { %v722_v49 = vadd.f32 %v721_v44, %v720_v40  ;;  %v823_v52 = vadd.f32 %v822_v50, %v821_v45  ;;  %v848_v1 = vsel %vm653_vm2, %v787_v57, 0.0  ;;  %685 = vst.msk [vmem:[%s1244_s14 + $0xf8] sm:$0xff] %vm653_vm2, %v650_v60  ;;  %v788_v7 = vmul.f32 %v650_v60, %v650_v60 }
 0x117   : > { %683 = vst.msk [vmem:[%s1244_s14 + $0xe8] sm:$0xff] %vm653_vm2, %v642_v61  ;;  %v733_v20 = vsel %vm653_vm2, %v623_v37, 0.0  ;;  %v832_v21 = vsel %vm653_vm2, %v779_v8, 0.0  ;;  %v834_v2 = vsel %vm653_vm2, %v780_v14, 0.0  ;;  %v836_v25 = vsel %vm653_vm2, %v781_v17, 0.0 }
 0x118   : > { %v724_v56 = vadd.f32 %v723_v6, %v722_v49  ;;  %v825_v12 = vadd.f32 %v824_v55, %v823_v52  ;;  %v850_v13 = vsel %vm653_vm2, %v788_v7, 0.0  ;;  %v782_v26 = vmul.f32 %v626_v42, %v626_v42 }
 0x119   : > { %v735_v10 = vsel %vm653_vm2, %v626_v42, 0.0  ;;  %v783_v29 = vmul.f32 %v1361_v27, %v1361_v27  ;;  %v737_v30 = vsel %vm653_vm2, %v1361_v27, 0.0  ;;  %v784_v32 = vmul.f32 %v1381_v41, %v1381_v41 }
 0x11a   : > { %v726_v62 = vadd.f32 %v725_v53, %v724_v56  ;;  %v827_v4 = vadd.f32 %v826_v59, %v825_v12  ;;  %v838_v34 = vsel %vm653_vm2, %v782_v26, 0.0  ;;  %v785_v35 = vmul.f32 %v639_v58, %v639_v58 }
 0x11b   : > { %v739_v36 = vsel %vm653_vm2, %v1381_v41, 0.0  ;;  %v741_v38 = vsel %vm653_vm2, %v639_v58, 0.0  ;;  %v840_v39 = vsel %vm653_vm2, %v783_v29, 0.0  ;;  %v842_v27 = vsel %vm653_vm2, %v784_v32, 0.0 }
 0x11c   : > { %v728_v23 = vadd.f32 %v727_v5, %v726_v62  ;;  %v829_v11 = vadd.f32 %v828_v63, %v827_v4  ;;  %v844_v44 = vsel %vm653_vm2, %v785_v35, 0.0  ;;  %v786_v45 = vmul.f32 %v642_v61, %v642_v61 }
 0x11d   : > { %v743_v48 = vsel %vm653_vm2, %v642_v61, 0.0  ;;  %v745_v41 = vsel %vm653_vm2, %v1391_v47, 0.0  ;;  %v747_v52 = vsel %vm653_vm2, %v650_v60, 0.0 }
 0x11e   : > { %v730_v15 = vadd.f32 %v729_v9, %v728_v23  ;;  %v831_v19 = vadd.f32 %v830_v16, %v829_v11  ;;  %v846_v6 = vsel %vm653_vm2, %v786_v45, 0.0 }
 0x120   : > { %v732_v22 = vadd.f32 %v731_v18, %v730_v15  ;;  %v833_v54 = vadd.f32 %v832_v21, %v831_v19 }
 0x122   : > { %v734_v24 = vadd.f32 %v733_v20, %v732_v22  ;;  %v835_v28 = vadd.f32 %v834_v2, %v833_v54 }
 0x124   : > { %v736_v3 = vadd.f32 %v735_v10, %v734_v24  ;;  %v837_v31 = vadd.f32 %v836_v25, %v835_v28 }
 0x126   : > { %v738_v33 = vadd.f32 %v737_v30, %v736_v3  ;;  %v839_v37 = vadd.f32 %v838_v34, %v837_v31 }
 0x128   : > { %v740_v40 = vadd.f32 %v739_v36, %v738_v33  ;;  %v841_v42 = vadd.f32 %v840_v39, %v839_v37 }
 0x12a   : > { %v742_v43 = vadd.f32 %v741_v38, %v740_v40  ;;  %v843_v46 = vadd.f32 %v842_v27, %v841_v42 }
 0x12c   : > { %v744_v49 = vadd.f32 %v743_v48, %v742_v43  ;;  %v845_v50 = vadd.f32 %v844_v44, %v843_v46 }
 0x12e   : > { %v746_v51 = vadd.f32 %v745_v41, %v744_v49  ;;  %v847_v53 = vadd.f32 %v846_v6, %v845_v50 }
 0x130   : > { %v748_v55 = vadd.f32 %v747_v52, %v746_v51  ;;  %v849_v56 = vadd.f32 %v848_v1, %v847_v53 }
 0x132   : > { %v749_v57 = vrot.slane %v748_v55, 4  ;;  %v851_v58 = vadd.f32 %v850_v13, %v849_v56 }
 0x134   : > { %v750_v59 = vadd.f32 %v749_v57, %v748_v55  ;;  %v852_v12 = vrot.slane %v851_v58, 4 }
 0x136   : > { %v751_v61 = vrot.slane %v750_v59, 2  ;;  %v853_v62 = vadd.f32 %v852_v12, %v851_v58 }
 0x138   : > { %v752_v63 = vadd.f32 %v751_v61, %v750_v59  ;;  %v854_v47 = vrot.slane %v853_v62, 2 }
 0x13a   : > { %v753_v0 = vrot.slane %v752_v63, 1  ;;  %v855_v60 = vadd.f32 %v854_v47, %v853_v62 }
 0x13c   : > { %v754_v4 = vadd.f32 %v753_v0, %v752_v63  ;;  %v856_v5 = vrot.slane %v855_v60, 1 }
 0x13e   : > { %756 = vst.msk [vmem:[%s265_s18] sm:$0x1] %vm755_vm3, %v754_v4  ;;  %v857_v1 = vadd.f32 %v856_v5, %v855_v60 }
 0x140   : > { %858 = vst.msk [vmem:[%s265_s18 + $0x1] sm:$0x1] %vm755_vm3, %v857_v1 }
 0x141 PF: > { %s17_s21 = sadd.s32 1, %s1048_s21  }
 0x142   : > { %p14_p5 = scmp.ge.s32.totalorder %s17_s21, 4  }
 0x144   :  { %16 = sbr.rel (!%p14_p5) target bundleno = 1 (0x1), region = 82 }

// kernel: dense_block_forward.11
= control target key start
LH: loop header
LB: loop body
LE: loop exit
PB: predicated region body
PF: predicated region fallthrough
CT: control target
= control target key end

     0   :  { %s5409_s18 = smov 0   ;;  %s7263_s0 = inlined_call_operand.vmem [shape: f32[2,16,16,16], index: 0, kind: input, shape index: {}]   ;;  %s7264_s1 = inlined_call_operand.vmem [shape: f32[1,16], index: 1, kind: input, shape index: {}]   ;;  %s7265_s2 = inlined_call_operand.vmem [shape: f32[1,16], index: 2, kind: input, shape index: {}]   ;;  %s7266_s3 = inlined_call_operand.vmem [shape: bf16[3,3,16,4], index: 3, kind: input, shape index: {}]   ;;  %s7267_s4 = inlined_call_operand.vmem [shape: f32[1,4], index: 4, kind: input, shape index: {}]   ;;  %s7268_s5 = inlined_call_operand.vmem [shape: f32[2,256,4], index: 5, kind: output, shape index: {}]  }
   0x1 LB: > { %s4542_s19 = sadd.s32 4294967295, %s5375_s18   ;;  %p4546_p0 = scmp.ge.s32.totalorder %s5375_s18, 1  ;;  %s5375_s18 = sphi %s5409_s18, %s15_s18  }
   0x2   : > { %p187_p1 = scmp.lt.s32.totalorder %s5375_s18, 3 }
   0x4   : > { %p188_p2 = pnand %p4546_p0, %p187_p1 }
   0x6   : > { %191 = sbr.rel (%p188_p2) target bundleno = 649 (0x289), region = 40 }
   0xd   : > { %v5420_v0 = vld [vmem:[%s7266_s3] sm:$0xff]   ;;  %p215_p3 = scmp.lt.s32.totalorder %s4542_s19, 1  ;;  %vm368_vm0 = vcmask 125952   ;;  %vm371_vm1 = vcmask 122880   ;;  %v5377_v2 = vmov 0   ;;  %v5489_v3 = vld [vmem:[%s7266_s3 + $0x8] sm:$0xff]  }
   0xe   : > { %5322 = vmatprep.subr.bf16.mxu1 %v5420_v0  ;;  %v5428_v1 = vld [vmem:[%s7264_s1] ss:$0 sm:$0xff]  ;;  %394 = vst.msk [vmem:[#allocation2 + $0x60] sm:$0xf] %vm368_vm0, %v5377_v2  ;;  %395 = vst.msk [vmem:[#allocation2 + $0x64] sm:$0xf] %vm368_vm0, %v5377_v2  ;;  %5016 = vmatprep.subr.bf16.mxu0 %v5420_v0 }
   0xf   : > { %s7438_s19 = smov (!%p215_p3, %s4542_s19), 1  ;;  %369 = vst.msk [vmem:[#allocation2] sm:$0xf] %vm368_vm0, %v5377_v2  ;;  %370 = vst.msk [vmem:[#allocation2 + $0x4] sm:$0xf] %vm368_vm0, %v5377_v2  ;;  %5323 = vmatpush3.bf16.msra.mxu1 %v5420_v0  ;;  %5017 = vmatpush3.bf16.msra.mxu0 %v5420_v0  ;;  %v5515_v6 = vld [vmem:[%s7266_s3 + $0x10] sm:$0xff]  }
  0x10   : > { %373 = vst.msk [vmem:[#allocation2 + $0xc] sm:$0xf] %vm368_vm0, %v5377_v2  ;;  %374 = vst.msk [vmem:[#allocation2 + $0x10] sm:$0xf] %vm368_vm0, %v5377_v2  ;;  %vm520_vm2 = vsmask.f32 256  ;;  %5050 = vmatprep.subr.bf16.mxu1 %v5489_v3  ;;  %5084 = vmatprep.subr.bf16.mxu0 %v5515_v6 }
  0x11   : > { %376 = vst.msk [vmem:[#allocation2 + $0x18] sm:$0xf] %vm368_vm0, %v5377_v2  ;;  %377 = vst.msk [vmem:[#allocation2 + $0x1c] sm:$0xf] %vm368_vm0, %v5377_v2  ;;  %s4829_s26 = sshll.u32 %s7438_s19, 8  ;;  %vm1168_vm6 = vcmask 130048  }
  0x12   : > { %379 = vst.msk [vmem:[#allocation2 + $0x24] sm:$0xf] %vm368_vm0, %v5377_v2  ;;  %380 = vst.msk [vmem:[#allocation2 + $0x28] sm:$0xf] %vm368_vm0, %v5377_v2  ;;  %v5496_v4 = vld [vmem:[%s7265_s2] ss:$0 sm:$0xff]  ;;  %s5503_s6 = scalar_lea.vmem %s7263_s0, %s4829_s26  ;;  %s7060_s7 = scalar_lea.vmem %s7268_s5, %s4829_s26 }
  0x13   : > { %382 = vst.msk [vmem:[#allocation2 + $0x30] sm:$0xf] %vm368_vm0, %v5377_v2  ;;  %383 = vst.msk [vmem:[#allocation2 + $0x34] sm:$0xf] %vm368_vm0, %v5377_v2  ;;  %v240_v7 = vld [vmem:[%s5503_s6 + $0x70] sm:$0xff]  ;;  %v241_v8 = vld [vmem:[%s5503_s6 + $0x78] sm:$0xff] }
  0x14   : > { %385 = vst.msk [vmem:[#allocation2 + $0x3c] sm:$0xf] %vm368_vm0, %v5377_v2  ;;  %386 = vst.msk [vmem:[#allocation2 + $0x40] sm:$0xf] %vm368_vm0, %v5377_v2  ;;  %vm521_vm4 = vsmask.f32 4368  ;;  %v279_v10 = vmul.f32 %v5428_v1, %v240_v7  ;;  %v280_v11 = vmul.f32 %v5428_v1, %v241_v8 }
  0x15   : > { %388 = vst.msk [vmem:[#allocation2 + $0x48] sm:$0xf] %vm368_vm0, %v5377_v2  ;;  %389 = vst.msk [vmem:[#allocation2 + $0x4c] sm:$0xf] %vm368_vm0, %v5377_v2  ;;  %v242_v9 = vld [vmem:[%s5503_s6 + $0x80] sm:$0xff]  ;;  %v243_v12 = vld [vmem:[%s5503_s6 + $0x88] sm:$0xff] }
  0x16   : > { %391 = vst.msk [vmem:[#allocation2 + $0x54] sm:$0xf] %vm368_vm0, %v5377_v2  ;;  %392 = vst.msk [vmem:[#allocation2 + $0x58] sm:$0xf] %vm368_vm0, %v5377_v2  ;;  %vm845_vm5 = vsmask.f32 7938  ;;  %v281_v13 = vmul.f32 %v5428_v1, %v242_v9  ;;  %v282_v16 = vmul.f32 %v5428_v1, %v243_v12  ;;  %v318_v20 = vadd.f32 %v5496_v4, %v279_v10 }
  0x17   : > { %397 = vst.msk [vmem:[#allocation2 + $0x6c] sm:$0xf] %vm368_vm0, %v5377_v2  ;;  %398 = vst.msk [vmem:[#allocation2 + $0x70] sm:$0xf] %vm368_vm0, %v5377_v2  ;;  %v226_v14 = vld [vmem:[%s5503_s6] sm:$0xff]  ;;  %v227_v15 = vld [vmem:[%s5503_s6 + $0x8] sm:$0xff]  ;;  %v319_v21 = vadd.f32 %v5496_v4, %v280_v11 }
  0x18   : > { %400 = vst.msk [vmem:[#allocation2 + $0x78] sm:$0xf] %vm368_vm0, %v5377_v2  ;;  %401 = vst.msk [vmem:[#allocation2 + $0x7c] sm:$0xf] %vm368_vm0, %v5377_v2  ;;  %v265_v17 = vmul.f32 %v5428_v1, %v226_v14  ;;  %v266_v18 = vmul.f32 %v5428_v1, %v227_v15  ;;  %v244_v19 = vld [vmem:[%s5503_s6 + $0x90] sm:$0xff]  ;;  %v320_v22 = vadd.f32 %v5496_v4, %v281_v13  ;;  %v350_v30 = vmax.f32 %v318_v20, 0.0 }
  0x19   : > { %403 = vst.msk [vmem:[#allocation2 + $0x84] sm:$0xf] %vm368_vm0, %v5377_v2  ;;  %404 = vst.msk [vmem:[#allocation2 + $0x88] sm:$0xf] %vm368_vm0, %v5377_v2  ;;  %v5534_v23 = vld [vmem:[#allocation2] sm:$0xf]  ;;  %v5537_v24 = vmul.f32 %v5428_v1, %v244_v19  ;;  %v321_v25 = vadd.f32 %v5496_v4, %v282_v16 }
  0x1a   : > { %406 = vst.msk [vmem:[#allocation2 + $0x90] sm:$0xf] %vm368_vm0, %v5377_v2  ;;  %407 = vst.msk [vmem:[#allocation2 + $0x94] sm:$0xf] %vm368_vm0, %v5377_v2  ;;  %v5540_v26 = vld [vmem:[#allocation2 + $0x4] sm:$0xf]  ;;  %v4845_v38 = vpack.c.bf16 %v350_v30, %v350_v30  ;;  %v304_v0 = vadd.f32 %v5496_v4, %v265_v17  ;;  %v305_v20 = vadd.f32 %v5496_v4, %v266_v18 }
  0x1b   : > { %409 = vst.msk [vmem:[#allocation2 + $0x9c] sm:$0xf] %vm368_vm0, %v5377_v2  ;;  %410 = vst.msk [vmem:[#allocation2 + $0xa0] sm:$0xf] %vm368_vm0, %v5377_v2  ;;  %v1446_v27 = vshrl.u32 %v5534_v23, 16  ;;  %v1449_v28 = vshll.u32 %v5534_v23, 16  ;;  %v4585_v33 = vcombine.low %v5534_v23, %v5540_v26 }
  0x1c   : > { %412 = vst.msk [vmem:[#allocation2 + $0xa8] sm:$0xf] %vm368_vm0, %v5377_v2  ;;  %413 = vst.msk [vmem:[#allocation2 + $0xac] sm:$0xf] %vm368_vm0, %v5377_v2  ;;  %v351_v31 = vmax.f32 %v319_v21, 0.0  ;;  %v352_v32 = vmax.f32 %v320_v22, 0.0 }
  0x1d   : > { %415 = vst.msk [vmem:[#allocation2 + $0xb4] sm:$0xf] %vm368_vm0, %v5377_v2  ;;  %416 = vst.msk [vmem:[#allocation2 + $0xb8] sm:$0xf] %vm368_vm0, %v5377_v2  ;;  %v353_v34 = vmax.f32 %v321_v25, 0.0  ;;  %v1448_v35 = vrot.slane %v1446_v27, 4  ;;  %5018 = vmatprep.mubr.msk.bf16.mxu0 %vm1168_vm6, %v4585_v33 }
  0x1e   : > { %418 = vst.msk [vmem:[#allocation2 + $0xc0] sm:$0xf] %vm368_vm0, %v5377_v2  ;;  %419 = vst.msk [vmem:[#allocation2 + $0xc4] sm:$0xf] %vm368_vm0, %v5377_v2  ;;  %v1451_v36 = vrot.slane %v1449_v28, 5  ;;  %v1455_v37 = vshll.u32 %v5540_v26, 16  ;;  %v4846_v39 = vpack.c.bf16 %v351_v31, %v351_v31  ;;  %v4847_v40 = vpack.c.bf16 %v352_v32, %v352_v32 }
  0x1f   : > { %421 = vst.msk [vmem:[#allocation2 + $0xcc] sm:$0xf] %vm368_vm0, %v5377_v2  ;;  %422 = vst.msk [vmem:[#allocation2 + $0xd0] sm:$0xf] %vm368_vm0, %v5377_v2  ;;  %v1459_v41 = vshrl.u32 %v5540_v26, 16  ;;  %v4848_v42 = vpack.c.bf16 %v353_v34, %v353_v34  ;;  %v7270_v45 = vrot.slane %v5540_v26, 5  ;;  %v322_v34 = vadd.f32 %v5496_v4, %v5537_v24 }
  0x20   : > { %372 = vst.msk [vmem:[#allocation2 + $0x8] sm:$0x1] %vm371_vm1, %v5377_v2  ;;  %375 = vst.msk [vmem:[#allocation2 + $0x14] sm:$0x1] %vm371_vm1, %v5377_v2  ;;  %v1452_v43 = vor.u32 %v1451_v36, %v1448_v35  ;;  %v5550_v44 = vrot.slane %v1455_v37, 5  ;;  %v643_v46 = vshrl.u32 %v4845_v38, 16 }
  0x21   : > { %378 = vst.msk [vmem:[#allocation2 + $0x20] sm:$0x1] %vm371_vm1, %v5377_v2  ;;  %381 = vst.msk [vmem:[#allocation2 + $0x2c] sm:$0x1] %vm371_vm1, %v5377_v2  ;;  %v646_v47 = vshll.u32 %v4845_v38, 16  ;;  %v651_v48 = vshrl.u32 %v4846_v39, 16 }
  0x22   : > { %384 = vst.msk [vmem:[#allocation2 + $0x38] sm:$0x1] %vm371_vm1, %v5377_v2  ;;  %387 = vst.msk [vmem:[#allocation2 + $0x44] sm:$0x1] %vm371_vm1, %v5377_v2  ;;  %v654_v49 = vshll.u32 %v4846_v39, 16  ;;  %v660_v50 = vshrl.u32 %v4847_v40, 16 }
  0x23   : > { %390 = vst.msk [vmem:[#allocation2 + $0x50] sm:$0x1] %vm371_vm1, %v5377_v2  ;;  %393 = vst.msk [vmem:[#allocation2 + $0x5c] sm:$0x1] %vm371_vm1, %v5377_v2  ;;  %v663_v51 = vshll.u32 %v4847_v40, 16  ;;  %v668_v52 = vshrl.u32 %v4848_v42, 16 }
  0x24   : > { %396 = vst.msk [vmem:[#allocation2 + $0x68] sm:$0x1] %vm371_vm1, %v5377_v2  ;;  %399 = vst.msk [vmem:[#allocation2 + $0x74] sm:$0x1] %vm371_vm1, %v5377_v2  ;;  %v671_v53 = vshll.u32 %v4848_v42, 16  ;;  %v645_v55 = vrot.slane %v643_v46, 7 }
  0x25   : > { %402 = vst.msk [vmem:[#allocation2 + $0x80] sm:$0x1] %vm371_vm1, %v5377_v2  ;;  %405 = vst.msk [vmem:[#allocation2 + $0x8c] sm:$0x1] %vm371_vm1, %v5377_v2  ;;  %v5559_v56 = vrot.slane %v651_v48, 7  ;;  %v5561_v57 = vrot.slane %v1452_v43, 4 }
  0x26   : > { %408 = vst.msk [vmem:[#allocation2 + $0x98] sm:$0x1] %vm371_vm1, %v5377_v2  ;;  %411 = vst.msk [vmem:[#allocation2 + $0xa4] sm:$0x1] %vm371_vm1, %v5377_v2  ;;  %v1461_v58 = vrot.slane %v1459_v41, 4  ;;  %v7324_v59 = vmov 0 }
  0x27   : > { %414 = vst.msk [vmem:[#allocation2 + $0xb0] sm:$0x1] %vm371_vm1, %v5377_v2  ;;  %417 = vst.msk [vmem:[#allocation2 + $0xbc] sm:$0x1] %vm371_vm1, %v5377_v2  ;;  %v898_v60 = vld [vmem:[#allocation2 + $0x60] sm:$0xf]  ;;  %v656_v8 = vor.u32 %v654_v49, %v5559_v56 }
  0x28   : > { %420 = vst.msk [vmem:[#allocation2 + $0xc8] sm:$0x1] %vm371_vm1, %v5377_v2  ;;  %423 = vst.msk [vmem:[#allocation2 + $0xd4] sm:$0x1] %vm371_vm1, %v5377_v2  ;;  %v662_v61 = vrot.slane %v660_v50, 7  ;;  %v5569_v62 = vrot.slane %v668_v52, 7  ;;  %v648_v2 = vor.u32 %v646_v47, %v645_v55  ;;  %v1462_v15 = vor.u32 %v1461_v58, %v5550_v44 }
  0x29   : > { %vm5507_vm3 = vmand %vm371_vm1, %vm520_vm2  ;;  %v5573_v63 = vrot.slane %v7270_v45, 4  ;;  %v649_v7 = vrot.slane %v645_v55, 4  ;;  %v905_v10 = vld [vmem:[#allocation2 + $0x6c] sm:$0xf]  ;;  %v245_v11 = vld [vmem:[%s5503_s6 + $0x98] sm:$0xff]  ;;  %v336_v21 = vmax.f32 %v304_v0, 0.0 }
  0x2a   : > { %vm5555_vm7 = vmor %vm520_vm2, %vm521_vm4  ;;  %v665_v12 = vor.u32 %v663_v51, %v662_v61  ;;  %v666_v13 = vrot.slane %v662_v61, 4  ;;  %v673_v14 = vor.u32 %v671_v53, %v5569_v62  ;;  %v246_v16 = vld [vmem:[%s5503_s6 + $0xa0] sm:$0xff]  ;;  %v247_v22 = vld [vmem:[%s5503_s6 + $0xa8] sm:$0xff]  ;;  %v5595_v31 = vrot.slane %v1462_v15, 4 }
  0x2b   : > { %vm5565_vm8 = vmand %vm368_vm0, %vm845_vm5  ;;  %v657_v17 = vsel %vm5555_vm7, %v649_v7, %v656_v8  ;;  %v228_v25 = vld [vmem:[%s5503_s6 + $0x10] sm:$0xff]  ;;  %v229_v27 = vld [vmem:[%s5503_s6 + $0x18] sm:$0xff]  ;;  %v284_v32 = vmul.f32 %v5428_v1, %v245_v11  ;;  %v337_v18 = vmax.f32 %v305_v20, 0.0  ;;  %v4831_v33 = vpack.c.bf16 %v336_v21, %v336_v21 }
  0x2c   : > { %v7325_v59 = vsel %vm5565_vm8, 4294967295, %v7324_v59  ;;  %v899_v19 = vsel %vm5565_vm8, %v648_v2, %v898_v60  ;;  %901 = vst.msk [vmem:[#allocation2 + $0x64] sm:$0xf] %vm368_vm0, %v657_v17  ;;  %v674_v28 = vsel %vm5555_vm7, %v666_v13, %v673_v14  ;;  %v906_v30 = vsel %vm5565_vm8, %v665_v12, %v905_v10  ;;  %v230_v49 = vld [vmem:[%s5503_s6 + $0x20] sm:$0xff]  ;;  %v847_v11 = vld [vmem:[#allocation2 + $0xc] sm:$0xf] }
  0x2d   : > { %7326 = vst [vmem:[#allocation4_spill] sm:$0xff] %v7325_v59  ;;  %900 = vst [vmem:[#allocation2 + $0x60] sm:$0xf] %v899_v19  ;;  %v285_v35 = vmul.f32 %v5428_v1, %v246_v16  ;;  %v323_v36 = vadd.f32 %v5496_v4, %v284_v32  ;;  %v286_v37 = vmul.f32 %v5428_v1, %v247_v22  ;;  %v524_v41 = vshrl.u32 %v4831_v33, 16  ;;  %v6570_v54 = vld [vmem:[%s7266_s3 + $0x38] sm:$0xff]  }
  0x2e   : > { %907 = vst [vmem:[#allocation2 + $0x6c] sm:$0xf] %v906_v30  ;;  %908 = vst.msk [vmem:[#allocation2 + $0x70] sm:$0xf] %vm368_vm0, %v674_v28  ;;  %v267_v38 = vmul.f32 %v5428_v1, %v228_v25  ;;  %v268_v39 = vmul.f32 %v5428_v1, %v229_v27  ;;  %v4832_v40 = vpack.c.bf16 %v337_v18, %v337_v18  ;;  %v527_v42 = vshll.u32 %v4831_v33, 16  ;;  %v5650_v18 = vld [vmem:[%s7266_s3 + $0x18] sm:$0xff]  }
  0x2f   : > { %v354_v43 = vmax.f32 %v322_v34, 0.0  ;;  %v355_v46 = vmax.f32 %v323_v36, 0.0  ;;  %v324_v47 = vadd.f32 %v5496_v4, %v285_v35  ;;  %v325_v48 = vadd.f32 %v5496_v4, %v286_v37  ;;  %v249_v35 = vld [vmem:[%s5503_s6 + $0xb8] sm:$0xff] }
  0x30   : > { %v5609_v24 = vadd.f32 %v5496_v4, %v267_v38  ;;  %v526_v50 = vrot.slane %v524_v41, 7  ;;  %v532_v51 = vshrl.u32 %v4832_v40, 16  ;;  %v535_v52 = vshll.u32 %v4832_v40, 16  ;;  %v231_v41 = vld [vmem:[%s5503_s6 + $0x28] sm:$0xff]  ;;  %v233_v34 = vld [vmem:[%s5503_s6 + $0x38] sm:$0xff] }
  0x31   : > { %v4849_v53 = vpack.c.bf16 %v354_v43, %v354_v43  ;;  %v4850_v55 = vpack.c.bf16 %v355_v46, %v355_v46  ;;  %v356_v58 = vmax.f32 %v324_v47, 0.0  ;;  %v357_v60 = vmax.f32 %v325_v48, 0.0 }
  0x32   : > { %v307_v61 = vadd.f32 %v5496_v4, %v268_v39  ;;  %v529_v7 = vor.u32 %v527_v42, %v526_v50  ;;  %v530_v8 = vrot.slane %v526_v50, 4  ;;  %v5617_v10 = vrot.slane %v532_v51, 7 }
  0x33   : > { %v5615_v2 = vld [vmem:[#allocation2 + $0x64] sm:$0xf]  ;;  %v269_v12 = vmul.f32 %v5428_v1, %v230_v49  ;;  %v677_v39 = vshrl.u32 %v4849_v53, 16  ;;  %v680_v40 = vshll.u32 %v4849_v53, 16  ;;  %v685_v43 = vshrl.u32 %v4850_v55, 16 }
  0x34   : > { %v5613_v0 = vld [vmem:[#allocation2 + $0x60] sm:$0xf]  ;;  %v1647_v16 = vshll.u32 %v5615_v2, 16  ;;  %v1651_v19 = vshrl.u32 %v5615_v2, 16  ;;  %v537_v36 = vor.u32 %v535_v52, %v5617_v10  ;;  %v848_v38 = vsel %vm5565_vm8, %v529_v7, %v847_v11  ;;  %v912_v53 = vld [vmem:[#allocation2 + $0x78] sm:$0xf] }
  0x35   : > { %v5622_v13 = vcombine.low %v5613_v0, %v5615_v2  ;;  %v1638_v14 = vshrl.u32 %v5613_v0, 16  ;;  %v1641_v15 = vshll.u32 %v5613_v0, 16  ;;  %v5627_v17 = vld [vmem:[#allocation2 + $0x6c] sm:$0xf]  ;;  %v5632_v22 = vld [vmem:[#allocation2 + $0x70] sm:$0xf]  ;;  %v4851_v47 = vpack.c.bf16 %v356_v58, %v356_v58 }
  0x36   : > { %v5641_v30 = vrot.slane %v1647_v16, 5  ;;  %v5645_v32 = vcombine.low %v5627_v17, %v5632_v22  ;;  %v5652_v33 = vrot.slane %v1651_v19, 4  ;;  %v538_v42 = vsel %vm5555_vm7, %v530_v8, %v537_v36  ;;  %849 = vst [vmem:[#allocation2 + $0xc] sm:$0xf] %v848_v38  ;;  %v919_v36 = vld [vmem:[#allocation2 + $0x84] sm:$0xf] }
  0x37   : > { %7327 = vst [vmem:[#allocation5_spill] sm:$0xff] %v5622_v13  ;;  %5034 = vmatprep.mubr.msk.bf16.mxu1 %vm1168_vm6, %v5622_v13  ;;  %v5637_v27 = vrot.slane %v1638_v14, 4  ;;  %v5639_v28 = vrot.slane %v1641_v15, 5  ;;  %v688_v46 = vshll.u32 %v4850_v55, 16  ;;  %850 = vst.msk [vmem:[#allocation2 + $0x10] sm:$0xf] %vm368_vm0, %v538_v42  ;;  %v4852_v49 = vpack.c.bf16 %v357_v60, %v357_v60 }
  0x38   : > { %7328 = vst [vmem:[#allocation6_spill] sm:$0xff] %v5645_v32  ;;  %5035 = vmatmul.mubr.msk.bf16.vlgmr.msra.gmra.mrb[0].mxu1 %vm1168_vm6, %v5645_v32  ;;  %v679_v48 = vrot.slane %v677_v39, 7  ;;  %v338_v50 = vmax.f32 %v5609_v24, 0.0  ;;  %v339_v51 = vmax.f32 %v307_v61, 0.0  ;;  %v5669_v52 = vrot.slane %v685_v43, 7 }
  0x39   : > { %5051 = vmatpush3.bf16.msra.mxu1 %v5489_v3  ;;  %v694_v3 = vshrl.u32 %v4851_v47, 16  ;;  %v697_v7 = vshll.u32 %v4851_v47, 16  ;;  %v270_v8 = vmul.f32 %v5428_v1, %v231_v41  ;;  %v702_v55 = vshrl.u32 %v4852_v49, 16 }
  0x3a   : > { %5118 = vmatprep.subr.bf16.mxu1 %v5650_v18  ;;  %v682_v11 = vor.u32 %v680_v40, %v679_v48  ;;  %v683_v14 = vrot.slane %v679_v48, 4  ;;  %v705_v58 = vshll.u32 %v4852_v49, 16  ;;  %v690_v15 = vor.u32 %v688_v46, %v5669_v52 }
  0x3b   : > { %v696_v16 = vrot.slane %v694_v3, 7  ;;  %v4833_v60 = vpack.c.bf16 %v338_v50, %v338_v50  ;;  %v4834_v19 = vpack.c.bf16 %v339_v51, %v339_v51  ;;  %v5675_v61 = vrot.slane %v702_v55, 7 }
  0x3c   : > { %v913_v24 = vsel %vm5565_vm8, %v682_v11, %v912_v53  ;;  %v5678_v38 = vadd.f32 %v5496_v4, %v269_v12  ;;  %v5681_v39 = vadd.f32 %v5496_v4, %v270_v8  ;;  %v691_v40 = vsel %vm5555_vm7, %v683_v14, %v690_v15  ;;  %v5706_v15 = vld [vmem:[%s7266_s3 + $0x20] sm:$0xff]  }
  0x3d   : > { %7329 = vst [vmem:[#allocation7_spill] sm:$0xff] %v5675_v61  ;;  %914 = vst [vmem:[#allocation2 + $0x78] sm:$0xf] %v913_v24  ;;  %v699_v41 = vor.u32 %v697_v7, %v696_v16  ;;  %v700_v42 = vrot.slane %v696_v16, 4  ;;  %v541_v43 = vshrl.u32 %v4833_v60, 16  ;;  %v707_v47 = vor.u32 %v705_v58, %v5675_v61 }
  0x3e   : > { %v5685_v46 = vld [vmem:[#allocation2 + $0xc] sm:$0xf]  ;;  %915 = vst.msk [vmem:[#allocation2 + $0x7c] sm:$0xf] %vm368_vm0, %v691_v40  ;;  %v544_v48 = vshll.u32 %v4833_v60, 16  ;;  %v549_v49 = vshrl.u32 %v4834_v19, 16 }
  0x3f   : > { %v552_v12 = vshll.u32 %v4834_v19, 16  ;;  %v5689_v50 = vld [vmem:[#allocation2 + $0x10] sm:$0xf]  ;;  %v1470_v51 = vshrl.u32 %v5685_v46, 16  ;;  %v1473_v53 = vshll.u32 %v5685_v46, 16  ;;  %v920_v7 = vsel %vm5565_vm8, %v699_v41, %v919_v36 }
  0x40   : > { %v5698_v8 = vcombine.low %v5685_v46, %v5689_v50  ;;  %v1479_v11 = vshll.u32 %v5689_v50, 16  ;;  %v1483_v14 = vshrl.u32 %v5689_v50, 16  ;;  %v7269_v55 = vrot.slane %v5689_v50, 5  ;;  %921 = vst [vmem:[#allocation2 + $0x84] sm:$0xf] %v920_v7  ;;  %v248_v36 = vld [vmem:[%s5503_s6 + $0xb0] sm:$0xff] }
  0x41   : > { %v856_v58 = vld [vmem:[#allocation2 + $0x18] sm:$0xf]  ;;  %v1472_v16 = vrot.slane %v1470_v51, 4  ;;  %v1475_v60 = vrot.slane %v1473_v53, 5  ;;  %v708_v19 = vsel %vm5555_vm7, %v700_v42, %v707_v47  ;;  %v543_v24 = vrot.slane %v541_v43, 7 }
  0x42   : > { %7330 = vst [vmem:[#allocation8_spill] sm:$0xff] %v5698_v8  ;;  %5019 = vmatmul.mubr.msk.bf16.vlgmr.msra.gmra.mrb[0].mxu0 %vm1168_vm6, %v5698_v8  ;;  %v5713_v40 = vrot.slane %v1479_v11, 5  ;;  %v1485_v41 = vrot.slane %v1483_v14, 4  ;;  %v5717_v7 = vrot.slane %v7269_v55, 4  ;;  %922 = vst.msk [vmem:[#allocation2 + $0x88] sm:$0xf] %vm368_vm0, %v708_v19 }
  0x43   : > { %v5720_v51 = vrot.slane %v549_v49, 7  ;;  %v1476_v53 = vor.u32 %v1475_v60, %v1472_v16  ;;  %5085 = vmatpush3.bf16.msra.mxu0 %v5515_v6  ;;  %v546_v42 = vor.u32 %v544_v48, %v543_v24  ;;  %v547_v43 = vrot.slane %v543_v24, 4  ;;  %v250_v19 = vld [vmem:[%s5503_s6 + $0xc0] sm:$0xff] }
  0x44   : > { %v340_v47 = vmax.f32 %v5678_v38, 0.0  ;;  %v1486_v11 = vor.u32 %v1485_v41, %v5713_v40  ;;  %v5725_v20 = vld [vmem:[#allocation2 + $0x78] sm:$0xf]  ;;  %v341_v21 = vmax.f32 %v5681_v39, 0.0  ;;  %v287_v49 = vmul.f32 %v5428_v1, %v248_v36  ;;  %5152 = vmatprep.subr.bf16.mxu0 %v5706_v15 }
  0x45   : > { %7331 = vst [vmem:[#allocation9_spill] sm:$0xff] %v5725_v20  ;;  %v554_v14 = vor.u32 %v552_v12, %v5720_v51  ;;  %v5733_v6 = vrot.slane %v1476_v53, 4  ;;  %v5735_v48 = vld [vmem:[#allocation2 + $0x7c] sm:$0xf]  ;;  %v857_v60 = vsel %vm5565_vm8, %v546_v42, %v856_v58  ;;  %v251_v12 = vld [vmem:[%s5503_s6 + $0xc8] sm:$0xff]  ;;  %v272_v38 = vmul.f32 %v5428_v1, %v233_v34 }
  0x46   : > { %7332 = vst [vmem:[#allocation10_spill] sm:$0xff] %v5735_v48  ;;  %v5742_v24 = vrot.slane %v1486_v11, 4  ;;  %v5746_v39 = vcombine.low %v5725_v20, %v5735_v48  ;;  %858 = vst [vmem:[#allocation2 + $0x18] sm:$0xf] %v857_v60  ;;  %v4835_v58 = vpack.c.bf16 %v340_v47, %v340_v47  ;;  %v4836_v42 = vpack.c.bf16 %v341_v21, %v341_v21  ;;  %v232_v60 = vld [vmem:[%s5503_s6 + $0x30] sm:$0xff] }
  0x47   : > { %v555_v41 = vsel %vm5555_vm7, %v547_v43, %v554_v14  ;;  %v5751_v53 = vld [vmem:[#allocation2 + $0x84] sm:$0xf]  ;;  %v288_v11 = vmul.f32 %v5428_v1, %v249_v35  ;;  %v326_v16 = vadd.f32 %v5496_v4, %v287_v49  ;;  %v289_v43 = vmul.f32 %v5428_v1, %v250_v19 }
  0x48   : > { %7333 = vst [vmem:[#allocation11_spill] sm:$0xff] %v5746_v39  ;;  %7334 = vst [vmem:[#allocation12_spill] sm:$0xff] %v5751_v53  ;;  %5038 = vmatprep.mubr.msk.bf16.mxu1 %vm1168_vm6, %v5746_v39  ;;  %v290_v14 = vmul.f32 %v5428_v1, %v251_v12  ;;  %v558_v21 = vshrl.u32 %v4835_v58, 16  ;;  %v561_v47 = vshll.u32 %v4835_v58, 16  ;;  %v566_v35 = vshrl.u32 %v4836_v42, 16 }
  0x49   : > { %859 = vst.msk [vmem:[#allocation2 + $0x1c] sm:$0xf] %vm368_vm0, %v555_v41  ;;  %v5764_v41 = vld [vmem:[#allocation2 + $0x88] sm:$0xf]  ;;  %v569_v25 = vshll.u32 %v4836_v42, 16  ;;  %v327_v36 = vadd.f32 %v5496_v4, %v288_v11  ;;  %v358_v9 = vmax.f32 %v326_v16, 0.0  ;;  %v328_v12 = vadd.f32 %v5496_v4, %v289_v43 }
  0x4a   : > { %7335 = vst [vmem:[#allocation13_spill] sm:$0xff] %v5764_v41  ;;  %v5768_v49 = vcombine.low %v5751_v53, %v5764_v41  ;;  %v560_v19 = vrot.slane %v558_v21, 7  ;;  %v5772_v3 = vrot.slane %v566_v35, 7  ;;  %v329_v55 = vadd.f32 %v5496_v4, %v290_v14  ;;  %v863_v58 = vld [vmem:[#allocation2 + $0x24] sm:$0xf]  ;;  %v252_v41 = vld [vmem:[%s5503_s6 + $0xd0] sm:$0xff] }
  0x4b   : > { %v359_v42 = vmax.f32 %v327_v36, 0.0  ;;  %v4853_v29 = vpack.c.bf16 %v358_v9, %v358_v9  ;;  %v271_v45 = vmul.f32 %v5428_v1, %v232_v60  ;;  %v360_v43 = vmax.f32 %v328_v12, 0.0  ;;  %v926_v39 = vld [vmem:[#allocation2 + $0x90] sm:$0xf]  ;;  %v255_v53 = vld [vmem:[%s5503_s6 + $0xe8] sm:$0xff] }
  0x4c   : > { %7336 = vst [vmem:[#allocation14_spill] sm:$0xff] %v5768_v49  ;;  %5039 = vmatmul.mubr.msk.bf16.gmra.mrb[4].mxu1 %vm1168_vm6, %v5768_v49  ;;  %v563_v16 = vor.u32 %v561_v47, %v560_v19  ;;  %v564_v21 = vrot.slane %v560_v19, 4  ;;  %v571_v35 = vor.u32 %v569_v25, %v5772_v3  ;;  %v234_v19 = vld [vmem:[%s5503_s6 + $0x40] sm:$0xff]  ;;  %v361_v34 = vmax.f32 %v329_v55, 0.0 }
  0x4d   : > { %v5780_v11 = vld [vmem:[#allocation2 + $0x18] sm:$0xf]  ;;  %v4854_v36 = vpack.c.bf16 %v359_v42, %v359_v42  ;;  %v711_v9 = vshrl.u32 %v4853_v29, 16  ;;  %v714_v42 = vshll.u32 %v4853_v29, 16  ;;  %v4855_v32 = vpack.c.bf16 %v360_v43, %v360_v43 }
  0x4e   : > { %v572_v47 = vsel %vm5555_vm7, %v564_v21, %v571_v35  ;;  %v864_v25 = vsel %vm5565_vm8, %v563_v16, %v863_v58  ;;  %v310_v13 = vadd.f32 %v5496_v4, %v271_v45  ;;  %v311_v21 = vadd.f32 %v5496_v4, %v272_v38  ;;  %v235_v35 = vld [vmem:[%s5503_s6 + $0x48] sm:$0xff] }
  0x4f   : > { %865 = vst [vmem:[#allocation2 + $0x24] sm:$0xf] %v864_v25  ;;  %866 = vst.msk [vmem:[#allocation2 + $0x28] sm:$0xf] %vm368_vm0, %v572_v47  ;;  %v713_v12 = vrot.slane %v711_v9, 7  ;;  %v719_v49 = vshrl.u32 %v4854_v36, 16  ;;  %v273_v29 = vmul.f32 %v5428_v1, %v234_v19  ;;  %v4856_v9 = vpack.c.bf16 %v361_v34, %v361_v34 }
  0x50   : > { %v5783_v37 = vld [vmem:[#allocation2 + $0x1c] sm:$0xf]  ;;  %v722_v14 = vshll.u32 %v4854_v36, 16  ;;  %v728_v36 = vshrl.u32 %v4855_v32, 16  ;;  %v731_v47 = vshll.u32 %v4855_v32, 16  ;;  %v342_v8 = vmax.f32 %v310_v13, 0.0 }
  0x51   : > { %v5789_v60 = vcombine.low %v5780_v11, %v5783_v37  ;;  %v716_v58 = vor.u32 %v714_v42, %v713_v12  ;;  %v717_v16 = vrot.slane %v713_v12, 4  ;;  %v5803_v25 = vrot.slane %v719_v49, 7  ;;  %v933_v32 = vld [vmem:[#allocation2 + $0x9c] sm:$0xf] }
  0x52   : > { %v343_v45 = vmax.f32 %v311_v21, 0.0  ;;  %v274_v38 = vmul.f32 %v5428_v1, %v235_v35  ;;  %v730_v43 = vrot.slane %v728_v36, 7  ;;  %v736_v12 = vshrl.u32 %v4856_v9, 16 }
  0x53   : > { %7337 = vst [vmem:[#allocation15_spill] sm:$0xff] %v5789_v60  ;;  %5022 = vmatprep.mubr.msk.bf16.mxu0 %vm1168_vm6, %v5789_v60  ;;  %7338 = vst [vmem:[#allocation16_spill] sm:$0xff] %v5803_v25  ;;  %v724_v60 = vor.u32 %v722_v14, %v5803_v25  ;;  %v927_v55 = vsel %vm5565_vm8, %v716_v58, %v926_v39  ;;  %v739_v42 = vshll.u32 %v4856_v9, 16  ;;  %v253_v9 = vld [vmem:[%s5503_s6 + $0xd8] sm:$0xff]  ;;  %v254_v25 = vld [vmem:[%s5503_s6 + $0xe0] sm:$0xff]  ;;  %vm2207_vm11 = vcmask 1042432  }
  0x54   : > { %928 = vst [vmem:[#allocation2 + $0x90] sm:$0xf] %v927_v55  ;;  %v4837_v49 = vpack.c.bf16 %v342_v8, %v342_v8  ;;  %v4838_v13 = vpack.c.bf16 %v343_v45, %v343_v45  ;;  %v312_v14 = vadd.f32 %v5496_v4, %v273_v29  ;;  %v313_v19 = vadd.f32 %v5496_v4, %v274_v38 }
  0x55   : > { %v725_v34 = vsel %vm5555_vm7, %v717_v16, %v724_v60  ;;  %v733_v35 = vor.u32 %v731_v47, %v730_v43  ;;  %v734_v58 = vrot.slane %v730_v43, 4  ;;  %v5820_v8 = vrot.slane %v736_v12, 7 }
  0x56   : > { %v5815_v39 = vld [vmem:[#allocation2 + $0x24] sm:$0xf]  ;;  %v5817_v21 = vld [vmem:[#allocation2 + $0x28] sm:$0xf]  ;;  %929 = vst.msk [vmem:[#allocation2 + $0x94] sm:$0xf] %vm368_vm0, %v725_v34  ;;  %v291_v36 = vmul.f32 %v5428_v1, %v252_v41 }
  0x57   : > { %7339 = vst [vmem:[#allocation17_spill] sm:$0xff] %v5820_v8  ;;  %v5824_v60 = vcombine.low %v5815_v39, %v5817_v21  ;;  %v741_v55 = vor.u32 %v739_v42, %v5820_v8  ;;  %v934_v47 = vsel %vm5565_vm8, %v733_v35, %v933_v32  ;;  %v575_v45 = vshrl.u32 %v4837_v49, 16  ;;  %v870_v35 = vld [vmem:[#allocation2 + $0x30] sm:$0xf] }
  0x58   : > { %v578_v38 = vshll.u32 %v4837_v49, 16  ;;  %935 = vst [vmem:[#allocation2 + $0x9c] sm:$0xf] %v934_v47  ;;  %v583_v43 = vshrl.u32 %v4838_v13, 16  ;;  %v586_v12 = vshll.u32 %v4838_v13, 16  ;;  %v344_v34 = vmax.f32 %v312_v14, 0.0 }
  0x59   : > { %7340 = vst [vmem:[#allocation18_spill] sm:$0xff] %v5824_v60  ;;  %5023 = vmatmul.mubr.msk.bf16.gmra.mrb[4].mxu0 %vm1168_vm6, %v5824_v60  ;;  %v345_v16 = vmax.f32 %v313_v19, 0.0  ;;  %v742_v41 = vsel %vm5555_vm7, %v734_v58, %v741_v55  ;;  %v577_v42 = vrot.slane %v575_v45, 7  ;;  %v292_v8 = vmul.f32 %v5428_v1, %v253_v9 }
  0x5a   : > { %936 = vst.msk [vmem:[#allocation2 + $0xa0] sm:$0xf] %vm368_vm0, %v742_v41  ;;  %v5843_v49 = vrot.slane %v583_v43, 7  ;;  %v4839_v13 = vpack.c.bf16 %v344_v34, %v344_v34  ;;  %v330_v19 = vadd.f32 %v5496_v4, %v291_v36  ;;  %v293_v55 = vmul.f32 %v5428_v1, %v254_v25  ;;  %v7423_v5 = vld [vmem:[#allocation15_spill] sm:$0xff] }
  0x5b   : > { %v5840_v32 = vld [vmem:[#allocation2 + $0x90] sm:$0xf]  ;;  %v4840_v14 = vpack.c.bf16 %v345_v16, %v345_v16  ;;  %v580_v29 = vor.u32 %v578_v38, %v577_v42  ;;  %v581_v58 = vrot.slane %v577_v42, 4  ;;  %vm1442_vm9 = vsmask.f32 3328 }
  0x5c   : > { %7341 = vst [vmem:[#allocation19_spill] sm:$0xff] %v5840_v32  ;;  %v588_v45 = vor.u32 %v586_v12, %v5843_v49  ;;  %v592_v60 = vshrl.u32 %v4839_v13, 16  ;;  %v595_v41 = vshll.u32 %v4839_v13, 16  ;;  %v236_v42 = vld [vmem:[%s5503_s6 + $0x50] sm:$0xff]  ;;  %v331_v13 = vadd.f32 %v5496_v4, %v292_v8 }
  0x5d   : > { %v5848_v9 = vld [vmem:[#allocation2 + $0x94] sm:$0xf]  ;;  %v600_v43 = vshrl.u32 %v4840_v14, 16  ;;  %v871_v38 = vsel %vm5565_vm8, %v580_v29, %v870_v35  ;;  %v603_v34 = vshll.u32 %v4840_v14, 16  ;;  %v877_v29 = vld [vmem:[#allocation2 + $0x3c] sm:$0xf]  ;;  %v294_v14 = vmul.f32 %v5428_v1, %v255_v53 }
  0x5e   : > { %7342 = vst [vmem:[#allocation20_spill] sm:$0xff] %v5848_v9  ;;  %v5854_v16 = vcombine.low %v5840_v32, %v5848_v9  ;;  %v589_v25 = vsel %vm5555_vm7, %v581_v58, %v588_v45  ;;  %872 = vst [vmem:[#allocation2 + $0x30] sm:$0xf] %v871_v38  ;;  %v594_v12 = vrot.slane %v592_v60, 7  ;;  %v362_v35 = vmax.f32 %v330_v19, 0.0  ;;  %v237_v53 = vld [vmem:[%s5503_s6 + $0x58] sm:$0xff] }
  0x5f   : > { %v5862_v47 = vrot.slane %v600_v43, 7  ;;  %v5868_v36 = vld [vmem:[#allocation2 + $0x9c] sm:$0xf]  ;;  %873 = vst.msk [vmem:[#allocation2 + $0x34] sm:$0xf] %vm368_vm0, %v589_v25  ;;  %v332_v60 = vadd.f32 %v5496_v4, %v293_v55  ;;  %v275_v43 = vmul.f32 %v5428_v1, %v236_v42  ;;  %v363_v61 = vmax.f32 %v331_v13, 0.0 }
  0x60   : > { %7343 = vst [vmem:[#allocation21_spill] sm:$0xff] %v5854_v16  ;;  %5042 = vmatprep.mubr.msk.bf16.mxu1 %vm1168_vm6, %v5854_v16  ;;  %7344 = vst [vmem:[#allocation22_spill] sm:$0xff] %v5868_v36  ;;  %v597_v45 = vor.u32 %v595_v41, %v594_v12  ;;  %v598_v8 = vrot.slane %v594_v12, 4  ;;  %vm1443_vm10 = vsmask.f32 7440  ;;  %v4857_v16 = vpack.c.bf16 %v362_v35, %v362_v35  ;;  %v238_v9 = vld [vmem:[%s5503_s6 + $0x60] sm:$0xff] }
  0x61   : > { %v5875_v38 = vld [vmem:[#allocation2 + $0xa0] sm:$0xf]  ;;  %v605_v25 = vor.u32 %v603_v34, %v5862_v47  ;;  %v333_v19 = vadd.f32 %v5496_v4, %v294_v14  ;;  %v364_v12 = vmax.f32 %v332_v60, 0.0  ;;  %v4858_v34 = vpack.c.bf16 %v363_v61, %v363_v61  ;;  %v940_v14 = vld [vmem:[#allocation2 + $0xa8] sm:$0xf]  ;;  %vm5926_vm13 = vmor %vm1442_vm9, %vm1443_vm10 }
  0x62   : > { %7345 = vst [vmem:[#allocation23_spill] sm:$0xff] %v5875_v38  ;;  %v5882_v55 = vcombine.low %v5868_v36, %v5875_v38  ;;  %v878_v42 = vsel %vm5565_vm8, %v597_v45, %v877_v29  ;;  %v745_v13 = vshrl.u32 %v4857_v16, 16  ;;  %v748_v35 = vshll.u32 %v4857_v16, 16 }
  0x63   : > { %v606_v58 = vsel %vm5555_vm7, %v598_v8, %v605_v25  ;;  %879 = vst [vmem:[#allocation2 + $0x3c] sm:$0xf] %v878_v42  ;;  %v365_v41 = vmax.f32 %v333_v19, 0.0  ;;  %v4859_v36 = vpack.c.bf16 %v364_v12, %v364_v12  ;;  %v276_v29 = vmul.f32 %v5428_v1, %v237_v53 }
  0x64   : > { %7346 = vst [vmem:[#allocation24_spill] sm:$0xff] %v5882_v55  ;;  %5043 = vmatmul.mubr.msk.bf16.gmra.mrb[8].mxu1 %vm1168_vm6, %v5882_v55  ;;  %880 = vst.msk [vmem:[#allocation2 + $0x40] sm:$0xf] %vm368_vm0, %v606_v58  ;;  %v747_v45 = vrot.slane %v745_v13, 7  ;;  %v753_v8 = vshrl.u32 %v4858_v34, 16  ;;  %v756_v25 = vshll.u32 %v4858_v34, 16  ;;  %v314_v61 = vadd.f32 %v5496_v4, %v275_v43 }
  0x65   : > { %v5895_v60 = vld [vmem:[#allocation2 + $0x30] sm:$0xf]  ;;  %vm2208_vm12 = vcmask 1046532   ;;  %v4860_v55 = vpack.c.bf16 %v365_v41, %v365_v41  ;;  %v762_v58 = vshrl.u32 %v4859_v36, 16  ;;  %v277_v19 = vmul.f32 %v5428_v1, %v238_v9 }
  0x66   : > { %v5898_v16 = vld [vmem:[#allocation2 + $0x34] sm:$0xf]  ;;  %v750_v34 = vor.u32 %v748_v35, %v747_v45  ;;  %v751_v13 = vrot.slane %v747_v45, 4  ;;  %v5907_v43 = vrot.slane %v753_v8, 7  ;;  %v765_v32 = vshll.u32 %v4859_v36, 16  ;;  %vm5968_vm14 = vmor %vm2207_vm11, %vm2208_vm12 }
  0x67   : > { %v5904_v53 = vcombine.low %v5895_v60, %v5898_v16  ;;  %v764_v38 = vrot.slane %v762_v58, 7  ;;  %v770_v48 = vshrl.u32 %v4860_v55, 16  ;;  %v773_v1 = vshll.u32 %v4860_v55, 16  ;;  %v947_v58 = vld [vmem:[#allocation2 + $0xb4] sm:$0xf] }
  0x68   : > { %7348 = vst [vmem:[#allocation26_spill] sm:$0xff] %v5907_v43  ;;  %v941_v41 = vsel %vm5565_vm8, %v750_v34, %v940_v14  ;;  %v315_v9 = vadd.f32 %v5496_v4, %v276_v29  ;;  %v346_v42 = vmax.f32 %v314_v61, 0.0  ;;  %v758_v35 = vor.u32 %v756_v25, %v5907_v43  ;;  %v239_v29 = vld [vmem:[%s5503_s6 + $0x68] sm:$0xff]  ;;  %v853_v43 = vld [vmem:[#allocation2 + $0x14] sm:$0x1] }
  0x69   : > { %7347 = vst [vmem:[#allocation25_spill] sm:$0xff] %v5904_v53  ;;  %5026 = vmatprep.mubr.msk.bf16.mxu0 %vm1168_vm6, %v5904_v53  ;;  %942 = vst [vmem:[#allocation2 + $0xa8] sm:$0xf] %v941_v41  ;;  %v767_v45 = vor.u32 %v765_v32, %v764_v38  ;;  %v768_v8 = vrot.slane %v764_v38, 4  ;;  %v5917_v36 = vrot.slane %v770_v48, 7  ;;  %v7365_v59 = vrot.slane %v5685_v46, 9 }
  0x6a   : > { %v5914_v20 = vld [vmem:[#allocation2 + $0x3c] sm:$0xf]  ;;  %v347_v55 = vmax.f32 %v315_v9, 0.0  ;;  %v4841_v34 = vpack.c.bf16 %v346_v42, %v346_v42  ;;  %v759_v38 = vsel %vm5555_vm7, %v751_v13, %v758_v35  ;;  %v5938_v41 = vld [vmem:[#allocation2 + $0x8] sm:$0x1]  ;;  %v316_v35 = vadd.f32 %v5496_v4, %v277_v19 }
  0x6b   : > { %v5920_v53 = vld [vmem:[#allocation2 + $0x40] sm:$0xf]  ;;  %v775_v25 = vor.u32 %v773_v1, %v5917_v36  ;;  %943 = vst.msk [vmem:[#allocation2 + $0xac] sm:$0xf] %vm368_vm0, %v759_v38  ;;  %v948_v42 = vsel %vm5565_vm8, %v767_v45, %v947_v58  ;;  %v1458_v45 = vsel %vm5926_vm13, %v5561_v57, %v5550_v44  ;;  %v7353_v19 = vrot.slane %v5617_v10, 4 }
  0x6c   : > { %v5932_v48 = vcombine.low %v5914_v20, %v5920_v53  ;;  %v4842_v9 = vpack.c.bf16 %v347_v55, %v347_v55  ;;  %v609_v14 = vshrl.u32 %v4841_v34, 16  ;;  %v612_v12 = vshll.u32 %v4841_v34, 16  ;;  %949 = vst [vmem:[#allocation2 + $0xb4] sm:$0xf] %v948_v42  ;;  %v5950_v13 = vld [vmem:[%s7264_s1] ss:$0 sm:$0xff] }
  0x6d   : > { %v776_v32 = vsel %vm5555_vm7, %v768_v8, %v775_v25  ;;  %7352 = vst [vmem:[#allocation28_spill] sm:$0xff] %v5950_v13  ;;  %v278_v1 = vmul.f32 %v5950_v13, %v239_v29  ;;  %v1465_v34 = vshll.u32 %v5938_v41, 16  ;;  %v884_v25 = vld [vmem:[#allocation2 + $0x48] sm:$0xf]  ;;  %v348_v29 = vmax.f32 %v316_v35, 0.0 }
  0x6e   : > { %7351 = vst [vmem:[#allocation27_spill] sm:$0xff] %v5932_v48  ;;  %5027 = vmatmul.mubr.msk.bf16.gmra.mrb[8].mxu0 %vm1168_vm6, %v5932_v48  ;;  %950 = vst.msk [vmem:[#allocation2 + $0xb8] sm:$0xf] %vm368_vm0, %v776_v32  ;;  %v611_v58 = vrot.slane %v609_v14, 7  ;;  %v617_v55 = vshrl.u32 %v4842_v9, 16  ;;  %v620_v8 = vshll.u32 %v4842_v9, 16  ;;  %v854_v48 = vsel %vm5507_vm3, %v7353_v19, %v853_v43 }
  0x6f   : > { %v317_v42 = vadd.f32 %v5496_v4, %v278_v1  ;;  %v7354_v44 = vmov 0  ;;  %v1467_v38 = vrot.slane %v1465_v34, 5  ;;  %855 = vst [vmem:[#allocation2 + $0x14] sm:$0x1] %v854_v48  ;;  %v4843_v1 = vpack.c.bf16 %v348_v29, %v348_v29 }
  0x70   : > { %v7355_v44 = vsel %vm5968_vm14, 4294967295, %v7354_v44  ;;  %v5972_v57 = vld [vmem:[#allocation2 + $0xa8] sm:$0xf]  ;;  %v614_v14 = vor.u32 %v612_v12, %v611_v58  ;;  %v615_v32 = vrot.slane %v611_v58, 4  ;;  %v5974_v9 = vrot.slane %v617_v55, 7 }
  0x71   : > { %7356 = vst [vmem:[#allocation29_spill] sm:$0xff] %v7355_v44  ;;  %v349_v10 = vmax.f32 %v317_v42, 0.0  ;;  %v1468_v12 = vsel %vm5926_vm13, %v5595_v31, %v1467_v38  ;;  %v7357_v48 = vrot.slane %v5540_v26, 5  ;;  %v7358_v58 = vrot.slane %v5534_v23, 9  ;;  %v860_v31 = vld [vmem:[#allocation2 + $0x20] sm:$0x1] }
  0x72   : > { %v622_v35 = vor.u32 %v620_v8, %v5974_v9  ;;  %v885_v19 = vsel %vm5565_vm8, %v614_v14, %v884_v25  ;;  %v5995_v34 = vld [vmem:[#allocation2 + $0xac] sm:$0xf]  ;;  %v626_v8 = vshrl.u32 %v4843_v1, 16  ;;  %v629_v29 = vshll.u32 %v4843_v1, 16 }
  0x73   : > { %v5993_v55 = vsel %vm5968_vm14, %v7358_v58, %v7357_v48  ;;  %886 = vst [vmem:[#allocation2 + $0x48] sm:$0xf] %v885_v19  ;;  %v4844_v42 = vpack.c.bf16 %v349_v10, %v349_v10  ;;  %v4620_v4 = vcombine.low %v1458_v45, %v1468_v12  ;;  %v5999_v25 = vcombine.low %v5972_v57, %v5995_v34  ;;  %v6002_v26 = vld [vmem:[#allocation2 + $0xb4] sm:$0xf] }
  0x74   : > { %v623_v23 = vsel %vm5555_vm7, %v615_v32, %v622_v35  ;;  %v2215_v38 = vrot.slane %v5938_v41, 5  ;;  %v628_v45 = vrot.slane %v626_v8, 7  ;;  %v891_v35 = vld [vmem:[#allocation2 + $0x54] sm:$0xf]  ;;  %v7361_v43 = vshrl.u32 %v5780_v11, 16 }
  0x75   : > { %7359 = vst [vmem:[#allocation30_spill] sm:$0xff] %v5999_v25  ;;  %v6008_v19 = vld [vmem:[#allocation2 + $0xb8] sm:$0xf]  ;;  %887 = vst.msk [vmem:[#allocation2 + $0x4c] sm:$0xf] %vm368_vm0, %v623_v23  ;;  %v634_v1 = vshrl.u32 %v4844_v42, 16  ;;  %5046 = vmatprep.mubr.msk.bf16.mxu1 %vm1168_vm6, %v5999_v25 }
  0x76   : > { %v6016_v12 = vcombine.low %v6002_v26, %v6008_v19  ;;  %v637_v41 = vshll.u32 %v4844_v42, 16  ;;  %v6022_v48 = vsel %vm5968_vm14, %v5573_v63, %v2215_v38  ;;  %v631_v58 = vor.u32 %v629_v29, %v628_v45  ;;  %v966_v10 = vld [vmem:[#allocation2 + $0x14] sm:$0x1] }
  0x77   : > { %v632_v23 = vrot.slane %v628_v45, 4  ;;  %v6024_v8 = vrot.slane %v634_v1, 7  ;;  %v1489_v32 = vshll.u32 %v966_v10, 16  ;;  %v556_v42 = vrot.slane %v5720_v51, 4 }
  0x78   : > { %7360 = vst [vmem:[#allocation31_spill] sm:$0xff] %v6016_v12  ;;  %5047 = vmatmul.mubr.msk.bf16.gmra.mrb[12].mxu1 %vm1168_vm6, %v6016_v12  ;;  %v1496_v25 = vrot.slane %v7361_v43, 4  ;;  %v7362_v63 = vshll.u32 %v5780_v11, 16  ;;  %v892_v45 = vsel %vm5565_vm8, %v631_v58, %v891_v35  ;;  %v1503_v1 = vshll.u32 %v5783_v37, 16 }
  0x79   : > { %v639_v38 = vor.u32 %v637_v41, %v6024_v8  ;;  %5052 = vmatprep.mubr.msk.bf16.mxu1 %vm1168_vm6, %v4620_v4  ;;  %v7363_v14 = vshrl.u32 %v5783_v37, 16  ;;  %893 = vst [vmem:[#allocation2 + $0x54] sm:$0xf] %v892_v45  ;;  %v1491_v51 = vrot.slane %v1489_v32, 5  ;;  %v861_v43 = vsel %vm5507_vm3, %v556_v42, %v860_v31  ;;  %v867_v45 = vld [vmem:[#allocation2 + $0x2c] sm:$0x1] }
  0x7a   : > { %v1499_v29 = vrot.slane %v7362_v63, 5  ;;  %v6042_v13 = vld [vmem:[#allocation2 + $0x48] sm:$0xf]  ;;  %v7364_v41 = vrot.slane %v5689_v50, 5  ;;  %862 = vst [vmem:[#allocation2 + $0x20] sm:$0x1] %v861_v43 }
  0x7b   : > { %v1509_v12 = vrot.slane %v7363_v14, 4  ;;  %v640_v14 = vsel %vm5555_vm7, %v632_v23, %v639_v38  ;;  %v6056_v32 = vrot.slane %v1503_v1, 5  ;;  %v1492_v46 = vsel %vm5926_vm13, %v5742_v24, %v1491_v51 }
  0x7c   : > { %v1500_v63 = vor.u32 %v1499_v29, %v1496_v25  ;;  %v2220_v4 = vsel %vm5968_vm14, %v7365_v59, %v7364_v41  ;;  %v6058_v31 = vld [vmem:[#allocation2 + $0x4c] sm:$0xf]  ;;  %894 = vst.msk [vmem:[#allocation2 + $0x58] sm:$0xf] %vm368_vm0, %v640_v14  ;;  %v2222_v50 = vrot.slane %v966_v10, 5  ;;  %v573_v25 = vrot.slane %v5772_v3, 4 }
  0x7d   : > { %v6069_v23 = vcombine.low %v6042_v13, %v6058_v31  ;;  %v7366_v29 = vsel %vm5926_vm13, %v5733_v6, %v5713_v40  ;;  %v1510_v24 = vor.u32 %v1509_v12, %v6056_v32  ;;  %v7367_v51 = vshrl.u32 %v5815_v39, 16  ;;  %v6094_v40 = vld [vmem:[%s7266_s3 + $0x28] sm:$0xff]  }
  0x7e   : > { %v6064_v59 = vrot.slane %v1500_v63, 4  ;;  %v6077_v38 = vcombine.low %v7366_v29, %v1492_v46  ;;  %v2223_v10 = vsel %vm5968_vm14, %v5717_v7, %v2222_v50  ;;  %v868_v1 = vsel %vm5507_vm3, %v573_v25, %v867_v45 }
  0x7f   : > { %v1520_v43 = vrot.slane %v7367_v51, 4  ;;  %5030 = vmatprep.mubr.msk.bf16.mxu0 %vm1168_vm6, %v6069_v23  ;;  %v1511_v6 = vrot.slane %v1510_v24, 4  ;;  %v6098_v12 = vcombine.low %v2220_v4, %v2223_v10  ;;  %869 = vst [vmem:[#allocation2 + $0x2c] sm:$0x1] %v868_v1  ;;  %v7368_v7 = vshll.u32 %v5815_v39, 16 }
  0x80   : > { %v1506_v3 = vsel %vm5926_vm13, %v6064_v59, %v6056_v32  ;;  %v1527_v41 = vshll.u32 %v5817_v21, 16  ;;  %5053 = vmatmul.mubr.msk.bf16.vlgmr.msra.gmra.mrb[16].mxu1 %vm1168_vm6, %v6077_v38  ;;  %v7369_v14 = vshrl.u32 %v5817_v21, 16  ;;  %v4655_v45 = vrot.slane %v5780_v11, 9  ;;  %v874_v4 = vld [vmem:[#allocation2 + $0x38] sm:$0x1] }
  0x81   : > { %v1523_v63 = vrot.slane %v7368_v7, 5  ;;  %v2226_v46 = vrot.slane %v5783_v37, 5  ;;  %v590_v59 = vrot.slane %v5843_v49, 4  ;;  %v6110_v50 = vld [vmem:[#allocation2 + $0x54] sm:$0xf]  ;;  %5119 = vmatpush3.bf16.msra.mxu1 %v5650_v18  ;;  %v7370_v24 = vshrl.u32 %v5895_v60, 16 }
  0x82   : > { %v1533_v32 = vrot.slane %v7369_v14, 4  ;;  %v1529_v29 = vrot.slane %v1527_v41, 5  ;;  %v7371_v1 = vshll.u32 %v5895_v60, 16  ;;  %v969_v37 = vld [vmem:[#allocation2 + $0x20] sm:$0x1]  ;;  %5186 = vmatprep.subr.bf16.mxu1 %v6094_v40  ;;  %v1551_v35 = vshll.u32 %v5898_v16, 16 }
  0x83   : > { %v1524_v25 = vor.u32 %v1523_v63, %v1520_v43  ;;  %v1544_v10 = vrot.slane %v7370_v24, 4  ;;  %v2227_v49 = vsel %vm5968_vm14, %v4655_v45, %v2226_v46  ;;  %v2228_v14 = vrot.slane %v2226_v46, 4  ;;  %v6122_v18 = vld [vmem:[#allocation2 + $0x58] sm:$0xf] }
  0x84   : > { %v1547_v51 = vrot.slane %v7371_v1, 5  ;;  %v1513_v43 = vshll.u32 %v969_v37, 16  ;;  %v1534_v41 = vor.u32 %v1533_v32, %v1529_v29  ;;  %v2229_v24 = vrot.slane %v969_v37, 5 }
  0x85   : > { %v1525_v63 = vrot.slane %v1524_v25, 4  ;;  %v6126_v1 = vcombine.low %v6110_v50, %v6122_v18  ;;  %v875_v11 = vsel %vm5507_vm3, %v590_v59, %v874_v4  ;;  %v7372_v59 = vshrl.u32 %v5898_v16, 16 }
  0x86   : > { %v1548_v42 = vor.u32 %v1547_v51, %v1544_v10  ;;  %v1515_v45 = vrot.slane %v1513_v43, 5  ;;  %v1535_v58 = vrot.slane %v1534_v41, 4  ;;  %v2230_v25 = vsel %vm5968_vm14, %v2228_v14, %v2229_v24  ;;  %876 = vst [vmem:[#allocation2 + $0x38] sm:$0x1] %v875_v11  ;;  %v972_v32 = vld [vmem:[#allocation2 + $0x2c] sm:$0x1] }
  0x87   : > { %v1530_v46 = vsel %vm5926_vm13, %v1525_v63, %v1529_v29  ;;  %5031 = vmatmul.mubr.msk.bf16.gmra.mrb[12].mxu0 %vm1168_vm6, %v6126_v1  ;;  %v6137_v37 = vcombine.low %v2227_v49, %v2230_v25  ;;  %v1557_v4 = vrot.slane %v7372_v59, 4  ;;  %v7373_v29 = vcombine.low %v5993_v55, %v6022_v48  ;;  %v881_v14 = vld [vmem:[#allocation2 + $0x44] sm:$0x1] }
  0x88   : > { %v1549_v7 = vrot.slane %v1548_v42, 4  ;;  %v1516_v10 = vsel %vm5926_vm13, %v1511_v6, %v1515_v45  ;;  %v1537_v51 = vshll.u32 %v972_v32, 16  ;;  %v4656_v11 = vrot.slane %v5815_v39, 9 }
  0x89   : > { %5086 = vmatprep.mubr.msk.bf16.mxu0 %vm1168_vm6, %v7373_v29  ;;  %v2233_v49 = vrot.slane %v5817_v21, 5  ;;  %v6150_v42 = vcombine.low %v1506_v3, %v1516_v10  ;;  %v1553_v43 = vrot.slane %v1551_v35, 5  ;;  %v2236_v63 = vrot.slane %v972_v32, 5 }
  0x8a   : > { %v607_v41 = vrot.slane %v5862_v47, 4  ;;  %v1539_v24 = vrot.slane %v1537_v51, 5  ;;  %v7374_v25 = vshrl.u32 %v5914_v20, 16  ;;  %v7375_v47 = vshll.u32 %v5914_v20, 16 }
  0x8b   : > { %v2234_v55 = vsel %vm5968_vm14, %v4656_v11, %v2233_v49  ;;  %v2235_v48 = vrot.slane %v2233_v49, 4  ;;  %5056 = vmatprep.mubr.msk.bf16.mxu1 %vm1168_vm6, %v6150_v42  ;;  %v1554_v39 = vsel %vm5926_vm13, %v1549_v7, %v1553_v43  ;;  %v1558_v21 = vor.u32 %v1557_v4, %v1553_v43 }
  0x8c   : > { %v1568_v6 = vrot.slane %v7374_v25, 4  ;;  %v882_v35 = vsel %vm5507_vm3, %v607_v41, %v881_v14  ;;  %v1571_v3 = vrot.slane %v7375_v47, 5  ;;  %v1540_v45 = vsel %vm5926_vm13, %v1535_v58, %v1539_v24  ;;  %v6179_v58 = vld [vmem:[%s7266_s3 + $0x30] sm:$0xff]  }
  0x8d   : > { %v2237_v32 = vsel %vm5968_vm14, %v2235_v48, %v2236_v63  ;;  %883 = vst [vmem:[#allocation2 + $0x44] sm:$0x1] %v882_v35  ;;  %v1575_v59 = vshll.u32 %v5920_v53, 16  ;;  %v7376_v29 = vshrl.u32 %v5920_v53, 16  ;;  %v6172_v7 = vcombine.low %v1530_v46, %v1540_v45  ;;  %v975_v4 = vld [vmem:[#allocation2 + $0x38] sm:$0x1] }
  0x8e   : > { %v1559_v51 = vrot.slane %v1558_v21, 4  ;;  %v6174_v11 = vcombine.low %v2234_v55, %v2237_v32  ;;  %v1572_v49 = vor.u32 %v1571_v3, %v1568_v6  ;;  %v1561_v14 = vshll.u32 %v975_v4, 16  ;;  %v888_v24 = vld [vmem:[#allocation2 + $0x50] sm:$0x1] }
  0x8f   : > { %v1581_v10 = vrot.slane %v7376_v29, 4  ;;  %v1577_v43 = vrot.slane %v1575_v59, 5  ;;  %v4657_v63 = vrot.slane %v5895_v60, 9  ;;  %v2240_v41 = vrot.slane %v5898_v16, 5  ;;  %5087 = vmatmul.mubr.msk.bf16.vlgmr.msra.gmra.mrb[16].mxu0 %vm1168_vm6, %v6098_v12  ;;  %5057 = vmatmul.mubr.msk.bf16.gmra.mrb[20].mxu1 %vm1168_vm6, %v6172_v7 }
  0x90   : > { %v1573_v46 = vrot.slane %v1572_v49, 4  ;;  %v2243_v55 = vrot.slane %v975_v4, 5  ;;  %v624_v48 = vrot.slane %v5974_v9, 4  ;;  %v7377_v25 = vshrl.u32 %v6042_v13, 16  ;;  %5153 = vmatpush3.bf16.msra.mxu0 %v5706_v15  ;;  %5090 = vmatprep.mubr.msk.bf16.mxu0 %vm1168_vm6, %v6137_v37 }
  0x91   : > { %v1563_v60 = vrot.slane %v1561_v14, 5  ;;  %v1582_v16 = vor.u32 %v1581_v10, %v1577_v43  ;;  %v2241_v21 = vsel %vm5968_vm14, %v4657_v63, %v2240_v41  ;;  %v2242_v35 = vrot.slane %v2240_v41, 4  ;;  %5220 = vmatprep.subr.bf16.mxu0 %v6179_v58 }
  0x92   : > { %v1592_v6 = vrot.slane %v7377_v25, 4  ;;  %v1578_v47 = vsel %vm5926_vm13, %v1573_v46, %v1577_v43  ;;  %v889_v9 = vsel %vm5507_vm3, %v624_v48, %v888_v24  ;;  %v7378_v3 = vshll.u32 %v6042_v13, 16  ;;  %v895_v25 = vld [vmem:[#allocation2 + $0x5c] sm:$0x1] }
  0x93   : > { %v1599_v15 = vshll.u32 %v6058_v31, 16  ;;  %v1564_v32 = vsel %vm5926_vm13, %v1559_v51, %v1563_v60  ;;  %v1583_v59 = vrot.slane %v1582_v16, 4  ;;  %v2244_v29 = vsel %vm5968_vm14, %v2242_v35, %v2243_v55  ;;  %890 = vst [vmem:[#allocation2 + $0x50] sm:$0x1] %v889_v9 }
  0x94   : > { %v1595_v45 = vrot.slane %v7378_v3, 5  ;;  %v7379_v10 = vshrl.u32 %v6058_v31, 16  ;;  %v6209_v49 = vcombine.low %v1554_v39, %v1564_v32  ;;  %v978_v14 = vld [vmem:[#allocation2 + $0x44] sm:$0x1]  ;;  %v6211_v43 = vcombine.low %v2241_v21, %v2244_v29 }
  0x95   : > { %v1601_v41 = vrot.slane %v1599_v15, 5  ;;  %v1585_v24 = vshll.u32 %v978_v14, 16  ;;  %v4658_v46 = vrot.slane %v5914_v20, 9  ;;  %v2247_v51 = vrot.slane %v5920_v53, 5 }
  0x96   : > { %v1605_v4 = vrot.slane %v7379_v10, 4  ;;  %v1596_v63 = vor.u32 %v1595_v45, %v1592_v6  ;;  %v2250_v48 = vrot.slane %v978_v14, 5  ;;  %5060 = vmatprep.mubr.msk.bf16.mxu1 %vm1168_vm6, %v6209_v49  ;;  %v641_v39 = vrot.slane %v6024_v8, 4 }
  0x97   : > { %v7380_v16 = vshrl.u32 %v6110_v50, 16  ;;  %v1587_v35 = vrot.slane %v1585_v24, 5  ;;  %v2248_v6 = vsel %vm5968_vm14, %v4658_v46, %v2247_v51  ;;  %v2249_v9 = vrot.slane %v2247_v51, 4  ;;  %5091 = vmatmul.mubr.msk.bf16.gmra.mrb[20].mxu0 %vm1168_vm6, %v6174_v11 }
  0x98   : > { %v1597_v55 = vrot.slane %v1596_v63, 4  ;;  %v1606_v60 = vor.u32 %v1605_v4, %v1601_v41  ;;  %v7381_v20 = vshll.u32 %v6110_v50, 16  ;;  %v896_v8 = vsel %vm5507_vm3, %v641_v39, %v895_v25  ;;  %5094 = vmatprep.mubr.msk.bf16.mxu0 %vm1168_vm6, %v6211_v43  ;;  %v902_v63 = vld [vmem:[#allocation2 + $0x68] sm:$0x1] }
  0x99   : > { %v1616_v21 = vrot.slane %v7380_v16, 4  ;;  %v1623_v15 = vshll.u32 %v6122_v18, 16  ;;  %v1588_v32 = vsel %vm5926_vm13, %v1583_v59, %v1587_v35  ;;  %v2251_v29 = vsel %vm5968_vm14, %v2249_v9, %v2250_v48  ;;  %897 = vst [vmem:[#allocation2 + $0x5c] sm:$0x1] %v896_v8 }
  0x9a   : > { %v1619_v53 = vrot.slane %v7381_v20, 5  ;;  %v1602_v3 = vsel %vm5926_vm13, %v1597_v55, %v1601_v41  ;;  %v1607_v45 = vrot.slane %v1606_v60, 4  ;;  %v7382_v4 = vshrl.u32 %v6122_v18, 16  ;;  %v981_v24 = vld [vmem:[#allocation2 + $0x50] sm:$0x1] }
  0x9b   : > { %v6239_v41 = vcombine.low %v1578_v47, %v1588_v32  ;;  %v6241_v46 = vcombine.low %v2248_v6, %v2251_v29  ;;  %v1625_v51 = vrot.slane %v1623_v15, 5  ;;  %v4659_v59 = vrot.slane %v6042_v13, 9  ;;  %v909_v32 = vld [vmem:[#allocation2 + $0x74] sm:$0x1] }
  0x9c   : > { %v1620_v10 = vor.u32 %v1619_v53, %v1616_v21  ;;  %v1629_v14 = vrot.slane %v7382_v4, 4  ;;  %v1609_v25 = vshll.u32 %v981_v24, 16  ;;  %v2254_v60 = vrot.slane %v6058_v31, 5 }
  0x9d   : > { %v2257_v39 = vrot.slane %v981_v24, 5  ;;  %5061 = vmatmul.mubr.msk.bf16.gmra.mrb[24].mxu1 %vm1168_vm6, %v6239_v41  ;;  %v7383_v16 = vrot.slane %v5559_v56, 4  ;;  %v1644_v21 = vor.u32 %v5639_v28, %v5637_v27  ;;  %v1654_v13 = vor.u32 %v5652_v33, %v5641_v30 }
  0x9e   : > { %v1621_v55 = vrot.slane %v1620_v10, 4  ;;  %v1630_v48 = vor.u32 %v1629_v14, %v1625_v51  ;;  %v1611_v35 = vrot.slane %v1609_v25, 5  ;;  %v2255_v6 = vsel %vm5968_vm14, %v4659_v59, %v2254_v60  ;;  %v5362_v59 = vld [vmem:[#allocation2 + $0x70] sm:$0xf] }
  0x9f   : > { %v903_v47 = vsel %vm5507_vm3, %v7383_v16, %v902_v63  ;;  %v2256_v9 = vrot.slane %v2254_v60, 4  ;;  %v6259_v56 = vrot.slane %v1644_v21, 4  ;;  %v1655_v53 = vrot.slane %v1654_v13, 4  ;;  %5095 = vmatmul.mubr.msk.bf16.gmra.mrb[24].mxu0 %vm1168_vm6, %v6241_v46 }
  0xa0   : > { %v1626_v31 = vsel %vm5926_vm13, %v1621_v55, %v1625_v51  ;;  %904 = vst [vmem:[#allocation2 + $0x68] sm:$0x1] %v903_v47  ;;  %v1631_v20 = vrot.slane %v1630_v48, 4  ;;  %v4660_v8 = vrot.slane %v6110_v50, 9  ;;  %v1612_v27 = vsel %vm5926_vm13, %v1607_v45, %v1611_v35  ;;  %v984_v10 = vld [vmem:[#allocation2 + $0x5c] sm:$0x1] }
  0xa1   : > { %v2258_v28 = vsel %vm5968_vm14, %v2256_v9, %v2257_v39  ;;  %v2261_v33 = vrot.slane %v6122_v18, 5  ;;  %v675_v15 = vrot.slane %v5569_v62, 4  ;;  %v6268_v29 = vcombine.low %v1602_v3, %v1612_v27  ;;  %v916_v35 = vld [vmem:[#allocation2 + $0x80] sm:$0x1] }
  0xa2   : > { %v6272_v4 = vcombine.low %v2255_v6, %v2258_v28  ;;  %v1650_v50 = vsel %vm5926_vm13, %v6259_v56, %v5641_v30  ;;  %v7384_v45 = vshrl.u32 %v5627_v17, 16  ;;  %v1633_v18 = vshll.u32 %v984_v10, 16 }
  0xa3   : > { %v2262_v62 = vsel %vm5968_vm14, %v4660_v8, %v2261_v33  ;;  %v2263_v3 = vrot.slane %v2261_v33, 4  ;;  %v2264_v63 = vrot.slane %v984_v10, 5  ;;  %5064 = vmatprep.mubr.msk.bf16.mxu1 %vm1168_vm6, %v6268_v29  ;;  %v910_v24 = vsel %vm5507_vm3, %v675_v15, %v909_v32 }
  0xa4   : > { %v1664_v14 = vrot.slane %v7384_v45, 4  ;;  %5098 = vmatprep.mubr.msk.bf16.mxu0 %vm1168_vm6, %v6272_v4  ;;  %v7385_v30 = vshll.u32 %v5627_v17, 16  ;;  %v1671_v25 = vshll.u32 %v5362_v59, 16  ;;  %v7386_v55 = vshrl.u32 %v5632_v22, 16  ;;  %911 = vst [vmem:[#allocation2 + $0x74] sm:$0x1] %v910_v24 }
  0xa5   : > { %v1635_v39 = vrot.slane %v1633_v18, 5  ;;  %v2265_v48 = vsel %vm5968_vm14, %v2263_v3, %v2264_v63  ;;  %v7387_v16 = vrot.slane %v5615_v2, 5  ;;  %v7388_v47 = vrot.slane %v5613_v0, 9  ;;  %v7390_v0 = vld [vmem:[#allocation9_spill] sm:$0xff]  ;;  %v5363_v3 = vld [vmem:[#allocation2 + $0x7c] sm:$0xf] }
  0xa6   : > { %v1667_v51 = vrot.slane %v7385_v30, 5  ;;  %v1677_v60 = vrot.slane %v7386_v55, 4  ;;  %v6302_v9 = vcombine.low %v2262_v62, %v2265_v48  ;;  %v1673_v56 = vrot.slane %v1671_v25, 5 }
  0xa7   : > { %v2269_v21 = vsel %vm5968_vm14, %v7388_v47, %v7387_v16  ;;  %v7389_v17 = vmov %v7387_v16  ;;  %v987_v6 = vld [vmem:[#allocation2 + $0x68] sm:$0x1]  ;;  %v692_v8 = vrot.slane %v5669_v52, 4  ;;  %v1636_v27 = vsel %vm5926_vm13, %v1631_v20, %v1635_v39  ;;  %v5364_v16 = vld [vmem:[#allocation2 + $0x6c] sm:$0xf] }
  0xa8   : > { %v2270_v13 = vrot.slane %v7389_v17, 4  ;;  %v1668_v22 = vor.u32 %v1667_v51, %v1664_v14  ;;  %v1657_v28 = vshll.u32 %v987_v6, 16  ;;  %v2271_v33 = vrot.slane %v987_v6, 5  ;;  %5099 = vmatmul.mubr.msk.bf16.gmra.mrb[28].mxu0 %vm1168_vm6, %v6302_v9  ;;  %v7393_v51 = vld [vmem:[#allocation10_spill] sm:$0xff] }
  0xa9   : > { %v7391_v15 = vshrl.u32 %v7390_v0, 16  ;;  %v6309_v10 = vcombine.low %v1626_v31, %v1636_v27  ;;  %v1678_v45 = vor.u32 %v1677_v60, %v1673_v56  ;;  %v917_v18 = vsel %vm5507_vm3, %v692_v8, %v916_v35  ;;  %v923_v17 = vld [vmem:[#allocation2 + $0x8c] sm:$0x1] }
  0xaa   : > { %v1669_v2 = vrot.slane %v1668_v22, 4  ;;  %v1659_v62 = vrot.slane %v1657_v28, 5  ;;  %v2272_v14 = vsel %vm5968_vm14, %v2270_v13, %v2271_v33  ;;  %918 = vst [vmem:[#allocation2 + $0x80] sm:$0x1] %v917_v18  ;;  %v7392_v52 = vshll.u32 %v7390_v0, 16 }
  0xab   : > { %v1688_v32 = vrot.slane %v7391_v15, 4  ;;  %v1695_v63 = vshll.u32 %v5363_v3, 16  ;;  %5065 = vmatmul.mubr.msk.bf16.gmra.mrb[28].mxu1 %vm1168_vm6, %v6309_v10  ;;  %v1679_v24 = vrot.slane %v1678_v45, 4  ;;  %v6323_v30 = vcombine.low %v2269_v21, %v2272_v14  ;;  %v990_v35 = vld [vmem:[#allocation2 + $0x74] sm:$0x1] }
  0xac   : > { %v1691_v20 = vrot.slane %v7392_v52, 5  ;;  %v1674_v31 = vsel %vm5926_vm13, %v1669_v2, %v1673_v56  ;;  %v7394_v25 = vshrl.u32 %v7393_v51, 16  ;;  %v1660_v60 = vsel %vm5926_vm13, %v1655_v53, %v1659_v62  ;;  %v7395_v21 = vld [vmem:[#allocation7_spill] sm:$0xff]  ;;  %v7396_v56 = vld [vmem:[#allocation12_spill] sm:$0xff]  ;;  %v5365_v14 = vld [vmem:[#allocation2 + $0x88] sm:$0xf] }
  0xad   : > { %v1697_v48 = vrot.slane %v1695_v63, 5  ;;  %v4662_v47 = vrot.slane %v5364_v16, 9  ;;  %v6329_v13 = vcombine.low %v1650_v50, %v1660_v60  ;;  %5102 = vmatprep.mubr.msk.bf16.mxu0 %vm1168_vm6, %v6323_v30  ;;  %v2275_v6 = vrot.slane %v5362_v59, 5 }
  0xae   : > { %v1701_v55 = vrot.slane %v7394_v25, 4  ;;  %v1692_v39 = vor.u32 %v1691_v20, %v1688_v32  ;;  %v709_v22 = vrot.slane %v7395_v21, 4  ;;  %v7397_v8 = vshrl.u32 %v7396_v56, 16  ;;  %v7399_v25 = vld [vmem:[#allocation13_spill] sm:$0xff] }
  0xaf   : > { %v1681_v28 = vshll.u32 %v990_v35, 16  ;;  %v2278_v0 = vrot.slane %v990_v35, 5  ;;  %5068 = vmatprep.mubr.msk.bf16.mxu1 %vm1168_vm6, %v6329_v13  ;;  %v2276_v50 = vsel %vm5968_vm14, %v4662_v47, %v2275_v6  ;;  %v2277_v15 = vrot.slane %v2275_v6, 4 }
  0xb0   : > { %v1712_v27 = vrot.slane %v7397_v8, 4  ;;  %v1693_v33 = vrot.slane %v1692_v39, 4  ;;  %v1702_v53 = vor.u32 %v1701_v55, %v1697_v48  ;;  %v924_v32 = vsel %vm5507_vm3, %v709_v22, %v923_v17  ;;  %v5366_v39 = vld [vmem:[#allocation2 + $0x78] sm:$0xf] }
  0xb1   : > { %v7398_v59 = vshll.u32 %v7396_v56, 16  ;;  %v1683_v45 = vrot.slane %v1681_v28, 5  ;;  %925 = vst [vmem:[#allocation2 + $0x8c] sm:$0x1] %v924_v32  ;;  %v1719_v52 = vshll.u32 %v5365_v14, 16  ;;  %v2279_v63 = vsel %vm5968_vm14, %v2277_v15, %v2278_v0  ;;  %v7402_v0 = vld [vmem:[#allocation19_spill] sm:$0xff] }
  0xb2   : > { %v1698_v18 = vsel %vm5926_vm13, %v1693_v33, %v1697_v48  ;;  %v1703_v62 = vrot.slane %v1702_v53, 4  ;;  %v993_v20 = vld [vmem:[#allocation2 + $0x80] sm:$0x1]  ;;  %v7400_v55 = vshrl.u32 %v7399_v25, 16  ;;  %v4663_v16 = vrot.slane %v5366_v39, 9  ;;  %v7401_v33 = vld [vmem:[#allocation16_spill] sm:$0xff] }
  0xb3   : > { %v1715_v2 = vrot.slane %v7398_v59, 5  ;;  %v1684_v47 = vsel %vm5926_vm13, %v1679_v24, %v1683_v45  ;;  %v1705_v17 = vshll.u32 %v993_v20, 16  ;;  %v6352_v35 = vcombine.low %v2276_v50, %v2279_v63  ;;  %v930_v8 = vld [vmem:[#allocation2 + $0x98] sm:$0x1] }
  0xb4   : > { %v1725_v60 = vrot.slane %v7400_v55, 4  ;;  %v1721_v48 = vrot.slane %v1719_v52, 5  ;;  %v6354_v6 = vcombine.low %v1674_v31, %v1684_v47  ;;  %v2282_v22 = vrot.slane %v5363_v3, 5 }
  0xb5   : > { %v1716_v51 = vor.u32 %v1715_v2, %v1712_v27  ;;  %v2285_v56 = vrot.slane %v993_v20, 5  ;;  %v1707_v28 = vrot.slane %v1705_v17, 5  ;;  %5103 = vmatmul.mubr.msk.bf16.gmra.mrb[32].mxu0 %vm1168_vm6, %v6352_v35  ;;  %v726_v53 = vrot.slane %v7401_v33, 4  ;;  %v7405_v20 = vld [vmem:[#allocation20_spill] sm:$0xff] }
  0xb6   : > { %v1726_v27 = vor.u32 %v1725_v60, %v1721_v48  ;;  %v7403_v15 = vshrl.u32 %v7402_v0, 16  ;;  %5069 = vmatmul.mubr.msk.bf16.gmra.mrb[32].mxu1 %vm1168_vm6, %v6354_v6  ;;  %v2283_v3 = vsel %vm5968_vm14, %v4663_v16, %v2282_v22  ;;  %v2284_v50 = vrot.slane %v2282_v22, 4  ;;  %v937_v22 = vld [vmem:[#allocation2 + $0xa4] sm:$0x1] }
  0xb7   : > { %v1717_v21 = vrot.slane %v1716_v51, 4  ;;  %v7404_v32 = vshll.u32 %v7402_v0, 16  ;;  %v1708_v2 = vsel %vm5926_vm13, %v1703_v62, %v1707_v28  ;;  %v931_v52 = vsel %vm5507_vm3, %v726_v53, %v930_v8 }
  0xb8   : > { %v1736_v24 = vrot.slane %v7403_v15, 4  ;;  %v1727_v45 = vrot.slane %v1726_v27, 4  ;;  %v1743_v63 = vshll.u32 %v7405_v20, 16  ;;  %v6374_v51 = vcombine.low %v1698_v18, %v1708_v2  ;;  %v996_v25 = vld [vmem:[#allocation2 + $0x8c] sm:$0x1]  ;;  %v7407_v27 = vld [vmem:[#allocation17_spill] sm:$0xff] }
  0xb9   : > { %v1722_v31 = vsel %vm5926_vm13, %v1717_v21, %v1721_v48  ;;  %v1739_v59 = vrot.slane %v7404_v32, 5  ;;  %v2286_v55 = vsel %vm5968_vm14, %v2284_v50, %v2285_v56  ;;  %932 = vst [vmem:[#allocation2 + $0x98] sm:$0x1] %v931_v52  ;;  %v7406_v39 = vshrl.u32 %v7405_v20, 16  ;;  %v5367_v48 = vld [vmem:[#allocation2 + $0x84] sm:$0xf] }
  0xba   : > { %v1729_v47 = vshll.u32 %v996_v25, 16  ;;  %v6380_v17 = vcombine.low %v2283_v3, %v2286_v55  ;;  %v1745_v62 = vrot.slane %v1743_v63, 5  ;;  %v4664_v21 = vrot.slane %v5367_v48, 9  ;;  %5072 = vmatprep.mubr.msk.bf16.mxu1 %vm1168_vm6, %v6374_v51  ;;  %v7408_v15 = vld [vmem:[#allocation22_spill] sm:$0xff] }
  0xbb   : > { %v1740_v60 = vor.u32 %v1739_v59, %v1736_v24  ;;  %v1749_v16 = vrot.slane %v7406_v39, 4  ;;  %v2289_v8 = vrot.slane %v5365_v14, 5  ;;  %v2292_v28 = vrot.slane %v996_v25, 5 }
  0xbc   : > { %v743_v56 = vrot.slane %v7407_v27, 4  ;;  %v1731_v33 = vrot.slane %v1729_v47, 5  ;;  %5106 = vmatprep.mubr.msk.bf16.mxu0 %vm1168_vm6, %v6380_v17  ;;  %v7409_v24 = vshrl.u32 %v7408_v15, 16  ;;  %v7410_v50 = vshll.u32 %v7408_v15, 16 }
  0xbd   : > { %v1741_v18 = vrot.slane %v1740_v60, 4  ;;  %v1750_v53 = vor.u32 %v1749_v16, %v1745_v62  ;;  %v1819_v59 = vshrl.u32 %v6008_v19, 16  ;;  %v2290_v2 = vsel %vm5968_vm14, %v4664_v21, %v2289_v8  ;;  %v7411_v60 = vld [vmem:[#allocation23_spill] sm:$0xff] }
  0xbe   : > { %v1760_v3 = vrot.slane %v7409_v24, 4  ;;  %v1763_v32 = vrot.slane %v7410_v50, 5  ;;  %v2291_v14 = vrot.slane %v2289_v8, 4  ;;  %v938_v52 = vsel %vm5507_vm3, %v743_v56, %v937_v22  ;;  %v944_v8 = vld [vmem:[#allocation2 + $0xb0] sm:$0x1]  ;;  %v7413_v24 = vld [vmem:[#allocation26_spill] sm:$0xff] }
  0xbf   : > { %v1732_v63 = vsel %vm5926_vm13, %v1727_v45, %v1731_v33  ;;  %v1746_v25 = vsel %vm5926_vm13, %v1741_v18, %v1745_v62  ;;  %939 = vst [vmem:[#allocation2 + $0xa4] sm:$0x1] %v938_v52  ;;  %v1767_v39 = vshll.u32 %v7411_v60, 16  ;;  %v7412_v48 = vshrl.u32 %v7411_v60, 16 }
  0xc0   : > { %v1764_v55 = vor.u32 %v1763_v32, %v1760_v3  ;;  %v6401_v16 = vcombine.low %v1722_v31, %v1732_v63  ;;  %v2293_v47 = vsel %vm5968_vm14, %v2291_v14, %v2292_v28  ;;  %v4665_v22 = vrot.slane %v7402_v0, 9  ;;  %v999_v27 = vld [vmem:[#allocation2 + $0x98] sm:$0x1] }
  0xc1   : > { %v1773_v21 = vrot.slane %v7412_v48, 4  ;;  %v1751_v45 = vrot.slane %v1750_v53, 4  ;;  %v6408_v56 = vcombine.low %v2290_v2, %v2293_v47  ;;  %v1769_v62 = vrot.slane %v1767_v39, 5 }
  0xc2   : > { %v2296_v18 = vrot.slane %v7405_v20, 5  ;;  %5073 = vmatmul.mubr.msk.bf16.gmra.mrb[36].mxu1 %vm1168_vm6, %v6401_v16  ;;  %v1753_v31 = vshll.u32 %v999_v27, 16  ;;  %v2299_v33 = vrot.slane %v999_v27, 5  ;;  %v760_v28 = vrot.slane %v7413_v24, 4 }
  0xc3   : > { %v7414_v3 = vshrl.u32 %v5972_v57, 16  ;;  %5107 = vmatmul.mubr.msk.bf16.gmra.mrb[36].mxu0 %vm1168_vm6, %v6408_v56  ;;  %v1765_v0 = vrot.slane %v1764_v55, 4  ;;  %v1774_v53 = vor.u32 %v1773_v21, %v1769_v62  ;;  %v7415_v52 = vshll.u32 %v5972_v57, 16 }
  0xc4   : > { %v2297_v32 = vsel %vm5968_vm14, %v4665_v22, %v2296_v18  ;;  %v2298_v2 = vrot.slane %v2296_v18, 4  ;;  %v1755_v20 = vrot.slane %v1753_v31, 5  ;;  %v945_v14 = vsel %vm5507_vm3, %v760_v28, %v944_v8 }
  0xc5   : > { %v1784_v50 = vrot.slane %v7414_v3, 4  ;;  %v1787_v63 = vrot.slane %v7415_v52, 5  ;;  %v1791_v39 = vshll.u32 %v5995_v34, 16  ;;  %v1775_v47 = vrot.slane %v1774_v53, 4  ;;  %946 = vst [vmem:[#allocation2 + $0xb0] sm:$0x1] %v945_v14 }
  0xc6   : > { %v2300_v48 = vsel %vm5968_vm14, %v2298_v2, %v2299_v33  ;;  %v7416_v55 = vshrl.u32 %v5995_v34, 16  ;;  %v4666_v22 = vrot.slane %v7408_v15, 9  ;;  %v1756_v27 = vsel %vm5926_vm13, %v1751_v45, %v1755_v20  ;;  %v1002_v18 = vld [vmem:[#allocation2 + $0xa4] sm:$0x1]  ;;  %v951_v2 = vld [vmem:[#allocation2 + $0xbc] sm:$0x1] }
  0xc7   : > { %v6432_v8 = vcombine.low %v2297_v32, %v2300_v48  ;;  %v1788_v31 = vor.u32 %v1787_v63, %v1784_v50  ;;  %v1793_v24 = vrot.slane %v1791_v39, 5  ;;  %v6434_v28 = vcombine.low %v1746_v25, %v1756_v27 }
  0xc8   : > { %v1797_v21 = vrot.slane %v7416_v55, 4  ;;  %v1777_v3 = vshll.u32 %v1002_v18, 16  ;;  %v2303_v53 = vrot.slane %v7411_v60, 5  ;;  %v2306_v33 = vrot.slane %v1002_v18, 5 }
  0xc9   : > { %7417 = vst [vmem:[#allocation9_spill] sm:$0xff] %v6434_v28  ;;  %v1770_v14 = vsel %vm5926_vm13, %v1765_v0, %v1769_v62  ;;  %5110 = vmatprep.mubr.msk.bf16.mxu0 %vm1168_vm6, %v6432_v8  ;;  %v777_v45 = vrot.slane %v5917_v36, 4  ;;  %v7418_v50 = vshrl.u32 %v6002_v26, 16  ;;  %5076 = vmatprep.mubr.msk.bf16.mxu1 %vm1168_vm6, %v6434_v28  ;;  %v7419_v62 = vshll.u32 %v6002_v26, 16 }
  0xca   : > { %v1798_v15 = vor.u32 %v1797_v21, %v1793_v24  ;;  %v1779_v25 = vrot.slane %v1777_v3, 5  ;;  %v2304_v60 = vsel %vm5968_vm14, %v4666_v22, %v2303_v53  ;;  %v2305_v20 = vrot.slane %v2303_v53, 4  ;;  %v256_v22 = vld [vmem:[%s5503_s6 + $0xf0] sm:$0xff] }
  0xcb   : > { %v1808_v32 = vrot.slane %v7418_v50, 4  ;;  %v1811_v0 = vrot.slane %v7419_v62, 5  ;;  %v1789_v52 = vrot.slane %v1788_v31, 4  ;;  %v952_v63 = vsel %vm5507_vm3, %v777_v45, %v951_v2  ;;  %v257_v50 = vld [vmem:[%s5503_s6 + $0xf8] sm:$0xff] }
  0xcc   : > { %v1815_v36 = vshll.u32 %v6008_v19, 16  ;;  %v1780_v39 = vsel %vm5926_vm13, %v1775_v47, %v1779_v25  ;;  %v2307_v48 = vsel %vm5968_vm14, %v2305_v20, %v2306_v33  ;;  %953 = vst [vmem:[#allocation2 + $0xbc] sm:$0x1] %v952_v63  ;;  %v1821_v21 = vrot.slane %v1819_v59, 4  ;;  %v1005_v18 = vld [vmem:[#allocation2 + $0xb0] sm:$0x1] }
  0xcd   : > { %v1812_v55 = vor.u32 %v1811_v0, %v1808_v32  ;;  %v6460_v27 = vcombine.low %v1770_v14, %v1780_v39  ;;  %v6462_v31 = vcombine.low %v2304_v60, %v2307_v48  ;;  %v4667_v53 = vrot.slane %v5972_v57, 9  ;;  %v7420_v57 = vld [vmem:[#allocation28_spill] sm:$0xff] }
  0xce   : > { %v6464_v3 = vrot.slane %v1815_v36, 5  ;;  %v1799_v2 = vrot.slane %v1798_v15, 4  ;;  %v1801_v47 = vshll.u32 %v1005_v18, 16  ;;  %v2310_v45 = vrot.slane %v5995_v34, 5  ;;  %v5368_v36 = vld [vmem:[%s7265_s2] ss:$0 sm:$0xff] }
  0xcf   : > { %v2313_v33 = vrot.slane %v1005_v18, 5  ;;  %5077 = vmatmul.mubr.msk.bf16.gmra.mrb[40].mxu1 %vm1168_vm6, %v6460_v27  ;;  %v1794_v59 = vsel %vm5926_vm13, %v1789_v52, %v1793_v24  ;;  %5111 = vmatmul.mubr.msk.bf16.gmra.mrb[40].mxu0 %vm1168_vm6, %v6462_v31  ;;  %v2317_v32 = vrot.slane %v6008_v19, 5  ;;  %v295_v15 = vmul.f32 %v7420_v57, %v256_v22 }
  0xd0   : > { %v1822_v14 = vor.u32 %v1821_v21, %v6464_v3  ;;  %v1803_v25 = vrot.slane %v1801_v47, 5  ;;  %v2311_v34 = vsel %vm5968_vm14, %v4667_v53, %v2310_v45  ;;  %v2312_v60 = vrot.slane %v2310_v45, 4 }
  0xd1   : > { %v4668_v20 = vrot.slane %v6002_v26, 9  ;;  %v6481_v62 = vrot.slane %v1812_v55, 4  ;;  %v2319_v24 = vrot.slane %v2317_v32, 4  ;;  %v296_v52 = vmul.f32 %v7420_v57, %v257_v50 }
  0xd2   : > { %v1823_v0 = vrot.slane %v1822_v14, 4  ;;  %v1804_v63 = vsel %vm5926_vm13, %v1799_v2, %v1803_v25  ;;  %v2314_v19 = vsel %vm5968_vm14, %v2312_v60, %v2313_v33  ;;  %v334_v39 = vadd.f32 %v5368_v36, %v295_v15 }
  0xd3   : > { %vm1015_vm15 = vcmask 31744   ;;  %v6491_v48 = vcombine.low %v1794_v59, %v1804_v63  ;;  %v1008_v26 = vld [vmem:[#allocation2 + $0xbc] sm:$0x1]  ;;  %v6493_v55 = vcombine.low %v2311_v34, %v2314_v19  ;;  %v335_v21 = vadd.f32 %v5368_v36, %v296_v52  ;;  %v954_v52 = vld [vmem:[#allocation2 + $0xc0] sm:$0xf] }
  0xd4   : > { %v1825_v22 = vshll.u32 %v1008_v26, 16  ;;  %v2318_v18 = vsel %vm5968_vm14, %v4668_v20, %v2317_v32  ;;  %v2320_v53 = vrot.slane %v1008_v26, 5  ;;  %v366_v2 = vmax.f32 %v334_v39, 0.0  ;;  %v7421_v63 = vld [vmem:[#allocation8_spill] sm:$0xff]  ;;  %v958_v36 = vld [vmem:[#allocation2 + $0xc8] sm:$0x1] }
  0xd5   : > { %v5378_v47 = vmov 0.0   ;;  %5080 = vmatprep.mubr.msk.bf16.mxu1 %vm1168_vm6, %v6491_v48  ;;  %5114 = vmatprep.mubr.msk.bf16.mxu0 %vm1168_vm6, %v6493_v55  ;;  %v367_v45 = vmax.f32 %v335_v21, 0.0  ;;  %v1818_v33 = vsel %vm5926_vm13, %v6481_v62, %v6464_v3 }
  0xd6   : > { %1034 = vst.msk [vmem:[#allocation3 + $0x90] sm:$0xff] %vm1015_vm15, %v5378_v47  ;;  %1016 = vst.msk [vmem:[#allocation3] sm:$0xff] %vm1015_vm15, %v5378_v47  ;;  %v1827_v50 = vrot.slane %v1825_v22, 5  ;;  %v2321_v59 = vsel %vm5968_vm14, %v2319_v24, %v2320_v53  ;;  %v4861_v14 = vpack.c.bf16 %v366_v2, %v366_v2  ;;  %v6562_v53 = vld [vmem:[%s7266_s3 + $0x40] sm:$0xff]   ;;  %v7424_v2 = vld [vmem:[#allocation18_spill] sm:$0xff] }
  0xd7   : > { %1017 = vst.msk [vmem:[#allocation3 + $0x8] sm:$0xff] %vm1015_vm15, %v5378_v47  ;;  %1018 = vst.msk [vmem:[#allocation3 + $0x10] sm:$0xff] %vm1015_vm15, %v5378_v47  ;;  %v6539_v32 = vcombine.low %v2318_v18, %v2321_v59  ;;  %v4862_v57 = vpack.c.bf16 %v367_v45, %v367_v45  ;;  %v7425_v59 = vld [vmem:[#allocation25_spill] sm:$0xff] }
  0xd8   : > { %1019 = vst.msk [vmem:[#allocation3 + $0x18] sm:$0xff] %vm1015_vm15, %v5378_v47  ;;  %1020 = vst.msk [vmem:[#allocation3 + $0x20] sm:$0xff] %vm1015_vm15, %v5378_v47  ;;  %v1828_v15 = vsel %vm5926_vm13, %v1823_v0, %v1827_v50  ;;  %v779_v25 = vshrl.u32 %v4861_v14, 16  ;;  %v782_v34 = vshll.u32 %v4861_v14, 16 }
  0xd9   : > { %1021 = vst.msk [vmem:[#allocation3 + $0x28] sm:$0xff] %vm1015_vm15, %v5378_v47  ;;  %1022 = vst.msk [vmem:[#allocation3 + $0x30] sm:$0xff] %vm1015_vm15, %v5378_v47  ;;  %v6543_v60 = vcombine.low %v1818_v33, %v1828_v15  ;;  %5115 = vmatmul.mubr.msk.bf16.gmra.mrb[44].mxu0 %vm1168_vm6, %v6539_v32  ;;  %v787_v20 = vshrl.u32 %v4862_v57, 16  ;;  %v790_v3 = vshll.u32 %v4862_v57, 16  ;;  %v7426_v15 = vld [vmem:[#allocation27_spill] sm:$0xff] }
  0xda   : > { %1023 = vst.msk [vmem:[#allocation3 + $0x38] sm:$0xff] %vm1015_vm15, %v5378_v47  ;;  %1024 = vst.msk [vmem:[#allocation3 + $0x40] sm:$0xff] %vm1015_vm15, %v5378_v47  ;;  %5154 = vmatprep.mubr.msk.bf16.mxu0 %vm1168_vm6, %v6077_v38  ;;  %v781_v62 = vrot.slane %v779_v25, 7 }
  0xdb   : > { %1025 = vst.msk [vmem:[#allocation3 + $0x48] sm:$0xff] %vm1015_vm15, %v5378_v47  ;;  %1026 = vst.msk [vmem:[#allocation3 + $0x50] sm:$0xff] %vm1015_vm15, %v5378_v47  ;;  %5081 = vmatmul.mubr.msk.bf16.gmra.mrb[44].mxu1 %vm1168_vm6, %v6543_v60  ;;  %v789_v24 = vrot.slane %v787_v20, 7  ;;  %v7427_v20 = vld [vmem:[#allocation5_spill] sm:$0xff] }
  0xdc   : > { %1027 = vst.msk [vmem:[#allocation3 + $0x58] sm:$0xff] %vm1015_vm15, %v5378_v47  ;;  %1028 = vst.msk [vmem:[#allocation3 + $0x60] sm:$0xff] %vm1015_vm15, %v5378_v47  ;;  %5120 = vmatprep.mubr.msk.bf16.mxu1 %vm1168_vm6, %v7421_v63  ;;  %v784_v0 = vor.u32 %v782_v34, %v781_v62  ;;  %v785_v19 = vrot.slane %v781_v62, 4 }
  0xdd   : > { %1029 = vst.msk [vmem:[#allocation3 + $0x68] sm:$0xff] %vm1015_vm15, %v5378_v47  ;;  %1030 = vst.msk [vmem:[#allocation3 + $0x70] sm:$0xff] %vm1015_vm15, %v5378_v47  ;;  %v792_v39 = vor.u32 %v790_v3, %v789_v24  ;;  %v794_v26 = vrot.slane %v789_v24, 4  ;;  %v7428_v3 = vld [vmem:[#allocation6_spill] sm:$0xff] }
  0xde   : > { %1031 = vst.msk [vmem:[#allocation3 + $0x78] sm:$0xff] %vm1015_vm15, %v5378_v47  ;;  %1032 = vst.msk [vmem:[#allocation3 + $0x80] sm:$0xff] %vm1015_vm15, %v5378_v47  ;;  %v955_v22 = vsel %vm5565_vm8, %v784_v0, %v954_v52  ;;  %v7429_v0 = vld [vmem:[#allocation11_spill] sm:$0xff] }
  0xdf   : > { %1033 = vst.msk [vmem:[#allocation3 + $0x88] sm:$0xff] %vm1015_vm15, %v5378_v47  ;;  %1035 = vst.msk [vmem:[#allocation3 + $0x98] sm:$0xff] %vm1015_vm15, %v5378_v47  ;;  %v793_v38 = vsel %vm5555_vm7, %v785_v19, %v792_v39  ;;  %v959_v18 = vsel %vm5507_vm3, %v794_v26, %v958_v36  ;;  %v7430_v19 = vld [vmem:[#allocation14_spill] sm:$0xff] }
  0xe0   : > { %1036 = vst.msk [vmem:[#allocation3 + $0xa0] sm:$0xff] %vm1015_vm15, %v5378_v47  ;;  %1037 = vst.msk [vmem:[#allocation3 + $0xa8] sm:$0xff] %vm1015_vm15, %v5378_v47 }
  0xe1   : > { %1038 = vst.msk [vmem:[#allocation3 + $0xb0] sm:$0xff] %vm1015_vm15, %v5378_v47  ;;  %1039 = vst.msk [vmem:[#allocation3 + $0xb8] sm:$0xff] %vm1015_vm15, %v5378_v47  ;;  %5155 = vmatmul.mubr.msk.bf16.vlgmr.msra.gmra.mrb[48].mxu0 %vm1168_vm6, %v6150_v42 }
  0xe2   : > { %1040 = vst.msk [vmem:[#allocation3 + $0xc0] sm:$0xff] %vm1015_vm15, %v5378_v47  ;;  %1041 = vst.msk [vmem:[#allocation3 + $0xc8] sm:$0xff] %vm1015_vm15, %v5378_v47  ;;  %5221 = vmatpush3.bf16.msra.mxu0 %v6179_v58  ;;  %5158 = vmatprep.mubr.msk.bf16.mxu0 %vm1168_vm6, %v6172_v7 }
  0xe3   : > { %1042 = vst.msk [vmem:[#allocation3 + $0xd0] sm:$0xff] %vm1015_vm15, %v5378_v47  ;;  %1043 = vst.msk [vmem:[#allocation3 + $0xd8] sm:$0xff] %vm1015_vm15, %v5378_v47  ;;  %5121 = vmatmul.mubr.msk.bf16.vlgmr.msra.gmra.mrb[48].mxu1 %vm1168_vm6, %v7423_v5  ;;  %5288 = vmatprep.subr.bf16.mxu0 %v6562_v53 }
  0xe4   : > { %1044 = vst.msk [vmem:[#allocation3 + $0xe0] sm:$0xff] %vm1015_vm15, %v5378_v47  ;;  %1045 = vst.msk [vmem:[#allocation3 + $0xe8] sm:$0xff] %vm1015_vm15, %v5378_v47  ;;  %5187 = vmatpush3.bf16.msra.mxu1 %v6094_v40  ;;  %5124 = vmatprep.mubr.msk.bf16.mxu1 %vm1168_vm6, %v7424_v2 }
  0xe5   : > { %1046 = vst.msk [vmem:[#allocation3 + $0xf0] sm:$0xff] %vm1015_vm15, %v5378_v47  ;;  %1047 = vst.msk [vmem:[#allocation3 + $0xf8] sm:$0xff] %vm1015_vm15, %v5378_v47  ;;  %5254 = vmatprep.subr.bf16.mxu1 %v6570_v54 }
  0xe6   : > { %956 = vst [vmem:[#allocation2 + $0xc0] sm:$0xf] %v955_v22  ;;  %957 = vst.msk [vmem:[#allocation2 + $0xc4] sm:$0xf] %vm368_vm0, %v793_v38 }
  0xe7   : > { %960 = vst [vmem:[#allocation2 + $0xc8] sm:$0x1] %v959_v18 }
  0xe9   : > { %5159 = vmatmul.mubr.msk.bf16.gmra.mrb[52].mxu0 %vm1168_vm6, %v6209_v49 }
  0xea   : > { %5162 = vmatprep.mubr.msk.bf16.mxu0 %vm1168_vm6, %v6239_v41 }
  0xeb   : > { %5125 = vmatmul.mubr.msk.bf16.gmra.mrb[52].mxu1 %vm1168_vm6, %v7425_v59 }
  0xec   : > { %5128 = vmatprep.mubr.msk.bf16.mxu1 %vm1168_vm6, %v7426_v15 }
  0xed   : > { %v6582_v47 = vld [vmem:[#allocation2 + $0xc0] sm:$0xf]  ;;  %v6584_v45 = vld [vmem:[#allocation2 + $0xc4] sm:$0xf] }
  0xee   : > { %v1011_v58 = vld [vmem:[#allocation2 + $0xc8] sm:$0x1]  ;;  %v4744_v33 = vrot.slane %v6582_v47, 9  ;;  %v3257_v50 = vrot.slane %v6584_v45, 5  ;;  %v2959_v62 = vshrl.u32 %v6582_v47, 16  ;;  %v2962_v24 = vshll.u32 %v6582_v47, 16 }
  0xef   : > { %v3260_v40 = vrot.slane %v1011_v58, 5  ;;  %v2972_v52 = vshrl.u32 %v6584_v45, 16  ;;  %v2968_v63 = vshll.u32 %v6584_v45, 16  ;;  %v2978_v18 = vshll.u32 %v1011_v58, 16 }
  0xf0   : > { %v3258_v14 = vsel %vm5968_vm14, %v4744_v33, %v3257_v50  ;;  %v3259_v57 = vrot.slane %v3257_v50, 4  ;;  %v2961_v36 = vrot.slane %v2959_v62, 4  ;;  %v2964_v39 = vrot.slane %v2962_v24, 5  ;;  %v7431_v33 = vld [vmem:[#allocation21_spill] sm:$0xff]  ;;  %v7432_v50 = vld [vmem:[#allocation24_spill] sm:$0xff] }
  0xf1   : > { %5163 = vmatmul.mubr.msk.bf16.gmra.mrb[56].mxu0 %vm1168_vm6, %v6268_v29  ;;  %v2970_v26 = vrot.slane %v2968_v63, 5  ;;  %v2974_v21 = vrot.slane %v2972_v52, 4  ;;  %v1064_v62 = vld [vmem:[#allocation3 + $0x80] sm:$0xff]  ;;  %v1067_v52 = vld [vmem:[#allocation3 + $0x98] sm:$0xff] }
  0xf2   : > { %v3261_v25 = vsel %vm5968_vm14, %v3259_v57, %v3260_v40  ;;  %5166 = vmatprep.mubr.msk.bf16.mxu0 %vm1168_vm6, %v6309_v10  ;;  %v2965_v22 = vor.u32 %v2964_v39, %v2961_v36  ;;  %v1066_v40 = vld [vmem:[#allocation3 + $0x90] sm:$0xff] }
  0xf3   : > { %v6600_v34 = vcombine.low %v3258_v14, %v3261_v25  ;;  %5129 = vmatmul.mubr.msk.bf16.gmra.mrb[56].mxu1 %vm1168_vm6, %v6069_v23  ;;  %v2975_v38 = vor.u32 %v2974_v21, %v2970_v26  ;;  %v2980_v25 = vrot.slane %v2978_v18, 5  ;;  %v7433_v18 = vld [vmem:[#allocation30_spill] sm:$0xff] }
  0xf4   : > { %5132 = vmatprep.mubr.msk.bf16.mxu1 %vm1168_vm6, %v6126_v1  ;;  %v2966_v14 = vrot.slane %v2965_v22, 4 }
  0xf5   : > { %v2976_v57 = vrot.slane %v2975_v38, 4 }
  0xf6   : > { %v2971_v39 = vsel %vm5926_vm13, %v2966_v14, %v2970_v26  ;;  %v6658_v26 = vcombine.low %v6582_v47, %v6584_v45  ;;  %v1050_v14 = vld [vmem:[#allocation3 + $0x10] sm:$0xff]  ;;  %v1049_v47 = vld [vmem:[#allocation3 + $0x8] sm:$0xff] }
  0xf7   : > { %v2981_v21 = vsel %vm5926_vm13, %v2976_v57, %v2980_v25  ;;  %v1051_v25 = vld [vmem:[#allocation3 + $0x18] sm:$0xff] }
  0xf9   : > { %5167 = vmatmul.mubr.msk.bf16.gmra.mrb[60].mxu0 %vm1168_vm6, %v6329_v13 }
  0xfa   : > { %5170 = vmatprep.mubr.msk.bf16.mxu0 %vm1168_vm6, %v6354_v6 }
  0xfb   : > { %5133 = vmatmul.mubr.msk.bf16.gmra.mrb[60].mxu1 %vm1168_vm6, %v7427_v20 }
  0xfc   : > { %5136 = vmatprep.mubr.msk.bf16.mxu1 %vm1168_vm6, %v7428_v3 }
 0x101   : > { %5171 = vmatmul.mubr.msk.bf16.gmra.mrb[64].mxu0 %vm1168_vm6, %v6374_v51 }
 0x102   : > { %5174 = vmatprep.mubr.msk.bf16.mxu0 %vm1168_vm6, %v6401_v16 }
 0x103   : > { %5137 = vmatmul.mubr.msk.bf16.gmra.mrb[64].mxu1 %vm1168_vm6, %v7429_v0 }
 0x104   : > { %5140 = vmatprep.mubr.msk.bf16.mxu1 %vm1168_vm6, %v7430_v19 }
 0x109   : > { %5175 = vmatmul.mubr.msk.bf16.gmra.mrb[68].mxu0 %vm1168_vm6, %v6434_v28  ;;  %v1065_v28 = vld [vmem:[#allocation3 + $0x88] sm:$0xff] }
 0x10a   : > { %5178 = vmatprep.mubr.msk.bf16.mxu0 %vm1168_vm6, %v6460_v27 }
 0x10b   : > { %5141 = vmatmul.mubr.msk.bf16.gmra.mrb[68].mxu1 %vm1168_vm6, %v7431_v33  ;;  %v5036_v24 = vpop.f32.mrb[0].mxu1 }
 0x10c   : > { %5144 = vmatprep.mubr.msk.bf16.mxu1 %vm1168_vm6, %v7432_v50  ;;  %v1396_v63 = vadd.f32 %v5036_v24, %v1066_v40  ;;  %v1315_v44 = vpop.f32.mrb[1].mxu1  ;;  %v7434_v40 = vld [vmem:[#allocation31_spill] sm:$0xff] }
 0x10d   : > { %v1394_v58 = vadd.f32 %v1315_v44, %v1064_v62  ;;  %v5037_v36 = vpop.f32.mrb[2].mxu1  ;;  %v6653_v62 = vcombine.low %v2971_v39, %v2981_v21  ;;  %v1068_v39 = vld [vmem:[#allocation3 + $0xa0] sm:$0xff] }
 0x10e   : > { %1428 = vst.msk [vmem:[#allocation3 + $0x90] sm:$0xff] %vm1015_vm15, %v1396_v63  ;;  %v1397_v22 = vadd.f32 %v5037_v36, %v1067_v52  ;;  %v1318_v38 = vpop.f32.mrb[3].mxu1 }
 0x10f   : > { %1426 = vst.msk [vmem:[#allocation3 + $0x80] sm:$0xff] %vm1015_vm15, %v1394_v58  ;;  %v1395_v44 = vadd.f32 %v1318_v38, %v1065_v28  ;;  %v1048_v28 = vld [vmem:[#allocation3] sm:$0xff] }
 0x110   : > { %1429 = vst.msk [vmem:[#allocation3 + $0x98] sm:$0xff] %vm1015_vm15, %v1397_v22  ;;  %v1071_v22 = vld [vmem:[#allocation3 + $0xb8] sm:$0xff] }
 0x111   : > { %5179 = vmatmul.mubr.msk.bf16.gmra.mrb[72].mxu0 %vm1168_vm6, %v6491_v48  ;;  %1427 = vst.msk [vmem:[#allocation3 + $0x88] sm:$0xff] %vm1015_vm15, %v1395_v44  ;;  %v1069_v44 = vld [vmem:[#allocation3 + $0xa8] sm:$0xff] }
 0x112   : > { %5182 = vmatprep.mubr.msk.bf16.mxu0 %vm1168_vm6, %v6543_v60 }
 0x113   : > { %5145 = vmatmul.mubr.msk.bf16.gmra.mrb[72].mxu1 %vm1168_vm6, %v7433_v18 }
 0x114   : > { %5148 = vmatprep.mubr.msk.bf16.mxu1 %vm1168_vm6, %v7434_v40 }
 0x115   : > { %v5020_v57 = vpop.f32.mrb[0].mxu0 }
 0x116   : > { %v1380_v24 = vadd.f32 %v5020_v57, %v1050_v14  ;;  %v1251_v52 = vpop.f32.mrb[1].mxu0  ;;  %v1052_v57 = vld [vmem:[#allocation3 + $0x20] sm:$0xff] }
 0x117   : > { %v1378_v45 = vadd.f32 %v1251_v52, %v1048_v28  ;;  %v5021_v63 = vpop.f32.mrb[2].mxu0 }
 0x118   : > { %1412 = vst.msk [vmem:[#allocation3 + $0x10] sm:$0xff] %vm1015_vm15, %v1380_v24  ;;  %v1381_v58 = vadd.f32 %v5021_v63, %v1051_v25  ;;  %v1254_v36 = vpop.f32.mrb[3].mxu0  ;;  %v1055_v25 = vld [vmem:[#allocation3 + $0x38] sm:$0xff] }
 0x119   : > { %5183 = vmatmul.mubr.msk.bf16.gmra.mrb[76].mxu0 %vm1168_vm6, %v6653_v62  ;;  %1410 = vst.msk [vmem:[#allocation3] sm:$0xff] %vm1015_vm15, %v1378_v45 }
 0x11a   : > { %5222 = vmatprep.mubr.msk.bf16.mxu0 %vm1168_vm6, %v7423_v5  ;;  %v1379_v5 = vadd.f32 %v1254_v36, %v1049_v47  ;;  %1413 = vst.msk [vmem:[#allocation3 + $0x18] sm:$0xff] %vm1015_vm15, %v1381_v58  ;;  %v1053_v47 = vld [vmem:[#allocation3 + $0x28] sm:$0xff]  ;;  %v1074_v36 = vld [vmem:[#allocation3 + $0xd0] sm:$0xff] }
 0x11b   : > { %5149 = vmatmul.mubr.msk.bf16.gmra.mrb[76].mxu1 %vm1168_vm6, %v6658_v26 }
 0x11c   : > { %5188 = vmatprep.mubr.msk.bf16.mxu1 %vm1168_vm6, %v6098_v12  ;;  %1411 = vst.msk [vmem:[#allocation3 + $0x8] sm:$0xff] %vm1015_vm15, %v1379_v5  ;;  %v1070_v12 = vld [vmem:[#allocation3 + $0xb0] sm:$0xff]  ;;  %v1072_v5 = vld [vmem:[#allocation3 + $0xc0] sm:$0xff] }
 0x11f   : > { %v5040_v21 = vpop.f32.mrb[4].mxu1 }
 0x120   : > { %v1331_v38 = vpop.f32.mrb[5].mxu1 }
 0x121   : > { %5223 = vmatmul.mubr.msk.bf16.vlgmr.msra.gmra.mrb[80].mxu0 %vm1168_vm6, %v7424_v2  ;;  %v1400_v2 = vadd.f32 %v5040_v21, %v1070_v12  ;;  %v1398_v14 = vadd.f32 %v1331_v38, %v1068_v39  ;;  %v1075_v39 = vld [vmem:[#allocation3 + $0xd8] sm:$0xff] }
 0x122   : > { %5289 = vmatpush3.bf16.msra.mxu0 %v6562_v53  ;;  %5226 = vmatprep.mubr.msk.bf16.mxu0 %vm1168_vm6, %v7425_v59  ;;  %v5041_v53 = vpop.f32.mrb[6].mxu1 }
 0x123   : > { %5189 = vmatmul.mubr.msk.bf16.vlgmr.msra.gmra.mrb[80].mxu1 %vm1168_vm6, %v6137_v37  ;;  %1432 = vst.msk [vmem:[#allocation3 + $0xb0] sm:$0xff] %vm1015_vm15, %v1400_v2  ;;  %v1401_v59 = vadd.f32 %v5041_v53, %v1071_v22  ;;  %v1334_v28 = vpop.f32.mrb[7].mxu1  ;;  %1430 = vst.msk [vmem:[#allocation3 + $0xa0] sm:$0xff] %vm1015_vm15, %v1398_v14  ;;  %v1073_v2 = vld [vmem:[#allocation3 + $0xc8] sm:$0xff]  ;;  %v1056_v53 = vld [vmem:[#allocation3 + $0x40] sm:$0xff] }
 0x124   : > { %5255 = vmatpush3.bf16.msra.mxu1 %v6570_v54  ;;  %5192 = vmatprep.mubr.msk.bf16.mxu1 %vm1168_vm6, %v6174_v11  ;;  %v1399_v54 = vadd.f32 %v1334_v28, %v1069_v44 }
 0x125   : > { %1433 = vst.msk [vmem:[#allocation3 + $0xb8] sm:$0xff] %vm1015_vm15, %v1401_v59  ;;  %v1059_v59 = vld [vmem:[#allocation3 + $0x58] sm:$0xff] }
 0x126   : > { %1431 = vst.msk [vmem:[#allocation3 + $0xa8] sm:$0xff] %vm1015_vm15, %v1399_v54 }
 0x129   : > { %5227 = vmatmul.mubr.msk.bf16.gmra.mrb[84].mxu0 %vm1168_vm6, %v7426_v15  ;;  %v1054_v15 = vld [vmem:[#allocation3 + $0x30] sm:$0xff] }
 0x12a   : > { %5230 = vmatprep.mubr.msk.bf16.mxu0 %vm1168_vm6, %v6069_v23 }
 0x12b   : > { %5193 = vmatmul.mubr.msk.bf16.gmra.mrb[84].mxu1 %vm1168_vm6, %v6211_v43 }
 0x12c   : > { %5196 = vmatprep.mubr.msk.bf16.mxu1 %vm1168_vm6, %v6241_v46  ;;  %v5024_v23 = vpop.f32.mrb[4].mxu0 }
 0x12d   : > { %v1384_v24 = vadd.f32 %v5024_v23, %v1054_v15  ;;  %v1267_v52 = vpop.f32.mrb[5].mxu0  ;;  %v1057_v15 = vld [vmem:[#allocation3 + $0x48] sm:$0xff] }
 0x12e   : > { %v1382_v45 = vadd.f32 %v1267_v52, %v1052_v57  ;;  %v5025_v63 = vpop.f32.mrb[6].mxu0  ;;  %v6744_v52 = vld [vmem:[#allocation2 + $0xd0] sm:$0xf] }
 0x12f   : > { %1416 = vst.msk [vmem:[#allocation3 + $0x30] sm:$0xff] %vm1015_vm15, %v1384_v24  ;;  %v1270_v58 = vpop.f32.mrb[7].mxu0 }
 0x130   : > { %1414 = vst.msk [vmem:[#allocation3 + $0x20] sm:$0xff] %vm1015_vm15, %v1382_v45  ;;  %v1076_v45 = vld [vmem:[#allocation3 + $0xe0] sm:$0xff] }
 0x131   : > { %5231 = vmatmul.mubr.msk.bf16.gmra.mrb[88].mxu0 %vm1168_vm6, %v6126_v1  ;;  %v1385_v1 = vadd.f32 %v5025_v63, %v1055_v25 }
 0x132   : > { %5234 = vmatprep.mubr.msk.bf16.mxu0 %vm1168_vm6, %v7427_v20  ;;  %v1383_v20 = vadd.f32 %v1270_v58, %v1053_v47  ;;  %v1078_v47 = vld [vmem:[#allocation3 + $0xf0] sm:$0xff] }
 0x133   : > { %5197 = vmatmul.mubr.msk.bf16.gmra.mrb[88].mxu1 %vm1168_vm6, %v6272_v4  ;;  %1417 = vst.msk [vmem:[#allocation3 + $0x38] sm:$0xff] %vm1015_vm15, %v1385_v1  ;;  %v1079_v1 = vld [vmem:[#allocation3 + $0xf8] sm:$0xff] }
 0x134   : > { %5200 = vmatprep.mubr.msk.bf16.mxu1 %vm1168_vm6, %v6302_v9  ;;  %1415 = vst.msk [vmem:[#allocation3 + $0x28] sm:$0xff] %vm1015_vm15, %v1383_v20 }
 0x137   : > { %v5044_v12 = vpop.f32.mrb[8].mxu1 }
 0x138   : > { %v1404_v21 = vadd.f32 %v5044_v12, %v1074_v36  ;;  %v1347_v22 = vpop.f32.mrb[9].mxu1 }
 0x139   : > { %5235 = vmatmul.mubr.msk.bf16.gmra.mrb[92].mxu0 %vm1168_vm6, %v7428_v3  ;;  %v1402_v3 = vadd.f32 %v1347_v22, %v1072_v5  ;;  %v5045_v38 = vpop.f32.mrb[10].mxu1  ;;  %v1831_v22 = vld [vmem:[#allocation3 + $0x10] sm:$0xff] }
 0x13a   : > { %5238 = vmatprep.mubr.msk.bf16.mxu0 %vm1168_vm6, %v7429_v0  ;;  %1436 = vst.msk [vmem:[#allocation3 + $0xd0] sm:$0xff] %vm1015_vm15, %v1404_v21  ;;  %v1405_v0 = vadd.f32 %v5045_v38, %v1075_v39  ;;  %v1350_v44 = vpop.f32.mrb[11].mxu1  ;;  %v1829_v38 = vld [vmem:[#allocation3] sm:$0xff] }
 0x13b   : > { %5201 = vmatmul.mubr.msk.bf16.gmra.mrb[92].mxu1 %vm1168_vm6, %v6323_v30  ;;  %1434 = vst.msk [vmem:[#allocation3 + $0xc0] sm:$0xff] %vm1015_vm15, %v1402_v3  ;;  %v1403_v14 = vadd.f32 %v1350_v44, %v1073_v2 }
 0x13c   : > { %5204 = vmatprep.mubr.msk.bf16.mxu1 %vm1168_vm6, %v6352_v35  ;;  %1437 = vst.msk [vmem:[#allocation3 + $0xd8] sm:$0xff] %vm1015_vm15, %v1405_v0 }
 0x13d   : > { %1435 = vst.msk [vmem:[#allocation3 + $0xc8] sm:$0xff] %vm1015_vm15, %v1403_v14  ;;  %v1832_v14 = vld [vmem:[#allocation3 + $0x18] sm:$0xff] }
 0x141   : > { %5239 = vmatmul.mubr.msk.bf16.gmra.mrb[96].mxu0 %vm1168_vm6, %v7430_v19  ;;  %v1058_v19 = vld [vmem:[#allocation3 + $0x50] sm:$0xff] }
 0x142   : > { %5242 = vmatprep.mubr.msk.bf16.mxu0 %vm1168_vm6, %v7431_v33  ;;  %v5028_v33 = vpop.f32.mrb[8].mxu0 }
 0x143   : > { %5205 = vmatmul.mubr.msk.bf16.gmra.mrb[96].mxu1 %vm1168_vm6, %v6380_v17  ;;  %v1388_v28 = vadd.f32 %v5028_v33, %v1058_v19  ;;  %v1283_v54 = vpop.f32.mrb[9].mxu0 }
 0x144   : > { %5208 = vmatprep.mubr.msk.bf16.mxu1 %vm1168_vm6, %v6408_v56  ;;  %v1386_v57 = vadd.f32 %v1283_v54, %v1056_v53  ;;  %v5029_v23 = vpop.f32.mrb[10].mxu0 }
 0x145   : > { %1420 = vst.msk [vmem:[#allocation3 + $0x50] sm:$0xff] %vm1015_vm15, %v1388_v28  ;;  %v1389_v25 = vadd.f32 %v5029_v23, %v1059_v59  ;;  %v1062_v59 = vld [vmem:[#allocation3 + $0x70] sm:$0xff] }
 0x146   : > { %1418 = vst.msk [vmem:[#allocation3 + $0x40] sm:$0xff] %vm1015_vm15, %v1386_v57 }
 0x147   : > { %1421 = vst.msk [vmem:[#allocation3 + $0x58] sm:$0xff] %vm1015_vm15, %v1389_v25  ;;  %v1061_v25 = vld [vmem:[#allocation3 + $0x68] sm:$0xff] }
 0x149   : > { %5243 = vmatmul.mubr.msk.bf16.gmra.mrb[100].mxu0 %vm1168_vm6, %v7432_v50  ;;  %v1286_v50 = vpop.f32.mrb[11].mxu0 }
 0x14a   : > { %5246 = vmatprep.mubr.msk.bf16.mxu0 %vm1168_vm6, %v7433_v18  ;;  %v1387_v24 = vadd.f32 %v1286_v50, %v1057_v15  ;;  %v6742_v18 = vld [vmem:[#allocation2 + $0xcc] sm:$0xf]  ;;  %v1063_v15 = vld [vmem:[#allocation3 + $0x78] sm:$0xff] }
 0x14b   : > { %5209 = vmatmul.mubr.msk.bf16.gmra.mrb[100].mxu1 %vm1168_vm6, %v6432_v8  ;;  %v5048_v63 = vpop.f32.mrb[12].mxu1 }
 0x14c   : > { %5212 = vmatprep.mubr.msk.bf16.mxu1 %vm1168_vm6, %v6462_v31  ;;  %1419 = vst.msk [vmem:[#allocation3 + $0x48] sm:$0xff] %vm1015_vm15, %v1387_v24  ;;  %v1408_v58 = vadd.f32 %v5048_v63, %v1078_v47  ;;  %v1363_v20 = vpop.f32.mrb[13].mxu1  ;;  %v1835_v63 = vld [vmem:[#allocation3 + $0x30] sm:$0xff] }
 0x14d   : > { %v1406_v36 = vadd.f32 %v1363_v20, %v1076_v45  ;;  %v5049_v5 = vpop.f32.mrb[14].mxu1 }
 0x14e   : > { %1440 = vst.msk [vmem:[#allocation3 + $0xf0] sm:$0xff] %vm1015_vm15, %v1408_v58  ;;  %v1409_v12 = vadd.f32 %v5049_v5, %v1079_v1  ;;  %v1366_v39 = vpop.f32.mrb[15].mxu1 }
 0x14f   : > { %1438 = vst.msk [vmem:[#allocation3 + $0xe0] sm:$0xff] %vm1015_vm15, %v1406_v36  ;;  %v1833_v36 = vld [vmem:[#allocation3 + $0x20] sm:$0xff] }
 0x150   : > { %1441 = vst.msk [vmem:[#allocation3 + $0xf8] sm:$0xff] %vm1015_vm15, %v1409_v12 }
 0x151   : > { %5247 = vmatmul.mubr.msk.bf16.gmra.mrb[104].mxu0 %vm1168_vm6, %v7434_v40  ;;  %v4767_v40 = vcombine.low %v6742_v18, %v6744_v52 }
 0x152   : > { %5250 = vmatprep.mubr.msk.bf16.mxu0 %vm1168_vm6, %v6658_v26  ;;  %v1077_v26 = vld [vmem:[#allocation3 + $0xe8] sm:$0xff] }
 0x153   : > { %5213 = vmatmul.mubr.msk.bf16.gmra.mrb[104].mxu1 %vm1168_vm6, %v6493_v55  ;;  %v1407_v21 = vadd.f32 %v1366_v39, %v1077_v26  ;;  %v5054_v2 = vpop.f32.mrb[16].mxu1 }
 0x154   : > { %5216 = vmatprep.mubr.msk.bf16.mxu1 %vm1168_vm6, %v6539_v32  ;;  %v2129_v3 = vadd.f32 %v5054_v2, %v1831_v22  ;;  %v2000_v0 = vpop.f32.mrb[17].mxu1 }
 0x155   : > { %1439 = vst.msk [vmem:[#allocation3 + $0xe8] sm:$0xff] %vm1015_vm15, %v1407_v21  ;;  %v2127_v44 = vadd.f32 %v2000_v0, %v1829_v38  ;;  %v5055_v19 = vpop.f32.mrb[18].mxu1  ;;  %v1834_v38 = vld [vmem:[#allocation3 + $0x28] sm:$0xff] }
 0x156   : > { %2161 = vst.msk [vmem:[#allocation3 + $0x10] sm:$0xff] %vm1015_vm15, %v2129_v3  ;;  %v2130_v53 = vadd.f32 %v5055_v19, %v1832_v14  ;;  %v2003_v33 = vpop.f32.mrb[19].mxu1 }
 0x157   : > { %2159 = vst.msk [vmem:[#allocation3] sm:$0xff] %vm1015_vm15, %v2127_v44 }
 0x158   : > { %2162 = vst.msk [vmem:[#allocation3 + $0x18] sm:$0xff] %vm1015_vm15, %v2130_v53 }
 0x159   : > { %5251 = vmatmul.mubr.msk.bf16.gmra.mrb[108].mxu0 %vm1168_vm6, %v4767_v40 }
 0x15a   : > { %5290 = vmatprep.mubr.msk.bf16.mxu0 %vm1168_vm6, %v6137_v37  ;;  %v1830_v37 = vld [vmem:[#allocation3 + $0x8] sm:$0xff]  ;;  %v5032_v54 = vpop.f32.mrb[12].mxu0 }
 0x15b   : > { %5217 = vmatmul.mubr.msk.bf16.gmra.mrb[108].mxu1 %vm1168_vm6, %v6600_v34  ;;  %v2128_v28 = vadd.f32 %v2003_v33, %v1830_v37  ;;  %v1392_v57 = vadd.f32 %v5032_v54, %v1062_v59  ;;  %v1299_v23 = vpop.f32.mrb[13].mxu0 }
 0x15c   : > { %5256 = vmatprep.mubr.msk.bf16.mxu1 %vm1168_vm6, %v6150_v42  ;;  %v1060_v42 = vld [vmem:[#allocation3 + $0x60] sm:$0xff]  ;;  %v5033_v50 = vpop.f32.mrb[14].mxu0 }
 0x15d   : > { %2160 = vst.msk [vmem:[#allocation3 + $0x8] sm:$0xff] %vm1015_vm15, %v2128_v28  ;;  %1424 = vst.msk [vmem:[#allocation3 + $0x70] sm:$0xff] %vm1015_vm15, %v1392_v57  ;;  %v1393_v24 = vadd.f32 %v5033_v50, %v1063_v15  ;;  %v1302_v47 = vpop.f32.mrb[15].mxu0  ;;  %v1837_v57 = vld [vmem:[#allocation3 + $0x40] sm:$0xff] }
 0x15e   : > { %v2322_v45 = vld [vmem:[#allocation3] sm:$0xff] }
 0x15f   : > { %1425 = vst.msk [vmem:[#allocation3 + $0x78] sm:$0xff] %vm1015_vm15, %v1393_v24  ;;  %v2325_v40 = vld [vmem:[#allocation3 + $0x18] sm:$0xff] }
 0x161   : > { %5291 = vmatmul.mubr.msk.bf16.vlgmr.msra.gmra.mrb[112].mxu0 %vm1168_vm6, %v6174_v11  ;;  %v1390_v11 = vadd.f32 %v1299_v23, %v1060_v42  ;;  %v1839_v42 = vld [vmem:[#allocation3 + $0x50] sm:$0xff] }
 0x162   : > { %5294 = vmatprep.mubr.msk.bf16.mxu0 %vm1168_vm6, %v6211_v43  ;;  %v1391_v43 = vadd.f32 %v1302_v47, %v1061_v25  ;;  %v5058_v1 = vpop.f32.mrb[20].mxu1 }
 0x163   : > { %5257 = vmatmul.mubr.msk.bf16.vlgmr.msra.gmra.mrb[112].mxu1 %vm1168_vm6, %v6172_v7  ;;  %1422 = vst.msk [vmem:[#allocation3 + $0x60] sm:$0xff] %vm1015_vm15, %v1390_v11  ;;  %v2324_v7 = vld [vmem:[#allocation3 + $0x10] sm:$0xff]  ;;  %v2133_v20 = vadd.f32 %v5058_v1, %v1835_v63  ;;  %v2016_v5 = vpop.f32.mrb[21].mxu1 }
 0x164   : > { %5260 = vmatprep.mubr.msk.bf16.mxu1 %vm1168_vm6, %v6209_v49  ;;  %1423 = vst.msk [vmem:[#allocation3 + $0x68] sm:$0xff] %vm1015_vm15, %v1391_v43  ;;  %v5088_v49 = vpop.f32.mrb[16].mxu0  ;;  %v2323_v12 = vld [vmem:[#allocation3 + $0x8] sm:$0xff]  ;;  %v2131_v39 = vadd.f32 %v2016_v5, %v1833_v36  ;;  %v5059_v22 = vpop.f32.mrb[22].mxu1 }
 0x165   : > { %v2622_v58 = vadd.f32 %v5088_v49, %v2324_v7  ;;  %v2493_v26 = vpop.f32.mrb[17].mxu0  ;;  %2165 = vst.msk [vmem:[#allocation3 + $0x30] sm:$0xff] %vm1015_vm15, %v2133_v20  ;;  %v2019_v0 = vpop.f32.mrb[23].mxu1  ;;  %v1838_v43 = vld [vmem:[#allocation3 + $0x48] sm:$0xff]  ;;  %v1843_v20 = vld [vmem:[#allocation3 + $0x70] sm:$0xff] }
 0x166   : > { %v5089_v21 = vpop.f32.mrb[18].mxu0  ;;  %2163 = vst.msk [vmem:[#allocation3 + $0x20] sm:$0xff] %vm1015_vm15, %v2131_v39 }
 0x167   : > { %2654 = vst.msk [vmem:[#allocation3 + $0x10] sm:$0xff] %vm1015_vm15, %v2622_v58  ;;  %v2623_v2 = vadd.f32 %v5089_v21, %v2325_v40  ;;  %v2496_v3 = vpop.f32.mrb[19].mxu0 }
 0x168   : > { %v2621_v44 = vadd.f32 %v2496_v3, %v2323_v12  ;;  %v3812_v12 = vshll.u32 %v6742_v18, 16  ;;  %v1844_v3 = vld [vmem:[#allocation3 + $0x78] sm:$0xff] }
 0x169   : > { %5295 = vmatmul.mubr.msk.bf16.gmra.mrb[116].mxu0 %vm1168_vm6, %v6241_v46  ;;  %v2620_v46 = vadd.f32 %v2493_v26, %v2322_v45  ;;  %2655 = vst.msk [vmem:[#allocation3 + $0x18] sm:$0xff] %vm1015_vm15, %v2623_v2  ;;  %v3822_v2 = vshrl.u32 %v6744_v52, 16 }
 0x16a   : > { %5298 = vmatprep.mubr.msk.bf16.mxu0 %vm1168_vm6, %v6272_v4  ;;  %v1836_v4 = vld [vmem:[#allocation3 + $0x38] sm:$0xff]  ;;  %2653 = vst.msk [vmem:[#allocation3 + $0x8] sm:$0xff] %vm1015_vm15, %v2621_v44  ;;  %v5092_v14 = vpop.f32.mrb[20].mxu0  ;;  %v3818_v44 = vshll.u32 %v6744_v52, 16 }
 0x16b   : > { %5261 = vmatmul.mubr.msk.bf16.gmra.mrb[116].mxu1 %vm1168_vm6, %v6239_v41  ;;  %v2134_v41 = vadd.f32 %v5059_v22, %v1836_v4  ;;  %2652 = vst.msk [vmem:[#allocation3] sm:$0xff] %vm1015_vm15, %v2620_v46  ;;  %v2509_v19 = vpop.f32.mrb[21].mxu0  ;;  %v1841_v46 = vld [vmem:[#allocation3 + $0x60] sm:$0xff] }
 0x16c   : > { %5264 = vmatprep.mubr.msk.bf16.mxu1 %vm1168_vm6, %v6268_v29  ;;  %v2132_v29 = vadd.f32 %v2019_v0, %v1834_v38  ;;  %v2328_v53 = vld [vmem:[#allocation3 + $0x30] sm:$0xff]  ;;  %v5093_v37 = vpop.f32.mrb[22].mxu0 }
 0x16d   : > { %2166 = vst.msk [vmem:[#allocation3 + $0x38] sm:$0xff] %vm1015_vm15, %v2134_v41  ;;  %v2626_v33 = vadd.f32 %v5092_v14, %v2328_v53  ;;  %v2326_v59 = vld [vmem:[#allocation3 + $0x20] sm:$0xff]  ;;  %v2512_v28 = vpop.f32.mrb[23].mxu0  ;;  %v7435_v41 = vld [vmem:[#allocation9_spill] sm:$0xff] }
 0x16e   : > { %2164 = vst.msk [vmem:[#allocation3 + $0x28] sm:$0xff] %vm1015_vm15, %v2132_v29  ;;  %v2624_v15 = vadd.f32 %v2509_v19, %v2326_v59  ;;  %v1842_v14 = vld [vmem:[#allocation3 + $0x68] sm:$0xff]  ;;  %v3814_v59 = vrot.slane %v3812_v12, 5 }
 0x16f   : > { %2658 = vst.msk [vmem:[#allocation3 + $0x30] sm:$0xff] %vm1015_vm15, %v2626_v33 }
 0x170   : > { %v5062_v54 = vpop.f32.mrb[24].mxu1  ;;  %2656 = vst.msk [vmem:[#allocation3 + $0x20] sm:$0xff] %vm1015_vm15, %v2624_v15  ;;  %v4107_v15 = vrot.slane %v6744_v52, 5 }
 0x171   : > { %5299 = vmatmul.mubr.msk.bf16.gmra.mrb[120].mxu0 %vm1168_vm6, %v6302_v9  ;;  %v2032_v23 = vpop.f32.mrb[25].mxu1 }
 0x172   : > { %5302 = vmatprep.mubr.msk.bf16.mxu0 %vm1168_vm6, %v6323_v30  ;;  %v2137_v30 = vadd.f32 %v5062_v54, %v1839_v42  ;;  %v2135_v11 = vadd.f32 %v2032_v23, %v1837_v57  ;;  %v5063_v50 = vpop.f32.mrb[26].mxu1  ;;  %v5096_v49 = vpop.f32.mrb[24].mxu0  ;;  %v3824_v42 = vrot.slane %v3822_v2, 4  ;;  %v1014_v54 = vld [vmem:[#allocation2 + $0xd4] sm:$0x1]  ;;  %v1847_v23 = vld [vmem:[#allocation3 + $0x90] sm:$0xff] }
 0x173   : > { %5265 = vmatmul.mubr.msk.bf16.gmra.mrb[120].mxu1 %vm1168_vm6, %v6309_v10  ;;  %v2035_v7 = vpop.f32.mrb[27].mxu1 }
 0x174   : > { %5268 = vmatprep.mubr.msk.bf16.mxu1 %vm1168_vm6, %v6329_v13  ;;  %v2329_v9 = vld [vmem:[#allocation3 + $0x38] sm:$0xff]  ;;  %2169 = vst.msk [vmem:[#allocation3 + $0x50] sm:$0xff] %vm1015_vm15, %v2137_v30  ;;  %2167 = vst.msk [vmem:[#allocation3 + $0x40] sm:$0xff] %vm1015_vm15, %v2135_v11  ;;  %v2136_v45 = vadd.f32 %v2035_v7, %v1838_v43  ;;  %v3828_v11 = vshll.u32 %v1014_v54, 16  ;;  %v4805_v43 = vrot.slane %v6742_v18, 9 }
 0x175   : > { %v2627_v25 = vadd.f32 %v5093_v37, %v2329_v9  ;;  %v2327_v10 = vld [vmem:[#allocation3 + $0x28] sm:$0xff]  ;;  %v1840_v13 = vld [vmem:[#allocation3 + $0x58] sm:$0xff] }
 0x176   : > { %v2625_v24 = vadd.f32 %v2512_v28, %v2327_v10  ;;  %v2138_v47 = vadd.f32 %v5063_v50, %v1840_v13  ;;  %2168 = vst.msk [vmem:[#allocation3 + $0x48] sm:$0xff] %vm1015_vm15, %v2136_v45  ;;  %v3820_v28 = vrot.slane %v3818_v44, 5 }
 0x177   : > { %2659 = vst.msk [vmem:[#allocation3 + $0x38] sm:$0xff] %vm1015_vm15, %v2627_v25 }
 0x178   : > { %2657 = vst.msk [vmem:[#allocation3 + $0x28] sm:$0xff] %vm1015_vm15, %v2625_v24  ;;  %2170 = vst.msk [vmem:[#allocation3 + $0x58] sm:$0xff] %vm1015_vm15, %v2138_v47  ;;  %v3825_v10 = vor.u32 %v3824_v42, %v3820_v28 }
 0x179   : > { %5303 = vmatmul.mubr.msk.bf16.gmra.mrb[124].mxu0 %vm1168_vm6, %v6352_v35  ;;  %v2525_v35 = vpop.f32.mrb[25].mxu0 }
 0x17a   : > { %5306 = vmatprep.mubr.msk.bf16.mxu0 %vm1168_vm6, %v6380_v17  ;;  %v5097_v63 = vpop.f32.mrb[26].mxu0 }
 0x17b   : > { %5269 = vmatmul.mubr.msk.bf16.gmra.mrb[124].mxu1 %vm1168_vm6, %v6354_v6  ;;  %v2528_v1 = vpop.f32.mrb[27].mxu0  ;;  %v2332_v40 = vld [vmem:[#allocation3 + $0x50] sm:$0xff]  ;;  %v2330_v17 = vld [vmem:[#allocation3 + $0x40] sm:$0xff] }
 0x17c   : > { %5272 = vmatprep.mubr.msk.bf16.mxu1 %vm1168_vm6, %v6374_v51  ;;  %v2630_v58 = vadd.f32 %v5096_v49, %v2332_v40  ;;  %v2628_v36 = vadd.f32 %v2525_v35, %v2330_v17  ;;  %v5100_v5 = vpop.f32.mrb[28].mxu0  ;;  %v3809_v51 = vshrl.u32 %v6742_v18, 16  ;;  %v1848_v49 = vld [vmem:[#allocation3 + $0x98] sm:$0xff] }
 0x17d   : > { %v2331_v4 = vld [vmem:[#allocation3 + $0x48] sm:$0xff]  ;;  %v2541_v22 = vpop.f32.mrb[29].mxu0 }
 0x17e   : > { %v5066_v26 = vpop.f32.mrb[28].mxu1  ;;  %2662 = vst.msk [vmem:[#allocation3 + $0x50] sm:$0xff] %vm1015_vm15, %v2630_v58  ;;  %2660 = vst.msk [vmem:[#allocation3 + $0x40] sm:$0xff] %vm1015_vm15, %v2628_v36  ;;  %v2629_v0 = vadd.f32 %v2528_v1, %v2331_v4  ;;  %v3811_v33 = vrot.slane %v3809_v51, 4  ;;  %v4110_v1 = vrot.slane %v1014_v54, 5  ;;  %v3830_v51 = vrot.slane %v3828_v11, 5 }
 0x17f   : > { %v2333_v6 = vld [vmem:[#allocation3 + $0x58] sm:$0xff]  ;;  %v2048_v39 = vpop.f32.mrb[29].mxu1  ;;  %v1851_v4 = vld [vmem:[#allocation3 + $0xb0] sm:$0xff] }
 0x180   : > { %v2631_v21 = vadd.f32 %v5097_v63, %v2333_v6  ;;  %v5067_v38 = vpop.f32.mrb[30].mxu1  ;;  %2661 = vst.msk [vmem:[#allocation3 + $0x48] sm:$0xff] %vm1015_vm15, %v2629_v0  ;;  %v3815_v9 = vor.u32 %v3814_v59, %v3811_v33  ;;  %v4109_v63 = vrot.slane %v4107_v15, 4  ;;  %v1850_v33 = vld [vmem:[#allocation3 + $0xa8] sm:$0xff] }
 0x181   : > { %5307 = vmatmul.mubr.msk.bf16.gmra.mrb[128].mxu0 %vm1168_vm6, %v6408_v56  ;;  %v2141_v56 = vadd.f32 %v5066_v26, %v1843_v20  ;;  %v2142_v29 = vadd.f32 %v5067_v38, %v1844_v3  ;;  %v2051_v19 = vpop.f32.mrb[31].mxu1  ;;  %v1846_v20 = vld [vmem:[#allocation3 + $0x88] sm:$0xff]  ;;  %v1849_v38 = vld [vmem:[#allocation3 + $0xa0] sm:$0xff] }
 0x182   : > { %5310 = vmatprep.mubr.msk.bf16.mxu0 %vm1168_vm6, %v6432_v8  ;;  %v2139_v8 = vadd.f32 %v2048_v39, %v1841_v46  ;;  %2663 = vst.msk [vmem:[#allocation3 + $0x58] sm:$0xff] %vm1015_vm15, %v2631_v21  ;;  %v2140_v37 = vadd.f32 %v2051_v19, %v1842_v14  ;;  %v3816_v36 = vrot.slane %v3815_v9, 4  ;;  %v4111_v46 = vsel %vm5968_vm14, %v4109_v63, %v4110_v1 }
 0x183   : > { %5273 = vmatmul.mubr.msk.bf16.gmra.mrb[128].mxu1 %vm1168_vm6, %v6401_v16  ;;  %v5101_v16 = vpop.f32.mrb[30].mxu0  ;;  %2173 = vst.msk [vmem:[#allocation3 + $0x70] sm:$0xff] %vm1015_vm15, %v2141_v56  ;;  %2174 = vst.msk [vmem:[#allocation3 + $0x78] sm:$0xff] %vm1015_vm15, %v2142_v29  ;;  %v4108_v56 = vsel %vm5968_vm14, %v4805_v43, %v4107_v15  ;;  %v1852_v29 = vld [vmem:[#allocation3 + $0xb8] sm:$0xff] }
 0x184   : > { %5276 = vmatprep.mubr.msk.bf16.mxu1 %vm1168_vm6, %v7435_v41  ;;  %v2544_v53 = vpop.f32.mrb[31].mxu0  ;;  %2171 = vst.msk [vmem:[#allocation3 + $0x60] sm:$0xff] %vm1015_vm15, %v2139_v8  ;;  %2172 = vst.msk [vmem:[#allocation3 + $0x68] sm:$0xff] %vm1015_vm15, %v2140_v37  ;;  %v4808_v21 = vcombine.low %v4108_v56, %v4111_v46  ;;  %v1857_v46 = vld [vmem:[#allocation3 + $0xe0] sm:$0xff] }
 0x188   : > { %v5104_v30 = vpop.f32.mrb[32].mxu0 }
 0x189   : > { %5311 = vmatmul.mubr.msk.bf16.gmra.mrb[132].mxu0 %vm1168_vm6, %v6462_v31  ;;  %v5070_v25 = vpop.f32.mrb[32].mxu1  ;;  %v2557_v31 = vpop.f32.mrb[33].mxu0 }
 0x18a   : > { %5314 = vmatprep.mubr.msk.bf16.mxu0 %vm1168_vm6, %v6493_v55  ;;  %v2336_v57 = vld [vmem:[#allocation3 + $0x70] sm:$0xff]  ;;  %v2145_v50 = vadd.f32 %v5070_v25, %v1847_v23  ;;  %v1845_v55 = vld [vmem:[#allocation3 + $0x80] sm:$0xff]  ;;  %v2064_v47 = vpop.f32.mrb[33].mxu1  ;;  %v5105_v52 = vpop.f32.mrb[34].mxu0  ;;  %v2337_v45 = vld [vmem:[#allocation3 + $0x78] sm:$0xff] }
 0x18b   : > { %5277 = vmatmul.mubr.msk.bf16.gmra.mrb[132].mxu1 %vm1168_vm6, %v6460_v27  ;;  %v2634_v13 = vadd.f32 %v5100_v5, %v2336_v57  ;;  %v2334_v24 = vld [vmem:[#allocation3 + $0x60] sm:$0xff]  ;;  %v2143_v7 = vadd.f32 %v2064_v47, %v1845_v55  ;;  %v5071_v35 = vpop.f32.mrb[34].mxu1  ;;  %v2635_v40 = vadd.f32 %v5101_v16, %v2337_v45  ;;  %v2335_v17 = vld [vmem:[#allocation3 + $0x68] sm:$0xff]  ;;  %v3826_v5 = vrot.slane %v3825_v10, 4  ;;  %v1855_v23 = vld [vmem:[#allocation3 + $0xd0] sm:$0xff] }
 0x18c   : > { %5280 = vmatprep.mubr.msk.bf16.mxu1 %vm1168_vm6, %v6491_v48  ;;  %v2632_v27 = vadd.f32 %v2541_v22, %v2334_v24  ;;  %v2560_v48 = vpop.f32.mrb[35].mxu0  ;;  %2177 = vst.msk [vmem:[#allocation3 + $0x90] sm:$0xff] %vm1015_vm15, %v2145_v50  ;;  %v2146_v58 = vadd.f32 %v5071_v35, %v1848_v49  ;;  %v2067_v26 = vpop.f32.mrb[35].mxu1  ;;  %v2633_v18 = vadd.f32 %v2544_v53, %v2335_v17  ;;  %v1853_v50 = vld [vmem:[#allocation3 + $0xc0] sm:$0xff] }
 0x18d   : > { %2666 = vst.msk [vmem:[#allocation3 + $0x70] sm:$0xff] %vm1015_vm15, %v2634_v13  ;;  %2175 = vst.msk [vmem:[#allocation3 + $0x80] sm:$0xff] %vm1015_vm15, %v2143_v7  ;;  %v2144_v6 = vadd.f32 %v2067_v26, %v1846_v20  ;;  %v3831_v39 = vsel %vm5926_vm13, %v3826_v5, %v3830_v51 }
 0x18e   : > { %2664 = vst.msk [vmem:[#allocation3 + $0x60] sm:$0xff] %vm1015_vm15, %v2632_v27  ;;  %2667 = vst.msk [vmem:[#allocation3 + $0x78] sm:$0xff] %vm1015_vm15, %v2635_v40  ;;  %v1856_v27 = vld [vmem:[#allocation3 + $0xd8] sm:$0xff] }
 0x18f   : > { %2178 = vst.msk [vmem:[#allocation3 + $0x98] sm:$0xff] %vm1015_vm15, %v2146_v58  ;;  %2665 = vst.msk [vmem:[#allocation3 + $0x68] sm:$0xff] %vm1015_vm15, %v2633_v18  ;;  %v1859_v18 = vld [vmem:[#allocation3 + $0xf0] sm:$0xff] }
 0x190   : > { %2176 = vst.msk [vmem:[#allocation3 + $0x88] sm:$0xff] %vm1015_vm15, %v2144_v6 }
 0x191   : > { %5315 = vmatmul.mubr.msk.bf16.gmra.mrb[136].mxu0 %vm1168_vm6, %v6539_v32  ;;  %v3821_v32 = vsel %vm5926_vm13, %v3816_v36, %v3820_v28 }
 0x192   : > { %5318 = vmatprep.mubr.msk.bf16.mxu0 %vm1168_vm6, %v6600_v34  ;;  %v4787_v2 = vcombine.low %v3821_v32, %v3831_v39 }
 0x193   : > { %5281 = vmatmul.mubr.msk.bf16.gmra.mrb[136].mxu1 %vm1168_vm6, %v6543_v60  ;;  %v2340_v34 = vld [vmem:[#allocation3 + $0x90] sm:$0xff] }
 0x194   : > { %5284 = vmatprep.mubr.msk.bf16.mxu1 %vm1168_vm6, %v6653_v62  ;;  %v2638_v41 = vadd.f32 %v5104_v30, %v2340_v34  ;;  %v2338_v3 = vld [vmem:[#allocation3 + $0x80] sm:$0xff] }
 0x195   : > { %v5074_v22 = vpop.f32.mrb[36].mxu1  ;;  %v2636_v16 = vadd.f32 %v2557_v31, %v2338_v3  ;;  %v1858_v3 = vld [vmem:[#allocation3 + $0xe8] sm:$0xff] }
 0x196   : > { %v2149_v8 = vadd.f32 %v5074_v22, %v1851_v4  ;;  %v2080_v0 = vpop.f32.mrb[37].mxu1  ;;  %v5108_v60 = vpop.f32.mrb[36].mxu0  ;;  %v2341_v62 = vld [vmem:[#allocation3 + $0x98] sm:$0xff]  ;;  %2670 = vst.msk [vmem:[#allocation3 + $0x90] sm:$0xff] %vm1015_vm15, %v2638_v41 }
 0x197   : > { %v2147_v44 = vadd.f32 %v2080_v0, %v1849_v38  ;;  %v5075_v14 = vpop.f32.mrb[38].mxu1  ;;  %v2573_v19 = vpop.f32.mrb[37].mxu0  ;;  %v2639_v61 = vadd.f32 %v5105_v52, %v2341_v62  ;;  %v2339_v37 = vld [vmem:[#allocation3 + $0x88] sm:$0xff]  ;;  %2668 = vst.msk [vmem:[#allocation3 + $0x80] sm:$0xff] %vm1015_vm15, %v2636_v16  ;;  %v1860_v22 = vld [vmem:[#allocation3 + $0xf8] sm:$0xff] }
 0x198   : > { %2181 = vst.msk [vmem:[#allocation3 + $0xb0] sm:$0xff] %vm1015_vm15, %v2149_v8  ;;  %v2150_v53 = vadd.f32 %v5075_v14, %v1852_v29  ;;  %v2083_v59 = vpop.f32.mrb[39].mxu1  ;;  %v5109_v28 = vpop.f32.mrb[38].mxu0  ;;  %v2637_v42 = vadd.f32 %v2560_v48, %v2339_v37  ;;  %v1854_v48 = vld [vmem:[#allocation3 + $0xc8] sm:$0xff] }
 0x199   : > { %5319 = vmatmul.mubr.msk.bf16.gmra.mrb[140].mxu0 %vm1168_vm6, %v4808_v21  ;;  %2179 = vst.msk [vmem:[#allocation3 + $0xa0] sm:$0xff] %vm1015_vm15, %v2147_v44  ;;  %v2148_v54 = vadd.f32 %v2083_v59, %v1850_v33  ;;  %v2576_v15 = vpop.f32.mrb[39].mxu0  ;;  %2671 = vst.msk [vmem:[#allocation3 + $0x98] sm:$0xff] %vm1015_vm15, %v2639_v61  ;;  %v2686_v44 = vld [vmem:[#allocation3 + $0x10] sm:$0xff]  ;;  %v2687_v59 = vld [vmem:[#allocation3 + $0x18] sm:$0xff] }
 0x19a   : > { %2182 = vst.msk [vmem:[#allocation3 + $0xb8] sm:$0xff] %vm1015_vm15, %v2150_v53  ;;  %2669 = vst.msk [vmem:[#allocation3 + $0x88] sm:$0xff] %vm1015_vm15, %v2637_v42 }
 0x19b   : > { %5285 = vmatmul.mubr.msk.bf16.gmra.mrb[140].mxu1 %vm1168_vm6, %v4787_v2  ;;  %2180 = vst.msk [vmem:[#allocation3 + $0xa8] sm:$0xff] %vm1015_vm15, %v2148_v54 }
 0x19f   : > { %v2344_v9 = vld [vmem:[#allocation3 + $0xb0] sm:$0xff] }
 0x1a0   : > { %v2642_v30 = vadd.f32 %v5108_v60, %v2344_v9  ;;  %v2342_v57 = vld [vmem:[#allocation3 + $0xa0] sm:$0xff]  ;;  %v2685_v9 = vld [vmem:[#allocation3 + $0x8] sm:$0xff] }
 0x1a1   : > { %v2640_v10 = vadd.f32 %v2573_v19, %v2342_v57  ;;  %v2345_v11 = vld [vmem:[#allocation3 + $0xb8] sm:$0xff]  ;;  %v2684_v19 = vld [vmem:[#allocation3] sm:$0xff] }
 0x1a2   : > { %v5078_v25 = vpop.f32.mrb[40].mxu1  ;;  %v5112_v31 = vpop.f32.mrb[40].mxu0  ;;  %2674 = vst.msk [vmem:[#allocation3 + $0xb0] sm:$0xff] %vm1015_vm15, %v2642_v30  ;;  %v2643_v55 = vadd.f32 %v5109_v28, %v2345_v11  ;;  %v2343_v47 = vld [vmem:[#allocation3 + $0xa8] sm:$0xff] }
 0x1a3   : > { %v2153_v13 = vadd.f32 %v5078_v25, %v1855_v23  ;;  %v2096_v24 = vpop.f32.mrb[41].mxu1  ;;  %v2589_v52 = vpop.f32.mrb[41].mxu0  ;;  %2672 = vst.msk [vmem:[#allocation3 + $0xa0] sm:$0xff] %vm1015_vm15, %v2640_v10  ;;  %v2641_v45 = vadd.f32 %v2576_v15, %v2343_v47 }
 0x1a4   : > { %v2151_v43 = vadd.f32 %v2096_v24, %v1853_v50  ;;  %v5079_v7 = vpop.f32.mrb[42].mxu1  ;;  %v5113_v49 = vpop.f32.mrb[42].mxu0  ;;  %2675 = vst.msk [vmem:[#allocation3 + $0xb8] sm:$0xff] %vm1015_vm15, %v2643_v55  ;;  %v2690_v24 = vld [vmem:[#allocation3 + $0x30] sm:$0xff] }
 0x1a5   : > { %2185 = vst.msk [vmem:[#allocation3 + $0xd0] sm:$0xff] %vm1015_vm15, %v2153_v13  ;;  %v2154_v35 = vadd.f32 %v5079_v7, %v1856_v27  ;;  %v2099_v63 = vpop.f32.mrb[43].mxu1  ;;  %v2592_v1 = vpop.f32.mrb[43].mxu0  ;;  %2673 = vst.msk [vmem:[#allocation3 + $0xa8] sm:$0xff] %vm1015_vm15, %v2641_v45 }
 0x1a6   : > { %2183 = vst.msk [vmem:[#allocation3 + $0xc0] sm:$0xff] %vm1015_vm15, %v2151_v43  ;;  %v2152_v40 = vadd.f32 %v2099_v63, %v1854_v48  ;;  %v2688_v43 = vld [vmem:[#allocation3 + $0x20] sm:$0xff] }
 0x1a7   : > { %2186 = vst.msk [vmem:[#allocation3 + $0xd8] sm:$0xff] %vm1015_vm15, %v2154_v35  ;;  %v2691_v35 = vld [vmem:[#allocation3 + $0x38] sm:$0xff] }
 0x1a8   : > { %2184 = vst.msk [vmem:[#allocation3 + $0xc8] sm:$0xff] %vm1015_vm15, %v2152_v40 }
 0x1ac   : > { %v2348_v58 = vld [vmem:[#allocation3 + $0xd0] sm:$0xff]  ;;  %v5116_v17 = vpop.f32.mrb[44].mxu0 }
 0x1ad   : > { %v2646_v20 = vadd.f32 %v5112_v31, %v2348_v58  ;;  %v2346_v26 = vld [vmem:[#allocation3 + $0xc0] sm:$0xff]  ;;  %v2605_v36 = vpop.f32.mrb[45].mxu0  ;;  %v2689_v58 = vld [vmem:[#allocation3 + $0x28] sm:$0xff] }
 0x1ae   : > { %v5082_v6 = vpop.f32.mrb[44].mxu1  ;;  %v2644_v5 = vadd.f32 %v2589_v52, %v2346_v26  ;;  %v2349_v51 = vld [vmem:[#allocation3 + $0xd8] sm:$0xff]  ;;  %v5117_v12 = vpop.f32.mrb[46].mxu0 }
 0x1af   : > { %2678 = vst.msk [vmem:[#allocation3 + $0xd0] sm:$0xff] %vm1015_vm15, %v2646_v20  ;;  %v2157_v56 = vadd.f32 %v5082_v6, %v1859_v18  ;;  %v2112_v32 = vpop.f32.mrb[45].mxu1  ;;  %v2647_v39 = vadd.f32 %v5113_v49, %v2349_v51  ;;  %v2347_v21 = vld [vmem:[#allocation3 + $0xc8] sm:$0xff]  ;;  %v2608_v34 = vpop.f32.mrb[47].mxu0 }
 0x1b0   : > { %2676 = vst.msk [vmem:[#allocation3 + $0xc0] sm:$0xff] %vm1015_vm15, %v2644_v5  ;;  %v2155_v4 = vadd.f32 %v2112_v32, %v1857_v46  ;;  %v5083_v2 = vpop.f32.mrb[46].mxu1  ;;  %v2645_v41 = vadd.f32 %v2592_v1, %v2347_v21  ;;  %v2692_v21 = vld [vmem:[#allocation3 + $0x40] sm:$0xff] }
 0x1b1   : > { %2189 = vst.msk [vmem:[#allocation3 + $0xf0] sm:$0xff] %vm1015_vm15, %v2157_v56  ;;  %2679 = vst.msk [vmem:[#allocation3 + $0xd8] sm:$0xff] %vm1015_vm15, %v2647_v39  ;;  %v2158_v8 = vadd.f32 %v5083_v2, %v1860_v22  ;;  %v2115_v38 = vpop.f32.mrb[47].mxu1  ;;  %v2694_v56 = vld [vmem:[#allocation3 + $0x50] sm:$0xff] }
 0x1b2   : > { %2187 = vst.msk [vmem:[#allocation3 + $0xe0] sm:$0xff] %vm1015_vm15, %v2155_v4  ;;  %2677 = vst.msk [vmem:[#allocation3 + $0xc8] sm:$0xff] %vm1015_vm15, %v2645_v41  ;;  %v2156_v0 = vadd.f32 %v2115_v38, %v1858_v3  ;;  %v2695_v41 = vld [vmem:[#allocation3 + $0x58] sm:$0xff] }
 0x1b3   : > { %2190 = vst.msk [vmem:[#allocation3 + $0xf8] sm:$0xff] %vm1015_vm15, %v2158_v8 }
 0x1b4   : > { %2188 = vst.msk [vmem:[#allocation3 + $0xe8] sm:$0xff] %vm1015_vm15, %v2156_v0  ;;  %v5156_v60 = vpop.f32.mrb[48].mxu0 }
 0x1b5   : > { %v3063_v16 = vpop.f32.mrb[49].mxu0 }
 0x1b6   : > { %v5122_v62 = vpop.f32.mrb[48].mxu1  ;;  %v5157_v29 = vpop.f32.mrb[50].mxu0 }
 0x1b7   : > { %v2896_v14 = vadd.f32 %v5122_v62, %v2686_v44  ;;  %v2767_v61 = vpop.f32.mrb[49].mxu1  ;;  %v3066_v53 = vpop.f32.mrb[51].mxu0 }
 0x1b8   : > { %v2352_v37 = vld [vmem:[#allocation3 + $0xf0] sm:$0xff]  ;;  %v2894_v33 = vadd.f32 %v2767_v61, %v2684_v19  ;;  %v5123_v28 = vpop.f32.mrb[50].mxu1 }
 0x1b9   : > { %v2650_v42 = vadd.f32 %v5116_v17, %v2352_v37  ;;  %v2350_v54 = vld [vmem:[#allocation3 + $0xe0] sm:$0xff]  ;;  %2928 = vst.msk [vmem:[#allocation3 + $0x10] sm:$0xff] %vm1015_vm15, %v2896_v14  ;;  %v2897_v15 = vadd.f32 %v5123_v28, %v2687_v59  ;;  %v2770_v30 = vpop.f32.mrb[51].mxu1 }
 0x1ba   : > { %v2648_v57 = vadd.f32 %v2605_v36, %v2350_v54  ;;  %v2353_v23 = vld [vmem:[#allocation3 + $0xf8] sm:$0xff]  ;;  %2926 = vst.msk [vmem:[#allocation3] sm:$0xff] %vm1015_vm15, %v2894_v33  ;;  %v2895_v25 = vadd.f32 %v2770_v30, %v2685_v9  ;;  %v2698_v33 = vld [vmem:[#allocation3 + $0x70] sm:$0xff]  ;;  %v2696_v54 = vld [vmem:[#allocation3 + $0x60] sm:$0xff] }
 0x1bb   : > { %2682 = vst.msk [vmem:[#allocation3 + $0xf0] sm:$0xff] %vm1015_vm15, %v2650_v42  ;;  %v2651_v10 = vadd.f32 %v5117_v12, %v2353_v23  ;;  %v2351_v11 = vld [vmem:[#allocation3 + $0xe8] sm:$0xff]  ;;  %2929 = vst.msk [vmem:[#allocation3 + $0x18] sm:$0xff] %vm1015_vm15, %v2897_v15  ;;  %v2699_v23 = vld [vmem:[#allocation3 + $0x78] sm:$0xff] }
 0x1bc   : > { %2680 = vst.msk [vmem:[#allocation3 + $0xe0] sm:$0xff] %vm1015_vm15, %v2648_v57  ;;  %v2649_v31 = vadd.f32 %v2608_v34, %v2351_v11  ;;  %2927 = vst.msk [vmem:[#allocation3 + $0x8] sm:$0xff] %vm1015_vm15, %v2895_v25  ;;  %v5160_v13 = vpop.f32.mrb[52].mxu0 }
 0x1bd   : > { %2683 = vst.msk [vmem:[#allocation3 + $0xf8] sm:$0xff] %vm1015_vm15, %v2651_v10  ;;  %v3079_v50 = vpop.f32.mrb[53].mxu0 }
 0x1be   : > { %2681 = vst.msk [vmem:[#allocation3 + $0xe8] sm:$0xff] %vm1015_vm15, %v2649_v31  ;;  %v5126_v55 = vpop.f32.mrb[52].mxu1  ;;  %v5161_v47 = vpop.f32.mrb[54].mxu0 }
 0x1bf   : > { %v2900_v52 = vadd.f32 %v5126_v55, %v2690_v24  ;;  %v2783_v27 = vpop.f32.mrb[53].mxu1  ;;  %v3082_v7 = vpop.f32.mrb[55].mxu0 }
 0x1c0   : > { %v2984_v45 = vld [vmem:[#allocation3 + $0x10] sm:$0xff]  ;;  %v2898_v49 = vadd.f32 %v2783_v27, %v2688_v43  ;;  %v5127_v48 = vpop.f32.mrb[54].mxu1 }
 0x1c1   : > { %v3192_v63 = vadd.f32 %v5156_v60, %v2984_v45  ;;  %2932 = vst.msk [vmem:[#allocation3 + $0x30] sm:$0xff] %vm1015_vm15, %v2900_v52  ;;  %v2982_v1 = vld [vmem:[#allocation3] sm:$0xff]  ;;  %v2901_v40 = vadd.f32 %v5127_v48, %v2691_v35  ;;  %v2786_v17 = vpop.f32.mrb[55].mxu1  ;;  %v2693_v60 = vld [vmem:[#allocation3 + $0x48] sm:$0xff] }
 0x1c2   : > { %v3190_v20 = vadd.f32 %v3063_v16, %v2982_v1  ;;  %2930 = vst.msk [vmem:[#allocation3 + $0x20] sm:$0xff] %vm1015_vm15, %v2898_v49  ;;  %v2985_v26 = vld [vmem:[#allocation3 + $0x18] sm:$0xff]  ;;  %v2899_v36 = vadd.f32 %v2786_v17, %v2689_v58  ;;  %v2702_v49 = vld [vmem:[#allocation3 + $0x90] sm:$0xff]  ;;  %v2700_v1 = vld [vmem:[#allocation3 + $0x80] sm:$0xff] }
 0x1c3   : > { %3224 = vst.msk [vmem:[#allocation3 + $0x10] sm:$0xff] %vm1015_vm15, %v3192_v63  ;;  %v3193_v18 = vadd.f32 %v5157_v29, %v2985_v26  ;;  %2933 = vst.msk [vmem:[#allocation3 + $0x38] sm:$0xff] %vm1015_vm15, %v2901_v40  ;;  %v2983_v6 = vld [vmem:[#allocation3 + $0x8] sm:$0xff]  ;;  %v2703_v26 = vld [vmem:[#allocation3 + $0x98] sm:$0xff] }
 0x1c4   : > { %3222 = vst.msk [vmem:[#allocation3] sm:$0xff] %vm1015_vm15, %v3190_v20  ;;  %v3191_v5 = vadd.f32 %v3066_v53, %v2983_v6  ;;  %2931 = vst.msk [vmem:[#allocation3 + $0x28] sm:$0xff] %vm1015_vm15, %v2899_v36  ;;  %v5164_v51 = vpop.f32.mrb[56].mxu0 }
 0x1c5   : > { %3225 = vst.msk [vmem:[#allocation3 + $0x18] sm:$0xff] %vm1015_vm15, %v3193_v18  ;;  %v3095_v12 = vpop.f32.mrb[57].mxu0 }
 0x1c6   : > { %3223 = vst.msk [vmem:[#allocation3 + $0x8] sm:$0xff] %vm1015_vm15, %v3191_v5  ;;  %v5130_v46 = vpop.f32.mrb[56].mxu1  ;;  %v5165_v32 = vpop.f32.mrb[58].mxu0 }
 0x1c7   : > { %v2904_v39 = vadd.f32 %v5130_v46, %v2694_v56  ;;  %v2799_v34 = vpop.f32.mrb[57].mxu1  ;;  %v3098_v4 = vpop.f32.mrb[59].mxu0 }
 0x1c8   : > { %v2988_v22 = vld [vmem:[#allocation3 + $0x30] sm:$0xff]  ;;  %v2902_v2 = vadd.f32 %v2799_v34, %v2692_v21  ;;  %v5131_v8 = vpop.f32.mrb[58].mxu1 }
 0x1c9   : > { %v3196_v3 = vadd.f32 %v5160_v13, %v2988_v22  ;;  %2936 = vst.msk [vmem:[#allocation3 + $0x50] sm:$0xff] %vm1015_vm15, %v2904_v39  ;;  %v2986_v38 = vld [vmem:[#allocation3 + $0x20] sm:$0xff]  ;;  %v2905_v0 = vadd.f32 %v5131_v8, %v2695_v41  ;;  %v2802_v16 = vpop.f32.mrb[59].mxu1  ;;  %v2697_v13 = vld [vmem:[#allocation3 + $0x68] sm:$0xff] }
 0x1ca   : > { %v3194_v44 = vadd.f32 %v3079_v50, %v2986_v38  ;;  %2934 = vst.msk [vmem:[#allocation3 + $0x40] sm:$0xff] %vm1015_vm15, %v2902_v2  ;;  %v2989_v62 = vld [vmem:[#allocation3 + $0x38] sm:$0xff]  ;;  %v2903_v29 = vadd.f32 %v2802_v16, %v2693_v60  ;;  %v2706_v2 = vld [vmem:[#allocation3 + $0xb0] sm:$0xff]  ;;  %v2704_v38 = vld [vmem:[#allocation3 + $0xa0] sm:$0xff] }
 0x1cb   : > { %3228 = vst.msk [vmem:[#allocation3 + $0x30] sm:$0xff] %vm1015_vm15, %v3196_v3  ;;  %v3197_v14 = vadd.f32 %v5161_v47, %v2989_v62  ;;  %2937 = vst.msk [vmem:[#allocation3 + $0x58] sm:$0xff] %vm1015_vm15, %v2905_v0  ;;  %v2987_v19 = vld [vmem:[#allocation3 + $0x28] sm:$0xff]  ;;  %v2707_v62 = vld [vmem:[#allocation3 + $0xb8] sm:$0xff] }
 0x1cc   : > { %3226 = vst.msk [vmem:[#allocation3 + $0x20] sm:$0xff] %vm1015_vm15, %v3194_v44  ;;  %v3195_v61 = vadd.f32 %v3082_v7, %v2987_v19  ;;  %2935 = vst.msk [vmem:[#allocation3 + $0x48] sm:$0xff] %vm1015_vm15, %v2903_v29  ;;  %v5168_v53 = vpop.f32.mrb[60].mxu0 }
 0x1cd   : > { %3229 = vst.msk [vmem:[#allocation3 + $0x38] sm:$0xff] %vm1015_vm15, %v3197_v14  ;;  %v3111_v37 = vpop.f32.mrb[61].mxu0 }
 0x1ce   : > { %3227 = vst.msk [vmem:[#allocation3 + $0x28] sm:$0xff] %vm1015_vm15, %v3195_v61  ;;  %v5134_v59 = vpop.f32.mrb[60].mxu1  ;;  %v5169_v28 = vpop.f32.mrb[62].mxu0 }
 0x1cf   : > { %v2908_v42 = vadd.f32 %v5134_v59, %v2698_v33  ;;  %v2815_v15 = vpop.f32.mrb[61].mxu1  ;;  %v3114_v9 = vpop.f32.mrb[63].mxu0 }
 0x1d0   : > { %v2992_v30 = vld [vmem:[#allocation3 + $0x50] sm:$0xff]  ;;  %v2906_v57 = vadd.f32 %v2815_v15, %v2696_v54  ;;  %v5135_v25 = vpop.f32.mrb[62].mxu1 }
 0x1d1   : > { %v3200_v10 = vadd.f32 %v5164_v51, %v2992_v30  ;;  %2940 = vst.msk [vmem:[#allocation3 + $0x70] sm:$0xff] %vm1015_vm15, %v2908_v42  ;;  %v2990_v11 = vld [vmem:[#allocation3 + $0x40] sm:$0xff]  ;;  %v2909_v31 = vadd.f32 %v5135_v25, %v2699_v23  ;;  %v2818_v50 = vpop.f32.mrb[63].mxu1  ;;  %v2701_v51 = vld [vmem:[#allocation3 + $0x88] sm:$0xff] }
 0x1d2   : > { %v3198_v24 = vadd.f32 %v3095_v12, %v2990_v11  ;;  %2938 = vst.msk [vmem:[#allocation3 + $0x60] sm:$0xff] %vm1015_vm15, %v2906_v57  ;;  %v2993_v55 = vld [vmem:[#allocation3 + $0x58] sm:$0xff]  ;;  %v2907_v47 = vadd.f32 %v2818_v50, %v2697_v13  ;;  %v2710_v57 = vld [vmem:[#allocation3 + $0xd0] sm:$0xff]  ;;  %v2708_v11 = vld [vmem:[#allocation3 + $0xc0] sm:$0xff] }
 0x1d3   : > { %3232 = vst.msk [vmem:[#allocation3 + $0x50] sm:$0xff] %vm1015_vm15, %v3200_v10  ;;  %v3201_v52 = vadd.f32 %v5165_v32, %v2993_v55  ;;  %2941 = vst.msk [vmem:[#allocation3 + $0x78] sm:$0xff] %vm1015_vm15, %v2909_v31  ;;  %v2991_v43 = vld [vmem:[#allocation3 + $0x48] sm:$0xff]  ;;  %v2711_v55 = vld [vmem:[#allocation3 + $0xd8] sm:$0xff] }
 0x1d4   : > { %3230 = vst.msk [vmem:[#allocation3 + $0x40] sm:$0xff] %vm1015_vm15, %v3198_v24  ;;  %v3199_v27 = vadd.f32 %v3098_v4, %v2991_v43  ;;  %2939 = vst.msk [vmem:[#allocation3 + $0x68] sm:$0xff] %vm1015_vm15, %v2907_v47  ;;  %v5172_v7 = vpop.f32.mrb[64].mxu0 }
 0x1d5   : > { %3233 = vst.msk [vmem:[#allocation3 + $0x58] sm:$0xff] %vm1015_vm15, %v3201_v52  ;;  %v3127_v45 = vpop.f32.mrb[65].mxu0 }
 0x1d6   : > { %3231 = vst.msk [vmem:[#allocation3 + $0x48] sm:$0xff] %vm1015_vm15, %v3199_v27  ;;  %v5138_v35 = vpop.f32.mrb[64].mxu1  ;;  %v5173_v48 = vpop.f32.mrb[66].mxu0 }
 0x1d7   : > { %v2912_v63 = vadd.f32 %v5138_v35, %v2702_v49  ;;  %v2831_v40 = vpop.f32.mrb[65].mxu1  ;;  %v3130_v58 = vpop.f32.mrb[67].mxu0 }
 0x1d8   : > { %v2996_v17 = vld [vmem:[#allocation3 + $0x70] sm:$0xff]  ;;  %v2910_v20 = vadd.f32 %v2831_v40, %v2700_v1  ;;  %v5139_v36 = vpop.f32.mrb[66].mxu1 }
 0x1d9   : > { %v3204_v18 = vadd.f32 %v5168_v53, %v2996_v17  ;;  %2944 = vst.msk [vmem:[#allocation3 + $0x90] sm:$0xff] %vm1015_vm15, %v2912_v63  ;;  %v2994_v6 = vld [vmem:[#allocation3 + $0x60] sm:$0xff]  ;;  %v2913_v5 = vadd.f32 %v5139_v36, %v2703_v26  ;;  %v2834_v12 = vpop.f32.mrb[67].mxu1  ;;  %v2705_v53 = vld [vmem:[#allocation3 + $0xa8] sm:$0xff] }
 0x1da   : > { %v3202_v56 = vadd.f32 %v3111_v37, %v2994_v6  ;;  %2942 = vst.msk [vmem:[#allocation3 + $0x80] sm:$0xff] %vm1015_vm15, %v2910_v20  ;;  %v2997_v46 = vld [vmem:[#allocation3 + $0x78] sm:$0xff]  ;;  %v2911_v32 = vadd.f32 %v2834_v12, %v2701_v51  ;;  %v2714_v20 = vld [vmem:[#allocation3 + $0xf0] sm:$0xff]  ;;  %v2712_v6 = vld [vmem:[#allocation3 + $0xe0] sm:$0xff] }
 0x1db   : > { %3236 = vst.msk [vmem:[#allocation3 + $0x70] sm:$0xff] %vm1015_vm15, %v3204_v18  ;;  %v3205_v39 = vadd.f32 %v5169_v28, %v2997_v46  ;;  %2945 = vst.msk [vmem:[#allocation3 + $0x98] sm:$0xff] %vm1015_vm15, %v2913_v5  ;;  %v2995_v21 = vld [vmem:[#allocation3 + $0x68] sm:$0xff]  ;;  %v2715_v46 = vld [vmem:[#allocation3 + $0xf8] sm:$0xff] }
 0x1dc   : > { %3234 = vst.msk [vmem:[#allocation3 + $0x60] sm:$0xff] %vm1015_vm15, %v3202_v56  ;;  %v3203_v34 = vadd.f32 %v3114_v9, %v2995_v21  ;;  %2943 = vst.msk [vmem:[#allocation3 + $0x88] sm:$0xff] %vm1015_vm15, %v2911_v32  ;;  %v5176_v4 = vpop.f32.mrb[68].mxu0 }
 0x1dd   : > { %3237 = vst.msk [vmem:[#allocation3 + $0x78] sm:$0xff] %vm1015_vm15, %v3205_v39  ;;  %v3143_v22 = vpop.f32.mrb[69].mxu0 }
 0x1de   : > { %3235 = vst.msk [vmem:[#allocation3 + $0x68] sm:$0xff] %vm1015_vm15, %v3203_v34  ;;  %v5142_v41 = vpop.f32.mrb[68].mxu1  ;;  %v5177_v8 = vpop.f32.mrb[70].mxu0 }
 0x1df   : > { %v2916_v3 = vadd.f32 %v5142_v41, %v2706_v2  ;;  %v2847_v0 = vpop.f32.mrb[69].mxu1  ;;  %v3146_v60 = vpop.f32.mrb[71].mxu0 }
 0x1e0   : > { %v3000_v16 = vld [vmem:[#allocation3 + $0x90] sm:$0xff]  ;;  %v2914_v44 = vadd.f32 %v2847_v0, %v2704_v38  ;;  %v5143_v29 = vpop.f32.mrb[70].mxu1 }
 0x1e1   : > { %v3208_v14 = vadd.f32 %v5172_v7, %v3000_v16  ;;  %2948 = vst.msk [vmem:[#allocation3 + $0xb0] sm:$0xff] %vm1015_vm15, %v2916_v3  ;;  %v2998_v19 = vld [vmem:[#allocation3 + $0x80] sm:$0xff]  ;;  %v2917_v61 = vadd.f32 %v5143_v29, %v2707_v62  ;;  %v2850_v37 = vpop.f32.mrb[71].mxu1  ;;  %v2709_v7 = vld [vmem:[#allocation3 + $0xc8] sm:$0xff] }
 0x1e2   : > { %v3206_v33 = vadd.f32 %v3127_v45, %v2998_v19  ;;  %2946 = vst.msk [vmem:[#allocation3 + $0xa0] sm:$0xff] %vm1015_vm15, %v2914_v44  ;;  %v3001_v59 = vld [vmem:[#allocation3 + $0x98] sm:$0xff]  ;;  %v2915_v28 = vadd.f32 %v2850_v37, %v2705_v53  ;;  %v3264_v44 = vld [vmem:[#allocation3 + $0x10] sm:$0xff]  ;;  %v3262_v19 = vld [vmem:[#allocation3] sm:$0xff] }
 0x1e3   : > { %3240 = vst.msk [vmem:[#allocation3 + $0x90] sm:$0xff] %vm1015_vm15, %v3208_v14  ;;  %v3209_v42 = vadd.f32 %v5173_v48, %v3001_v59  ;;  %2949 = vst.msk [vmem:[#allocation3 + $0xb8] sm:$0xff] %vm1015_vm15, %v2917_v61  ;;  %v2999_v54 = vld [vmem:[#allocation3 + $0x88] sm:$0xff]  ;;  %v3265_v59 = vld [vmem:[#allocation3 + $0x18] sm:$0xff] }
 0x1e4   : > { %3238 = vst.msk [vmem:[#allocation3 + $0x80] sm:$0xff] %vm1015_vm15, %v3206_v33  ;;  %v3207_v15 = vadd.f32 %v3130_v58, %v2999_v54  ;;  %2947 = vst.msk [vmem:[#allocation3 + $0xa8] sm:$0xff] %vm1015_vm15, %v2915_v28  ;;  %v5180_v9 = vpop.f32.mrb[72].mxu0 }
 0x1e5   : > { %3241 = vst.msk [vmem:[#allocation3 + $0x98] sm:$0xff] %vm1015_vm15, %v3209_v42  ;;  %v3159_v30 = vpop.f32.mrb[73].mxu0 }
 0x1e6   : > { %3239 = vst.msk [vmem:[#allocation3 + $0x88] sm:$0xff] %vm1015_vm15, %v3207_v15  ;;  %v5146_v23 = vpop.f32.mrb[72].mxu1  ;;  %v5181_v25 = vpop.f32.mrb[74].mxu0 }
 0x1e7   : > { %v2920_v10 = vadd.f32 %v5146_v23, %v2710_v57  ;;  %v2863_v31 = vpop.f32.mrb[73].mxu1  ;;  %v3162_v13 = vpop.f32.mrb[75].mxu0 }
 0x1e8   : > { %v3004_v50 = vld [vmem:[#allocation3 + $0xb0] sm:$0xff]  ;;  %v2918_v24 = vadd.f32 %v2863_v31, %v2708_v11  ;;  %v5147_v47 = vpop.f32.mrb[74].mxu1 }
 0x1e9   : > { %v3212_v52 = vadd.f32 %v5176_v4, %v3004_v50  ;;  %2952 = vst.msk [vmem:[#allocation3 + $0xd0] sm:$0xff] %vm1015_vm15, %v2920_v10  ;;  %v3002_v43 = vld [vmem:[#allocation3 + $0xa0] sm:$0xff]  ;;  %v2921_v27 = vadd.f32 %v5147_v47, %v2711_v55  ;;  %v2866_v45 = vpop.f32.mrb[75].mxu1  ;;  %v2713_v4 = vld [vmem:[#allocation3 + $0xe8] sm:$0xff] }
 0x1ea   : > { %v3210_v49 = vadd.f32 %v3143_v22, %v3002_v43  ;;  %2950 = vst.msk [vmem:[#allocation3 + $0xc0] sm:$0xff] %vm1015_vm15, %v2918_v24  ;;  %v3005_v35 = vld [vmem:[#allocation3 + $0xb8] sm:$0xff]  ;;  %v2919_v48 = vadd.f32 %v2866_v45, %v2709_v7  ;;  %v3268_v24 = vld [vmem:[#allocation3 + $0x30] sm:$0xff]  ;;  %v3266_v43 = vld [vmem:[#allocation3 + $0x20] sm:$0xff] }
 0x1eb   : > { %3244 = vst.msk [vmem:[#allocation3 + $0xb0] sm:$0xff] %vm1015_vm15, %v3212_v52  ;;  %v3213_v63 = vadd.f32 %v5177_v8, %v3005_v35  ;;  %2953 = vst.msk [vmem:[#allocation3 + $0xd8] sm:$0xff] %vm1015_vm15, %v2921_v27  ;;  %v3003_v1 = vld [vmem:[#allocation3 + $0xa8] sm:$0xff]  ;;  %v3269_v35 = vld [vmem:[#allocation3 + $0x38] sm:$0xff] }
 0x1ec   : > { %3242 = vst.msk [vmem:[#allocation3 + $0xa0] sm:$0xff] %vm1015_vm15, %v3210_v49  ;;  %v3211_v40 = vadd.f32 %v3146_v60, %v3003_v1  ;;  %2951 = vst.msk [vmem:[#allocation3 + $0xc8] sm:$0xff] %vm1015_vm15, %v2919_v48  ;;  %v5184_v58 = vpop.f32.mrb[76].mxu0 }
 0x1ed   : > { %3245 = vst.msk [vmem:[#allocation3 + $0xb8] sm:$0xff] %vm1015_vm15, %v3213_v63  ;;  %v3175_v17 = vpop.f32.mrb[77].mxu0 }
 0x1ee   : > { %3243 = vst.msk [vmem:[#allocation3 + $0xa8] sm:$0xff] %vm1015_vm15, %v3211_v40  ;;  %v5150_v26 = vpop.f32.mrb[76].mxu1  ;;  %v5185_v36 = vpop.f32.mrb[78].mxu0 }
 0x1ef   : > { %v2924_v18 = vadd.f32 %v5150_v26, %v2714_v20  ;;  %v2879_v5 = vpop.f32.mrb[77].mxu1  ;;  %v3178_v51 = vpop.f32.mrb[79].mxu0 }
 0x1f0   : > { %v3008_v12 = vld [vmem:[#allocation3 + $0xd0] sm:$0xff]  ;;  %v2922_v56 = vadd.f32 %v2879_v5, %v2712_v6  ;;  %v5151_v32 = vpop.f32.mrb[78].mxu1 }
 0x1f1   : > { %v3216_v39 = vadd.f32 %v5180_v9, %v3008_v12  ;;  %2956 = vst.msk [vmem:[#allocation3 + $0xf0] sm:$0xff] %vm1015_vm15, %v2924_v18  ;;  %v3006_v21 = vld [vmem:[#allocation3 + $0xc0] sm:$0xff]  ;;  %v2925_v34 = vadd.f32 %v5151_v32, %v2715_v46  ;;  %v2882_v22 = vpop.f32.mrb[79].mxu1  ;;  %v3263_v9 = vld [vmem:[#allocation3 + $0x8] sm:$0xff] }
 0x1f2   : > { %v3214_v2 = vadd.f32 %v3159_v30, %v3006_v21  ;;  %2954 = vst.msk [vmem:[#allocation3 + $0xe0] sm:$0xff] %vm1015_vm15, %v2922_v56  ;;  %v3009_v41 = vld [vmem:[#allocation3 + $0xd8] sm:$0xff]  ;;  %v2923_v8 = vadd.f32 %v2882_v22, %v2713_v4  ;;  %v3272_v56 = vld [vmem:[#allocation3 + $0x50] sm:$0xff]  ;;  %v3270_v21 = vld [vmem:[#allocation3 + $0x40] sm:$0xff] }
 0x1f3   : > { %3248 = vst.msk [vmem:[#allocation3 + $0xd0] sm:$0xff] %vm1015_vm15, %v3216_v39  ;;  %v3217_v3 = vadd.f32 %v5181_v25, %v3009_v41  ;;  %2957 = vst.msk [vmem:[#allocation3 + $0xf8] sm:$0xff] %vm1015_vm15, %v2925_v34  ;;  %v3007_v38 = vld [vmem:[#allocation3 + $0xc8] sm:$0xff]  ;;  %v3273_v41 = vld [vmem:[#allocation3 + $0x58] sm:$0xff] }
 0x1f4   : > { %3246 = vst.msk [vmem:[#allocation3 + $0xc0] sm:$0xff] %vm1015_vm15, %v3214_v2  ;;  %v3215_v0 = vadd.f32 %v3162_v13, %v3007_v38  ;;  %2955 = vst.msk [vmem:[#allocation3 + $0xe8] sm:$0xff] %vm1015_vm15, %v2923_v8  ;;  %v5224_v60 = vpop.f32.mrb[80].mxu0 }
 0x1f5   : > { %3249 = vst.msk [vmem:[#allocation3 + $0xd8] sm:$0xff] %vm1015_vm15, %v3217_v3  ;;  %v3617_v16 = vpop.f32.mrb[81].mxu0 }
 0x1f6   : > { %3247 = vst.msk [vmem:[#allocation3 + $0xc8] sm:$0xff] %vm1015_vm15, %v3215_v0  ;;  %v5190_v62 = vpop.f32.mrb[80].mxu1  ;;  %v5225_v29 = vpop.f32.mrb[82].mxu0 }
 0x1f7   : > { %v3472_v14 = vadd.f32 %v5190_v62, %v3264_v44  ;;  %v3343_v61 = vpop.f32.mrb[81].mxu1  ;;  %v3620_v53 = vpop.f32.mrb[83].mxu0 }
 0x1f8   : > { %v3012_v37 = vld [vmem:[#allocation3 + $0xf0] sm:$0xff]  ;;  %v3470_v33 = vadd.f32 %v3343_v61, %v3262_v19  ;;  %v5191_v28 = vpop.f32.mrb[82].mxu1 }
 0x1f9   : > { %v3220_v42 = vadd.f32 %v5184_v58, %v3012_v37  ;;  %v3010_v54 = vld [vmem:[#allocation3 + $0xe0] sm:$0xff]  ;;  %3504 = vst.msk [vmem:[#allocation3 + $0x10] sm:$0xff] %vm1015_vm15, %v3472_v14  ;;  %v3473_v15 = vadd.f32 %v5191_v28, %v3265_v59  ;;  %v3346_v30 = vpop.f32.mrb[83].mxu1  ;;  %v3267_v58 = vld [vmem:[#allocation3 + $0x28] sm:$0xff] }
 0x1fa   : > { %v3218_v57 = vadd.f32 %v3175_v17, %v3010_v54  ;;  %v3013_v23 = vld [vmem:[#allocation3 + $0xf8] sm:$0xff]  ;;  %3502 = vst.msk [vmem:[#allocation3] sm:$0xff] %vm1015_vm15, %v3470_v33  ;;  %v3471_v25 = vadd.f32 %v3346_v30, %v3263_v9  ;;  %v3276_v33 = vld [vmem:[#allocation3 + $0x70] sm:$0xff]  ;;  %v3274_v54 = vld [vmem:[#allocation3 + $0x60] sm:$0xff] }
 0x1fb   : > { %3252 = vst.msk [vmem:[#allocation3 + $0xf0] sm:$0xff] %vm1015_vm15, %v3220_v42  ;;  %v3221_v10 = vadd.f32 %v5185_v36, %v3013_v23  ;;  %v3011_v11 = vld [vmem:[#allocation3 + $0xe8] sm:$0xff]  ;;  %3505 = vst.msk [vmem:[#allocation3 + $0x18] sm:$0xff] %vm1015_vm15, %v3473_v15  ;;  %v3277_v23 = vld [vmem:[#allocation3 + $0x78] sm:$0xff] }
 0x1fc   : > { %3250 = vst.msk [vmem:[#allocation3 + $0xe0] sm:$0xff] %vm1015_vm15, %v3218_v57  ;;  %v3219_v31 = vadd.f32 %v3178_v51, %v3011_v11  ;;  %3503 = vst.msk [vmem:[#allocation3 + $0x8] sm:$0xff] %vm1015_vm15, %v3471_v25  ;;  %v5228_v13 = vpop.f32.mrb[84].mxu0 }
 0x1fd   : > { %3253 = vst.msk [vmem:[#allocation3 + $0xf8] sm:$0xff] %vm1015_vm15, %v3221_v10  ;;  %v3633_v50 = vpop.f32.mrb[85].mxu0 }
 0x1fe   : > { %3251 = vst.msk [vmem:[#allocation3 + $0xe8] sm:$0xff] %vm1015_vm15, %v3219_v31  ;;  %v5194_v55 = vpop.f32.mrb[84].mxu1  ;;  %v5229_v47 = vpop.f32.mrb[86].mxu0 }
 0x1ff   : > { %v3476_v52 = vadd.f32 %v5194_v55, %v3268_v24  ;;  %v3359_v27 = vpop.f32.mrb[85].mxu1  ;;  %v3636_v7 = vpop.f32.mrb[87].mxu0 }
 0x200   : > { %v3536_v45 = vld [vmem:[#allocation3 + $0x10] sm:$0xff]  ;;  %v3474_v49 = vadd.f32 %v3359_v27, %v3266_v43  ;;  %v5195_v48 = vpop.f32.mrb[86].mxu1 }
 0x201   : > { %v3746_v63 = vadd.f32 %v5224_v60, %v3536_v45  ;;  %3508 = vst.msk [vmem:[#allocation3 + $0x30] sm:$0xff] %vm1015_vm15, %v3476_v52  ;;  %v3534_v1 = vld [vmem:[#allocation3] sm:$0xff]  ;;  %v3477_v40 = vadd.f32 %v5195_v48, %v3269_v35  ;;  %v3362_v17 = vpop.f32.mrb[87].mxu1  ;;  %v3271_v60 = vld [vmem:[#allocation3 + $0x48] sm:$0xff] }
 0x202   : > { %v3744_v20 = vadd.f32 %v3617_v16, %v3534_v1  ;;  %3506 = vst.msk [vmem:[#allocation3 + $0x20] sm:$0xff] %vm1015_vm15, %v3474_v49  ;;  %v3537_v26 = vld [vmem:[#allocation3 + $0x18] sm:$0xff]  ;;  %v3475_v36 = vadd.f32 %v3362_v17, %v3267_v58  ;;  %v3280_v49 = vld [vmem:[#allocation3 + $0x90] sm:$0xff]  ;;  %v3278_v1 = vld [vmem:[#allocation3 + $0x80] sm:$0xff] }
 0x203   : > { %3778 = vst.msk [vmem:[#allocation3 + $0x10] sm:$0xff] %vm1015_vm15, %v3746_v63  ;;  %v3747_v18 = vadd.f32 %v5225_v29, %v3537_v26  ;;  %3509 = vst.msk [vmem:[#allocation3 + $0x38] sm:$0xff] %vm1015_vm15, %v3477_v40  ;;  %v3535_v6 = vld [vmem:[#allocation3 + $0x8] sm:$0xff]  ;;  %v3281_v26 = vld [vmem:[#allocation3 + $0x98] sm:$0xff] }
 0x204   : > { %3776 = vst.msk [vmem:[#allocation3] sm:$0xff] %vm1015_vm15, %v3744_v20  ;;  %v3745_v5 = vadd.f32 %v3620_v53, %v3535_v6  ;;  %3507 = vst.msk [vmem:[#allocation3 + $0x28] sm:$0xff] %vm1015_vm15, %v3475_v36  ;;  %v5232_v51 = vpop.f32.mrb[88].mxu0 }
 0x205   : > { %3779 = vst.msk [vmem:[#allocation3 + $0x18] sm:$0xff] %vm1015_vm15, %v3747_v18  ;;  %v3649_v12 = vpop.f32.mrb[89].mxu0 }
 0x206   : > { %3777 = vst.msk [vmem:[#allocation3 + $0x8] sm:$0xff] %vm1015_vm15, %v3745_v5  ;;  %v5198_v46 = vpop.f32.mrb[88].mxu1  ;;  %v5233_v32 = vpop.f32.mrb[90].mxu0 }
 0x207   : > { %v3480_v39 = vadd.f32 %v5198_v46, %v3272_v56  ;;  %v3375_v34 = vpop.f32.mrb[89].mxu1  ;;  %v3652_v4 = vpop.f32.mrb[91].mxu0 }
 0x208   : > { %v3540_v22 = vld [vmem:[#allocation3 + $0x30] sm:$0xff]  ;;  %v3478_v2 = vadd.f32 %v3375_v34, %v3270_v21  ;;  %v5199_v8 = vpop.f32.mrb[90].mxu1 }
 0x209   : > { %v3750_v3 = vadd.f32 %v5228_v13, %v3540_v22  ;;  %3512 = vst.msk [vmem:[#allocation3 + $0x50] sm:$0xff] %vm1015_vm15, %v3480_v39  ;;  %v3538_v38 = vld [vmem:[#allocation3 + $0x20] sm:$0xff]  ;;  %v3481_v0 = vadd.f32 %v5199_v8, %v3273_v41  ;;  %v3378_v16 = vpop.f32.mrb[91].mxu1  ;;  %v3275_v13 = vld [vmem:[#allocation3 + $0x68] sm:$0xff] }
 0x20a   : > { %v3748_v44 = vadd.f32 %v3633_v50, %v3538_v38  ;;  %3510 = vst.msk [vmem:[#allocation3 + $0x40] sm:$0xff] %vm1015_vm15, %v3478_v2  ;;  %v3541_v62 = vld [vmem:[#allocation3 + $0x38] sm:$0xff]  ;;  %v3479_v29 = vadd.f32 %v3378_v16, %v3271_v60  ;;  %v3284_v2 = vld [vmem:[#allocation3 + $0xb0] sm:$0xff]  ;;  %v3282_v38 = vld [vmem:[#allocation3 + $0xa0] sm:$0xff] }
 0x20b   : > { %3782 = vst.msk [vmem:[#allocation3 + $0x30] sm:$0xff] %vm1015_vm15, %v3750_v3  ;;  %v3751_v14 = vadd.f32 %v5229_v47, %v3541_v62  ;;  %3513 = vst.msk [vmem:[#allocation3 + $0x58] sm:$0xff] %vm1015_vm15, %v3481_v0  ;;  %v3539_v19 = vld [vmem:[#allocation3 + $0x28] sm:$0xff]  ;;  %v3285_v62 = vld [vmem:[#allocation3 + $0xb8] sm:$0xff] }
 0x20c   : > { %3780 = vst.msk [vmem:[#allocation3 + $0x20] sm:$0xff] %vm1015_vm15, %v3748_v44  ;;  %v3749_v61 = vadd.f32 %v3636_v7, %v3539_v19  ;;  %3511 = vst.msk [vmem:[#allocation3 + $0x48] sm:$0xff] %vm1015_vm15, %v3479_v29  ;;  %v5236_v53 = vpop.f32.mrb[92].mxu0 }
 0x20d   : > { %3783 = vst.msk [vmem:[#allocation3 + $0x38] sm:$0xff] %vm1015_vm15, %v3751_v14  ;;  %v3665_v37 = vpop.f32.mrb[93].mxu0 }
 0x20e   : > { %3781 = vst.msk [vmem:[#allocation3 + $0x28] sm:$0xff] %vm1015_vm15, %v3749_v61  ;;  %v5202_v59 = vpop.f32.mrb[92].mxu1  ;;  %v5237_v28 = vpop.f32.mrb[94].mxu0 }
 0x20f   : > { %v3484_v42 = vadd.f32 %v5202_v59, %v3276_v33  ;;  %v3391_v15 = vpop.f32.mrb[93].mxu1  ;;  %v3668_v9 = vpop.f32.mrb[95].mxu0 }
 0x210   : > { %v3544_v30 = vld [vmem:[#allocation3 + $0x50] sm:$0xff]  ;;  %v3482_v57 = vadd.f32 %v3391_v15, %v3274_v54  ;;  %v5203_v25 = vpop.f32.mrb[94].mxu1 }
 0x211   : > { %v3754_v10 = vadd.f32 %v5232_v51, %v3544_v30  ;;  %3516 = vst.msk [vmem:[#allocation3 + $0x70] sm:$0xff] %vm1015_vm15, %v3484_v42  ;;  %v3542_v11 = vld [vmem:[#allocation3 + $0x40] sm:$0xff]  ;;  %v3485_v31 = vadd.f32 %v5203_v25, %v3277_v23  ;;  %v3394_v50 = vpop.f32.mrb[95].mxu1  ;;  %v3279_v51 = vld [vmem:[#allocation3 + $0x88] sm:$0xff] }
 0x212   : > { %v3752_v24 = vadd.f32 %v3649_v12, %v3542_v11  ;;  %3514 = vst.msk [vmem:[#allocation3 + $0x60] sm:$0xff] %vm1015_vm15, %v3482_v57  ;;  %v3545_v55 = vld [vmem:[#allocation3 + $0x58] sm:$0xff]  ;;  %v3483_v47 = vadd.f32 %v3394_v50, %v3275_v13  ;;  %v3288_v57 = vld [vmem:[#allocation3 + $0xd0] sm:$0xff]  ;;  %v3286_v11 = vld [vmem:[#allocation3 + $0xc0] sm:$0xff] }
 0x213   : > { %3786 = vst.msk [vmem:[#allocation3 + $0x50] sm:$0xff] %vm1015_vm15, %v3754_v10  ;;  %v3755_v52 = vadd.f32 %v5233_v32, %v3545_v55  ;;  %3517 = vst.msk [vmem:[#allocation3 + $0x78] sm:$0xff] %vm1015_vm15, %v3485_v31  ;;  %v3543_v43 = vld [vmem:[#allocation3 + $0x48] sm:$0xff]  ;;  %v3289_v55 = vld [vmem:[#allocation3 + $0xd8] sm:$0xff] }
 0x214   : > { %3784 = vst.msk [vmem:[#allocation3 + $0x40] sm:$0xff] %vm1015_vm15, %v3752_v24  ;;  %v3753_v27 = vadd.f32 %v3652_v4, %v3543_v43  ;;  %3515 = vst.msk [vmem:[#allocation3 + $0x68] sm:$0xff] %vm1015_vm15, %v3483_v47  ;;  %v5240_v7 = vpop.f32.mrb[96].mxu0 }
 0x215   : > { %3787 = vst.msk [vmem:[#allocation3 + $0x58] sm:$0xff] %vm1015_vm15, %v3755_v52  ;;  %v3681_v45 = vpop.f32.mrb[97].mxu0 }
 0x216   : > { %3785 = vst.msk [vmem:[#allocation3 + $0x48] sm:$0xff] %vm1015_vm15, %v3753_v27  ;;  %v5206_v35 = vpop.f32.mrb[96].mxu1  ;;  %v5241_v48 = vpop.f32.mrb[98].mxu0 }
 0x217   : > { %v3488_v63 = vadd.f32 %v5206_v35, %v3280_v49  ;;  %v3407_v40 = vpop.f32.mrb[97].mxu1  ;;  %v3684_v58 = vpop.f32.mrb[99].mxu0 }
 0x218   : > { %v3548_v17 = vld [vmem:[#allocation3 + $0x70] sm:$0xff]  ;;  %v3486_v20 = vadd.f32 %v3407_v40, %v3278_v1  ;;  %v5207_v36 = vpop.f32.mrb[98].mxu1 }
 0x219   : > { %v3758_v18 = vadd.f32 %v5236_v53, %v3548_v17  ;;  %3520 = vst.msk [vmem:[#allocation3 + $0x90] sm:$0xff] %vm1015_vm15, %v3488_v63  ;;  %v3546_v6 = vld [vmem:[#allocation3 + $0x60] sm:$0xff]  ;;  %v3489_v5 = vadd.f32 %v5207_v36, %v3281_v26  ;;  %v3410_v12 = vpop.f32.mrb[99].mxu1  ;;  %v3283_v53 = vld [vmem:[#allocation3 + $0xa8] sm:$0xff] }
 0x21a   : > { %v3756_v56 = vadd.f32 %v3665_v37, %v3546_v6  ;;  %3518 = vst.msk [vmem:[#allocation3 + $0x80] sm:$0xff] %vm1015_vm15, %v3486_v20  ;;  %v3549_v46 = vld [vmem:[#allocation3 + $0x78] sm:$0xff]  ;;  %v3487_v32 = vadd.f32 %v3410_v12, %v3279_v51  ;;  %v3292_v20 = vld [vmem:[#allocation3 + $0xf0] sm:$0xff]  ;;  %v3290_v6 = vld [vmem:[#allocation3 + $0xe0] sm:$0xff] }
 0x21b   : > { %3790 = vst.msk [vmem:[#allocation3 + $0x70] sm:$0xff] %vm1015_vm15, %v3758_v18  ;;  %v3759_v39 = vadd.f32 %v5237_v28, %v3549_v46  ;;  %3521 = vst.msk [vmem:[#allocation3 + $0x98] sm:$0xff] %vm1015_vm15, %v3489_v5  ;;  %v3547_v21 = vld [vmem:[#allocation3 + $0x68] sm:$0xff]  ;;  %v3293_v46 = vld [vmem:[#allocation3 + $0xf8] sm:$0xff] }
 0x21c   : > { %3788 = vst.msk [vmem:[#allocation3 + $0x60] sm:$0xff] %vm1015_vm15, %v3756_v56  ;;  %v3757_v34 = vadd.f32 %v3668_v9, %v3547_v21  ;;  %3519 = vst.msk [vmem:[#allocation3 + $0x88] sm:$0xff] %vm1015_vm15, %v3487_v32  ;;  %v5244_v4 = vpop.f32.mrb[100].mxu0 }
 0x21d   : > { %3791 = vst.msk [vmem:[#allocation3 + $0x78] sm:$0xff] %vm1015_vm15, %v3759_v39  ;;  %v3697_v22 = vpop.f32.mrb[101].mxu0 }
 0x21e   : > { %3789 = vst.msk [vmem:[#allocation3 + $0x68] sm:$0xff] %vm1015_vm15, %v3757_v34  ;;  %v5210_v41 = vpop.f32.mrb[100].mxu1  ;;  %v5245_v8 = vpop.f32.mrb[102].mxu0 }
 0x21f   : > { %v3492_v3 = vadd.f32 %v5210_v41, %v3284_v2  ;;  %v3423_v0 = vpop.f32.mrb[101].mxu1  ;;  %v3700_v60 = vpop.f32.mrb[103].mxu0 }
 0x220   : > { %v3552_v16 = vld [vmem:[#allocation3 + $0x90] sm:$0xff]  ;;  %v3490_v44 = vadd.f32 %v3423_v0, %v3282_v38  ;;  %v5211_v29 = vpop.f32.mrb[102].mxu1 }
 0x221   : > { %v3762_v14 = vadd.f32 %v5240_v7, %v3552_v16  ;;  %3524 = vst.msk [vmem:[#allocation3 + $0xb0] sm:$0xff] %vm1015_vm15, %v3492_v3  ;;  %v3550_v19 = vld [vmem:[#allocation3 + $0x80] sm:$0xff]  ;;  %v3493_v61 = vadd.f32 %v5211_v29, %v3285_v62  ;;  %v3426_v37 = vpop.f32.mrb[103].mxu1  ;;  %v3287_v7 = vld [vmem:[#allocation3 + $0xc8] sm:$0xff] }
 0x222   : > { %v3760_v33 = vadd.f32 %v3681_v45, %v3550_v19  ;;  %3522 = vst.msk [vmem:[#allocation3 + $0xa0] sm:$0xff] %vm1015_vm15, %v3490_v44  ;;  %v3553_v59 = vld [vmem:[#allocation3 + $0x98] sm:$0xff]  ;;  %v3491_v28 = vadd.f32 %v3426_v37, %v3283_v53  ;;  %v3834_v44 = vld [vmem:[#allocation3 + $0x10] sm:$0xff]  ;;  %v3832_v19 = vld [vmem:[#allocation3] sm:$0xff] }
 0x223   : > { %3794 = vst.msk [vmem:[#allocation3 + $0x90] sm:$0xff] %vm1015_vm15, %v3762_v14  ;;  %v3763_v42 = vadd.f32 %v5241_v48, %v3553_v59  ;;  %3525 = vst.msk [vmem:[#allocation3 + $0xb8] sm:$0xff] %vm1015_vm15, %v3493_v61  ;;  %v3551_v54 = vld [vmem:[#allocation3 + $0x88] sm:$0xff]  ;;  %v3835_v59 = vld [vmem:[#allocation3 + $0x18] sm:$0xff] }
 0x224   : > { %3792 = vst.msk [vmem:[#allocation3 + $0x80] sm:$0xff] %vm1015_vm15, %v3760_v33  ;;  %v3761_v15 = vadd.f32 %v3684_v58, %v3551_v54  ;;  %3523 = vst.msk [vmem:[#allocation3 + $0xa8] sm:$0xff] %vm1015_vm15, %v3491_v28  ;;  %v5248_v9 = vpop.f32.mrb[104].mxu0 }
 0x225   : > { %3795 = vst.msk [vmem:[#allocation3 + $0x98] sm:$0xff] %vm1015_vm15, %v3763_v42  ;;  %v3713_v30 = vpop.f32.mrb[105].mxu0 }
 0x226   : > { %3793 = vst.msk [vmem:[#allocation3 + $0x88] sm:$0xff] %vm1015_vm15, %v3761_v15  ;;  %v5214_v23 = vpop.f32.mrb[104].mxu1  ;;  %v5249_v25 = vpop.f32.mrb[106].mxu0 }
 0x227   : > { %v3496_v10 = vadd.f32 %v5214_v23, %v3288_v57  ;;  %v3439_v31 = vpop.f32.mrb[105].mxu1  ;;  %v3716_v13 = vpop.f32.mrb[107].mxu0 }
 0x228   : > { %v3556_v50 = vld [vmem:[#allocation3 + $0xb0] sm:$0xff]  ;;  %v3494_v24 = vadd.f32 %v3439_v31, %v3286_v11  ;;  %v5215_v47 = vpop.f32.mrb[106].mxu1 }
 0x229   : > { %v3766_v52 = vadd.f32 %v5244_v4, %v3556_v50  ;;  %3528 = vst.msk [vmem:[#allocation3 + $0xd0] sm:$0xff] %vm1015_vm15, %v3496_v10  ;;  %v3554_v43 = vld [vmem:[#allocation3 + $0xa0] sm:$0xff]  ;;  %v3497_v27 = vadd.f32 %v5215_v47, %v3289_v55  ;;  %v3442_v45 = vpop.f32.mrb[107].mxu1  ;;  %v3291_v4 = vld [vmem:[#allocation3 + $0xe8] sm:$0xff] }
 0x22a   : > { %v3764_v49 = vadd.f32 %v3697_v22, %v3554_v43  ;;  %3526 = vst.msk [vmem:[#allocation3 + $0xc0] sm:$0xff] %vm1015_vm15, %v3494_v24  ;;  %v3557_v35 = vld [vmem:[#allocation3 + $0xb8] sm:$0xff]  ;;  %v3495_v48 = vadd.f32 %v3442_v45, %v3287_v7  ;;  %v3838_v24 = vld [vmem:[#allocation3 + $0x30] sm:$0xff]  ;;  %v3836_v43 = vld [vmem:[#allocation3 + $0x20] sm:$0xff] }
 0x22b   : > { %3798 = vst.msk [vmem:[#allocation3 + $0xb0] sm:$0xff] %vm1015_vm15, %v3766_v52  ;;  %v3767_v63 = vadd.f32 %v5245_v8, %v3557_v35  ;;  %3529 = vst.msk [vmem:[#allocation3 + $0xd8] sm:$0xff] %vm1015_vm15, %v3497_v27  ;;  %v3555_v1 = vld [vmem:[#allocation3 + $0xa8] sm:$0xff]  ;;  %v3839_v35 = vld [vmem:[#allocation3 + $0x38] sm:$0xff] }
 0x22c   : > { %3796 = vst.msk [vmem:[#allocation3 + $0xa0] sm:$0xff] %vm1015_vm15, %v3764_v49  ;;  %v3765_v40 = vadd.f32 %v3700_v60, %v3555_v1  ;;  %3527 = vst.msk [vmem:[#allocation3 + $0xc8] sm:$0xff] %vm1015_vm15, %v3495_v48  ;;  %v5252_v58 = vpop.f32.mrb[108].mxu0 }
 0x22d   : > { %3799 = vst.msk [vmem:[#allocation3 + $0xb8] sm:$0xff] %vm1015_vm15, %v3767_v63  ;;  %v3729_v17 = vpop.f32.mrb[109].mxu0 }
 0x22e   : > { %3797 = vst.msk [vmem:[#allocation3 + $0xa8] sm:$0xff] %vm1015_vm15, %v3765_v40  ;;  %v5218_v26 = vpop.f32.mrb[108].mxu1  ;;  %v5253_v36 = vpop.f32.mrb[110].mxu0 }
 0x22f   : > { %v3500_v18 = vadd.f32 %v5218_v26, %v3292_v20  ;;  %v3455_v5 = vpop.f32.mrb[109].mxu1  ;;  %v3732_v51 = vpop.f32.mrb[111].mxu0 }
 0x230   : > { %v3560_v12 = vld [vmem:[#allocation3 + $0xd0] sm:$0xff]  ;;  %v3498_v56 = vadd.f32 %v3455_v5, %v3290_v6  ;;  %v5219_v32 = vpop.f32.mrb[110].mxu1 }
 0x231   : > { %v3770_v39 = vadd.f32 %v5248_v9, %v3560_v12  ;;  %3532 = vst.msk [vmem:[#allocation3 + $0xf0] sm:$0xff] %vm1015_vm15, %v3500_v18  ;;  %v3558_v21 = vld [vmem:[#allocation3 + $0xc0] sm:$0xff]  ;;  %v3501_v34 = vadd.f32 %v5219_v32, %v3293_v46  ;;  %v3458_v22 = vpop.f32.mrb[111].mxu1  ;;  %v3833_v9 = vld [vmem:[#allocation3 + $0x8] sm:$0xff] }
 0x232   : > { %v3768_v2 = vadd.f32 %v3713_v30, %v3558_v21  ;;  %3530 = vst.msk [vmem:[#allocation3 + $0xe0] sm:$0xff] %vm1015_vm15, %v3498_v56  ;;  %v3561_v41 = vld [vmem:[#allocation3 + $0xd8] sm:$0xff]  ;;  %v3499_v8 = vadd.f32 %v3458_v22, %v3291_v4  ;;  %v3842_v56 = vld [vmem:[#allocation3 + $0x50] sm:$0xff]  ;;  %v3840_v21 = vld [vmem:[#allocation3 + $0x40] sm:$0xff] }
 0x233   : > { %3802 = vst.msk [vmem:[#allocation3 + $0xd0] sm:$0xff] %vm1015_vm15, %v3770_v39  ;;  %v3771_v3 = vadd.f32 %v5249_v25, %v3561_v41  ;;  %3533 = vst.msk [vmem:[#allocation3 + $0xf8] sm:$0xff] %vm1015_vm15, %v3501_v34  ;;  %v3559_v38 = vld [vmem:[#allocation3 + $0xc8] sm:$0xff] }
 0x234   : > { %3800 = vst.msk [vmem:[#allocation3 + $0xc0] sm:$0xff] %vm1015_vm15, %v3768_v2  ;;  %v3769_v0 = vadd.f32 %v3716_v13, %v3559_v38  ;;  %3531 = vst.msk [vmem:[#allocation3 + $0xe8] sm:$0xff] %vm1015_vm15, %v3499_v8  ;;  %v5292_v60 = vpop.f32.mrb[112].mxu0  ;;  %v7052_v22 = vld [vmem:[%s7267_s4] ss:$0 sm:$0xff]  ;;  %v3843_v8 = vld [vmem:[#allocation3 + $0x58] sm:$0xff] }
 0x235   : > { %3803 = vst.msk [vmem:[#allocation3 + $0xd8] sm:$0xff] %vm1015_vm15, %v3771_v3  ;;  %v4193_v16 = vpop.f32.mrb[113].mxu0 }
 0x236   : > { %3801 = vst.msk [vmem:[#allocation3 + $0xc8] sm:$0xff] %vm1015_vm15, %v3769_v0  ;;  %v5258_v62 = vpop.f32.mrb[112].mxu1  ;;  %v5293_v29 = vpop.f32.mrb[114].mxu0 }
 0x237   : > { %v4042_v14 = vadd.f32 %v5258_v62, %v3834_v44  ;;  %v3913_v61 = vpop.f32.mrb[113].mxu1  ;;  %v4196_v53 = vpop.f32.mrb[115].mxu0 }
 0x238   : > { %v3564_v37 = vld [vmem:[#allocation3 + $0xf0] sm:$0xff]  ;;  %v4040_v33 = vadd.f32 %v3913_v61, %v3832_v19  ;;  %v5259_v28 = vpop.f32.mrb[114].mxu1 }
 0x239   : > { %v3774_v42 = vadd.f32 %v5252_v58, %v3564_v37  ;;  %v3562_v54 = vld [vmem:[#allocation3 + $0xe0] sm:$0xff]  ;;  %4074 = vst.msk [vmem:[#allocation3 + $0x10] sm:$0xff] %vm1015_vm15, %v4042_v14  ;;  %v4043_v15 = vadd.f32 %v5259_v28, %v3835_v59  ;;  %v3916_v30 = vpop.f32.mrb[115].mxu1  ;;  %v3837_v58 = vld [vmem:[#allocation3 + $0x28] sm:$0xff] }
 0x23a   : > { %v3772_v57 = vadd.f32 %v3729_v17, %v3562_v54  ;;  %v3565_v23 = vld [vmem:[#allocation3 + $0xf8] sm:$0xff]  ;;  %4072 = vst.msk [vmem:[#allocation3] sm:$0xff] %vm1015_vm15, %v4040_v33  ;;  %v4041_v25 = vadd.f32 %v3916_v30, %v3833_v9 }
 0x23b   : > { %3806 = vst.msk [vmem:[#allocation3 + $0xf0] sm:$0xff] %vm1015_vm15, %v3774_v42  ;;  %v3775_v10 = vadd.f32 %v5253_v36, %v3565_v23  ;;  %v3563_v11 = vld [vmem:[#allocation3 + $0xe8] sm:$0xff]  ;;  %4075 = vst.msk [vmem:[#allocation3 + $0x18] sm:$0xff] %vm1015_vm15, %v4043_v15  ;;  %v3846_v23 = vld [vmem:[#allocation3 + $0x70] sm:$0xff] }
 0x23c   : > { %3804 = vst.msk [vmem:[#allocation3 + $0xe0] sm:$0xff] %vm1015_vm15, %v3772_v57  ;;  %v3773_v31 = vadd.f32 %v3732_v51, %v3563_v11  ;;  %4073 = vst.msk [vmem:[#allocation3 + $0x8] sm:$0xff] %vm1015_vm15, %v4041_v25  ;;  %v5296_v13 = vpop.f32.mrb[116].mxu0 }
 0x23d   : > { %3807 = vst.msk [vmem:[#allocation3 + $0xf8] sm:$0xff] %vm1015_vm15, %v3775_v10  ;;  %v4209_v50 = vpop.f32.mrb[117].mxu0 }
 0x23e   : > { %3805 = vst.msk [vmem:[#allocation3 + $0xe8] sm:$0xff] %vm1015_vm15, %v3773_v31  ;;  %v5262_v55 = vpop.f32.mrb[116].mxu1  ;;  %v5297_v47 = vpop.f32.mrb[118].mxu0  ;;  %v3844_v31 = vld [vmem:[#allocation3 + $0x60] sm:$0xff] }
 0x23f   : > { %v4046_v52 = vadd.f32 %v5262_v55, %v3838_v24  ;;  %v3929_v27 = vpop.f32.mrb[117].mxu1  ;;  %v4212_v7 = vpop.f32.mrb[119].mxu0 }
 0x240   : > { %v4114_v45 = vld [vmem:[#allocation3 + $0x10] sm:$0xff]  ;;  %v4044_v49 = vadd.f32 %v3929_v27, %v3836_v43  ;;  %v5263_v48 = vpop.f32.mrb[118].mxu1 }
 0x241   : > { %v4322_v63 = vadd.f32 %v5292_v60, %v4114_v45  ;;  %4078 = vst.msk [vmem:[#allocation3 + $0x30] sm:$0xff] %vm1015_vm15, %v4046_v52  ;;  %v4112_v1 = vld [vmem:[#allocation3] sm:$0xff]  ;;  %v4047_v40 = vadd.f32 %v5263_v48, %v3839_v35  ;;  %v3932_v17 = vpop.f32.mrb[119].mxu1  ;;  %v3845_v45 = vld [vmem:[#allocation3 + $0x68] sm:$0xff] }
 0x242   : > { %v4320_v20 = vadd.f32 %v4193_v16, %v4112_v1  ;;  %4076 = vst.msk [vmem:[#allocation3 + $0x20] sm:$0xff] %vm1015_vm15, %v4044_v49  ;;  %v4115_v26 = vld [vmem:[#allocation3 + $0x18] sm:$0xff]  ;;  %v4045_v36 = vadd.f32 %v3932_v17, %v3837_v58  ;;  %v3841_v16 = vld [vmem:[#allocation3 + $0x48] sm:$0xff] }
 0x243   : > { %4354 = vst.msk [vmem:[#allocation3 + $0x10] sm:$0xff] %vm1015_vm15, %v4322_v63  ;;  %v4323_v18 = vadd.f32 %v5293_v29, %v4115_v26  ;;  %4079 = vst.msk [vmem:[#allocation3 + $0x38] sm:$0xff] %vm1015_vm15, %v4047_v40  ;;  %v4113_v6 = vld [vmem:[#allocation3 + $0x8] sm:$0xff] }
 0x244   : > { %4352 = vst.msk [vmem:[#allocation3] sm:$0xff] %vm1015_vm15, %v4320_v20  ;;  %v4321_v5 = vadd.f32 %v4196_v53, %v4113_v6  ;;  %4077 = vst.msk [vmem:[#allocation3 + $0x28] sm:$0xff] %vm1015_vm15, %v4045_v36  ;;  %v5300_v51 = vpop.f32.mrb[120].mxu0 }
 0x245   : > { %4355 = vst.msk [vmem:[#allocation3 + $0x18] sm:$0xff] %vm1015_vm15, %v4323_v18  ;;  %v7042_v12 = vpop.f32.mrb[121].mxu0 }
 0x246   : > { %4353 = vst.msk [vmem:[#allocation3 + $0x8] sm:$0xff] %vm1015_vm15, %v4321_v5  ;;  %v5266_v46 = vpop.f32.mrb[120].mxu1  ;;  %v7045_v32 = vpop.f32.mrb[122].mxu0 }
 0x247   : > { %v4050_v39 = vadd.f32 %v5266_v46, %v3842_v56  ;;  %v3945_v34 = vpop.f32.mrb[121].mxu1  ;;  %v7047_v4 = vpop.f32.mrb[123].mxu0  ;;  %v3850_v46 = vld [vmem:[#allocation3 + $0x90] sm:$0xff] }
 0x248   : > { %v4118_v2 = vld [vmem:[#allocation3 + $0x30] sm:$0xff]  ;;  %v4048_v41 = vadd.f32 %v3945_v34, %v3840_v21  ;;  %v5267_v3 = vpop.f32.mrb[122].mxu1  ;;  %v3848_v34 = vld [vmem:[#allocation3 + $0x80] sm:$0xff] }
 0x249   : > { %v4326_v38 = vadd.f32 %v5296_v13, %v4118_v2  ;;  %4082 = vst.msk [vmem:[#allocation3 + $0x50] sm:$0xff] %vm1015_vm15, %v4050_v39  ;;  %v4116_v0 = vld [vmem:[#allocation3 + $0x20] sm:$0xff]  ;;  %v4051_v60 = vadd.f32 %v5267_v3, %v3843_v8  ;;  %v3948_v44 = vpop.f32.mrb[123].mxu1  ;;  %v3851_v3 = vld [vmem:[#allocation3 + $0x98] sm:$0xff] }
 0x24a   : > { %v4386_v62 = vld [vmem:[#allocation3 + $0x10] sm:$0xff]  ;;  %v4324_v29 = vadd.f32 %v4209_v50, %v4116_v0  ;;  %4080 = vst.msk [vmem:[#allocation3 + $0x40] sm:$0xff] %vm1015_vm15, %v4048_v41  ;;  %v4119_v14 = vld [vmem:[#allocation3 + $0x38] sm:$0xff]  ;;  %v4049_v19 = vadd.f32 %v3948_v44, %v3841_v16  ;;  %v3849_v44 = vld [vmem:[#allocation3 + $0x88] sm:$0xff] }
 0x24b   : > { %v4425_v61 = vadd.f32 %v7052_v22, %v4386_v62  ;;  %v4384_v53 = vld [vmem:[#allocation3] sm:$0xff]  ;;  %4358 = vst.msk [vmem:[#allocation3 + $0x30] sm:$0xff] %vm1015_vm15, %v4326_v38  ;;  %v4327_v37 = vadd.f32 %v5297_v47, %v4119_v14  ;;  %4083 = vst.msk [vmem:[#allocation3 + $0x58] sm:$0xff] %vm1015_vm15, %v4051_v60  ;;  %v4117_v33 = vld [vmem:[#allocation3 + $0x28] sm:$0xff] }
 0x24c   : > { %v4423_v59 = vadd.f32 %v7052_v22, %v4384_v53  ;;  %v4387_v28 = vld [vmem:[#allocation3 + $0x18] sm:$0xff]  ;;  %4356 = vst.msk [vmem:[#allocation3 + $0x20] sm:$0xff] %vm1015_vm15, %v4324_v29  ;;  %v4325_v42 = vadd.f32 %v4212_v7, %v4117_v33  ;;  %4081 = vst.msk [vmem:[#allocation3 + $0x48] sm:$0xff] %vm1015_vm15, %v4049_v19  ;;  %v7069_v54 = vpop.f32.mrb[124].mxu0 }
 0x24d   : > { %4457 = vst.msk [vmem:[%s7060_s7 + $0x10] sm:$0xff] %vm1015_vm15, %v4425_v61  ;;  %v4426_v15 = vadd.f32 %v7052_v22, %v4387_v28  ;;  %v4385_v9 = vld [vmem:[#allocation3 + $0x8] sm:$0xff]  ;;  %4359 = vst.msk [vmem:[#allocation3 + $0x38] sm:$0xff] %vm1015_vm15, %v4327_v37  ;;  %v7075_v30 = vpop.f32.mrb[125].mxu0  ;;  %v3847_v47 = vld [vmem:[#allocation3 + $0x78] sm:$0xff] }
 0x24e   : > { %4455 = vst.msk [vmem:[%s7060_s7] sm:$0xff] %vm1015_vm15, %v4423_v59  ;;  %v4424_v57 = vadd.f32 %v7052_v22, %v4385_v9  ;;  %4357 = vst.msk [vmem:[#allocation3 + $0x28] sm:$0xff] %vm1015_vm15, %v4325_v42  ;;  %v5270_v25 = vpop.f32.mrb[124].mxu1  ;;  %v7081_v10 = vpop.f32.mrb[126].mxu0 }
 0x24f   : > { %4458 = vst.msk [vmem:[%s7060_s7 + $0x18] sm:$0xff] %vm1015_vm15, %v4426_v15  ;;  %v4054_v11 = vadd.f32 %v5270_v25, %v3846_v23  ;;  %v3961_v13 = vpop.f32.mrb[125].mxu1  ;;  %v7085_v50 = vpop.f32.mrb[127].mxu0  ;;  %v3854_v25 = vld [vmem:[#allocation3 + $0xb0] sm:$0xff] }
 0x250   : > { %4456 = vst.msk [vmem:[%s7060_s7 + $0x8] sm:$0xff] %vm1015_vm15, %v4424_v57  ;;  %v4122_v24 = vld [vmem:[#allocation3 + $0x50] sm:$0xff]  ;;  %v4052_v55 = vadd.f32 %v3961_v13, %v3844_v31  ;;  %v5271_v52 = vpop.f32.mrb[126].mxu1  ;;  %v3852_v13 = vld [vmem:[#allocation3 + $0xa0] sm:$0xff] }
 0x251   : > { %v4330_v43 = vadd.f32 %v5300_v51, %v4122_v24  ;;  %4086 = vst.msk [vmem:[#allocation3 + $0x70] sm:$0xff] %vm1015_vm15, %v4054_v11  ;;  %v4120_v27 = vld [vmem:[#allocation3 + $0x40] sm:$0xff]  ;;  %v4055_v7 = vadd.f32 %v5271_v52, %v3847_v47  ;;  %v3964_v49 = vpop.f32.mrb[127].mxu1  ;;  %v3855_v52 = vld [vmem:[#allocation3 + $0xb8] sm:$0xff] }
 0x252   : > { %v4390_v35 = vld [vmem:[#allocation3 + $0x30] sm:$0xff]  ;;  %v4328_v48 = vadd.f32 %v7042_v12, %v4120_v27  ;;  %4084 = vst.msk [vmem:[#allocation3 + $0x60] sm:$0xff] %vm1015_vm15, %v4052_v55  ;;  %v4123_v63 = vld [vmem:[#allocation3 + $0x58] sm:$0xff]  ;;  %v4053_v1 = vadd.f32 %v3964_v49, %v3845_v45  ;;  %v3853_v49 = vld [vmem:[#allocation3 + $0xa8] sm:$0xff] }
 0x253   : > { %v4429_v40 = vadd.f32 %v7052_v22, %v4390_v35  ;;  %v4388_v58 = vld [vmem:[#allocation3 + $0x20] sm:$0xff]  ;;  %4362 = vst.msk [vmem:[#allocation3 + $0x50] sm:$0xff] %vm1015_vm15, %v4330_v43  ;;  %v4331_v17 = vadd.f32 %v7045_v32, %v4123_v63  ;;  %4087 = vst.msk [vmem:[#allocation3 + $0x78] sm:$0xff] %vm1015_vm15, %v4055_v7  ;;  %v4121_v20 = vld [vmem:[#allocation3 + $0x48] sm:$0xff] }
 0x254   : > { %v4427_v26 = vadd.f32 %v7052_v22, %v4388_v58  ;;  %v4391_v36 = vld [vmem:[#allocation3 + $0x38] sm:$0xff]  ;;  %4360 = vst.msk [vmem:[#allocation3 + $0x40] sm:$0xff] %vm1015_vm15, %v4328_v48  ;;  %v4329_v18 = vadd.f32 %v7047_v4, %v4121_v20  ;;  %4085 = vst.msk [vmem:[#allocation3 + $0x68] sm:$0xff] %vm1015_vm15, %v4053_v1  ;;  %v7100_v6 = vpop.f32.mrb[128].mxu0 }
 0x255   : > { %4461 = vst.msk [vmem:[%s7060_s7 + $0x30] sm:$0xff] %vm1015_vm15, %v4429_v40  ;;  %v4430_v5 = vadd.f32 %v7052_v22, %v4391_v36  ;;  %v4389_v51 = vld [vmem:[#allocation3 + $0x28] sm:$0xff]  ;;  %4363 = vst.msk [vmem:[#allocation3 + $0x58] sm:$0xff] %vm1015_vm15, %v4331_v17  ;;  %v7106_v12 = vpop.f32.mrb[129].mxu0 }
 0x256   : > { %4459 = vst.msk [vmem:[%s7060_s7 + $0x20] sm:$0xff] %vm1015_vm15, %v4427_v26  ;;  %v4428_v56 = vadd.f32 %v7052_v22, %v4389_v51  ;;  %4361 = vst.msk [vmem:[#allocation3 + $0x48] sm:$0xff] %vm1015_vm15, %v4329_v18  ;;  %v5274_v32 = vpop.f32.mrb[128].mxu1  ;;  %v7112_v39 = vpop.f32.mrb[130].mxu0 }
 0x257   : > { %4462 = vst.msk [vmem:[%s7060_s7 + $0x38] sm:$0xff] %vm1015_vm15, %v4430_v5  ;;  %v4058_v21 = vadd.f32 %v5274_v32, %v3850_v46  ;;  %v3977_v4 = vpop.f32.mrb[129].mxu1  ;;  %v7116_v2 = vpop.f32.mrb[131].mxu0  ;;  %v3858_v32 = vld [vmem:[#allocation3 + $0xd0] sm:$0xff] }
 0x258   : > { %4460 = vst.msk [vmem:[%s7060_s7 + $0x28] sm:$0xff] %vm1015_vm15, %v4428_v56  ;;  %v4126_v41 = vld [vmem:[#allocation3 + $0x70] sm:$0xff]  ;;  %v4056_v8 = vadd.f32 %v3977_v4, %v3848_v34  ;;  %v5275_v38 = vpop.f32.mrb[130].mxu1  ;;  %v3856_v4 = vld [vmem:[#allocation3 + $0xc0] sm:$0xff] }
 0x259   : > { %v4334_v0 = vadd.f32 %v7069_v54, %v4126_v41  ;;  %4090 = vst.msk [vmem:[#allocation3 + $0x90] sm:$0xff] %vm1015_vm15, %v4058_v21  ;;  %v4124_v60 = vld [vmem:[#allocation3 + $0x60] sm:$0xff]  ;;  %v4059_v16 = vadd.f32 %v5275_v38, %v3851_v3  ;;  %v3980_v62 = vpop.f32.mrb[131].mxu1  ;;  %v3859_v38 = vld [vmem:[#allocation3 + $0xd8] sm:$0xff] }
 0x25a   : > { %v4394_v29 = vld [vmem:[#allocation3 + $0x50] sm:$0xff]  ;;  %v4332_v14 = vadd.f32 %v7075_v30, %v4124_v60  ;;  %4088 = vst.msk [vmem:[#allocation3 + $0x80] sm:$0xff] %vm1015_vm15, %v4056_v8  ;;  %v4127_v19 = vld [vmem:[#allocation3 + $0x78] sm:$0xff]  ;;  %v4057_v61 = vadd.f32 %v3980_v62, %v3849_v44  ;;  %v3857_v62 = vld [vmem:[#allocation3 + $0xc8] sm:$0xff] }
 0x25b   : > { %v4433_v53 = vadd.f32 %v7052_v22, %v4394_v29  ;;  %v4392_v37 = vld [vmem:[#allocation3 + $0x40] sm:$0xff]  ;;  %4366 = vst.msk [vmem:[#allocation3 + $0x70] sm:$0xff] %vm1015_vm15, %v4334_v0  ;;  %v4335_v33 = vadd.f32 %v7081_v10, %v4127_v19  ;;  %4091 = vst.msk [vmem:[#allocation3 + $0x98] sm:$0xff] %vm1015_vm15, %v4059_v16  ;;  %v4125_v59 = vld [vmem:[#allocation3 + $0x68] sm:$0xff] }
 0x25c   : > { %v4431_v28 = vadd.f32 %v7052_v22, %v4392_v37  ;;  %v4395_v42 = vld [vmem:[#allocation3 + $0x58] sm:$0xff]  ;;  %4364 = vst.msk [vmem:[#allocation3 + $0x60] sm:$0xff] %vm1015_vm15, %v4332_v14  ;;  %v4333_v54 = vadd.f32 %v7085_v50, %v4125_v59  ;;  %4089 = vst.msk [vmem:[#allocation3 + $0x88] sm:$0xff] %vm1015_vm15, %v4057_v61  ;;  %v7132_v15 = vpop.f32.mrb[132].mxu0 }
 0x25d   : > { %4465 = vst.msk [vmem:[%s7060_s7 + $0x50] sm:$0xff] %vm1015_vm15, %v4433_v53  ;;  %v4434_v9 = vadd.f32 %v7052_v22, %v4395_v42  ;;  %v4393_v30 = vld [vmem:[#allocation3 + $0x48] sm:$0xff]  ;;  %4367 = vst.msk [vmem:[#allocation3 + $0x78] sm:$0xff] %vm1015_vm15, %v4335_v33  ;;  %v7138_v57 = vpop.f32.mrb[133].mxu0 }
 0x25e   : > { %4463 = vst.msk [vmem:[%s7060_s7 + $0x40] sm:$0xff] %vm1015_vm15, %v4431_v28  ;;  %v4432_v23 = vadd.f32 %v7052_v22, %v4393_v30  ;;  %4365 = vst.msk [vmem:[#allocation3 + $0x68] sm:$0xff] %vm1015_vm15, %v4333_v54  ;;  %v5278_v10 = vpop.f32.mrb[132].mxu1  ;;  %v7144_v11 = vpop.f32.mrb[134].mxu0 }
 0x25f   : > { %4466 = vst.msk [vmem:[%s7060_s7 + $0x58] sm:$0xff] %vm1015_vm15, %v4434_v9  ;;  %v4062_v31 = vadd.f32 %v5278_v10, %v3854_v25  ;;  %v3993_v50 = vpop.f32.mrb[133].mxu1  ;;  %v7148_v24 = vpop.f32.mrb[135].mxu0  ;;  %v3862_v10 = vld [vmem:[#allocation3 + $0xf0] sm:$0xff] }
 0x260   : > { %4464 = vst.msk [vmem:[%s7060_s7 + $0x48] sm:$0xff] %vm1015_vm15, %v4432_v23  ;;  %v4130_v55 = vld [vmem:[#allocation3 + $0x90] sm:$0xff]  ;;  %v4060_v47 = vadd.f32 %v3993_v50, %v3852_v13  ;;  %v5279_v43 = vpop.f32.mrb[134].mxu1  ;;  %v3860_v50 = vld [vmem:[#allocation3 + $0xe0] sm:$0xff] }
 0x261   : > { %v4338_v27 = vadd.f32 %v7100_v6, %v4130_v55  ;;  %4094 = vst.msk [vmem:[#allocation3 + $0xb0] sm:$0xff] %vm1015_vm15, %v4062_v31  ;;  %v4128_v7 = vld [vmem:[#allocation3 + $0x80] sm:$0xff]  ;;  %v4063_v45 = vadd.f32 %v5279_v43, %v3855_v52  ;;  %v3996_v35 = vpop.f32.mrb[135].mxu1  ;;  %v3863_v43 = vld [vmem:[#allocation3 + $0xf8] sm:$0xff] }
 0x262   : > { %v4398_v48 = vld [vmem:[#allocation3 + $0x70] sm:$0xff]  ;;  %v4336_v63 = vadd.f32 %v7106_v12, %v4128_v7  ;;  %4092 = vst.msk [vmem:[#allocation3 + $0xa0] sm:$0xff] %vm1015_vm15, %v4060_v47  ;;  %v4131_v1 = vld [vmem:[#allocation3 + $0x98] sm:$0xff]  ;;  %v4061_v40 = vadd.f32 %v3996_v35, %v3853_v49  ;;  %v3861_v35 = vld [vmem:[#allocation3 + $0xe8] sm:$0xff] }
 0x263   : > { %v4437_v58 = vadd.f32 %v7052_v22, %v4398_v48  ;;  %v4396_v17 = vld [vmem:[#allocation3 + $0x60] sm:$0xff]  ;;  %4370 = vst.msk [vmem:[#allocation3 + $0x90] sm:$0xff] %vm1015_vm15, %v4338_v27  ;;  %v4339_v20 = vadd.f32 %v7112_v39, %v4131_v1  ;;  %4095 = vst.msk [vmem:[#allocation3 + $0xb8] sm:$0xff] %vm1015_vm15, %v4063_v45  ;;  %v4129_v26 = vld [vmem:[#allocation3 + $0x88] sm:$0xff] }
 0x264   : > { %v4435_v36 = vadd.f32 %v7052_v22, %v4396_v17  ;;  %v4399_v18 = vld [vmem:[#allocation3 + $0x78] sm:$0xff]  ;;  %4368 = vst.msk [vmem:[#allocation3 + $0x80] sm:$0xff] %vm1015_vm15, %v4336_v63  ;;  %v4337_v6 = vadd.f32 %v7116_v2, %v4129_v26  ;;  %4093 = vst.msk [vmem:[#allocation3 + $0xa8] sm:$0xff] %vm1015_vm15, %v4061_v40  ;;  %v7164_v5 = vpop.f32.mrb[136].mxu0 }
 0x265   : > { %4469 = vst.msk [vmem:[%s7060_s7 + $0x70] sm:$0xff] %vm1015_vm15, %v4437_v58  ;;  %v4438_v51 = vadd.f32 %v7052_v22, %v4399_v18  ;;  %v4397_v12 = vld [vmem:[#allocation3 + $0x68] sm:$0xff]  ;;  %4371 = vst.msk [vmem:[#allocation3 + $0x98] sm:$0xff] %vm1015_vm15, %v4339_v20  ;;  %v7170_v56 = vpop.f32.mrb[137].mxu0 }
 0x266   : > { %4467 = vst.msk [vmem:[%s7060_s7 + $0x60] sm:$0xff] %vm1015_vm15, %v4435_v36  ;;  %v4436_v46 = vadd.f32 %v7052_v22, %v4397_v12  ;;  %4369 = vst.msk [vmem:[#allocation3 + $0x88] sm:$0xff] %vm1015_vm15, %v4337_v6  ;;  %v5282_v39 = vpop.f32.mrb[136].mxu1  ;;  %v7176_v21 = vpop.f32.mrb[138].mxu0 }
 0x267   : > { %4470 = vst.msk [vmem:[%s7060_s7 + $0x78] sm:$0xff] %vm1015_vm15, %v4438_v51  ;;  %v4066_v34 = vadd.f32 %v5282_v39, %v3858_v32  ;;  %v4009_v2 = vpop.f32.mrb[137].mxu1  ;;  %v7180_v41 = vpop.f32.mrb[139].mxu0 }
 0x268   : > { %4468 = vst.msk [vmem:[%s7060_s7 + $0x68] sm:$0xff] %vm1015_vm15, %v4436_v46  ;;  %v4134_v8 = vld [vmem:[#allocation3 + $0xb0] sm:$0xff]  ;;  %v4064_v3 = vadd.f32 %v4009_v2, %v3856_v4  ;;  %v5283_v0 = vpop.f32.mrb[138].mxu1 }
 0x269   : > { %v4342_v60 = vadd.f32 %v7132_v15, %v4134_v8  ;;  %4098 = vst.msk [vmem:[#allocation3 + $0xd0] sm:$0xff] %vm1015_vm15, %v4066_v34  ;;  %v4132_v16 = vld [vmem:[#allocation3 + $0xa0] sm:$0xff]  ;;  %v4067_v44 = vadd.f32 %v5283_v0, %v3859_v38  ;;  %v4012_v29 = vpop.f32.mrb[139].mxu1 }
 0x26a   : > { %v4402_v14 = vld [vmem:[#allocation3 + $0x90] sm:$0xff]  ;;  %v4340_v19 = vadd.f32 %v7138_v57, %v4132_v16  ;;  %4096 = vst.msk [vmem:[#allocation3 + $0xc0] sm:$0xff] %vm1015_vm15, %v4064_v3  ;;  %v4135_v61 = vld [vmem:[#allocation3 + $0xb8] sm:$0xff]  ;;  %v4065_v53 = vadd.f32 %v4012_v29, %v3857_v62 }
 0x26b   : > { %v4441_v37 = vadd.f32 %v7052_v22, %v4402_v14  ;;  %v4400_v33 = vld [vmem:[#allocation3 + $0x80] sm:$0xff]  ;;  %4374 = vst.msk [vmem:[#allocation3 + $0xb0] sm:$0xff] %vm1015_vm15, %v4342_v60  ;;  %v4343_v59 = vadd.f32 %v7144_v11, %v4135_v61  ;;  %4099 = vst.msk [vmem:[#allocation3 + $0xd8] sm:$0xff] %vm1015_vm15, %v4067_v44  ;;  %v4133_v28 = vld [vmem:[#allocation3 + $0xa8] sm:$0xff] }
 0x26c   : > { %v4439_v42 = vadd.f32 %v7052_v22, %v4400_v33  ;;  %v4403_v54 = vld [vmem:[#allocation3 + $0x98] sm:$0xff]  ;;  %4372 = vst.msk [vmem:[#allocation3 + $0xa0] sm:$0xff] %vm1015_vm15, %v4340_v19  ;;  %v4341_v15 = vadd.f32 %v7148_v24, %v4133_v28  ;;  %4097 = vst.msk [vmem:[#allocation3 + $0xc8] sm:$0xff] %vm1015_vm15, %v4065_v53  ;;  %v5320_v9 = vpop.f32.mrb[140].mxu0 }
 0x26d   : > { %4473 = vst.msk [vmem:[%s7060_s7 + $0x90] sm:$0xff] %vm1015_vm15, %v4441_v37  ;;  %v4442_v30 = vadd.f32 %v7052_v22, %v4403_v54  ;;  %v4401_v57 = vld [vmem:[#allocation3 + $0x88] sm:$0xff]  ;;  %4375 = vst.msk [vmem:[#allocation3 + $0xb8] sm:$0xff] %vm1015_vm15, %v4343_v59  ;;  %v4305_v23 = vpop.f32.mrb[141].mxu0 }
 0x26e   : > { %4471 = vst.msk [vmem:[%s7060_s7 + $0x80] sm:$0xff] %vm1015_vm15, %v4439_v42  ;;  %v4440_v25 = vadd.f32 %v7052_v22, %v4401_v57  ;;  %4373 = vst.msk [vmem:[#allocation3 + $0xa8] sm:$0xff] %vm1015_vm15, %v4341_v15  ;;  %v5286_v11 = vpop.f32.mrb[140].mxu1  ;;  %v5321_v31 = vpop.f32.mrb[142].mxu0 }
 0x26f   : > { %4474 = vst.msk [vmem:[%s7060_s7 + $0x98] sm:$0xff] %vm1015_vm15, %v4442_v30  ;;  %v4070_v13 = vadd.f32 %v5286_v11, %v3862_v10  ;;  %v4025_v24 = vpop.f32.mrb[141].mxu1  ;;  %v4308_v55 = vpop.f32.mrb[143].mxu0 }
 0x270   : > { %4472 = vst.msk [vmem:[%s7060_s7 + $0x88] sm:$0xff] %vm1015_vm15, %v4440_v25  ;;  %v4138_v47 = vld [vmem:[#allocation3 + $0xd0] sm:$0xff]  ;;  %v4068_v52 = vadd.f32 %v4025_v24, %v3860_v50  ;;  %v5287_v27 = vpop.f32.mrb[142].mxu1 }
 0x271   : > { %v4346_v7 = vadd.f32 %v7164_v5, %v4138_v47  ;;  %4102 = vst.msk [vmem:[#allocation3 + $0xf0] sm:$0xff] %vm1015_vm15, %v4070_v13  ;;  %v4136_v45 = vld [vmem:[#allocation3 + $0xc0] sm:$0xff]  ;;  %v4071_v49 = vadd.f32 %v5287_v27, %v3863_v43  ;;  %v4028_v48 = vpop.f32.mrb[143].mxu1 }
 0x272   : > { %v4406_v63 = vld [vmem:[#allocation3 + $0xb0] sm:$0xff]  ;;  %v4344_v1 = vadd.f32 %v7170_v56, %v4136_v45  ;;  %4100 = vst.msk [vmem:[#allocation3 + $0xe0] sm:$0xff] %vm1015_vm15, %v4068_v52  ;;  %v4139_v40 = vld [vmem:[#allocation3 + $0xd8] sm:$0xff]  ;;  %v4069_v58 = vadd.f32 %v4028_v48, %v3861_v35 }
 0x273   : > { %v4445_v17 = vadd.f32 %v7052_v22, %v4406_v63  ;;  %v4404_v20 = vld [vmem:[#allocation3 + $0xa0] sm:$0xff]  ;;  %4378 = vst.msk [vmem:[#allocation3 + $0xd0] sm:$0xff] %vm1015_vm15, %v4346_v7  ;;  %v4347_v26 = vadd.f32 %v7176_v21, %v4139_v40  ;;  %4103 = vst.msk [vmem:[#allocation3 + $0xf8] sm:$0xff] %vm1015_vm15, %v4071_v49  ;;  %v4137_v36 = vld [vmem:[#allocation3 + $0xc8] sm:$0xff] }
 0x274   : > { %v4443_v18 = vadd.f32 %v7052_v22, %v4404_v20  ;;  %v4407_v6 = vld [vmem:[#allocation3 + $0xb8] sm:$0xff]  ;;  %4376 = vst.msk [vmem:[#allocation3 + $0xc0] sm:$0xff] %vm1015_vm15, %v4344_v1  ;;  %v4345_v5 = vadd.f32 %v7180_v41, %v4137_v36  ;;  %4101 = vst.msk [vmem:[#allocation3 + $0xe8] sm:$0xff] %vm1015_vm15, %v4069_v58 }
 0x275   : > { %4477 = vst.msk [vmem:[%s7060_s7 + $0xb0] sm:$0xff] %vm1015_vm15, %v4445_v17  ;;  %v4446_v51 = vadd.f32 %v7052_v22, %v4407_v6  ;;  %v4405_v12 = vld [vmem:[#allocation3 + $0xa8] sm:$0xff]  ;;  %4379 = vst.msk [vmem:[#allocation3 + $0xd8] sm:$0xff] %vm1015_vm15, %v4347_v26 }
 0x276   : > { %4475 = vst.msk [vmem:[%s7060_s7 + $0xa0] sm:$0xff] %vm1015_vm15, %v4443_v18  ;;  %v4444_v56 = vadd.f32 %v7052_v22, %v4405_v12  ;;  %4377 = vst.msk [vmem:[#allocation3 + $0xc8] sm:$0xff] %vm1015_vm15, %v4345_v5 }
 0x277   : > { %4478 = vst.msk [vmem:[%s7060_s7 + $0xb8] sm:$0xff] %vm1015_vm15, %v4446_v51 }
 0x278   : > { %4476 = vst.msk [vmem:[%s7060_s7 + $0xa8] sm:$0xff] %vm1015_vm15, %v4444_v56  ;;  %v4142_v46 = vld [vmem:[#allocation3 + $0xf0] sm:$0xff] }
 0x279   : > { %v4350_v32 = vadd.f32 %v5320_v9, %v4142_v46  ;;  %v4140_v39 = vld [vmem:[#allocation3 + $0xe0] sm:$0xff] }
 0x27a   : > { %v4410_v21 = vld [vmem:[#allocation3 + $0xd0] sm:$0xff]  ;;  %v4348_v34 = vadd.f32 %v4305_v23, %v4140_v39  ;;  %v4143_v4 = vld [vmem:[#allocation3 + $0xf8] sm:$0xff] }
 0x27b   : > { %v4449_v2 = vadd.f32 %v7052_v22, %v4410_v21  ;;  %v4408_v41 = vld [vmem:[#allocation3 + $0xc0] sm:$0xff]  ;;  %4382 = vst.msk [vmem:[#allocation3 + $0xf0] sm:$0xff] %vm1015_vm15, %v4350_v32  ;;  %v4351_v8 = vadd.f32 %v5321_v31, %v4143_v4  ;;  %v4141_v3 = vld [vmem:[#allocation3 + $0xe8] sm:$0xff] }
 0x27c   : > { %v4447_v38 = vadd.f32 %v7052_v22, %v4408_v41  ;;  %v4411_v0 = vld [vmem:[#allocation3 + $0xd8] sm:$0xff]  ;;  %4380 = vst.msk [vmem:[#allocation3 + $0xe0] sm:$0xff] %vm1015_vm15, %v4348_v34  ;;  %v4349_v60 = vadd.f32 %v4308_v55, %v4141_v3 }
 0x27d   : > { %4481 = vst.msk [vmem:[%s7060_s7 + $0xd0] sm:$0xff] %vm1015_vm15, %v4449_v2  ;;  %v4450_v16 = vadd.f32 %v7052_v22, %v4411_v0  ;;  %v4409_v44 = vld [vmem:[#allocation3 + $0xc8] sm:$0xff]  ;;  %4383 = vst.msk [vmem:[#allocation3 + $0xf8] sm:$0xff] %vm1015_vm15, %v4351_v8 }
 0x27e   : > { %4479 = vst.msk [vmem:[%s7060_s7 + $0xc0] sm:$0xff] %vm1015_vm15, %v4447_v38  ;;  %v4448_v62 = vadd.f32 %v7052_v22, %v4409_v44  ;;  %4381 = vst.msk [vmem:[#allocation3 + $0xe8] sm:$0xff] %vm1015_vm15, %v4349_v60 }
 0x27f   : > { %4482 = vst.msk [vmem:[%s7060_s7 + $0xd8] sm:$0xff] %vm1015_vm15, %v4450_v16 }
 0x280   : > { %4480 = vst.msk [vmem:[%s7060_s7 + $0xc8] sm:$0xff] %vm1015_vm15, %v4448_v62 }
 0x282   : > { %v4414_v29 = vld [vmem:[#allocation3 + $0xf0] sm:$0xff] }
 0x283   : > { %v4453_v14 = vadd.f32 %v7052_v22, %v4414_v29  ;;  %v4412_v19 = vld [vmem:[#allocation3 + $0xe0] sm:$0xff] }
 0x284   : > { %v4451_v61 = vadd.f32 %v7052_v22, %v4412_v19  ;;  %v4415_v53 = vld [vmem:[#allocation3 + $0xf8] sm:$0xff] }
 0x285   : > { %4485 = vst.msk [vmem:[%s7060_s7 + $0xf0] sm:$0xff] %vm1015_vm15, %v4453_v14  ;;  %v4454_v37 = vadd.f32 %v7052_v22, %v4415_v53  ;;  %v4413_v33 = vld [vmem:[#allocation3 + $0xe8] sm:$0xff] }
 0x286   : > { %4483 = vst.msk [vmem:[%s7060_s7 + $0xe0] sm:$0xff] %vm1015_vm15, %v4451_v61  ;;  %v4452_v59 = vadd.f32 %v7052_v22, %v4413_v33 }
 0x287   : > { %4486 = vst.msk [vmem:[%s7060_s7 + $0xf8] sm:$0xff] %vm1015_vm15, %v4454_v37 }
 0x288   : > { %4484 = vst.msk [vmem:[%s7060_s7 + $0xe8] sm:$0xff] %vm1015_vm15, %v4452_v59 }
 0x289 PF: > { %s15_s18 = sadd.s32 1, %s5375_s18  }
 0x28a   : > { %p12_p4 = scmp.ge.s32.totalorder %s15_s18, 4  }
 0x28c   :  { %14 = sbr.rel (!%p12_p4) target bundleno = 1 (0x1), region = 79 }

</bundles_post_ra>
